<compile_context>
chip_gen: v6e
topology: v6e:2x2x1
jax: 0.10.0
libtpu: 0.0.40
codegen_flags: <defaults>
</compile_context>

<pallas_src>
import jax
import jax.numpy as jnp
import numpy as np
from jax.experimental import pallas as pl
from jax.experimental.pallas import tpu as pltpu

_VMEM_LIMIT = 48 * 1024 * 1024  # safe on v5e/v6e (128 MiB) and v7x (64 MiB) physical VMEM


def _pick_batch_tile(n, target):
    """Largest multiple-of-8 divisor of n that is <= target (n itself if n % 8 != 0)."""
    if n % 8 == 0:
        t = max(8, (min(target, n) // 8) * 8)
        while n % t:
            t -= 8
        return t
    return n


def _compiler_params():
    return pltpu.CompilerParams(dimension_semantics=("parallel",),
                                vmem_limit_bytes=_VMEM_LIMIT)


# ---------------------------------------------------------------------------
# Kernels
# ---------------------------------------------------------------------------
def _conv1_pool_kernel(p_ref, w_ref, b_ref, o_ref):
    # p_ref: (NB, 200, 36) bf16  patches in pooled-window order;
    #        lane = q*9 + k, q = pooling tap (di*2+dj), k = kh*3+kw; rows 196..199 are pad.
    # w_ref: (36, 128) bf16      block-diagonal conv1 weight (4 copies of the (9,32) kernel)
    # b_ref: (1, 128)  f32       conv1 bias tiled 4x
    # o_ref: (NB, 200, 32) bf16  pooled conv1 output
    nb, r, _ = p_ref.shape
    p = p_ref[...].reshape(nb * r, 36)                       # free merge (r % 8 == 0)
    y = jnp.dot(p, w_ref[...], preferred_element_type=jnp.float32)   # (nb*r, 128)
    y = jnp.maximum(y + b_ref[...], 0.0)
    pooled = jnp.maximum(jnp.maximum(y[:, 0:32], y[:, 32:64]),
                         jnp.maximum(y[:, 64:96], y[:, 96:128]))      # 2x2 maxpool
    o_ref[...] = pooled.reshape(nb, r, 32).astype(o_ref.dtype)


def _conv2_pool_kernel(x_ref, w_ref, b_ref, o_ref):
    # x_ref: (NB, 9, 9, 128) bf16  phase-split padded input: lane = p*32 + cin,
    #         x[n, ii, jj, p*32+c] = padded18[n, 2*ii+ph, 2*jj+pw, c], p = ph*2+pw
    # w_ref: (9, 32, 64) bf16      per-tap conv2 weights (kh*3+kw, cin, cout)
    # b_ref: (1, 64) f32
    # o_ref: (NB, 8, 8, 64) bf16   pooled output on an 8x8 grid (row/col 7 = over-compute)
    nb = x_ref.shape[0]
    rows = nb * 64
    acc = jnp.zeros((4 * rows, 64), jnp.float32)
    for kh in range(3):
        for kw in range(3):
            taps = []
            for di in range(2):
                for dj in range(2):
                    ah, aw = di + kh, dj + kw
                    p = (ah & 1) * 2 + (aw & 1)
                    oh, ow = ah >> 1, aw >> 1
                    t = x_ref[:, oh:oh + 8, ow:ow + 8, 32 * p:32 * (p + 1)]  # (NB,8,8,32)
                    taps.append(t.reshape(rows, 32))                          # free merge
            tap = jnp.concatenate(taps, axis=0)                               # (4*rows, 32)
            acc = acc + jnp.dot(tap, w_ref[kh * 3 + kw],
                                preferred_element_type=jnp.float32)
    y = jnp.maximum(acc + b_ref[...], 0.0)
    pooled = jnp.maximum(jnp.maximum(y[0:rows], y[rows:2 * rows]),
                         jnp.maximum(y[2 * rows:3 * rows], y[3 * rows:4 * rows]))
    o_ref[...] = pooled.reshape(nb, 8, 8, 64).astype(o_ref.dtype)


def _mlp_kernel(x_ref, w1_ref, b1_ref, w2_ref, b2_ref, o_ref):
    # linear1 + ReLU + linear2 fused.  x: (NB, 4096) bf16, output logits f32.
    h = jnp.dot(x_ref[...], w1_ref[...], preferred_element_type=jnp.float32)
    h = jnp.maximum(h + b1_ref[...], 0.0)
    y = jnp.dot(h.astype(w2_ref.dtype), w2_ref[...],
                preferred_element_type=jnp.float32)
    o_ref[...] = (y + b2_ref[...]).astype(o_ref.dtype)


# ---------------------------------------------------------------------------
# Wrappers (thin XLA data prep + pallas_call)
# ---------------------------------------------------------------------------
def conv1_relu_pool(x_nchw, w_blk, b_tiled):
    """conv1(1->32, 3x3, pad 1) + ReLU + 2x2 maxpool in one fused Pallas kernel."""
    n = x_nchw.shape[0]
    x = x_nchw[:, 0].astype(jnp.bfloat16)                   # (N,28,28)
    xp = jnp.pad(x, ((0, 0), (1, 1), (1, 1)))               # (N,30,30)
    taps = jnp.stack([xp[:, kh:kh + 28, kw:kw + 28]
                      for kh in range(3) for kw in range(3)], axis=-1)  # (N,28,28,9)
    # Pooled-window order: row = pooled pos (i*14 + j), lane = (di*2+dj)*9 + k.
    pat = taps.reshape(n, 14, 2, 14, 2, 9).transpose(0, 1, 3, 2, 4, 5).reshape(n, 196, 36)
    pat = jnp.pad(pat, ((0, 0), (0, 4), (0, 0)))            # 196 -> 200 rows (mult. of 8)

    nb = _pick_batch_tile(n, 32)
    out = pl.pallas_call(
        _conv1_pool_kernel,
        out_shape=jax.ShapeDtypeStruct((n, 200, 32), jnp.bfloat16),
        grid_spec=pltpu.PrefetchScalarGridSpec(
            num_scalar_prefetch=0,
            grid=(n // nb,),
            in_specs=[pl.BlockSpec((nb, 200, 36), lambda i: (i, 0, 0)),
                      pl.BlockSpec((36, 128), lambda i: (0, 0)),
                      pl.BlockSpec((1, 128), lambda i: (0, 0))],
            out_specs=pl.BlockSpec((nb, 200, 32), lambda i: (i, 0, 0))),
        compiler_params=_compiler_params(),
    )(pat, w_blk, b_tiled)
    return out[:, :196, :].reshape(n, 14, 14, 32)           # pooled NHWC map


def conv2_relu_pool(x_nhwc, w_taps, b):
    """conv2(32->64, 3x3, pad 1) + ReLU + 2x2 maxpool; in-kernel tap accumulation."""
    n = x_nhwc.shape[0]
    # 14x14 -> 18x18: 1 ring of conv padding + 2 extra rows/cols so the kernel can
    # over-compute a 16x16 pre-pool grid using aligned 8-row tap slabs.
    xpad = jnp.pad(x_nhwc, ((0, 0), (1, 3), (1, 3), (0, 0)))            # (N,18,18,32)
    # Split into 2x2 spatial phases and pack the 4 phases onto 128 lanes.
    xph = xpad.reshape(n, 9, 2, 9, 2, 32).transpose(0, 1, 3, 2, 4, 5).reshape(n, 9, 9, 128)

    nb = _pick_batch_tile(n, 64)
    return pl.pallas_call(
        _conv2_pool_kernel,
        out_shape=jax.ShapeDtypeStruct((n, 8, 8, 64), jnp.bfloat16),
        grid_spec=pltpu.PrefetchScalarGridSpec(
            num_scalar_prefetch=0,
            grid=(n // nb,),
            in_specs=[pl.BlockSpec((nb, 9, 9, 128), lambda i: (i, 0, 0, 0)),
                      pl.BlockSpec((9, 32, 64), lambda i: (0, 0, 0)),
                      pl.BlockSpec((1, 64), lambda i: (0, 0))],
            out_specs=pl.BlockSpec((nb, 8, 8, 64), lambda i: (i, 0, 0, 0))),
        compiler_params=_compiler_params(),
    )(xph, w_taps, b)                                        # (N,8,8,64); [:7,:7] valid


def mlp(x, w1, b1, w2, b2):
    n = x.shape[0]
    nb = _pick_batch_tile(n, 256)
    return pl.pallas_call(
        _mlp_kernel,
        out_shape=jax.ShapeDtypeStruct((n, 10), jnp.float32),
        grid_spec=pltpu.PrefetchScalarGridSpec(
            num_scalar_prefetch=0,
            grid=(n // nb,),
            in_specs=[pl.BlockSpec((nb, 4096), lambda i: (i, 0)),
                      pl.BlockSpec((4096, 128), lambda i: (0, 0)),
                      pl.BlockSpec((1, 128), lambda i: (0, 0)),
                      pl.BlockSpec((128, 10), lambda i: (0, 0)),
                      pl.BlockSpec((1, 10), lambda i: (0, 0))],
            out_specs=pl.BlockSpec((nb, 10), lambda i: (i, 0))),
        compiler_params=_compiler_params(),
    )(x, w1, b1, w2, b2)


# ---------------------------------------------------------------------------
# Parameters
# ---------------------------------------------------------------------------
def init_params(key):
    """Deterministic synthetic parameters, PyTorch shape conventions."""
    ks = jax.random.split(key, 8)
    s = 0.05
    return {
        "conv1_w": jax.random.normal(ks[0], (32, 1, 3, 3), jnp.float32) * s,
        "conv1_b": jax.random.normal(ks[1], (32,), jnp.float32) * s,
        "conv2_w": jax.random.normal(ks[2], (64, 32, 3, 3), jnp.float32) * s,
        "conv2_b": jax.random.normal(ks[3], (64,), jnp.float32) * s,
        "fc1_w":   jax.random.normal(ks[4], (128, 64 * 7 * 7), jnp.float32) * s,
        "fc1_b":   jax.random.normal(ks[5], (128,), jnp.float32) * s,
        "fc2_w":   jax.random.normal(ks[6], (10, 128), jnp.float32) * s,
        "fc2_b":   jax.random.normal(ks[7], (10,), jnp.float32) * s,
    }


def prepare_params(p):
    """One-time permutation / packing / cast of PyTorch-layout params into kernel layouts."""
    f32, bf16 = jnp.float32, jnp.bfloat16
    # conv1: (32,1,3,3) -> (kh,kw,cin,cout) -> (9,32); block-diagonal over 4 pooling taps.
    w1r = jnp.transpose(p["conv1_w"], (2, 3, 1, 0)).reshape(9, 32)
    w1_blk = jnp.zeros((36, 128), f32)
    for q in range(4):
        w1_blk = w1_blk.at[q * 9:(q + 1) * 9, q * 32:(q + 1) * 32].set(w1r)
    b1_t = jnp.tile(p["conv1_b"].reshape(1, 32), (1, 4)).astype(f32)
    # conv2: (64,32,3,3) -> (9, cin, cout).
    w2_t = jnp.transpose(p["conv2_w"], (2, 3, 1, 0)).reshape(9, 32, 64)
    # fc1: fold PyTorch's (C,H,W) flatten order into the weight and embed into the
    # kernel's 8x8-over-computed HWC flatten; garbage positions get exact-zero rows.
    wf = p["fc1_w"].reshape(128, 64, 7, 7).transpose(2, 3, 1, 0)        # (7,7,64,128)
    wf = jnp.pad(wf, ((0, 1), (0, 1), (0, 0), (0, 0))).reshape(4096, 128)
    return {
        "conv1_w": w1_blk.astype(bf16), "conv1_b": b1_t,
        "conv2_w": w2_t.astype(bf16),
        "conv2_b": p["conv2_b"].reshape(1, 64).astype(f32),
        "fc1_w": wf.astype(bf16), "fc1_b": p["fc1_b"].reshape(1, 128).astype(f32),
        "fc2_w": p["fc2_w"].T.astype(bf16),
        "fc2_b": p["fc2_b"].reshape(1, 10).astype(f32),
    }


@jax.jit
def cnn_forward(x_nchw, prep):
    n = x_nchw.shape[0]
    x = conv1_relu_pool(x_nchw, prep["conv1_w"], prep["conv1_b"])   # (N,14,14,32)
    x = conv2_relu_pool(x, prep["conv2_w"], prep["conv2_b"])        # (N,8,8,64)
    x = x.reshape(n, 8 * 8 * 64)                                    # flatten (zero fc1 rows mask over-compute)
    return mlp(x, prep["fc1_w"], prep["fc1_b"], prep["fc2_w"], prep["fc2_b"])


# Pure-JAX reference (mirrors torch semantics) for a correctness sanity check.
def cnn_reference(x_nchw, p):
    dn = ("NCHW", "OIHW", "NCHW")
    x = jax.lax.conv_general_dilated(x_nchw, p["conv1_w"], (1, 1),
                                     ((1, 1), (1, 1)), dimension_numbers=dn)
    x = jnp.maximum(x + p["conv1_b"][None, :, None, None], 0.0)
    x = jax.lax.reduce_window(x, -jnp.inf, jax.lax.max,
                              (1, 1, 2, 2), (1, 1, 2, 2), "VALID")
    x = jax.lax.conv_general_dilated(x, p["conv2_w"], (1, 1),
                                     ((1, 1), (1, 1)), dimension_numbers=dn)
    x = jnp.maximum(x + p["conv2_b"][None, :, None, None], 0.0)
    x = jax.lax.reduce_window(x, -jnp.inf, jax.lax.max,
                              (1, 1, 2, 2), (1, 1, 2, 2), "VALID")
    x = x.reshape(x.shape[0], -1)
    x = jnp.maximum(x @ p["fc1_w"].T + p["fc1_b"], 0.0)
    return x @ p["fc2_w"].T + p["fc2_b"]


if __name__ == "__main__":
    key = jax.random.PRNGKey(0)
    pkey, xkey = jax.random.split(key)
    params = init_params(pkey)
    prep = prepare_params(params)
    # MNIST geometry is forced by linear1 (64*7*7): input must be (N,1,28,28).
    x = jax.random.normal(xkey, (2, 1, 28, 28), jnp.float32)

    out = cnn_forward(x, prep)
    out = jax.block_until_ready(out)
    assert out.shape == (2, 10) and out.dtype == jnp.float32

    ref = cnn_reference(x, params)
    # bf16 matmul operands with f32 accumulation -> slightly looser tolerance.
    np.testing.assert_allclose(np.asarray(out), np.asarray(ref),
                               rtol=2e-2, atol=2e-2)
    print("KERNEL_OK")
</pallas_src>

<mosaic_0001>
module attributes {stable_mosaic.version = 11 : i64} {
  func.func @_conv1_pool_kernel(%arg0: i32, %arg1: memref<2x200x36xbf16, #tpu.memory_space<vmem>>, %arg2: memref<36x128xbf16, #tpu.memory_space<vmem>>, %arg3: memref<1x128xf32, #tpu.memory_space<vmem>>, %arg4: memref<2x200x32xbf16, #tpu.memory_space<vmem>>) attributes {dimension_semantics = [#tpu.dimension_semantics<parallel>], iteration_bounds = array<i64: 1>, scalar_prefetch = 0 : i64, scratch_operands = 0 : i64, tpu.core_type = #tpu.core_type<tc>, window_params = [{transform_indices = @transform_0, window_bounds = array<i64: 2, 200, 36>}, {pipeline_mode = #tpu.pipeline_mode<synchronous>, transform_indices = @transform_1, window_bounds = array<i64: 36, 128>}, {pipeline_mode = #tpu.pipeline_mode<synchronous>, transform_indices = @transform_2, window_bounds = array<i64: 1, 128>}, {transform_indices = @transform_3, window_bounds = array<i64: 2, 200, 32>}]} {
    %c0 = arith.constant 0 : index
    %c0_0 = arith.constant 0 : index
    %c0_1 = arith.constant 0 : index
    %0 = vector.load %arg1[%c0, %c0_0, %c0_1] : memref<2x200x36xbf16, #tpu.memory_space<vmem>>, vector<2x200x36xbf16>
    %1 = vector.shape_cast %0 : vector<2x200x36xbf16> to vector<400x36xbf16>
    %c0_2 = arith.constant 0 : index
    %c0_3 = arith.constant 0 : index
    %2 = vector.load %arg2[%c0_2, %c0_3] : memref<36x128xbf16, #tpu.memory_space<vmem>>, vector<36x128xbf16>
    %cst = arith.constant dense<0.000000e+00> : vector<400x128xf32>
    %3 = tpu.matmul %1, %2, %cst {dimension_numbers = #tpu.dot_dimension_numbers<[1], [0], [0], [1], [0, 0, 1, 1], [], []>} : vector<400x36xbf16>, vector<36x128xbf16>, vector<400x128xf32> -> vector<400x128xf32>
    %c0_4 = arith.constant 0 : index
    %c0_5 = arith.constant 0 : index
    %4 = vector.load %arg3[%c0_4, %c0_5] : memref<1x128xf32, #tpu.memory_space<vmem>>, vector<1x128xf32>
    %5 = vector.broadcast %4 : vector<1x128xf32> to vector<400x128xf32>
    %6 = arith.addf %3, %5 : vector<400x128xf32>
    %cst_6 = arith.constant 0.000000e+00 : f32
    %7 = vector.broadcast %cst_6 : f32 to vector<400x128xf32>
    %8 = arith.maximumf %6, %7 : vector<400x128xf32>
    %9 = vector.extract_strided_slice %8 {offsets = [0, 0], sizes = [400, 32], strides = [1, 1]} : vector<400x128xf32> to vector<400x32xf32>
    %10 = vector.extract_strided_slice %8 {offsets = [0, 32], sizes = [400, 32], strides = [1, 1]} : vector<400x128xf32> to vector<400x32xf32>
    %11 = arith.maximumf %9, %10 : vector<400x32xf32>
    %12 = vector.extract_strided_slice %8 {offsets = [0, 64], sizes = [400, 32], strides = [1, 1]} : vector<400x128xf32> to vector<400x32xf32>
    %13 = vector.extract_strided_slice %8 {offsets = [0, 96], sizes = [400, 32], strides = [1, 1]} : vector<400x128xf32> to vector<400x32xf32>
    %14 = arith.maximumf %12, %13 : vector<400x32xf32>
    %15 = arith.maximumf %11, %14 : vector<400x32xf32>
    %16 = vector.shape_cast %15 : vector<400x32xf32> to vector<2x200x32xf32>
    %17 = arith.truncf %16 : vector<2x200x32xf32> to vector<2x200x32xbf16>
    %c0_7 = arith.constant 0 : index
    %c0_8 = arith.constant 0 : index
    %c0_9 = arith.constant 0 : index
    %18 = vector.load %arg4[%c0_7, %c0_8, %c0_9] : memref<2x200x32xbf16, #tpu.memory_space<vmem>>, vector<2x200x32xbf16>
    tpu.vector_store %arg4[%c0_7, %c0_8, %c0_9], %17 {strides = array<i32>} : memref<2x200x32xbf16, #tpu.memory_space<vmem>>, vector<2x200x32xbf16>,
    return
  }
  func.func @transform_0(%arg0: i32) -> (i32, i32, i32) {
    %c0_i32 = arith.constant 0 : i32
    %c0_i32_0 = arith.constant 0 : i32
    %c0_i32_1 = arith.constant 0 : i32
    return %arg0, %c0_i32, %c0_i32_0 : i32, i32, i32
  }
  func.func @transform_1(%arg0: i32) -> (i32, i32) {
    %c0_i32 = arith.constant 0 : i32
    %c0_i32_0 = arith.constant 0 : i32
    %c0_i32_1 = arith.constant 0 : i32
    return %c0_i32, %c0_i32_0 : i32, i32
  }
  func.func @transform_2(%arg0: i32) -> (i32, i32) {
    %c0_i32 = arith.constant 0 : i32
    %c0_i32_0 = arith.constant 0 : i32
    %c0_i32_1 = arith.constant 0 : i32
    return %c0_i32, %c0_i32_0 : i32, i32
  }
  func.func @transform_3(%arg0: i32) -> (i32, i32, i32) {
    %c0_i32 = arith.constant 0 : i32
    %c0_i32_0 = arith.constant 0 : i32
    %c0_i32_1 = arith.constant 0 : i32
    return %arg0, %c0_i32, %c0_i32_0 : i32, i32, i32
  }
}

module attributes {stable_mosaic.version = 11 : i64} {
  func.func @_conv2_pool_kernel(%arg0: i32, %arg1: memref<2x9x9x128xbf16, #tpu.memory_space<vmem>>, %arg2: memref<9x32x64xbf16, #tpu.memory_space<vmem>>, %arg3: memref<1x64xf32, #tpu.memory_space<vmem>>, %arg4: memref<2x8x8x64xbf16, #tpu.memory_space<vmem>>) attributes {dimension_semantics = [#tpu.dimension_semantics<parallel>], iteration_bounds = array<i64: 1>, scalar_prefetch = 0 : i64, scratch_operands = 0 : i64, tpu.core_type = #tpu.core_type<tc>, window_params = [{transform_indices = @transform_0, window_bounds = array<i64: 2, 9, 9, 128>}, {pipeline_mode = #tpu.pipeline_mode<synchronous>, transform_indices = @transform_1, window_bounds = array<i64: 9, 32, 64>}, {pipeline_mode = #tpu.pipeline_mode<synchronous>, transform_indices = @transform_2, window_bounds = array<i64: 1, 64>}, {transform_indices = @transform_3, window_bounds = array<i64: 2, 8, 8, 64>}]} {
    %cst = arith.constant 0.000000e+00 : f32
    %0 = vector.broadcast %cst : f32 to vector<512x64xf32>
    %c0 = arith.constant 0 : index
    %c0_0 = arith.constant 0 : index
    %c0_1 = arith.constant 0 : index
    %c0_2 = arith.constant 0 : index
    %1 = vector.load %arg1[%c0, %c0_0, %c0_1, %c0_2] : memref<2x9x9x128xbf16, #tpu.memory_space<vmem>>, vector<2x8x8x32xbf16>
    %2 = vector.shape_cast %1 : vector<2x8x8x32xbf16> to vector<128x32xbf16>
    %c0_3 = arith.constant 0 : index
    %c0_4 = arith.constant 0 : index
    %c0_5 = arith.constant 0 : index
    %c32 = arith.constant 32 : index
    %3 = vector.load %arg1[%c0_3, %c0_4, %c0_5, %c32] : memref<2x9x9x128xbf16, #tpu.memory_space<vmem>>, vector<2x8x8x32xbf16>
    %4 = vector.shape_cast %3 : vector<2x8x8x32xbf16> to vector<128x32xbf16>
    %c0_6 = arith.constant 0 : index
    %c0_7 = arith.constant 0 : index
    %c0_8 = arith.constant 0 : index
    %c64 = arith.constant 64 : index
    %5 = vector.load %arg1[%c0_6, %c0_7, %c0_8, %c64] : memref<2x9x9x128xbf16, #tpu.memory_space<vmem>>, vector<2x8x8x32xbf16>
    %6 = vector.shape_cast %5 : vector<2x8x8x32xbf16> to vector<128x32xbf16>
    %c0_9 = arith.constant 0 : index
    %c0_10 = arith.constant 0 : index
    %c0_11 = arith.constant 0 : index
    %c96 = arith.constant 96 : index
    %7 = vector.load %arg1[%c0_9, %c0_10, %c0_11, %c96] : memref<2x9x9x128xbf16, #tpu.memory_space<vmem>>, vector<2x8x8x32xbf16>
    %8 = vector.shape_cast %7 : vector<2x8x8x32xbf16> to vector<128x32xbf16>
    %9 = tpu.concatenate %2, %4, %6, %8 in 0 : vector<128x32xbf16>, vector<128x32xbf16>, vector<128x32xbf16>, vector<128x32xbf16> -> vector<512x32xbf16>
    %c0_12 = arith.constant 0 : index
    %c0_13 = arith.constant 0 : index
    %c0_14 = arith.constant 0 : index
    %10 = vector.load %arg2[%c0_12, %c0_13, %c0_14] : memref<9x32x64xbf16, #tpu.memory_space<vmem>>, vector<1x32x64xbf16>
    %11 = vector.shape_cast %10 : vector<1x32x64xbf16> to vector<32x64xbf16>
    %cst_15 = arith.constant dense<0.000000e+00> : vector<512x64xf32>
    %12 = tpu.matmul %9, %11, %cst_15 {dimension_numbers = #tpu.dot_dimension_numbers<[1], [0], [0], [1], [0, 0, 1, 1], [], []>} : vector<512x32xbf16>, vector<32x64xbf16>, vector<512x64xf32> -> vector<512x64xf32>
    %13 = arith.addf %0, %12 : vector<512x64xf32>
    %c0_16 = arith.constant 0 : index
    %c0_17 = arith.constant 0 : index
    %c0_18 = arith.constant 0 : index
    %c32_19 = arith.constant 32 : index
    %14 = vector.load %arg1[%c0_16, %c0_17, %c0_18, %c32_19] : memref<2x9x9x128xbf16, #tpu.memory_space<vmem>>, vector<2x8x8x32xbf16>
    %15 = vector.shape_cast %14 : vector<2x8x8x32xbf16> to vector<128x32xbf16>
    %c0_20 = arith.constant 0 : index
    %c0_21 = arith.constant 0 : index
    %c1 = arith.constant 1 : index
    %c0_22 = arith.constant 0 : index
    %16 = vector.load %arg1[%c0_20, %c0_21, %c1, %c0_22] : memref<2x9x9x128xbf16, #tpu.memory_space<vmem>>, vector<2x8x8x32xbf16>
    %17 = vector.shape_cast %16 : vector<2x8x8x32xbf16> to vector<128x32xbf16>
    %c0_23 = arith.constant 0 : index
    %c0_24 = arith.constant 0 : index
    %c0_25 = arith.constant 0 : index
    %c96_26 = arith.constant 96 : index
    %18 = vector.load %arg1[%c0_23, %c0_24, %c0_25, %c96_26] : memref<2x9x9x128xbf16, #tpu.memory_space<vmem>>, vector<2x8x8x32xbf16>
    %19 = vector.shape_cast %18 : vector<2x8x8x32xbf16> to vector<128x32xbf16>
    %c0_27 = arith.constant 0 : index
    %c0_28 = arith.constant 0 : index
    %c1_29 = arith.constant 1 : index
    %c64_30 = arith.constant 64 : index
    %20 = vector.load %arg1[%c0_27, %c0_28, %c1_29, %c64_30] : memref<2x9x9x128xbf16, #tpu.memory_space<vmem>>, vector<2x8x8x32xbf16>
    %21 = vector.shape_cast %20 : vector<2x8x8x32xbf16> to vector<128x32xbf16>
    %22 = tpu.concatenate %15, %17, %19, %21 in 0 : vector<128x32xbf16>, vector<128x32xbf16>, vector<128x32xbf16>, vector<128x32xbf16> -> vector<512x32xbf16>
    %c1_31 = arith.constant 1 : index
    %c0_32 = arith.constant 0 : index
    %c0_33 = arith.constant 0 : index
    %23 = vector.load %arg2[%c1_31, %c0_32, %c0_33] : memref<9x32x64xbf16, #tpu.memory_space<vmem>>, vector<1x32x64xbf16>
    %24 = vector.shape_cast %23 : vector<1x32x64xbf16> to vector<32x64xbf16>
    %cst_34 = arith.constant dense<0.000000e+00> : vector<512x64xf32>
    %25 = tpu.matmul %22, %24, %cst_34 {dimension_numbers = #tpu.dot_dimension_numbers<[1], [0], [0], [1], [0, 0, 1, 1], [], []>} : vector<512x32xbf16>, vector<32x64xbf16>, vector<512x64xf32> -> vector<512x64xf32>
    %26 = arith.addf %13, %25 : vector<512x64xf32>
    %c0_35 = arith.constant 0 : index
    %c0_36 = arith.constant 0 : index
    %c1_37 = arith.constant 1 : index
    %c0_38 = arith.constant 0 : index
    %27 = vector.load %arg1[%c0_35, %c0_36, %c1_37, %c0_38] : memref<2x9x9x128xbf16, #tpu.memory_space<vmem>>, vector<2x8x8x32xbf16>
    %28 = vector.shape_cast %27 : vector<2x8x8x32xbf16> to vector<128x32xbf16>
    %c0_39 = arith.constant 0 : index
    %c0_40 = arith.constant 0 : index
    %c1_41 = arith.constant 1 : index
    %c32_42 = arith.constant 32 : index
    %29 = vector.load %arg1[%c0_39, %c0_40, %c1_41, %c32_42] : memref<2x9x9x128xbf16, #tpu.memory_space<vmem>>, vector<2x8x8x32xbf16>
    %30 = vector.shape_cast %29 : vector<2x8x8x32xbf16> to vector<128x32xbf16>
    %c0_43 = arith.constant 0 : index
    %c0_44 = arith.constant 0 : index
    %c1_45 = arith.constant 1 : index
    %c64_46 = arith.constant 64 : index
    %31 = vector.load %arg1[%c0_43, %c0_44, %c1_45, %c64_46] : memref<2x9x9x128xbf16, #tpu.memory_space<vmem>>, vector<2x8x8x32xbf16>
    %32 = vector.shape_cast %31 : vector<2x8x8x32xbf16> to vector<128x32xbf16>
    %c0_47 = arith.constant 0 : index
    %c0_48 = arith.constant 0 : index
    %c1_49 = arith.constant 1 : index
    %c96_50 = arith.constant 96 : index
    %33 = vector.load %arg1[%c0_47, %c0_48, %c1_49, %c96_50] : memref<2x9x9x128xbf16, #tpu.memory_space<vmem>>, vector<2x8x8x32xbf16>
    %34 = vector.shape_cast %33 : vector<2x8x8x32xbf16> to vector<128x32xbf16>
    %35 = tpu.concatenate %28, %30, %32, %34 in 0 : vector<128x32xbf16>, vector<128x32xbf16>, vector<128x32xbf16>, vector<128x32xbf16> -> vector<512x32xbf16>
    %c2 = arith.constant 2 : index
    %c0_51 = arith.constant 0 : index
    %c0_52 = arith.constant 0 : index
    %36 = vector.load %arg2[%c2, %c0_51, %c0_52] : memref<9x32x64xbf16, #tpu.memory_space<vmem>>, vector<1x32x64xbf16>
    %37 = vector.shape_cast %36 : vector<1x32x64xbf16> to vector<32x64xbf16>
    %cst_53 = arith.constant dense<0.000000e+00> : vector<512x64xf32>
    %38 = tpu.matmul %35, %37, %cst_53 {dimension_numbers = #tpu.dot_dimension_numbers<[1], [0], [0], [1], [0, 0, 1, 1], [], []>} : vector<512x32xbf16>, vector<32x64xbf16>, vector<512x64xf32> -> vector<512x64xf32>
    %39 = arith.addf %26, %38 : vector<512x64xf32>
    %c0_54 = arith.constant 0 : index
    %c0_55 = arith.constant 0 : index
    %c0_56 = arith.constant 0 : index
    %c64_57 = arith.constant 64 : index
    %40 = vector.load %arg1[%c0_54, %c0_55, %c0_56, %c64_57] : memref<2x9x9x128xbf16, #tpu.memory_space<vmem>>, vector<2x8x8x32xbf16>
    %41 = vector.shape_cast %40 : vector<2x8x8x32xbf16> to vector<128x32xbf16>
    %c0_58 = arith.constant 0 : index
    %c0_59 = arith.constant 0 : index
    %c0_60 = arith.constant 0 : index
    %c96_61 = arith.constant 96 : index
    %42 = vector.load %arg1[%c0_58, %c0_59, %c0_60, %c96_61] : memref<2x9x9x128xbf16, #tpu.memory_space<vmem>>, vector<2x8x8x32xbf16>
    %43 = vector.shape_cast %42 : vector<2x8x8x32xbf16> to vector<128x32xbf16>
    %c0_62 = arith.constant 0 : index
    %c1_63 = arith.constant 1 : index
    %c0_64 = arith.constant 0 : index
    %c0_65 = arith.constant 0 : index
    %44 = vector.load %arg1[%c0_62, %c1_63, %c0_64, %c0_65] : memref<2x9x9x128xbf16, #tpu.memory_space<vmem>>, vector<2x8x8x32xbf16>
    %45 = vector.shape_cast %44 : vector<2x8x8x32xbf16> to vector<128x32xbf16>
    %c0_66 = arith.constant 0 : index
    %c1_67 = arith.constant 1 : index
    %c0_68 = arith.constant 0 : index
    %c32_69 = arith.constant 32 : index
    %46 = vector.load %arg1[%c0_66, %c1_67, %c0_68, %c32_69] : memref<2x9x9x128xbf16, #tpu.memory_space<vmem>>, vector<2x8x8x32xbf16>
    %47 = vector.shape_cast %46 : vector<2x8x8x32xbf16> to vector<128x32xbf16>
    %48 = tpu.concatenate %41, %43, %45, %47 in 0 : vector<128x32xbf16>, vector<128x32xbf16>, vector<128x32xbf16>, vector<128x32xbf16> -> vector<512x32xbf16>
    %c3 = arith.constant 3 : index
    %c0_70 = arith.constant 0 : index
    %c0_71 = arith.constant 0 : index
    %49 = vector.load %arg2[%c3, %c0_70, %c0_71] : memref<9x32x64xbf16, #tpu.memory_space<vmem>>, vector<1x32x64xbf16>
    %50 = vector.shape_cast %49 : vector<1x32x64xbf16> to vector<32x64xbf16>
    %cst_72 = arith.constant dense<0.000000e+00> : vector<512x64xf32>
    %51 = tpu.matmul %48, %50, %cst_72 {dimension_numbers = #tpu.dot_dimension_numbers<[1], [0], [0], [1], [0, 0, 1, 1], [], []>} : vector<512x32xbf16>, vector<32x64xbf16>, vector<512x64xf32> -> vector<512x64xf32>
    %52 = arith.addf %39, %51 : vector<512x64xf32>
    %c0_73 = arith.constant 0 : index
    %c0_74 = arith.constant 0 : index
    %c0_75 = arith.constant 0 : index
    %c96_76 = arith.constant 96 : index
    %53 = vector.load %arg1[%c0_73, %c0_74, %c0_75, %c96_76] : memref<2x9x9x128xbf16, #tpu.memory_space<vmem>>, vector<2x8x8x32xbf16>
    %54 = vector.shape_cast %53 : vector<2x8x8x32xbf16> to vector<128x32xbf16>
    %c0_77 = arith.constant 0 : index
    %c0_78 = arith.constant 0 : index
    %c1_79 = arith.constant 1 : index
    %c64_80 = arith.constant 64 : index
    %55 = vector.load %arg1[%c0_77, %c0_78, %c1_79, %c64_80] : memref<2x9x9x128xbf16, #tpu.memory_space<vmem>>, vector<2x8x8x32xbf16>
    %56 = vector.shape_cast %55 : vector<2x8x8x32xbf16> to vector<128x32xbf16>
    %c0_81 = arith.constant 0 : index
    %c1_82 = arith.constant 1 : index
    %c0_83 = arith.constant 0 : index
    %c32_84 = arith.constant 32 : index
    %57 = vector.load %arg1[%c0_81, %c1_82, %c0_83, %c32_84] : memref<2x9x9x128xbf16, #tpu.memory_space<vmem>>, vector<2x8x8x32xbf16>
    %58 = vector.shape_cast %57 : vector<2x8x8x32xbf16> to vector<128x32xbf16>
    %c0_85 = arith.constant 0 : index
    %c1_86 = arith.constant 1 : index
    %c1_87 = arith.constant 1 : index
    %c0_88 = arith.constant 0 : index
    %59 = vector.load %arg1[%c0_85, %c1_86, %c1_87, %c0_88] : memref<2x9x9x128xbf16, #tpu.memory_space<vmem>>, vector<2x8x8x32xbf16>
    %60 = vector.shape_cast %59 : vector<2x8x8x32xbf16> to vector<128x32xbf16>
    %61 = tpu.concatenate %54, %56, %58, %60 in 0 : vector<128x32xbf16>, vector<128x32xbf16>, vector<128x32xbf16>, vector<128x32xbf16> -> vector<512x32xbf16>
    %c4 = arith.constant 4 : index
    %c0_89 = arith.constant 0 : index
    %c0_90 = arith.constant 0 : index
    %62 = vector.load %arg2[%c4, %c0_89, %c0_90] : memref<9x32x64xbf16, #tpu.memory_space<vmem>>, vector<1x32x64xbf16>
    %63 = vector.shape_cast %62 : vector<1x32x64xbf16> to vector<32x64xbf16>
    %cst_91 = arith.constant dense<0.000000e+00> : vector<512x64xf32>
    %64 = tpu.matmul %61, %63, %cst_91 {dimension_numbers = #tpu.dot_dimension_numbers<[1], [0], [0], [1], [0, 0, 1, 1], [], []>} : vector<512x32xbf16>, vector<32x64xbf16>, vector<512x64xf32> -> vector<512x64xf32>
    %65 = arith.addf %52, %64 : vector<512x64xf32>
    %c0_92 = arith.constant 0 : index
    %c0_93 = arith.constant 0 : index
    %c1_94 = arith.constant 1 : index
    %c64_95 = arith.constant 64 : index
    %66 = vector.load %arg1[%c0_92, %c0_93, %c1_94, %c64_95] : memref<2x9x9x128xbf16, #tpu.memory_space<vmem>>, vector<2x8x8x32xbf16>
    %67 = vector.shape_cast %66 : vector<2x8x8x32xbf16> to vector<128x32xbf16>
    %c0_96 = arith.constant 0 : index
    %c0_97 = arith.constant 0 : index
    %c1_98 = arith.constant 1 : index
    %c96_99 = arith.constant 96 : index
    %68 = vector.load %arg1[%c0_96, %c0_97, %c1_98, %c96_99] : memref<2x9x9x128xbf16, #tpu.memory_space<vmem>>, vector<2x8x8x32xbf16>
    %69 = vector.shape_cast %68 : vector<2x8x8x32xbf16> to vector<128x32xbf16>
    %c0_100 = arith.constant 0 : index
    %c1_101 = arith.constant 1 : index
    %c1_102 = arith.constant 1 : index
    %c0_103 = arith.constant 0 : index
    %70 = vector.load %arg1[%c0_100, %c1_101, %c1_102, %c0_103] : memref<2x9x9x128xbf16, #tpu.memory_space<vmem>>, vector<2x8x8x32xbf16>
    %71 = vector.shape_cast %70 : vector<2x8x8x32xbf16> to vector<128x32xbf16>
    %c0_104 = arith.constant 0 : index
    %c1_105 = arith.constant 1 : index
    %c1_106 = arith.constant 1 : index
    %c32_107 = arith.constant 32 : index
    %72 = vector.load %arg1[%c0_104, %c1_105, %c1_106, %c32_107] : memref<2x9x9x128xbf16, #tpu.memory_space<vmem>>, vector<2x8x8x32xbf16>
    %73 = vector.shape_cast %72 : vector<2x8x8x32xbf16> to vector<128x32xbf16>
    %74 = tpu.concatenate %67, %69, %71, %73 in 0 : vector<128x32xbf16>, vector<128x32xbf16>, vector<128x32xbf16>, vector<128x32xbf16> -> vector<512x32xbf16>
    %c5 = arith.constant 5 : index
    %c0_108 = arith.constant 0 : index
    %c0_109 = arith.constant 0 : index
    %75 = vector.load %arg2[%c5, %c0_108, %c0_109] : memref<9x32x64xbf16, #tpu.memory_space<vmem>>, vector<1x32x64xbf16>
    %76 = vector.shape_cast %75 : vector<1x32x64xbf16> to vector<32x64xbf16>
    %cst_110 = arith.constant dense<0.000000e+00> : vector<512x64xf32>
    %77 = tpu.matmul %74, %76, %cst_110 {dimension_numbers = #tpu.dot_dimension_numbers<[1], [0], [0], [1], [0, 0, 1, 1], [], []>} : vector<512x32xbf16>, vector<32x64xbf16>, vector<512x64xf32> -> vector<512x64xf32>
    %78 = arith.addf %65, %77 : vector<512x64xf32>
    %c0_111 = arith.constant 0 : index
    %c1_112 = arith.constant 1 : index
    %c0_113 = arith.constant 0 : index
    %c0_114 = arith.constant 0 : index
    %79 = vector.load %arg1[%c0_111, %c1_112, %c0_113, %c0_114] : memref<2x9x9x128xbf16, #tpu.memory_space<vmem>>, vector<2x8x8x32xbf16>
    %80 = vector.shape_cast %79 : vector<2x8x8x32xbf16> to vector<128x32xbf16>
    %c0_115 = arith.constant 0 : index
    %c1_116 = arith.constant 1 : index
    %c0_117 = arith.constant 0 : index
    %c32_118 = arith.constant 32 : index
    %81 = vector.load %arg1[%c0_115, %c1_116, %c0_117, %c32_118] : memref<2x9x9x128xbf16, #tpu.memory_space<vmem>>, vector<2x8x8x32xbf16>
    %82 = vector.shape_cast %81 : vector<2x8x8x32xbf16> to vector<128x32xbf16>
    %c0_119 = arith.constant 0 : index
    %c1_120 = arith.constant 1 : index
    %c0_121 = arith.constant 0 : index
    %c64_122 = arith.constant 64 : index
    %83 = vector.load %arg1[%c0_119, %c1_120, %c0_121, %c64_122] : memref<2x9x9x128xbf16, #tpu.memory_space<vmem>>, vector<2x8x8x32xbf16>
    %84 = vector.shape_cast %83 : vector<2x8x8x32xbf16> to vector<128x32xbf16>
    %c0_123 = arith.constant 0 : index
    %c1_124 = arith.constant 1 : index
    %c0_125 = arith.constant 0 : index
    %c96_126 = arith.constant 96 : index
    %85 = vector.load %arg1[%c0_123, %c1_124, %c0_125, %c96_126] : memref<2x9x9x128xbf16, #tpu.memory_space<vmem>>, vector<2x8x8x32xbf16>
    %86 = vector.shape_cast %85 : vector<2x8x8x32xbf16> to vector<128x32xbf16>
    %87 = tpu.concatenate %80, %82, %84, %86 in 0 : vector<128x32xbf16>, vector<128x32xbf16>, vector<128x32xbf16>, vector<128x32xbf16> -> vector<512x32xbf16>
    %c6 = arith.constant 6 : index
    %c0_127 = arith.constant 0 : index
    %c0_128 = arith.constant 0 : index
    %88 = vector.load %arg2[%c6, %c0_127, %c0_128] : memref<9x32x64xbf16, #tpu.memory_space<vmem>>, vector<1x32x64xbf16>
    %89 = vector.shape_cast %88 : vector<1x32x64xbf16> to vector<32x64xbf16>
    %cst_129 = arith.constant dense<0.000000e+00> : vector<512x64xf32>
    %90 = tpu.matmul %87, %89, %cst_129 {dimension_numbers = #tpu.dot_dimension_numbers<[1], [0], [0], [1], [0, 0, 1, 1], [], []>} : vector<512x32xbf16>, vector<32x64xbf16>, vector<512x64xf32> -> vector<512x64xf32>
    %91 = arith.addf %78, %90 : vector<512x64xf32>
    %c0_130 = arith.constant 0 : index
    %c1_131 = arith.constant 1 : index
    %c0_132 = arith.constant 0 : index
    %c32_133 = arith.constant 32 : index
    %92 = vector.load %arg1[%c0_130, %c1_131, %c0_132, %c32_133] : memref<2x9x9x128xbf16, #tpu.memory_space<vmem>>, vector<2x8x8x32xbf16>
    %93 = vector.shape_cast %92 : vector<2x8x8x32xbf16> to vector<128x32xbf16>
    %c0_134 = arith.constant 0 : index
    %c1_135 = arith.constant 1 : index
    %c1_136 = arith.constant 1 : index
    %c0_137 = arith.constant 0 : index
    %94 = vector.load %arg1[%c0_134, %c1_135, %c1_136, %c0_137] : memref<2x9x9x128xbf16, #tpu.memory_space<vmem>>, vector<2x8x8x32xbf16>
    %95 = vector.shape_cast %94 : vector<2x8x8x32xbf16> to vector<128x32xbf16>
    %c0_138 = arith.constant 0 : index
    %c1_139 = arith.constant 1 : index
    %c0_140 = arith.constant 0 : index
    %c96_141 = arith.constant 96 : index
    %96 = vector.load %arg1[%c0_138, %c1_139, %c0_140, %c96_141] : memref<2x9x9x128xbf16, #tpu.memory_space<vmem>>, vector<2x8x8x32xbf16>
    %97 = vector.shape_cast %96 : vector<2x8x8x32xbf16> to vector<128x32xbf16>
    %c0_142 = arith.constant 0 : index
    %c1_143 = arith.constant 1 : index
    %c1_144 = arith.constant 1 : index
    %c64_145 = arith.constant 64 : index
    %98 = vector.load %arg1[%c0_142, %c1_143, %c1_144, %c64_145] : memref<2x9x9x128xbf16, #tpu.memory_space<vmem>>, vector<2x8x8x32xbf16>
    %99 = vector.shape_cast %98 : vector<2x8x8x32xbf16> to vector<128x32xbf16>
    %100 = tpu.concatenate %93, %95, %97, %99 in 0 : vector<128x32xbf16>, vector<128x32xbf16>, vector<128x32xbf16>, vector<128x32xbf16> -> vector<512x32xbf16>
    %c7 = arith.constant 7 : index
    %c0_146 = arith.constant 0 : index
    %c0_147 = arith.constant 0 : index
    %101 = vector.load %arg2[%c7, %c0_146, %c0_147] : memref<9x32x64xbf16, #tpu.memory_space<vmem>>, vector<1x32x64xbf16>
    %102 = vector.shape_cast %101 : vector<1x32x64xbf16> to vector<32x64xbf16>
    %cst_148 = arith.constant dense<0.000000e+00> : vector<512x64xf32>
    %103 = tpu.matmul %100, %102, %cst_148 {dimension_numbers = #tpu.dot_dimension_numbers<[1], [0], [0], [1], [0, 0, 1, 1], [], []>} : vector<512x32xbf16>, vector<32x64xbf16>, vector<512x64xf32> -> vector<512x64xf32>
    %104 = arith.addf %91, %103 : vector<512x64xf32>
    %c0_149 = arith.constant 0 : index
    %c1_150 = arith.constant 1 : index
    %c1_151 = arith.constant 1 : index
    %c0_152 = arith.constant 0 : index
    %105 = vector.load %arg1[%c0_149, %c1_150, %c1_151, %c0_152] : memref<2x9x9x128xbf16, #tpu.memory_space<vmem>>, vector<2x8x8x32xbf16>
    %106 = vector.shape_cast %105 : vector<2x8x8x32xbf16> to vector<128x32xbf16>
    %c0_153 = arith.constant 0 : index
    %c1_154 = arith.constant 1 : index
    %c1_155 = arith.constant 1 : index
    %c32_156 = arith.constant 32 : index
    %107 = vector.load %arg1[%c0_153, %c1_154, %c1_155, %c32_156] : memref<2x9x9x128xbf16, #tpu.memory_space<vmem>>, vector<2x8x8x32xbf16>
    %108 = vector.shape_cast %107 : vector<2x8x8x32xbf16> to vector<128x32xbf16>
    %c0_157 = arith.constant 0 : index
    %c1_158 = arith.constant 1 : index
    %c1_159 = arith.constant 1 : index
    %c64_160 = arith.constant 64 : index
    %109 = vector.load %arg1[%c0_157, %c1_158, %c1_159, %c64_160] : memref<2x9x9x128xbf16, #tpu.memory_space<vmem>>, vector<2x8x8x32xbf16>
    %110 = vector.shape_cast %109 : vector<2x8x8x32xbf16> to vector<128x32xbf16>
    %c0_161 = arith.constant 0 : index
    %c1_162 = arith.constant 1 : index
    %c1_163 = arith.constant 1 : index
    %c96_164 = arith.constant 96 : index
    %111 = vector.load %arg1[%c0_161, %c1_162, %c1_163, %c96_164] : memref<2x9x9x128xbf16, #tpu.memory_space<vmem>>, vector<2x8x8x32xbf16>
    %112 = vector.shape_cast %111 : vector<2x8x8x32xbf16> to vector<128x32xbf16>
    %113 = tpu.concatenate %106, %108, %110, %112 in 0 : vector<128x32xbf16>, vector<128x32xbf16>, vector<128x32xbf16>, vector<128x32xbf16> -> vector<512x32xbf16>
    %c8 = arith.constant 8 : index
    %c0_165 = arith.constant 0 : index
    %c0_166 = arith.constant 0 : index
    %114 = vector.load %arg2[%c8, %c0_165, %c0_166] : memref<9x32x64xbf16, #tpu.memory_space<vmem>>, vector<1x32x64xbf16>
    %115 = vector.shape_cast %114 : vector<1x32x64xbf16> to vector<32x64xbf16>
    %cst_167 = arith.constant dense<0.000000e+00> : vector<512x64xf32>
    %116 = tpu.matmul %113, %115, %cst_167 {dimension_numbers = #tpu.dot_dimension_numbers<[1], [0], [0], [1], [0, 0, 1, 1], [], []>} : vector<512x32xbf16>, vector<32x64xbf16>, vector<512x64xf32> -> vector<512x64xf32>
    %117 = arith.addf %104, %116 : vector<512x64xf32>
    %c0_168 = arith.constant 0 : index
    %c0_169 = arith.constant 0 : index
    %118 = vector.load %arg3[%c0_168, %c0_169] : memref<1x64xf32, #tpu.memory_space<vmem>>, vector<1x64xf32>
    %119 = vector.broadcast %118 : vector<1x64xf32> to vector<512x64xf32>
    %120 = arith.addf %117, %119 : vector<512x64xf32>
    %cst_170 = arith.constant 0.000000e+00 : f32
    %121 = vector.broadcast %cst_170 : f32 to vector<512x64xf32>
    %122 = arith.maximumf %120, %121 : vector<512x64xf32>
    %123 = vector.extract_strided_slice %122 {offsets = [0, 0], sizes = [128, 64], strides = [1, 1]} : vector<512x64xf32> to vector<128x64xf32>
    %124 = vector.extract_strided_slice %122 {offsets = [128, 0], sizes = [128, 64], strides = [1, 1]} : vector<512x64xf32> to vector<128x64xf32>
    %125 = arith.maximumf %123, %124 : vector<128x64xf32>
    %126 = vector.extract_strided_slice %122 {offsets = [256, 0], sizes = [128, 64], strides = [1, 1]} : vector<512x64xf32> to vector<128x64xf32>
    %127 = vector.extract_strided_slice %122 {offsets = [384, 0], sizes = [128, 64], strides = [1, 1]} : vector<512x64xf32> to vector<128x64xf32>
    %128 = arith.maximumf %126, %127 : vector<128x64xf32>
    %129 = arith.maximumf %125, %128 : vector<128x64xf32>
    %130 = vector.shape_cast %129 : vector<128x64xf32> to vector<2x8x8x64xf32>
    %131 = arith.truncf %130 : vector<2x8x8x64xf32> to vector<2x8x8x64xbf16>
    %c0_171 = arith.constant 0 : index
    %c0_172 = arith.constant 0 : index
    %c0_173 = arith.constant 0 : index
    %c0_174 = arith.constant 0 : index
    %132 = vector.load %arg4[%c0_171, %c0_172, %c0_173, %c0_174] : memref<2x8x8x64xbf16, #tpu.memory_space<vmem>>, vector<2x8x8x64xbf16>
    tpu.vector_store %arg4[%c0_171, %c0_172, %c0_173, %c0_174], %131 {strides = array<i32>} : memref<2x8x8x64xbf16, #tpu.memory_space<vmem>>, vector<2x8x8x64xbf16>,
    return
  }
  func.func @transform_0(%arg0: i32) -> (i32, i32, i32, i32) {
    %c0_i32 = arith.constant 0 : i32
    %c0_i32_0 = arith.constant 0 : i32
    %c0_i32_1 = arith.constant 0 : i32
    %c0_i32_2 = arith.constant 0 : i32
    return %arg0, %c0_i32, %c0_i32_0, %c0_i32_1 : i32, i32, i32, i32
  }
  func.func @transform_1(%arg0: i32) -> (i32, i32, i32) {
    %c0_i32 = arith.constant 0 : i32
    %c0_i32_0 = arith.constant 0 : i32
    %c0_i32_1 = arith.constant 0 : i32
    %c0_i32_2 = arith.constant 0 : i32
    return %c0_i32, %c0_i32_0, %c0_i32_1 : i32, i32, i32
  }
  func.func @transform_2(%arg0: i32) -> (i32, i32) {
    %c0_i32 = arith.constant 0 : i32
    %c0_i32_0 = arith.constant 0 : i32
    %c0_i32_1 = arith.constant 0 : i32
    return %c0_i32, %c0_i32_0 : i32, i32
  }
  func.func @transform_3(%arg0: i32) -> (i32, i32, i32, i32) {
    %c0_i32 = arith.constant 0 : i32
    %c0_i32_0 = arith.constant 0 : i32
    %c0_i32_1 = arith.constant 0 : i32
    %c0_i32_2 = arith.constant 0 : i32
    return %arg0, %c0_i32, %c0_i32_0, %c0_i32_1 : i32, i32, i32, i32
  }
}

module attributes {stable_mosaic.version = 11 : i64} {
  func.func @_mlp_kernel(%arg0: i32, %arg1: memref<2x4096xbf16, #tpu.memory_space<vmem>>, %arg2: memref<4096x128xbf16, #tpu.memory_space<vmem>>, %arg3: memref<1x128xf32, #tpu.memory_space<vmem>>, %arg4: memref<128x10xbf16, #tpu.memory_space<vmem>>, %arg5: memref<1x10xf32, #tpu.memory_space<vmem>>, %arg6: memref<2x10xf32, #tpu.memory_space<vmem>>) attributes {dimension_semantics = [#tpu.dimension_semantics<parallel>], iteration_bounds = array<i64: 1>, scalar_prefetch = 0 : i64, scratch_operands = 0 : i64, tpu.core_type = #tpu.core_type<tc>, window_params = [{transform_indices = @transform_0, window_bounds = array<i64: 2, 4096>}, {pipeline_mode = #tpu.pipeline_mode<synchronous>, transform_indices = @transform_1, window_bounds = array<i64: 4096, 128>}, {pipeline_mode = #tpu.pipeline_mode<synchronous>, transform_indices = @transform_2, window_bounds = array<i64: 1, 128>}, {pipeline_mode = #tpu.pipeline_mode<synchronous>, transform_indices = @transform_3, window_bounds = array<i64: 128, 10>}, {pipeline_mode = #tpu.pipeline_mode<synchronous>, transform_indices = @transform_4, window_bounds = array<i64: 1, 10>}, {transform_indices = @transform_5, window_bounds = array<i64: 2, 10>}]} {
    %c0 = arith.constant 0 : index
    %c0_0 = arith.constant 0 : index
    %0 = vector.load %arg1[%c0, %c0_0] : memref<2x4096xbf16, #tpu.memory_space<vmem>>, vector<2x4096xbf16>
    %c0_1 = arith.constant 0 : index
    %c0_2 = arith.constant 0 : index
    %1 = vector.load %arg2[%c0_1, %c0_2] : memref<4096x128xbf16, #tpu.memory_space<vmem>>, vector<4096x128xbf16>
    %cst = arith.constant dense<0.000000e+00> : vector<2x128xf32>
    %2 = tpu.matmul %0, %1, %cst {dimension_numbers = #tpu.dot_dimension_numbers<[1], [0], [0], [1], [0, 0, 1, 1], [], []>} : vector<2x4096xbf16>, vector<4096x128xbf16>, vector<2x128xf32> -> vector<2x128xf32>
    %c0_3 = arith.constant 0 : index
    %c0_4 = arith.constant 0 : index
    %3 = vector.load %arg3[%c0_3, %c0_4] : memref<1x128xf32, #tpu.memory_space<vmem>>, vector<1x128xf32>
    %4 = vector.broadcast %3 : vector<1x128xf32> to vector<2x128xf32>
    %5 = arith.addf %2, %4 : vector<2x128xf32>
    %cst_5 = arith.constant 0.000000e+00 : f32
    %6 = vector.broadcast %cst_5 : f32 to vector<2x128xf32>
    %7 = arith.maximumf %5, %6 : vector<2x128xf32>
    %8 = arith.truncf %7 : vector<2x128xf32> to vector<2x128xbf16>
    %c0_6 = arith.constant 0 : index
    %c0_7 = arith.constant 0 : index
    %9 = vector.load %arg4[%c0_6, %c0_7] : memref<128x10xbf16, #tpu.memory_space<vmem>>, vector<128x10xbf16>
    %cst_8 = arith.constant dense<0.000000e+00> : vector<2x10xf32>
    %10 = tpu.matmul %8, %9, %cst_8 {dimension_numbers = #tpu.dot_dimension_numbers<[1], [0], [0], [1], [0, 0, 1, 1], [], []>} : vector<2x128xbf16>, vector<128x10xbf16>, vector<2x10xf32> -> vector<2x10xf32>
    %c0_9 = arith.constant 0 : index
    %c0_10 = arith.constant 0 : index
    %11 = vector.load %arg5[%c0_9, %c0_10] : memref<1x10xf32, #tpu.memory_space<vmem>>, vector<1x10xf32>
    %12 = vector.broadcast %11 : vector<1x10xf32> to vector<2x10xf32>
    %13 = arith.addf %10, %12 : vector<2x10xf32>
    %c0_11 = arith.constant 0 : index
    %c0_12 = arith.constant 0 : index
    %14 = vector.load %arg6[%c0_11, %c0_12] : memref<2x10xf32, #tpu.memory_space<vmem>>, vector<2x10xf32>
    tpu.vector_store %arg6[%c0_11, %c0_12], %13 {strides = array<i32>} : memref<2x10xf32, #tpu.memory_space<vmem>>, vector<2x10xf32>,
    return
  }
  func.func @transform_0(%arg0: i32) -> (i32, i32) {
    %c0_i32 = arith.constant 0 : i32
    %c0_i32_0 = arith.constant 0 : i32
    return %arg0, %c0_i32 : i32, i32
  }
  func.func @transform_1(%arg0: i32) -> (i32, i32) {
    %c0_i32 = arith.constant 0 : i32
    %c0_i32_0 = arith.constant 0 : i32
    %c0_i32_1 = arith.constant 0 : i32
    return %c0_i32, %c0_i32_0 : i32, i32
  }
  func.func @transform_2(%arg0: i32) -> (i32, i32) {
    %c0_i32 = arith.constant 0 : i32
    %c0_i32_0 = arith.constant 0 : i32
    %c0_i32_1 = arith.constant 0 : i32
    return %c0_i32, %c0_i32_0 : i32, i32
  }
  func.func @transform_3(%arg0: i32) -> (i32, i32) {
    %c0_i32 = arith.constant 0 : i32
    %c0_i32_0 = arith.constant 0 : i32
    %c0_i32_1 = arith.constant 0 : i32
    return %c0_i32, %c0_i32_0 : i32, i32
  }
  func.func @transform_4(%arg0: i32) -> (i32, i32) {
    %c0_i32 = arith.constant 0 : i32
    %c0_i32_0 = arith.constant 0 : i32
    %c0_i32_1 = arith.constant 0 : i32
    return %c0_i32, %c0_i32_0 : i32, i32
  }
  func.func @transform_5(%arg0: i32) -> (i32, i32) {
    %c0_i32 = arith.constant 0 : i32
    %c0_i32_0 = arith.constant 0 : i32
    return %arg0, %c0_i32 : i32, i32
  }
}

</mosaic_0001>

<bundles_post_ra>
// kernel: cnn_forward.3
= control target key start
LH: loop header
LB: loop body
LE: loop exit
PB: predicated region body
PF: predicated region fallthrough
CT: control target
= control target key end

     0   :  { %vm293_vm0 = vcmask 1041408   ;;  %v1913_v0 = vmov 0.0   ;;  %vm1914_vm1 = vmmov 0   ;;  %vm217_vm2 = vcmask 293888   ;;  %s2957_s1 = inlined_call_operand.vmem [shape: bf16[36,128], index: 1, kind: input, shape index: {}]   ;;  %s2958_s0 = inlined_call_operand.vmem [shape: bf16[2,200,36], index: 0, kind: input, shape index: {}]   ;;  %s2959_s2 = inlined_call_operand.vmem [shape: f32[1,128], index: 2, kind: input, shape index: {}]   ;;  %s2960_s3 = inlined_call_operand.vmem [shape: bf16[2,200,32], index: 3, kind: output, shape index: {}]  }
   0x1   :  { %1519 = vmatprep.subr.bf16.mxu0 %v1913_v0  ;;  %1625 = vmatprep.subr.bf16.mxu1 %v1913_v0  ;;  %v1885_v1 = vld [vmem:[%s2957_s1 + $0x10] ss:$0 sps:$4 sm:$0x33]   ;;  %v1886_v3 = vld [vmem:[%s2957_s1 + $0x8] sm:$0xff]   ;;  %v1887_v4 = vld [vmem:[%s2957_s1] sm:$0xff]   ;;  %vm1282_vm3 = vcmask 257024  }
   0x2   :  { %1525 = vmatprep.mubr.msk.bf16.mxu0 %vm1914_vm1, %v1913_v0  ;;  %1577 = vmatprep.mubr.msk.bf16.mxu1 %vm1914_vm1, %v1913_v0  ;;  %v295_v2 = vsel %vm293_vm0, %v1885_v1, 0  ;;  %v1888_v5 = vld [vmem:[%s2958_s0] sm:$0xff]   ;;  %v1889_v6 = vld [vmem:[%s2958_s0 + $0x68] sm:$0xff]   ;;  %v1891_v8 = vld [vmem:[%s2958_s0 + $0x70] sm:$0xff]  }
   0x3   :  { %1520 = vmatpush3.bf16.msra.mxu0 %v295_v2  ;;  %1628 = vmatpush3.bf16.msra.mxu1 %v295_v2  ;;  %v1890_v7 = vld [vmem:[%s2958_s0 + $0x8] sm:$0xff]   ;;  %v1892_v9 = vld [vmem:[%s2958_s0 + $0x10] sm:$0xff]   ;;  %v1893_v10 = vld [vmem:[%s2958_s0 + $0x78] sm:$0xff]  }
   0x4   :  { %1521 = vmatprep.subr.bf16.mxu0 %v1913_v0  ;;  %1626 = vmatprep.subr.bf16.mxu1 %v1913_v0  ;;  %v1894_v11 = vld [vmem:[%s2958_s0 + $0x18] sm:$0xff]   ;;  %v1895_v12 = vld [vmem:[%s2958_s0 + $0x80] sm:$0xff]   ;;  %v1897_v14 = vld [vmem:[%s2958_s0 + $0x88] sm:$0xff]  }
   0x5   :  { %v1896_v13 = vld [vmem:[%s2958_s0 + $0x20] sm:$0xff]   ;;  %v1898_v15 = vld [vmem:[%s2958_s0 + $0x28] sm:$0xff]   ;;  %v1899_v16 = vld [vmem:[%s2958_s0 + $0x90] sm:$0xff]  }
   0x6   :  { %v1900_v17 = vld [vmem:[%s2958_s0 + $0x30] sm:$0xff]   ;;  %v1901_v18 = vld [vmem:[%s2958_s0 + $0x98] sm:$0xff]   ;;  %v1903_v20 = vld [vmem:[%s2958_s0 + $0xa0] sm:$0xff]  }
   0x7   :  { %1522 = vmatpush3.bf16.msra.mxu0 %v1886_v3  ;;  %1629 = vmatpush3.bf16.msra.mxu1 %v1886_v3  ;;  %v1902_v19 = vld [vmem:[%s2958_s0 + $0x38] sm:$0xff]   ;;  %v1904_v21 = vld [vmem:[%s2958_s0 + $0x40] sm:$0xff]   ;;  %v1905_v22 = vld [vmem:[%s2958_s0 + $0xa8] sm:$0xff]  }
   0x8   :  { %1523 = vmatprep.subr.bf16.mxu0 %v1913_v0  ;;  %1627 = vmatprep.subr.bf16.mxu1 %v1913_v0  ;;  %v1906_v23 = vld [vmem:[%s2958_s0 + $0x48] sm:$0xff]   ;;  %v1907_v24 = vld [vmem:[%s2958_s0 + $0xb0] sm:$0xff]   ;;  %v1909_v26 = vld [vmem:[%s2958_s0 + $0xb8] sm:$0xff]  }
   0x9   :  { %v1908_v25 = vld [vmem:[%s2958_s0 + $0x50] sm:$0xff]   ;;  %v1910_v27 = vld [vmem:[%s2958_s0 + $0x58] sm:$0xff]   ;;  %v1911_v28 = vld [vmem:[%s2958_s0 + $0xc0] sm:$0xff]  }
   0xa   :  { %v1912_v29 = vld [vmem:[%s2958_s0 + $0x60] sm:$0xff]   ;;  %s1915_s0 = smov 96  }
   0xb   :  { %1524 = vmatpush3.bf16.msra.mxu0 %v1887_v4  ;;  %1630 = vmatpush3.bf16.msra.mxu1 %v1887_v4  ;;  %v2105_v30 = vld [vmem:[%s2959_s2] ss:$0 sm:$0xff]  ;;  %s1916_s2 = smov 64  }
   0xe   :  { %1526 = vmatmul.mubr.msk.bf16.vlgmr.msra.gmra.mxu0 %vm217_vm2, %v1888_v5  ;;  %1578 = vmatmul.mubr.msk.bf16.vlgmr.msra.gmra.mxu1 %vm217_vm2, %v1889_v6 }
   0xf   :  { %1529 = vmatprep.mubr.msk.bf16.mxu0 %vm1914_vm1, %v1913_v0  ;;  %1581 = vmatprep.mubr.msk.bf16.mxu1 %vm1914_vm1, %v1913_v0 }
  0x16   :  { %1530 = vmatmul.mubr.msk.bf16.gmra.mxu0 %vm217_vm2, %v1890_v7  ;;  %1582 = vmatmul.mubr.msk.bf16.gmra.mxu1 %vm217_vm2, %v1891_v8 }
  0x17   :  { %1533 = vmatprep.mubr.msk.bf16.mxu0 %vm1914_vm1, %v1913_v0  ;;  %1585 = vmatprep.mubr.msk.bf16.mxu1 %vm1914_vm1, %v1913_v0 }
  0x1e   :  { %1534 = vmatmul.mubr.msk.bf16.gmra.mxu0 %vm217_vm2, %v1892_v9  ;;  %1586 = vmatmul.mubr.msk.bf16.gmra.mxu1 %vm217_vm2, %v1893_v10 }
  0x1f   :  { %1537 = vmatprep.mubr.msk.bf16.mxu0 %vm1914_vm1, %v1913_v0  ;;  %1589 = vmatprep.mubr.msk.bf16.mxu1 %vm1914_vm1, %v1913_v0 }
  0x26   :  { %1538 = vmatmul.mubr.msk.bf16.gmra.mxu0 %vm217_vm2, %v1894_v11  ;;  %1590 = vmatmul.mubr.msk.bf16.gmra.mxu1 %vm217_vm2, %v1895_v12 }
  0x27   :  { %1541 = vmatprep.mubr.msk.bf16.mxu0 %vm1914_vm1, %v1913_v0  ;;  %1593 = vmatprep.mubr.msk.bf16.mxu1 %vm1914_vm1, %v1913_v0 }
  0x2e   :  { %1542 = vmatmul.mubr.msk.bf16.gmra.mxu0 %vm217_vm2, %v1896_v13  ;;  %1594 = vmatmul.mubr.msk.bf16.gmra.mxu1 %vm217_vm2, %v1897_v14 }
  0x2f   :  { %1545 = vmatprep.mubr.msk.bf16.mxu0 %vm1914_vm1, %v1913_v0  ;;  %1597 = vmatprep.mubr.msk.bf16.mxu1 %vm1914_vm1, %v1913_v0 }
  0x36   :  { %1546 = vmatmul.mubr.msk.bf16.gmra.mxu0 %vm217_vm2, %v1898_v15  ;;  %1598 = vmatmul.mubr.msk.bf16.gmra.mxu1 %vm217_vm2, %v1899_v16 }
  0x37   :  { %1549 = vmatprep.mubr.msk.bf16.mxu0 %vm1914_vm1, %v1913_v0  ;;  %1601 = vmatprep.mubr.msk.bf16.mxu1 %vm1914_vm1, %v1913_v0 }
  0x3e   :  { %1550 = vmatmul.mubr.msk.bf16.gmra.mxu0 %vm217_vm2, %v1900_v17  ;;  %1602 = vmatmul.mubr.msk.bf16.gmra.mxu1 %vm217_vm2, %v1901_v18 }
  0x3f   :  { %1553 = vmatprep.mubr.msk.bf16.mxu0 %vm1914_vm1, %v1913_v0  ;;  %1605 = vmatprep.mubr.msk.bf16.mxu1 %vm1914_vm1, %v1913_v0 }
  0x46   :  { %1554 = vmatmul.mubr.msk.bf16.gmra.mxu0 %vm217_vm2, %v1902_v19  ;;  %1606 = vmatmul.mubr.msk.bf16.gmra.mxu1 %vm217_vm2, %v1903_v20 }
  0x47   :  { %1557 = vmatprep.mubr.msk.bf16.mxu0 %vm1914_vm1, %v1913_v0  ;;  %1609 = vmatprep.mubr.msk.bf16.mxu1 %vm1914_vm1, %v1913_v0 }
  0x4e   :  { %1558 = vmatmul.mubr.msk.bf16.gmra.mxu0 %vm217_vm2, %v1904_v21  ;;  %1610 = vmatmul.mubr.msk.bf16.gmra.mxu1 %vm217_vm2, %v1905_v22 }
  0x4f   :  { %1561 = vmatprep.mubr.msk.bf16.mxu0 %vm1914_vm1, %v1913_v0  ;;  %1613 = vmatprep.mubr.msk.bf16.mxu1 %vm1914_vm1, %v1913_v0 }
  0x56   :  { %1562 = vmatmul.mubr.msk.bf16.gmra.mxu0 %vm217_vm2, %v1906_v23  ;;  %1614 = vmatmul.mubr.msk.bf16.gmra.mxu1 %vm217_vm2, %v1907_v24 }
  0x57   :  { %1565 = vmatprep.mubr.msk.bf16.mxu0 %vm1914_vm1, %v1913_v0  ;;  %1617 = vmatprep.mubr.msk.bf16.mxu1 %vm1914_vm1, %v1913_v0 }
  0x5e   :  { %1566 = vmatmul.mubr.msk.bf16.gmra.mxu0 %vm217_vm2, %v1908_v25  ;;  %1618 = vmatmul.mubr.msk.bf16.gmra.mxu1 %vm217_vm2, %v1909_v26 }
  0x5f   :  { %1569 = vmatprep.mubr.msk.bf16.mxu0 %vm1914_vm1, %v1913_v0  ;;  %1621 = vmatprep.mubr.msk.bf16.mxu1 %vm1914_vm1, %v1913_v0 }
  0x66   :  { %1570 = vmatmul.mubr.msk.bf16.gmra.mxu0 %vm217_vm2, %v1910_v27  ;;  %1622 = vmatmul.mubr.msk.bf16.gmra.mxu1 %vm217_vm2, %v1911_v28 }
  0x67   :  { %1573 = vmatprep.mubr.msk.bf16.mxu0 %vm1914_vm1, %v1913_v0 }
  0x6e   :  { %1574 = vmatmul.mubr.msk.bf16.gmra.mxu0 %vm217_vm2, %v1912_v29 }
  0xce   :  { %v331_v31 = vpop.f32.mrf.mxu0  ;;  %v435_v32 = vpop.f32.mrf.mxu1 }
  0xcf   :  { %v2108_v33 = vadd.f32 %v2105_v30, %v435_v32  ;;  %v2111_v36 = vadd.f32 %v2105_v30, %v331_v31 }
  0xd0   :  { %v1527_v34 = vpop.f32.mrf.mxu0  ;;  %v1579_v35 = vpop.f32.mrf.mxu1 }
  0xd1   :  { %v3005_v39 = vmax.f32 %v2108_v33, 0.0  ;;  %v2999_v44 = vmax.f32 %v2111_v36, 0.0 }
  0xd2   :  { %v334_v37 = vpop.f32.mrf.mxu0  ;;  %v438_v38 = vpop.f32.mrf.mxu1 }
  0xd3   :  { %v2115_v40 = vadd.f32 %v2105_v30, %v334_v37  ;;  %v2118_v41 = vadd.f32 %v2105_v30, %v438_v38 }
  0xd4   :  { %v1528_v42 = vpop.f32.mrf.mxu0  ;;  %v1580_v43 = vpop.f32.mrf.mxu1 }
  0xd5   :  { %v3004_v45 = vmax.f32 %v2115_v40, 0.0  ;;  %v557_v46 = vmax.f32 %v2118_v41, 0.0 }
  0xd6   :  { %v339_v47 = vpop.f32.mrf.mxu0  ;;  %v443_v48 = vpop.f32.mrf.mxu1 }
  0xd7   :  { %v1640_v49 = vpack.i.bf16 %v557_v46, %v3005_v39  ;;  %v1635_v50 = vpack.i.bf16 %v3004_v45, %v2999_v44  ;;  %v2132_v53 = vadd.f32 %v2105_v30, %v339_v47  ;;  %v2135_v54 = vadd.f32 %v2105_v30, %v443_v48 }
  0xd8   :  { %v1531_v51 = vpop.f32.mrf.mxu0  ;;  %v1583_v52 = vpop.f32.mrf.mxu1 }
  0xd9   :  { %1641 = vrot.lane.b32.xlu1 %v1640_v49, %s1915_s0  ;;  %1636 = vrot.lane.b32.xlu0 %v1635_v50, %s1915_s0  ;;  %v2995_v61 = vmax.f32 %v2132_v53, 0.0  ;;  %v2993_v62 = vmax.f32 %v2135_v54, 0.0 }
  0xda   :  { %v342_v55 = vpop.f32.mrf.mxu0  ;;  %v446_v56 = vpop.f32.mrf.mxu1 }
  0xdb   :  { %v2140_v57 = vadd.f32 %v2105_v30, %v342_v55  ;;  %v2143_v58 = vadd.f32 %v2105_v30, %v446_v56 }
  0xdc   :  { %v1532_v59 = vpop.f32.mrf.mxu0  ;;  %v1584_v60 = vpop.f32.mrf.mxu1 }
  0xdd   :  { %v2998_v63 = vmax.f32 %v2140_v57, 0.0  ;;  %v2994_v0 = vmax.f32 %v2143_v58, 0.0 }
  0xde   :  { %v347_v1 = vpop.f32.mrf.mxu0  ;;  %v451_v2 = vpop.f32.mrf.mxu1 }
  0xdf   :  { %v1645_v3 = vpack.i.bf16 %v2998_v63, %v2995_v61  ;;  %v1650_v6 = vpack.i.bf16 %v2994_v0, %v2993_v62  ;;  %v2158_v7 = vadd.f32 %v2105_v30, %v347_v1  ;;  %v2161_v8 = vadd.f32 %v2105_v30, %v451_v2 }
  0xe0   :  { %v1535_v4 = vpop.f32.mrf.mxu0  ;;  %v1587_v5 = vpop.f32.mrf.mxu1 }
  0xe1   :  { %1646 = vrot.lane.b32.xlu0 %v1645_v3, %s1915_s0  ;;  %v2987_v15 = vmax.f32 %v2158_v7, 0.0  ;;  %v2985_v16 = vmax.f32 %v2161_v8, 0.0 }
  0xe2   :  { %v350_v9 = vpop.f32.mrf.mxu0  ;;  %v454_v10 = vpop.f32.mrf.mxu1 }
  0xe3   :  { %v2165_v11 = vadd.f32 %v2105_v30, %v350_v9  ;;  %v2168_v12 = vadd.f32 %v2105_v30, %v454_v10 }
  0xe4   :  { %v1536_v13 = vpop.f32.mrf.mxu0  ;;  %v1588_v14 = vpop.f32.mrf.mxu1 }
  0xe5   :  { %v2990_v17 = vmax.f32 %v2165_v11, 0.0  ;;  %v2986_v18 = vmax.f32 %v2168_v12, 0.0  ;;  %1651 = vrot.lane.b32.xlu0 %v1650_v6, %s1915_s0 }
  0xe6   :  { %v355_v19 = vpop.f32.mrf.mxu0  ;;  %v459_v20 = vpop.f32.mrf.mxu1 }
  0xe7   :  { %v1655_v21 = vpack.i.bf16 %v2990_v17, %v2987_v15  ;;  %v2180_v22 = vadd.f32 %v2105_v30, %v459_v20  ;;  %v1660_v25 = vpack.i.bf16 %v2986_v18, %v2985_v16  ;;  %v2187_v26 = vadd.f32 %v2105_v30, %v355_v19 }
  0xe8   :  { %v1539_v23 = vpop.f32.mrf.mxu0  ;;  %v1591_v24 = vpop.f32.mrf.mxu1 }
  0xe9   :  { %1656 = vrot.lane.b32.xlu1 %v1655_v21, %s1915_s0  ;;  %v2979_v29 = vmax.f32 %v2180_v22, 0.0  ;;  %v2977_v37 = vmax.f32 %v2187_v26, 0.0 }
  0xea   :  { %v358_v27 = vpop.f32.mrf.mxu0  ;;  %v462_v28 = vpop.f32.mrf.mxu1 }
  0xeb   :  { %v2192_v31 = vadd.f32 %v2105_v30, %v358_v27  ;;  %v2195_v32 = vadd.f32 %v2105_v30, %v462_v28 }
  0xec   :  { %v1540_v34 = vpop.f32.mrf.mxu0  ;;  %v1592_v35 = vpop.f32.mrf.mxu1 }
  0xed   :  { %v2978_v38 = vmax.f32 %v2192_v31, 0.0  ;;  %v2984_v42 = vmax.f32 %v2195_v32, 0.0  ;;  %1661 = vrot.lane.b32.xlu1 %v1660_v25, %s1915_s0 }
  0xee   :  { %v363_v43 = vpop.f32.mrf.mxu0  ;;  %v467_v47 = vpop.f32.mrf.mxu1 }
  0xef   :  { %v1665_v48 = vpack.i.bf16 %v2978_v38, %v2977_v37  ;;  %v1670_v49 = vpack.i.bf16 %v2984_v42, %v2979_v29  ;;  %v2210_v50 = vadd.f32 %v2105_v30, %v467_v47  ;;  %v2213_v55 = vadd.f32 %v2105_v30, %v363_v43 }
  0xf0   :  { %v1543_v51 = vpop.f32.mrf.mxu0  ;;  %v1595_v52 = vpop.f32.mrf.mxu1 }
  0xf1   :  { %1671 = vrot.lane.b32.xlu0 %v1670_v49, %s1915_s0  ;;  %1666 = vrot.lane.b32.xlu1 %v1665_v48, %s1915_s0  ;;  %v2971_v60 = vmax.f32 %v2210_v50, 0.0  ;;  %v2969_v5 = vmax.f32 %v2213_v55, 0.0 }
  0xf2   :  { %v366_v56 = vpop.f32.mrf.mxu0  ;;  %v470_v59 = vpop.f32.mrf.mxu1 }
  0xf3   :  { %v2219_v1 = vadd.f32 %v2105_v30, %v366_v56  ;;  %v2222_v2 = vadd.f32 %v2105_v30, %v470_v59 }
  0xf4   :  { %v1544_v3 = vpop.f32.mrf.mxu0  ;;  %v1596_v4 = vpop.f32.mrf.mxu1 }
  0xf5   :  { %v2970_v6 = vmax.f32 %v2219_v1, 0.0  ;;  %v2976_v9 = vmax.f32 %v2222_v2, 0.0 }
  0xf6   :  { %v371_v10 = vpop.f32.mrf.mxu0  ;;  %v475_v13 = vpop.f32.mrf.mxu1 }
  0xf7   :  { %v1675_v14 = vpack.i.bf16 %v2970_v6, %v2969_v5  ;;  %v1680_v19 = vpack.i.bf16 %v2976_v9, %v2971_v60  ;;  %v2236_v20 = vadd.f32 %v2105_v30, %v475_v13  ;;  %v2239_v24 = vadd.f32 %v2105_v30, %v371_v10 }
  0xf8   :  { %v1547_v21 = vpop.f32.mrf.mxu0  ;;  %v1599_v23 = vpop.f32.mrf.mxu1 }
  0xf9   :  { %1681 = vrot.lane.b32.xlu1 %v1680_v19, %s1915_s0  ;;  %1676 = vrot.lane.b32.xlu0 %v1675_v14, %s1915_s0  ;;  %v2963_v28 = vmax.f32 %v2236_v20, 0.0  ;;  %v2961_v48 = vmax.f32 %v2239_v24, 0.0 }
  0xfa   :  { %v374_v25 = vpop.f32.mrf.mxu0  ;;  %v478_v27 = vpop.f32.mrf.mxu1 }
  0xfb   :  { %v2245_v34 = vadd.f32 %v2105_v30, %v374_v25  ;;  %v2248_v35 = vadd.f32 %v2105_v30, %v478_v27 }
  0xfc   :  { %v1548_v43 = vpop.f32.mrf.mxu0  ;;  %v1600_v47 = vpop.f32.mrf.mxu1 }
  0xfd   :  { %v2962_v49 = vmax.f32 %v2245_v34, 0.0  ;;  %v2968_v51 = vmax.f32 %v2248_v35, 0.0 }
  0xfe   :  { %v379_v52 = vpop.f32.mrf.mxu0  ;;  %v483_v56 = vpop.f32.mrf.mxu1 }
  0xff   :  { %v1685_v59 = vpack.i.bf16 %v2962_v49, %v2961_v48  ;;  %v1690_v3 = vpack.i.bf16 %v2968_v51, %v2963_v28  ;;  %v2262_v4 = vadd.f32 %v2105_v30, %v483_v56  ;;  %v2265_v14 = vadd.f32 %v2105_v30, %v379_v52 }
 0x100   :  { %v1551_v10 = vpop.f32.mrf.mxu0  ;;  %v1603_v13 = vpop.f32.mrf.mxu1 }
 0x101   :  { %1691 = vrot.lane.b32.xlu0 %v1690_v3, %s1915_s0  ;;  %1686 = vrot.lane.b32.xlu1 %v1685_v59, %s1915_s0  ;;  %v2966_v23 = vmax.f32 %v2262_v4, 0.0  ;;  %v2964_v56 = vmax.f32 %v2265_v14, 0.0 }
 0x102   :  { %v382_v19 = vpop.f32.mrf.mxu0  ;;  %v486_v21 = vpop.f32.mrf.mxu1 }
 0x103   :  { %v2271_v25 = vadd.f32 %v2105_v30, %v382_v19  ;;  %v2274_v27 = vadd.f32 %v2105_v30, %v486_v21 }
 0x104   :  { %v1552_v43 = vpop.f32.mrf.mxu0  ;;  %v1604_v47 = vpop.f32.mrf.mxu1 }
 0x105   :  { %v2965_v52 = vmax.f32 %v2271_v25, 0.0  ;;  %v2967_v3 = vmax.f32 %v2274_v27, 0.0 }
 0x106   :  { %v387_v10 = vpop.f32.mrf.mxu0  ;;  %v491_v59 = vpop.f32.mrf.mxu1 }
 0x107   :  { %v1695_v13 = vpack.i.bf16 %v2965_v52, %v2964_v56  ;;  %v1700_v19 = vpack.i.bf16 %v2967_v3, %v2966_v23  ;;  %v2288_v21 = vadd.f32 %v2105_v30, %v491_v59  ;;  %v2291_v48 = vadd.f32 %v2105_v30, %v387_v10 }
 0x108   :  { %v1555_v43 = vpop.f32.mrf.mxu0  ;;  %v1607_v47 = vpop.f32.mrf.mxu1 }
 0x109   :  { %1701 = vrot.lane.b32.xlu1 %v1700_v19, %s1915_s0  ;;  %1696 = vrot.lane.b32.xlu0 %v1695_v13, %s1915_s0  ;;  %v2974_v56 = vmax.f32 %v2288_v21, 0.0  ;;  %v2972_v47 = vmax.f32 %v2291_v48, 0.0 }
 0x10a   :  { %v390_v49 = vpop.f32.mrf.mxu0  ;;  %v494_v28 = vpop.f32.mrf.mxu1 }
 0x10b   :  { %v2297_v52 = vadd.f32 %v2105_v30, %v390_v49  ;;  %v2300_v23 = vadd.f32 %v2105_v30, %v494_v28 }
 0x10c   :  { %v1556_v59 = vpop.f32.mrf.mxu0  ;;  %v1608_v43 = vpop.f32.mrf.mxu1 }
 0x10d   :  { %v2973_v10 = vmax.f32 %v2297_v52, 0.0  ;;  %v2975_v19 = vmax.f32 %v2300_v23, 0.0 }
 0x10e   :  { %v395_v3 = vpop.f32.mrf.mxu0  ;;  %v499_v13 = vpop.f32.mrf.mxu1 }
 0x10f   :  { %v1705_v51 = vpack.i.bf16 %v2973_v10, %v2972_v47  ;;  %v1710_v28 = vpack.i.bf16 %v2975_v19, %v2974_v56  ;;  %v2314_v49 = vadd.f32 %v2105_v30, %v499_v13  ;;  %v2317_v5 = vadd.f32 %v2105_v30, %v395_v3 }
 0x110   :  { %v1559_v59 = vpop.f32.mrf.mxu0  ;;  %v1611_v43 = vpop.f32.mrf.mxu1 }
 0x111   :  { %1711 = vrot.lane.b32.xlu0 %v1710_v28, %s1915_s0  ;;  %1706 = vrot.lane.b32.xlu1 %v1705_v51, %s1915_s0  ;;  %v2982_v47 = vmax.f32 %v2314_v49, 0.0  ;;  %v2980_v43 = vmax.f32 %v2317_v5, 0.0 }
 0x112   :  { %v398_v6 = vpop.f32.mrf.mxu0  ;;  %v502_v60 = vpop.f32.mrf.mxu1 }
 0x113   :  { %v2323_v10 = vadd.f32 %v2105_v30, %v398_v6  ;;  %v2326_v56 = vadd.f32 %v2105_v30, %v502_v60 }
 0x114   :  { %v1560_v13 = vpop.f32.mrf.mxu0  ;;  %v1612_v59 = vpop.f32.mrf.mxu1 }
 0x115   :  { %v2981_v3 = vmax.f32 %v2323_v10, 0.0  ;;  %v2983_v28 = vmax.f32 %v2326_v56, 0.0 }
 0x116   :  { %v403_v19 = vpop.f32.mrf.mxu0  ;;  %v507_v51 = vpop.f32.mrf.mxu1 }
 0x117   :  { %v1715_v9 = vpack.i.bf16 %v2981_v3, %v2980_v43  ;;  %v1720_v60 = vpack.i.bf16 %v2983_v28, %v2982_v47  ;;  %v2340_v6 = vadd.f32 %v2105_v30, %v507_v51  ;;  %v2343_v37 = vadd.f32 %v2105_v30, %v403_v19 }
 0x118   :  { %v1563_v13 = vpop.f32.mrf.mxu0  ;;  %v1615_v59 = vpop.f32.mrf.mxu1 }
 0x119   :  { %1721 = vrot.lane.b32.xlu1 %v1720_v60, %s1915_s0  ;;  %1716 = vrot.lane.b32.xlu0 %v1715_v9, %s1915_s0  ;;  %v2991_v43 = vmax.f32 %v2340_v6, 0.0  ;;  %v2988_v59 = vmax.f32 %v2343_v37, 0.0 }
 0x11a   :  { %v406_v38 = vpop.f32.mrf.mxu0  ;;  %v510_v29 = vpop.f32.mrf.mxu1 }
 0x11b   :  { %v2349_v3 = vadd.f32 %v2105_v30, %v406_v38  ;;  %v2352_v47 = vadd.f32 %v2105_v30, %v510_v29 }
 0x11c   :  { %v1564_v51 = vpop.f32.mrf.mxu0  ;;  %v1616_v13 = vpop.f32.mrf.mxu1 }
 0x11d   :  { %v2989_v19 = vmax.f32 %v2349_v3, 0.0  ;;  %v2992_v60 = vmax.f32 %v2352_v47, 0.0 }
 0x11e   :  { %v411_v28 = vpop.f32.mrf.mxu0  ;;  %v515_v9 = vpop.f32.mrf.mxu1 }
 0x11f   :  { %v1725_v42 = vpack.i.bf16 %v2989_v19, %v2988_v59  ;;  %v1730_v29 = vpack.i.bf16 %v2992_v60, %v2991_v43  ;;  %v2366_v13 = vadd.f32 %v2105_v30, %v411_v28 }
 0x120   :  { %v1567_v38 = vpop.f32.mrf.mxu0  ;;  %v1619_v51 = vpop.f32.mrf.mxu1 }
 0x121   :  { %1731 = vrot.lane.b32.xlu0 %v1730_v29, %s1915_s0  ;;  %1726 = vrot.lane.b32.xlu1 %v1725_v42, %s1915_s0  ;;  %v2996_v17 = vmax.f32 %v2366_v13, 0.0 }
 0x122   :  { %v414_v16 = vpop.f32.mrf.mxu0  ;;  %v518_v18 = vpop.f32.mrf.mxu1 }
 0x123   :  { %v2371_v15 = vadd.f32 %v2105_v30, %v414_v16  ;;  %v2387_v62 = vadd.f32 %v2105_v30, %v518_v18 }
 0x124   :  { %v1568_v59 = vpop.f32.mrf.mxu0  ;;  %v1620_v19 = vpop.f32.mrf.mxu1 }
 0x125   :  { %v2997_v43 = vmax.f32 %v2371_v15, 0.0  ;;  %v2384_v19 = vadd.f32 %v2105_v30, %v515_v9 }
 0x126   :  { %v419_v38 = vpop.f32.mrf.mxu0  ;;  %v523_v51 = vpop.f32.mrf.mxu1 }
 0x127   :  { %v1735_v28 = vpack.i.bf16 %v2997_v43, %v2996_v17  ;;  %v2380_v60 = vadd.f32 %v2105_v30, %v419_v38  ;;  %v3003_v43 = vmax.f32 %v2387_v62, 0.0  ;;  %v2409_v63 = vadd.f32 %v2105_v30, %v523_v51 }
 0x128   :  { %v1571_v29 = vpop.f32.mrf.mxu0  ;;  %v1623_v42 = vpop.f32.mrf.mxu1 }
 0x129   :  { %1736 = vrot.lane.b32.xlu0 %v1735_v28, %s1915_s0  ;;  %v3000_v29 = vmax.f32 %v2380_v60, 0.0  ;;  %v3002_v28 = vmax.f32 %v2384_v19, 0.0  ;;  %3012 = vst [vmem:[#allocation2_spill] sm:$0xff] %v2409_v63 }
 0x12a   :  { %v422_v16 = vpop.f32.mrf.mxu0  ;;  %v526_v59 = vpop.f32.mrf.mxu1 }
 0x12b   :  { %v2390_v0 = vadd.f32 %v2105_v30, %v422_v16  ;;  %v2412_v44 = vadd.f32 %v2105_v30, %v526_v59 }
 0x12c   :  { %v1572_v61 = vpop.f32.mrf.mxu0  ;;  %v1624_v17 = vpop.f32.mrf.mxu1 }
 0x12d   :  { %v3001_v38 = vmax.f32 %v2390_v0, 0.0  ;;  %v1745_v17 = vpack.i.bf16 %v3003_v43, %v3002_v28  ;;  %v3010_v28 = vmax.f32 %v2412_v44, 0.0 }
 0x12e   :  { %v427_v42 = vpop.f32.mrf.mxu0 }
 0x12f   :  { %v1740_v18 = vpack.i.bf16 %v3001_v38, %v3000_v29  ;;  %v2401_v16 = vadd.f32 %v2105_v30, %v427_v42  ;;  %v3009_v38 = vmax.f32 %v2409_v63, 0.0 }
 0x130   :  { %v1575_v9 = vpop.f32.mrf.mxu0 }
 0x131   :  { %1741 = vrot.lane.b32.xlu1 %v1740_v18, %s1915_s0  ;;  %v3006_v42 = vmax.f32 %v2401_v16, 0.0 }
 0x132   :  { %v430_v61 = vpop.f32.mrf.mxu0 }
 0x133   :  { %v2415_v29 = vadd.f32 %v2105_v30, %v430_v61  ;;  %v1755_v30 = vpack.i.bf16 %v3010_v28, %v3009_v38  ;;  %v3024_v28 = vmax.f32 %v2195_v32, 0.0 }
 0x134   :  { %v1576_v9 = vpop.f32.mrf.mxu0 }
 0x135   :  { %v3007_v18 = vmax.f32 %v2415_v29, 0.0  ;;  %1746 = vrot.lane.b32.xlu1 %v1745_v17, %s1915_s0 }
 0x137   :  { %v1750_v51 = vpack.i.bf16 %v3007_v18, %v3006_v42  ;;  %v3013_v42 = vmax.f32 %v2108_v33, 0.0  ;;  %v3014_v18 = vmax.f32 %v2115_v40, 0.0 }
 0x139   :  { %1751 = vrot.lane.b32.xlu0 %v1750_v51, %s1915_s0 }
 0x13d   :  { %1756 = vrot.lane.b32.xlu0 %v1755_v30, %s1915_s0  ;;  %v3015_v30 = vmax.f32 %v2111_v36, 0.0  ;;  %v3017_v36 = vmax.f32 %v2132_v53, 0.0 }
 0x14b   :  { %v1642_v59 = vpop.permute.xlu1 %1641  ;;  %v1637_v61 = vpop.permute.xlu0 %1636 }
 0x14c   :  { %v1644_v17 = vunpack.i.h.bf16 %v1642_v59  ;;  %v1643_v9 = vunpack.i.l.bf16 %v1642_v59  ;;  %v1639_v43 = vunpack.i.h.bf16 %v1637_v61  ;;  %v1638_v45 = vunpack.i.l.bf16 %v1637_v61 }
 0x14e   :  { %v2434_v39 = vmax.f32 %v557_v46, %v1644_v17  ;;  %v2438_v51 = vmax.f32 %v3013_v42, %v1643_v9  ;;  %v2442_v63 = vmax.f32 %v3014_v18, %v1639_v43  ;;  %v2446_v38 = vmax.f32 %v3015_v30, %v1638_v45 }
 0x14f   :  { %v3016_v43 = vmax.f32 %v2140_v57, 0.0  ;;  %v3018_v30 = vmax.f32 %v2143_v58, 0.0  ;;  %v3021_v58 = vmax.f32 %v2158_v7, 0.0 }
 0x150   :  { %v1760_v59 = vpack.i.bf16 %v2442_v63, %v2446_v38  ;;  %v1765_v41 = vpack.i.bf16 %v2434_v39, %v2438_v51 }
 0x152   :  { %1761 = vrot.lane.b32.xlu1 %v1760_v59, %s1916_s2  ;;  %1766 = vrot.lane.b32.xlu0 %v1765_v41, %s1916_s2  ;;  %v3019_v41 = vmax.f32 %v2135_v54, 0.0 }
 0x153   :  { %v1647_v33 = vpop.permute.xlu0 %1646 }
 0x154   :  { %v1649_v46 = vunpack.i.h.bf16 %v1647_v33  ;;  %v1648_v40 = vunpack.i.l.bf16 %v1647_v33 }
 0x156   :  { %v2456_v42 = vmax.f32 %v3016_v43, %v1649_v46  ;;  %v2460_v45 = vmax.f32 %v3017_v36, %v1648_v40  ;;  %v3020_v43 = vmax.f32 %v2165_v11, 0.0  ;;  %v3023_v11 = vmax.f32 %v2161_v8, 0.0 }
 0x157   :  { %v1652_v18 = vpop.permute.xlu0 %1651 }
 0x158   :  { %v1654_v61 = vunpack.i.h.bf16 %v1652_v18  ;;  %v1653_v17 = vunpack.i.l.bf16 %v1652_v18  ;;  %v1770_v9 = vpack.i.bf16 %v2456_v42, %v2460_v45 }
 0x15a   :  { %v2466_v59 = vmax.f32 %v3018_v30, %v1654_v61  ;;  %v2470_v33 = vmax.f32 %v3019_v41, %v1653_v17  ;;  %1771 = vrot.lane.b32.xlu0 %v1770_v9, %s1916_s2  ;;  %v3022_v30 = vmax.f32 %v2168_v12, 0.0 }
 0x15b   :  { %v1657_v57 = vpop.permute.xlu1 %1656 }
 0x15c   :  { %v1659_v53 = vunpack.i.h.bf16 %v1657_v57  ;;  %v1658_v46 = vunpack.i.l.bf16 %v1657_v57  ;;  %v1775_v40 = vpack.i.bf16 %v2466_v59, %v2470_v33 }
 0x15e   :  { %v2477_v36 = vmax.f32 %v3020_v43, %v1659_v53  ;;  %v2481_v18 = vmax.f32 %v3021_v58, %v1658_v46  ;;  %1776 = vrot.lane.b32.xlu1 %v1775_v40, %s1916_s2 }
 0x15f   :  { %v1662_v54 = vpop.permute.xlu1 %1661 }
 0x160   :  { %v1664_v61 = vunpack.i.h.bf16 %v1662_v54  ;;  %v1663_v17 = vunpack.i.l.bf16 %v1662_v54  ;;  %v1780_v9 = vpack.i.bf16 %v2477_v36, %v2481_v18 }
 0x162   :  { %v2488_v41 = vmax.f32 %v3022_v30, %v1664_v61  ;;  %v2492_v57 = vmax.f32 %v3023_v11, %v1663_v17  ;;  %1781 = vrot.lane.b32.xlu1 %v1780_v9, %s1916_s2  ;;  %v3025_v61 = vmax.f32 %v2180_v22, 0.0  ;;  %v3026_v17 = vmax.f32 %v2192_v31, 0.0 }
 0x163   :  { %v1672_v7 = vpop.permute.xlu0 %1671  ;;  %v1667_v53 = vpop.permute.xlu1 %1666  ;;  %v3027_v30 = vmax.f32 %v2187_v26, 0.0 }
 0x164   :  { %v1674_v46 = vunpack.i.h.bf16 %v1672_v7  ;;  %v1673_v40 = vunpack.i.l.bf16 %v1672_v7  ;;  %v1669_v43 = vunpack.i.h.bf16 %v1667_v53  ;;  %v1668_v58 = vunpack.i.l.bf16 %v1667_v53 }
 0x165   :  { %v1785_v54 = vpack.i.bf16 %v2488_v41, %v2492_v57 }
 0x166   :  { %v2499_v12 = vmax.f32 %v3024_v28, %v1674_v46  ;;  %v2503_v8 = vmax.f32 %v3025_v61, %v1673_v40  ;;  %v2507_v9 = vmax.f32 %v3026_v17, %v1669_v43  ;;  %v2511_v11 = vmax.f32 %v3027_v30, %v1668_v58 }
 0x167   :  { %1786 = vrot.lane.b32.xlu0 %v1785_v54, %s1916_s2  ;;  %v3028_v40 = vmax.f32 %v2222_v2, 0.0  ;;  %v3029_v58 = vmax.f32 %v2210_v50, 0.0  ;;  %v3030_v61 = vmax.f32 %v2219_v1, 0.0  ;;  %v3031_v30 = vmax.f32 %v2213_v55, 0.0 }
 0x168   :  { %v1795_v7 = vpack.i.bf16 %v2499_v12, %v2503_v8  ;;  %v1790_v32 = vpack.i.bf16 %v2507_v9, %v2511_v11  ;;  %v3032_v55 = vmax.f32 %v2248_v35, 0.0 }
 0x16a   :  { %1796 = vrot.lane.b32.xlu1 %v1795_v7, %s1916_s2 }
 0x16b   :  { %1791 = vrot.lane.b32.xlu0 %v1790_v32, %s1916_s2  ;;  %v1682_v22 = vpop.permute.xlu1 %1681  ;;  %v1677_v31 = vpop.permute.xlu0 %1676 }
 0x16c   :  { %v1684_v28 = vunpack.i.h.bf16 %v1682_v22  ;;  %v1683_v53 = vunpack.i.l.bf16 %v1682_v22  ;;  %v1679_v46 = vunpack.i.h.bf16 %v1677_v31  ;;  %v1678_v26 = vunpack.i.l.bf16 %v1677_v31 }
 0x16e   :  { %v2522_v43 = vmax.f32 %v3028_v40, %v1684_v28  ;;  %v2526_v54 = vmax.f32 %v3029_v58, %v1683_v53  ;;  %v2530_v17 = vmax.f32 %v3030_v61, %v1679_v46  ;;  %v2534_v7 = vmax.f32 %v3031_v30, %v1678_v26 }
 0x16f   :  { %v3033_v26 = vmax.f32 %v2236_v20, 0.0  ;;  %v3034_v58 = vmax.f32 %v2245_v34, 0.0  ;;  %v3035_v30 = vmax.f32 %v2239_v24, 0.0  ;;  %v3036_v24 = vmax.f32 %v2274_v27, 0.0 }
 0x170   :  { %v1800_v32 = vpack.i.bf16 %v2530_v17, %v2534_v7  ;;  %v1805_v2 = vpack.i.bf16 %v2522_v43, %v2526_v54 }
 0x172   :  { %1801 = vrot.lane.b32.xlu1 %v1800_v32, %s1916_s2  ;;  %1806 = vrot.lane.b32.xlu0 %v1805_v2, %s1916_s2 }
 0x173   :  { %v1692_v50 = vpop.permute.xlu0 %1691  ;;  %v1687_v22 = vpop.permute.xlu1 %1686 }
 0x174   :  { %v1694_v31 = vunpack.i.h.bf16 %v1692_v50  ;;  %v1693_v1 = vunpack.i.l.bf16 %v1692_v50  ;;  %v1689_v28 = vunpack.i.h.bf16 %v1687_v22  ;;  %v1688_v53 = vunpack.i.l.bf16 %v1687_v22 }
 0x176   :  { %v2544_v46 = vmax.f32 %v3032_v55, %v1694_v31  ;;  %v2548_v40 = vmax.f32 %v3033_v26, %v1693_v1  ;;  %v2552_v61 = vmax.f32 %v3034_v58, %v1689_v28  ;;  %v2556_v32 = vmax.f32 %v3035_v30, %v1688_v53 }
 0x177   :  { %v3037_v53 = vmax.f32 %v2262_v4, 0.0  ;;  %v3038_v26 = vmax.f32 %v2271_v25, 0.0  ;;  %v3039_v30 = vmax.f32 %v2265_v14, 0.0  ;;  %v3040_v14 = vmax.f32 %v2300_v23, 0.0 }
 0x178   :  { %v1815_v2 = vpack.i.bf16 %v2544_v46, %v2548_v40  ;;  %v1810_v35 = vpack.i.bf16 %v2552_v61, %v2556_v32 }
 0x17a   :  { %1816 = vrot.lane.b32.xlu1 %v1815_v2, %s1916_s2  ;;  %1811 = vrot.lane.b32.xlu0 %v1810_v35, %s1916_s2 }
 0x17b   :  { %v1702_v20 = vpop.permute.xlu1 %1701  ;;  %v1697_v50 = vpop.permute.xlu0 %1696 }
 0x17c   :  { %v1704_v22 = vunpack.i.h.bf16 %v1702_v20  ;;  %v1703_v34 = vunpack.i.l.bf16 %v1702_v20  ;;  %v1699_v31 = vunpack.i.h.bf16 %v1697_v50  ;;  %v1698_v1 = vunpack.i.l.bf16 %v1697_v50 }
 0x17e   :  { %v2566_v28 = vmax.f32 %v3036_v24, %v1704_v22  ;;  %v2570_v55 = vmax.f32 %v3037_v53, %v1703_v34  ;;  %v2574_v58 = vmax.f32 %v3038_v26, %v1699_v31  ;;  %v2578_v2 = vmax.f32 %v3039_v30, %v1698_v1 }
 0x17f   :  { %v3041_v1 = vmax.f32 %v2288_v21, 0.0  ;;  %v3042_v53 = vmax.f32 %v2297_v52, 0.0  ;;  %v3043_v30 = vmax.f32 %v2291_v48, 0.0  ;;  %v3044_v48 = vmax.f32 %v2326_v56, 0.0 }
 0x180   :  { %v1820_v35 = vpack.i.bf16 %v2574_v58, %v2578_v2  ;;  %v1825_v27 = vpack.i.bf16 %v2566_v28, %v2570_v55 }
 0x182   :  { %1821 = vrot.lane.b32.xlu1 %v1820_v35, %s1916_s2  ;;  %1826 = vrot.lane.b32.xlu0 %v1825_v27, %s1916_s2 }
 0x183   :  { %v1712_v4 = vpop.permute.xlu0 %1711  ;;  %v1707_v20 = vpop.permute.xlu1 %1706 }
 0x184   :  { %v1714_v50 = vunpack.i.h.bf16 %v1712_v4  ;;  %v1713_v25 = vunpack.i.l.bf16 %v1712_v4  ;;  %v1709_v22 = vunpack.i.h.bf16 %v1707_v20  ;;  %v1708_v34 = vunpack.i.l.bf16 %v1707_v20 }
 0x186   :  { %v2588_v31 = vmax.f32 %v3040_v14, %v1714_v50  ;;  %v2592_v24 = vmax.f32 %v3041_v1, %v1713_v25  ;;  %v2596_v26 = vmax.f32 %v3042_v53, %v1709_v22  ;;  %v2600_v35 = vmax.f32 %v3043_v30, %v1708_v34 }
 0x187   :  { %v3045_v34 = vmax.f32 %v2314_v49, 0.0  ;;  %v3046_v1 = vmax.f32 %v2323_v10, 0.0  ;;  %v3047_v30 = vmax.f32 %v2317_v5, 0.0  ;;  %v3048_v5 = vmax.f32 %v2352_v47, 0.0 }
 0x188   :  { %v1835_v27 = vpack.i.bf16 %v2588_v31, %v2592_v24  ;;  %v1830_v23 = vpack.i.bf16 %v2596_v26, %v2600_v35 }
 0x18a   :  { %1836 = vrot.lane.b32.xlu1 %v1835_v27, %s1916_s2  ;;  %1831 = vrot.lane.b32.xlu0 %v1830_v23, %s1916_s2 }
 0x18b   :  { %v1722_v21 = vpop.permute.xlu1 %1721  ;;  %v1717_v4 = vpop.permute.xlu0 %1716 }
 0x18c   :  { %v1724_v20 = vunpack.i.h.bf16 %v1722_v21  ;;  %v1723_v52 = vunpack.i.l.bf16 %v1722_v21  ;;  %v1719_v50 = vunpack.i.h.bf16 %v1717_v4  ;;  %v1718_v25 = vunpack.i.l.bf16 %v1717_v4 }
 0x18e   :  { %v2610_v22 = vmax.f32 %v3044_v48, %v1724_v20  ;;  %v2614_v14 = vmax.f32 %v3045_v34, %v1723_v52  ;;  %v2618_v53 = vmax.f32 %v3046_v1, %v1719_v50  ;;  %v2622_v27 = vmax.f32 %v3047_v30, %v1718_v25 }
 0x18f   :  { %v3049_v25 = vmax.f32 %v2340_v6, 0.0  ;;  %v3050_v34 = vmax.f32 %v2349_v3, 0.0  ;;  %v3051_v30 = vmax.f32 %v2343_v37, 0.0  ;;  %v3052_v3 = vmax.f32 %v2371_v15, 0.0 }
 0x190   :  { %v1840_v23 = vpack.i.bf16 %v2618_v53, %v2622_v27  ;;  %v1845_v56 = vpack.i.bf16 %v2610_v22, %v2614_v14  ;;  %v3053_v37 = vmax.f32 %v2366_v13, 0.0  ;;  %v3055_v15 = vmax.f32 %v2380_v60, 0.0 }
 0x192   :  { %1841 = vrot.lane.b32.xlu1 %v1840_v23, %s1916_s2  ;;  %1846 = vrot.lane.b32.xlu0 %v1845_v56, %s1916_s2 }
 0x193   :  { %v1732_v49 = vpop.permute.xlu0 %1731  ;;  %v1727_v21 = vpop.permute.xlu1 %1726 }
 0x194   :  { %v1734_v4 = vunpack.i.h.bf16 %v1732_v49  ;;  %v1733_v10 = vunpack.i.l.bf16 %v1732_v49  ;;  %v1729_v20 = vunpack.i.h.bf16 %v1727_v21  ;;  %v1728_v52 = vunpack.i.l.bf16 %v1727_v21 }
 0x196   :  { %v2632_v50 = vmax.f32 %v3048_v5, %v1734_v4  ;;  %v2636_v48 = vmax.f32 %v3049_v25, %v1733_v10  ;;  %v2640_v1 = vmax.f32 %v3050_v34, %v1729_v20  ;;  %v2644_v23 = vmax.f32 %v3051_v30, %v1728_v52 }
 0x197   :  { %v3054_v34 = vmax.f32 %v2390_v0, 0.0 }
 0x198   :  { %v1855_v56 = vpack.i.bf16 %v2632_v50, %v2636_v48  ;;  %v1850_v47 = vpack.i.bf16 %v2640_v1, %v2644_v23 }
 0x19a   :  { %1856 = vrot.lane.b32.xlu1 %v1855_v56, %s1916_s2  ;;  %1851 = vrot.lane.b32.xlu0 %v1850_v47, %s1916_s2 }
 0x19b   :  { %v1737_v6 = vpop.permute.xlu0 %1736 }
 0x19c   :  { %v1739_v49 = vunpack.i.h.bf16 %v1737_v6  ;;  %v1738_v21 = vunpack.i.l.bf16 %v1737_v6 }
 0x19e   :  { %v2654_v4 = vmax.f32 %v3052_v3, %v1739_v49  ;;  %v2658_v10 = vmax.f32 %v3053_v37, %v1738_v21  ;;  %v3056_v21 = vmax.f32 %v2387_v62, 0.0  ;;  %v3057_v37 = vmax.f32 %v2384_v19, 0.0 }
 0x19f   :  { %v3059_v62 = vmax.f32 %v2401_v16, 0.0 }
 0x1a0   :  { %v1860_v20 = vpack.i.bf16 %v2654_v4, %v2658_v10 }
 0x1a2   :  { %1861 = vrot.lane.b32.xlu1 %v1860_v20, %s1916_s2 }
 0x1a3   :  { %v1742_v52 = vpop.permute.xlu1 %1741 }
 0x1a4   :  { %v1744_v5 = vunpack.i.h.bf16 %v1742_v52  ;;  %v1743_v25 = vunpack.i.l.bf16 %v1742_v52 }
 0x1a6   :  { %v2665_v30 = vmax.f32 %v3054_v34, %v1744_v5  ;;  %v2669_v56 = vmax.f32 %v3055_v15, %v1743_v25  ;;  %v3058_v25 = vmax.f32 %v2415_v29, 0.0 }
 0x1a7   :  { %v1747_v47 = vpop.permute.xlu1 %1746 }
 0x1a8   :  { %v1749_v13 = vunpack.i.h.bf16 %v1747_v47  ;;  %v1748_v6 = vunpack.i.l.bf16 %v1747_v47  ;;  %v1865_v49 = vpack.i.bf16 %v2665_v30, %v2669_v56 }
 0x1aa   :  { %v2675_v3 = vmax.f32 %v3056_v21, %v1749_v13  ;;  %v2679_v20 = vmax.f32 %v3057_v37, %v1748_v6  ;;  %1866 = vrot.lane.b32.xlu0 %v1865_v49, %s1916_s2  ;;  %v3060_v49 = vmax.f32 %v2412_v44, 0.0  ;;  %v3061_v37 = vld [vmem:[#allocation2_spill] sm:$0xff] }
 0x1ab   :  { %v1752_v0 = vpop.permute.xlu0 %1751  ;;  %v3062_v29 = vmax.f32 %v3061_v37, 0.0 }
 0x1ac   :  { %v1754_v60 = vunpack.i.h.bf16 %v1752_v0  ;;  %v1753_v52 = vunpack.i.l.bf16 %v1752_v0  ;;  %v1875_v5 = vpack.i.bf16 %v2675_v3, %v2679_v20 }
 0x1ae   :  { %v2686_v34 = vmax.f32 %v3058_v25, %v1754_v60  ;;  %v2690_v15 = vmax.f32 %v3059_v62, %v1753_v52  ;;  %1876 = vrot.lane.b32.xlu0 %v1875_v5, %s1916_s2 }
 0x1af   :  { %v1757_v19 = vpop.permute.xlu0 %1756 }
 0x1b0   :  { %v1759_v47 = vunpack.i.h.bf16 %v1757_v19  ;;  %v1758_v13 = vunpack.i.l.bf16 %v1757_v19  ;;  %v1870_v6 = vpack.i.bf16 %v2686_v34, %v2690_v15 }
 0x1b2   :  { %v2697_v21 = vmax.f32 %v3060_v49, %v1759_v47  ;;  %v2701_v0 = vmax.f32 %v3062_v29, %v1758_v13  ;;  %1871 = vrot.lane.b32.xlu1 %v1870_v6, %s1916_s2 }
 0x1b4   :  { %3063 = vst [vmem:[#allocation2_spill] sm:$0xff] %v2701_v0  ;;  %v1880_v16 = vpack.i.bf16 %v2697_v21, %v2701_v0 }
 0x1b6   :  { %1881 = vrot.lane.b32.xlu1 %v1880_v16, %s1916_s2 }
 0x1c4   :  { %v1762_v60 = vpop.permute.xlu1 %1761  ;;  %v1767_v52 = vpop.permute.xlu0 %1766 }
 0x1c5   :  { %v1764_v5 = vunpack.i.h.bf16 %v1762_v60  ;;  %v1763_v25 = vunpack.i.l.bf16 %v1762_v60  ;;  %v1769_v62 = vunpack.i.h.bf16 %v1767_v52  ;;  %v1768_v19 = vunpack.i.l.bf16 %v1767_v52 }
 0x1c7   :  { %v1031_v44 = vmax.f32 %v2442_v63, %v1764_v5  ;;  %v1030_v47 = vmax.f32 %v2446_v38, %v1763_v25  ;;  %v1057_v13 = vmax.f32 %v2434_v39, %v1769_v62  ;;  %v1056_v49 = vmax.f32 %v2438_v51, %v1768_v19 }
 0x1c9   :  { %v1442_v6 = vpack.c.bf16 %v1031_v44, %v1031_v44  ;;  %v1441_v37 = vpack.c.bf16 %v1030_v47, %v1030_v47  ;;  %v1468_v29 = vpack.c.bf16 %v1057_v13, %v1057_v13  ;;  %v1467_v0 = vpack.c.bf16 %v1056_v49, %v1056_v49 }
 0x1cb   :  { %1284 = vst.msk [vmem:[%s2960_s3 + $0x4] sm:$0xf] %vm1282_vm3, %v1442_v6  ;;  %1283 = vst.msk [vmem:[%s2960_s3] sm:$0xf] %vm1282_vm3, %v1441_v37 }
 0x1cc   :  { %1310 = vst.msk [vmem:[%s2960_s3 + $0x6c] sm:$0xf] %vm1282_vm3, %v1468_v29  ;;  %1309 = vst.msk [vmem:[%s2960_s3 + $0x68] sm:$0xf] %vm1282_vm3, %v1467_v0  ;;  %v1772_v39 = vpop.permute.xlu0 %1771 }
 0x1cd   :  { %v1774_v63 = vunpack.i.h.bf16 %v1772_v39  ;;  %v1773_v38 = vunpack.i.l.bf16 %v1772_v39 }
 0x1cf   :  { %v1033_v51 = vmax.f32 %v2456_v42, %v1774_v63  ;;  %v1032_v16 = vmax.f32 %v2460_v45, %v1773_v38 }
 0x1d0   :  { %v1777_v60 = vpop.permute.xlu1 %1776 }
 0x1d1   :  { %v1444_v52 = vpack.c.bf16 %v1033_v51, %v1033_v51  ;;  %v1443_v5 = vpack.c.bf16 %v1032_v16, %v1032_v16  ;;  %v1779_v25 = vunpack.i.h.bf16 %v1777_v60  ;;  %v1778_v62 = vunpack.i.l.bf16 %v1777_v60 }
 0x1d3   :  { %1286 = vst.msk [vmem:[%s2960_s3 + $0xc] sm:$0xf] %vm1282_vm3, %v1444_v52  ;;  %1285 = vst.msk [vmem:[%s2960_s3 + $0x8] sm:$0xf] %vm1282_vm3, %v1443_v5  ;;  %v1059_v0 = vmax.f32 %v2466_v59, %v1779_v25  ;;  %v1058_v42 = vmax.f32 %v2470_v33, %v1778_v62 }
 0x1d4   :  { %v1782_v45 = vpop.permute.xlu1 %1781 }
 0x1d5   :  { %v1470_v19 = vpack.c.bf16 %v1059_v0, %v1059_v0  ;;  %v1469_v44 = vpack.c.bf16 %v1058_v42, %v1058_v42  ;;  %v1784_v47 = vunpack.i.h.bf16 %v1782_v45  ;;  %v1783_v13 = vunpack.i.l.bf16 %v1782_v45 }
 0x1d7   :  { %1312 = vst.msk [vmem:[%s2960_s3 + $0x74] sm:$0xf] %vm1282_vm3, %v1470_v19  ;;  %1311 = vst.msk [vmem:[%s2960_s3 + $0x70] sm:$0xf] %vm1282_vm3, %v1469_v44  ;;  %v1035_v49 = vmax.f32 %v2477_v36, %v1784_v47  ;;  %v1034_v59 = vmax.f32 %v2481_v18, %v1783_v13 }
 0x1d9   :  { %v1446_v33 = vpack.c.bf16 %v1035_v49, %v1035_v49  ;;  %v1445_v6 = vpack.c.bf16 %v1034_v59, %v1034_v59  ;;  %v1787_v37 = vpop.permute.xlu0 %1786 }
 0x1da   :  { %v1789_v29 = vunpack.i.h.bf16 %v1787_v37  ;;  %v1788_v39 = vunpack.i.l.bf16 %v1787_v37 }
 0x1db   :  { %1288 = vst.msk [vmem:[%s2960_s3 + $0x14] sm:$0xf] %vm1282_vm3, %v1446_v33  ;;  %1287 = vst.msk [vmem:[%s2960_s3 + $0x10] sm:$0xf] %vm1282_vm3, %v1445_v6 }
 0x1dc   :  { %v1061_v63 = vmax.f32 %v2488_v41, %v1789_v29  ;;  %v1060_v36 = vmax.f32 %v2492_v57, %v1788_v39  ;;  %v1797_v18 = vpop.permute.xlu1 %1796 }
 0x1dd   :  { %v1799_v38 = vunpack.i.h.bf16 %v1797_v18  ;;  %v1798_v51 = vunpack.i.l.bf16 %v1797_v18  ;;  %v1792_v16 = vpop.permute.xlu0 %1791 }
 0x1de   :  { %v1472_v60 = vpack.c.bf16 %v1061_v63, %v1061_v63  ;;  %v1471_v52 = vpack.c.bf16 %v1060_v36, %v1060_v36  ;;  %v1794_v5 = vunpack.i.h.bf16 %v1792_v16  ;;  %v1793_v25 = vunpack.i.l.bf16 %v1792_v16 }
 0x1df   :  { %v1063_v62 = vmax.f32 %v2499_v12, %v1799_v38  ;;  %v1062_v0 = vmax.f32 %v2503_v8, %v1798_v51 }
 0x1e0   :  { %1314 = vst.msk [vmem:[%s2960_s3 + $0x7c] sm:$0xf] %vm1282_vm3, %v1472_v60  ;;  %1313 = vst.msk [vmem:[%s2960_s3 + $0x78] sm:$0xf] %vm1282_vm3, %v1471_v52  ;;  %v1037_v41 = vmax.f32 %v2507_v9, %v1794_v5  ;;  %v1036_v57 = vmax.f32 %v2511_v11, %v1793_v25 }
 0x1e1   :  { %v1474_v42 = vpack.c.bf16 %v1063_v62, %v1063_v62  ;;  %v1473_v45 = vpack.c.bf16 %v1062_v0, %v1062_v0 }
 0x1e2   :  { %v1448_v19 = vpack.c.bf16 %v1037_v41, %v1037_v41  ;;  %v1447_v12 = vpack.c.bf16 %v1036_v57, %v1036_v57 }
 0x1e3   :  { %1316 = vst.msk [vmem:[%s2960_s3 + $0x84] sm:$0xf] %vm1282_vm3, %v1474_v42  ;;  %1315 = vst.msk [vmem:[%s2960_s3 + $0x80] sm:$0xf] %vm1282_vm3, %v1473_v45 }
 0x1e4   :  { %1290 = vst.msk [vmem:[%s2960_s3 + $0x1c] sm:$0xf] %vm1282_vm3, %v1448_v19  ;;  %1289 = vst.msk [vmem:[%s2960_s3 + $0x18] sm:$0xf] %vm1282_vm3, %v1447_v12  ;;  %v1802_v8 = vpop.permute.xlu1 %1801  ;;  %v1807_v9 = vpop.permute.xlu0 %1806 }
 0x1e5   :  { %v1804_v11 = vunpack.i.h.bf16 %v1802_v8  ;;  %v1803_v44 = vunpack.i.l.bf16 %v1802_v8  ;;  %v1809_v47 = vunpack.i.h.bf16 %v1807_v9  ;;  %v1808_v13 = vunpack.i.l.bf16 %v1807_v9 }
 0x1e7   :  { %v1039_v49 = vmax.f32 %v2530_v17, %v1804_v11  ;;  %v1038_v59 = vmax.f32 %v2534_v7, %v1803_v44  ;;  %v1065_v33 = vmax.f32 %v2522_v43, %v1809_v47  ;;  %v1064_v6 = vmax.f32 %v2526_v54, %v1808_v13 }
 0x1e9   :  { %v1450_v37 = vpack.c.bf16 %v1039_v49, %v1039_v49  ;;  %v1449_v29 = vpack.c.bf16 %v1038_v59, %v1038_v59  ;;  %v1476_v39 = vpack.c.bf16 %v1065_v33, %v1065_v33  ;;  %v1475_v63 = vpack.c.bf16 %v1064_v6, %v1064_v6 }
 0x1eb   :  { %1292 = vst.msk [vmem:[%s2960_s3 + $0x24] sm:$0xf] %vm1282_vm3, %v1450_v37  ;;  %1291 = vst.msk [vmem:[%s2960_s3 + $0x20] sm:$0xf] %vm1282_vm3, %v1449_v29 }
 0x1ec   :  { %1318 = vst.msk [vmem:[%s2960_s3 + $0x8c] sm:$0xf] %vm1282_vm3, %v1476_v39  ;;  %1317 = vst.msk [vmem:[%s2960_s3 + $0x88] sm:$0xf] %vm1282_vm3, %v1475_v63  ;;  %v1817_v43 = vpop.permute.xlu1 %1816  ;;  %v1812_v54 = vpop.permute.xlu0 %1811 }
 0x1ed   :  { %v1819_v17 = vunpack.i.h.bf16 %v1817_v43  ;;  %v1818_v7 = vunpack.i.l.bf16 %v1817_v43  ;;  %v1814_v36 = vunpack.i.h.bf16 %v1812_v54  ;;  %v1813_v18 = vunpack.i.l.bf16 %v1812_v54 }
 0x1ef   :  { %v1067_v38 = vmax.f32 %v2544_v46, %v1819_v17  ;;  %v1066_v51 = vmax.f32 %v2548_v40, %v1818_v7  ;;  %v1041_v16 = vmax.f32 %v2552_v61, %v1814_v36  ;;  %v1040_v60 = vmax.f32 %v2556_v32, %v1813_v18 }
 0x1f1   :  { %v1478_v52 = vpack.c.bf16 %v1067_v38, %v1067_v38  ;;  %v1477_v5 = vpack.c.bf16 %v1066_v51, %v1066_v51  ;;  %v1452_v25 = vpack.c.bf16 %v1041_v16, %v1041_v16  ;;  %v1451_v62 = vpack.c.bf16 %v1040_v60, %v1040_v60 }
 0x1f3   :  { %1320 = vst.msk [vmem:[%s2960_s3 + $0x94] sm:$0xf] %vm1282_vm3, %v1478_v52  ;;  %1319 = vst.msk [vmem:[%s2960_s3 + $0x90] sm:$0xf] %vm1282_vm3, %v1477_v5 }
 0x1f4   :  { %1294 = vst.msk [vmem:[%s2960_s3 + $0x2c] sm:$0xf] %vm1282_vm3, %v1452_v25  ;;  %1293 = vst.msk [vmem:[%s2960_s3 + $0x28] sm:$0xf] %vm1282_vm3, %v1451_v62  ;;  %v1822_v46 = vpop.permute.xlu1 %1821  ;;  %v1827_v40 = vpop.permute.xlu0 %1826 }
 0x1f5   :  { %v1824_v61 = vunpack.i.h.bf16 %v1822_v46  ;;  %v1823_v32 = vunpack.i.l.bf16 %v1822_v46  ;;  %v1829_v0 = vunpack.i.h.bf16 %v1827_v40  ;;  %v1828_v41 = vunpack.i.l.bf16 %v1827_v40 }
 0x1f7   :  { %v1043_v57 = vmax.f32 %v2574_v58, %v1824_v61  ;;  %v1042_v42 = vmax.f32 %v2578_v2, %v1823_v32  ;;  %v1069_v45 = vmax.f32 %v2566_v28, %v1829_v0  ;;  %v1068_v19 = vmax.f32 %v2570_v55, %v1828_v41 }
 0x1f9   :  { %v1454_v12 = vpack.c.bf16 %v1043_v57, %v1043_v57  ;;  %v1453_v8 = vpack.c.bf16 %v1042_v42, %v1042_v42  ;;  %v1480_v9 = vpack.c.bf16 %v1069_v45, %v1069_v45  ;;  %v1479_v11 = vpack.c.bf16 %v1068_v19, %v1068_v19 }
 0x1fb   :  { %1296 = vst.msk [vmem:[%s2960_s3 + $0x34] sm:$0xf] %vm1282_vm3, %v1454_v12  ;;  %1295 = vst.msk [vmem:[%s2960_s3 + $0x30] sm:$0xf] %vm1282_vm3, %v1453_v8 }
 0x1fc   :  { %1322 = vst.msk [vmem:[%s2960_s3 + $0x9c] sm:$0xf] %vm1282_vm3, %v1480_v9  ;;  %1321 = vst.msk [vmem:[%s2960_s3 + $0x98] sm:$0xf] %vm1282_vm3, %v1479_v11  ;;  %v1837_v28 = vpop.permute.xlu1 %1836  ;;  %v1832_v55 = vpop.permute.xlu0 %1831 }
 0x1fd   :  { %v1839_v58 = vunpack.i.h.bf16 %v1837_v28  ;;  %v1838_v2 = vunpack.i.l.bf16 %v1837_v28  ;;  %v1834_v44 = vunpack.i.h.bf16 %v1832_v55  ;;  %v1833_v47 = vunpack.i.l.bf16 %v1832_v55 }
 0x1ff   :  { %v1071_v13 = vmax.f32 %v2588_v31, %v1839_v58  ;;  %v1070_v49 = vmax.f32 %v2592_v24, %v1838_v2  ;;  %v1045_v59 = vmax.f32 %v2596_v26, %v1834_v44  ;;  %v1044_v33 = vmax.f32 %v2600_v35, %v1833_v47 }
 0x201   :  { %v1482_v6 = vpack.c.bf16 %v1071_v13, %v1071_v13  ;;  %v1481_v37 = vpack.c.bf16 %v1070_v49, %v1070_v49  ;;  %v1456_v29 = vpack.c.bf16 %v1045_v59, %v1045_v59  ;;  %v1455_v39 = vpack.c.bf16 %v1044_v33, %v1044_v33 }
 0x203   :  { %1324 = vst.msk [vmem:[%s2960_s3 + $0xa4] sm:$0xf] %vm1282_vm3, %v1482_v6  ;;  %1323 = vst.msk [vmem:[%s2960_s3 + $0xa0] sm:$0xf] %vm1282_vm3, %v1481_v37 }
 0x204   :  { %1298 = vst.msk [vmem:[%s2960_s3 + $0x3c] sm:$0xf] %vm1282_vm3, %v1456_v29  ;;  %1297 = vst.msk [vmem:[%s2960_s3 + $0x38] sm:$0xf] %vm1282_vm3, %v1455_v39  ;;  %v1842_v31 = vpop.permute.xlu1 %1841  ;;  %v1847_v24 = vpop.permute.xlu0 %1846 }
 0x205   :  { %v1844_v26 = vunpack.i.h.bf16 %v1842_v31  ;;  %v1843_v35 = vunpack.i.l.bf16 %v1842_v31  ;;  %v1849_v63 = vunpack.i.h.bf16 %v1847_v24  ;;  %v1848_v43 = vunpack.i.l.bf16 %v1847_v24 }
 0x207   :  { %v1047_v54 = vmax.f32 %v2618_v53, %v1844_v26  ;;  %v1046_v17 = vmax.f32 %v2622_v27, %v1843_v35  ;;  %v1073_v7 = vmax.f32 %v2610_v22, %v1849_v63  ;;  %v1072_v36 = vmax.f32 %v2614_v14, %v1848_v43 }
 0x209   :  { %v1458_v18 = vpack.c.bf16 %v1047_v54, %v1047_v54  ;;  %v1457_v38 = vpack.c.bf16 %v1046_v17, %v1046_v17  ;;  %v1484_v51 = vpack.c.bf16 %v1073_v7, %v1073_v7  ;;  %v1483_v16 = vpack.c.bf16 %v1072_v36, %v1072_v36 }
 0x20b   :  { %1300 = vst.msk [vmem:[%s2960_s3 + $0x44] sm:$0xf] %vm1282_vm3, %v1458_v18  ;;  %1299 = vst.msk [vmem:[%s2960_s3 + $0x40] sm:$0xf] %vm1282_vm3, %v1457_v38 }
 0x20c   :  { %1326 = vst.msk [vmem:[%s2960_s3 + $0xac] sm:$0xf] %vm1282_vm3, %v1484_v51  ;;  %1325 = vst.msk [vmem:[%s2960_s3 + $0xa8] sm:$0xf] %vm1282_vm3, %v1483_v16  ;;  %v1857_v22 = vpop.permute.xlu1 %1856  ;;  %v1852_v14 = vpop.permute.xlu0 %1851 }
 0x20d   :  { %v1859_v53 = vunpack.i.h.bf16 %v1857_v22  ;;  %v1858_v27 = vunpack.i.l.bf16 %v1857_v22  ;;  %v1854_v60 = vunpack.i.h.bf16 %v1852_v14  ;;  %v1853_v52 = vunpack.i.l.bf16 %v1852_v14 }
 0x20f   :  { %v1075_v5 = vmax.f32 %v2632_v50, %v1859_v53  ;;  %v1074_v25 = vmax.f32 %v2636_v48, %v1858_v27  ;;  %v1049_v62 = vmax.f32 %v2640_v1, %v1854_v60  ;;  %v1048_v46 = vmax.f32 %v2644_v23, %v1853_v52 }
 0x211   :  { %v1486_v40 = vpack.c.bf16 %v1075_v5, %v1075_v5  ;;  %v1485_v61 = vpack.c.bf16 %v1074_v25, %v1074_v25  ;;  %v1460_v32 = vpack.c.bf16 %v1049_v62, %v1049_v62  ;;  %v1459_v0 = vpack.c.bf16 %v1048_v46, %v1048_v46 }
 0x213   :  { %1328 = vst.msk [vmem:[%s2960_s3 + $0xb4] sm:$0xf] %vm1282_vm3, %v1486_v40  ;;  %1327 = vst.msk [vmem:[%s2960_s3 + $0xb0] sm:$0xf] %vm1282_vm3, %v1485_v61 }
 0x214   :  { %1302 = vst.msk [vmem:[%s2960_s3 + $0x4c] sm:$0xf] %vm1282_vm3, %v1460_v32  ;;  %1301 = vst.msk [vmem:[%s2960_s3 + $0x48] sm:$0xf] %vm1282_vm3, %v1459_v0  ;;  %v1862_v50 = vpop.permute.xlu1 %1861 }
 0x215   :  { %v1864_v48 = vunpack.i.h.bf16 %v1862_v50  ;;  %v1863_v1 = vunpack.i.l.bf16 %v1862_v50 }
 0x217   :  { %v1051_v23 = vmax.f32 %v2654_v4, %v1864_v48  ;;  %v1050_v41 = vmax.f32 %v2658_v10, %v1863_v1 }
 0x219   :  { %v1462_v57 = vpack.c.bf16 %v1051_v23, %v1051_v23  ;;  %v1461_v42 = vpack.c.bf16 %v1050_v41, %v1050_v41 }
 0x21b   :  { %1304 = vst.msk [vmem:[%s2960_s3 + $0x54] sm:$0xf] %vm1282_vm3, %v1462_v57  ;;  %1303 = vst.msk [vmem:[%s2960_s3 + $0x50] sm:$0xf] %vm1282_vm3, %v1461_v42 }
 0x21c   :  { %v1867_v45 = vpop.permute.xlu0 %1866 }
 0x21d   :  { %v1869_v19 = vunpack.i.h.bf16 %v1867_v45  ;;  %v1868_v12 = vunpack.i.l.bf16 %v1867_v45 }
 0x21f   :  { %v1053_v8 = vmax.f32 %v2665_v30, %v1869_v19  ;;  %v1052_v4 = vmax.f32 %v2669_v56, %v1868_v12 }
 0x220   :  { %v1877_v10 = vpop.permute.xlu0 %1876 }
 0x221   :  { %v1464_v9 = vpack.c.bf16 %v1053_v8, %v1053_v8  ;;  %v1463_v11 = vpack.c.bf16 %v1052_v4, %v1052_v4  ;;  %v1879_v28 = vunpack.i.h.bf16 %v1877_v10  ;;  %v1878_v55 = vunpack.i.l.bf16 %v1877_v10 }
 0x223   :  { %1306 = vst.msk [vmem:[%s2960_s3 + $0x5c] sm:$0xf] %vm1282_vm3, %v1464_v9  ;;  %1305 = vst.msk [vmem:[%s2960_s3 + $0x58] sm:$0xf] %vm1282_vm3, %v1463_v11  ;;  %v1077_v58 = vmax.f32 %v2675_v3, %v1879_v28  ;;  %v1076_v30 = vmax.f32 %v2679_v20, %v1878_v55 }
 0x224   :  { %v1872_v56 = vpop.permute.xlu1 %1871 }
 0x225   :  { %v1488_v2 = vpack.c.bf16 %v1077_v58, %v1077_v58  ;;  %v1487_v44 = vpack.c.bf16 %v1076_v30, %v1076_v30  ;;  %v1874_v47 = vunpack.i.h.bf16 %v1872_v56  ;;  %v1873_v13 = vunpack.i.l.bf16 %v1872_v56 }
 0x227   :  { %1330 = vst.msk [vmem:[%s2960_s3 + $0xbc] sm:$0xf] %vm1282_vm3, %v1488_v2  ;;  %1329 = vst.msk [vmem:[%s2960_s3 + $0xb8] sm:$0xf] %vm1282_vm3, %v1487_v44  ;;  %v1055_v49 = vmax.f32 %v2686_v34, %v1874_v47  ;;  %v1054_v3 = vmax.f32 %v2690_v15, %v1873_v13  ;;  %v3064_v34 = vld [vmem:[#allocation2_spill] sm:$0xff] }
 0x228   :  { %v1882_v20 = vpop.permute.xlu1 %1881 }
 0x229   :  { %v1466_v59 = vpack.c.bf16 %v1055_v49, %v1055_v49  ;;  %v1465_v33 = vpack.c.bf16 %v1054_v3, %v1054_v3  ;;  %v1884_v6 = vunpack.i.h.bf16 %v1882_v20  ;;  %v1883_v37 = vunpack.i.l.bf16 %v1882_v20 }
 0x22b   :  { %1308 = vst.msk [vmem:[%s2960_s3 + $0x64] sm:$0xf] %vm1282_vm3, %v1466_v59  ;;  %1307 = vst.msk [vmem:[%s2960_s3 + $0x60] sm:$0xf] %vm1282_vm3, %v1465_v33  ;;  %v1079_v29 = vmax.f32 %v2697_v21, %v1884_v6  ;;  %v1078_v39 = vmax.f32 %v3064_v34, %v1883_v37 }
 0x22d   :  { %v1490_v15 = vpack.c.bf16 %v1079_v29, %v1079_v29  ;;  %v1489_v31 = vpack.c.bf16 %v1078_v39, %v1078_v39 }
 0x22f   :  { %1332 = vst.msk [vmem:[%s2960_s3 + $0xc4] sm:$0xf] %vm1282_vm3, %v1490_v15  ;;  %1331 = vst.msk [vmem:[%s2960_s3 + $0xc0] sm:$0xf] %vm1282_vm3, %v1489_v31 }

// kernel: cnn_forward.5
= control target key start
LH: loop header
LB: loop body
LE: loop exit
PB: predicated region body
PF: predicated region fallthrough
CT: control target
= control target key end

     0   :  { %v553_v28 = vlaneseq  ;;  %v4023_v36 = vmov 1966171168   ;;  %s4916_s0 = inlined_call_operand.vmem [shape: bf16[2,4096], index: 0, kind: input, shape index: {}]   ;;  %s4917_s1 = inlined_call_operand.vmem [shape: bf16[4096,128], index: 1, kind: input, shape index: {}]   ;;  %s4918_s2 = inlined_call_operand.vmem [shape: f32[1,128], index: 2, kind: input, shape index: {}]   ;;  %s4919_s3 = inlined_call_operand.vmem [shape: bf16[128,10], index: 3, kind: input, shape index: {}]   ;;  %s4920_s4 = inlined_call_operand.vmem [shape: f32[1,10], index: 4, kind: input, shape index: {}]   ;;  %s4921_s5 = inlined_call_operand.hbm [shape: f32[2,10], index: 5, kind: output, shape index: {}]  }
   0x1   :  { %v3733_v0 = vld [vmem:[%s4917_s1 + $0x78] sm:$0xff]   ;;  %v3737_v4 = vld [vmem:[%s4917_s1 + $0x70] sm:$0xff]   ;;  %v3741_v8 = vld [vmem:[%s4917_s1 + $0x68] sm:$0xff]   ;;  %v551_v37 = vunpack.c.l.s4 %v4023_v36 }
   0x2   :  { %v3734_v1 = vld [vmem:[%s4917_s1 + $0xf8] sm:$0xff]   ;;  %3348 = vmatprep.subr.bf16.mxu0 %v3733_v0  ;;  %v3738_v5 = vld [vmem:[%s4917_s1 + $0xf0] sm:$0xff]   ;;  %v3742_v9 = vld [vmem:[%s4917_s1 + $0xe8] sm:$0xff]   ;;  %v554_v33 = vshrl.u32 %v553_v28, 7 }
   0x3   :  { %v3735_v2 = vld [vmem:[%s4917_s1 + $0x38] sm:$0xff]   ;;  %3370 = vmatprep.subr.bf16.mxu1 %v3734_v1  ;;  %v3739_v6 = vld [vmem:[%s4917_s1 + $0x30] sm:$0xff]   ;;  %v3743_v10 = vld [vmem:[%s4917_s1 + $0x28] sm:$0xff]   ;;  %v552_v40 = vunpack.c.0.s8 %v551_v37 }
   0x4   :  { %v3736_v3 = vld [vmem:[%s4917_s1 + $0xb8] sm:$0xff]   ;;  %3349 = vmatpush3.bf16.msra.mxu0 %v3735_v2  ;;  %v3740_v7 = vld [vmem:[%s4917_s1 + $0xb0] sm:$0xff]   ;;  %v3744_v11 = vld [vmem:[%s4917_s1 + $0xa8] sm:$0xff]  }
   0x5   :  { %3371 = vmatpush3.bf16.msra.mxu1 %v3736_v3  ;;  %3350 = vmatprep.subr.bf16.mxu0 %v3737_v4  ;;  %v3745_v12 = vld [vmem:[%s4917_s1 + $0x60] sm:$0xff]   ;;  %v3749_v16 = vld [vmem:[%s4917_s1 + $0x58] sm:$0xff]   ;;  %v3753_v20 = vld [vmem:[%s4917_s1 + $0x50] sm:$0xff]   ;;  %v4162_v41 = vsub.s32 %v552_v40, %v554_v33 }
   0x6   :  { %3372 = vmatprep.subr.bf16.mxu1 %v3738_v5  ;;  %v3746_v13 = vld [vmem:[%s4917_s1 + $0xe0] sm:$0xff]   ;;  %v3750_v17 = vld [vmem:[%s4917_s1 + $0xd8] sm:$0xff]   ;;  %v3754_v21 = vld [vmem:[%s4917_s1 + $0xd0] sm:$0xff]  }
   0x7   :  { %v3747_v14 = vld [vmem:[%s4917_s1 + $0x20] sm:$0xff]   ;;  %v3751_v18 = vld [vmem:[%s4917_s1 + $0x18] sm:$0xff]   ;;  %v3755_v22 = vld [vmem:[%s4917_s1 + $0x10] sm:$0xff]  }
   0x8   :  { %3351 = vmatpush3.bf16.msra.mxu0 %v3739_v6  ;;  %v3748_v15 = vld [vmem:[%s4917_s1 + $0xa0] sm:$0xff]   ;;  %v3752_v19 = vld [vmem:[%s4917_s1 + $0x98] sm:$0xff]   ;;  %v3756_v23 = vld [vmem:[%s4917_s1 + $0x90] sm:$0xff]  }
   0x9   :  { %3373 = vmatpush3.bf16.msra.mxu1 %v3740_v7  ;;  %3352 = vmatprep.subr.bf16.mxu0 %v3741_v8  ;;  %v3757_v24 = vld [vmem:[%s4917_s1 + $0x48] sm:$0xff]   ;;  %v3761_v29 = vld [vmem:[%s4917_s1 + $0x40] sm:$0xff]   ;;  %v3766_v35 = vld [vmem:[%s4917_s1 + $0x178] sm:$0xff]  }
   0xa   :  { %3374 = vmatprep.subr.bf16.mxu1 %v3742_v9  ;;  %v3758_v25 = vld [vmem:[%s4917_s1 + $0xc8] sm:$0xff]   ;;  %v3762_v30 = vld [vmem:[%s4917_s1 + $0xc0] sm:$0xff]   ;;  %v3767_v38 = vld [vmem:[%s4917_s1 + $0x1f8] sm:$0xff]  }
   0xb   :  { %v3759_v26 = vld [vmem:[%s4917_s1 + $0x8] sm:$0xff]   ;;  %v3763_v31 = vld [vmem:[%s4917_s1] sm:$0xff]   ;;  %v3768_v47 = vld [vmem:[%s4917_s1 + $0x138] sm:$0xff]  }
   0xc   :  { %3353 = vmatpush3.bf16.msra.mxu0 %v3743_v10  ;;  %v3760_v27 = vld [vmem:[%s4917_s1 + $0x88] sm:$0xff]   ;;  %v3764_v32 = vld [vmem:[%s4917_s1 + $0x80] sm:$0xff]   ;;  %v3769_v49 = vld [vmem:[%s4917_s1 + $0x1b8] sm:$0xff]  }
   0xd   :  { %3375 = vmatpush3.bf16.msra.mxu1 %v3744_v11  ;;  %3354 = vmatprep.subr.bf16.mxu0 %v3745_v12  ;;  %v22_v34 = vld [vmem:[%s4916_s0] sm:$0xff]  ;;  %v3770_v52 = vld [vmem:[%s4917_s1 + $0x170] sm:$0xff]   ;;  %v3774_v58 = vld [vmem:[%s4917_s1 + $0x168] sm:$0xff]  }
   0xe   :  { %3376 = vmatprep.subr.bf16.mxu1 %v3746_v13  ;;  %v549_v39 = vcombine.high %v22_v34, %v22_v34  ;;  %v556_v42 = vrot.slane %v22_v34, %v4162_v41  ;;  %v3771_v54 = vld [vmem:[%s4917_s1 + $0x1f0] sm:$0xff]   ;;  %v3775_v59 = vld [vmem:[%s4917_s1 + $0x1e8] sm:$0xff]   ;;  %v3778_v62 = vld [vmem:[%s4917_s1 + $0x160] sm:$0xff]  }
   0xf   :  { %v3772_v55 = vld [vmem:[%s4917_s1 + $0x130] sm:$0xff]   ;;  %v3776_v60 = vld [vmem:[%s4917_s1 + $0x128] sm:$0xff]   ;;  %v3779_v63 = vld [vmem:[%s4917_s1 + $0x1e0] sm:$0xff]  }
  0x10   :  { %3355 = vmatpush3.bf16.msra.mxu0 %v3747_v14  ;;  %v4166_v43 = vrot.slane %v549_v39, %v4162_v41  ;;  %v564_v44 = vcombine.high %v556_v42, %v556_v42  ;;  %v572_v45 = vrot.slane %v556_v42, %v4162_v41  ;;  %v3773_v57 = vld [vmem:[%s4917_s1 + $0x1b0] sm:$0xff]   ;;  %v3777_v61 = vld [vmem:[%s4917_s1 + $0x1a8] sm:$0xff]   ;;  %v3780_v0 = vld [vmem:[%s4917_s1 + $0x120] sm:$0xff]  }
  0x11   :  { %3377 = vmatpush3.bf16.msra.mxu1 %v3748_v15  ;;  %3356 = vmatprep.subr.bf16.mxu0 %v3749_v16  ;;  %v3781_v1 = vld [vmem:[%s4917_s1 + $0x1a0] sm:$0xff]   ;;  %v3782_v2 = vld [vmem:[%s4917_s1 + $0x158] sm:$0xff]   ;;  %v3786_v6 = vld [vmem:[%s4917_s1 + $0x150] sm:$0xff]  }
  0x12   :  { %3378 = vmatprep.subr.bf16.mxu1 %v3750_v17  ;;  %v565_v46 = vcombine.high %v4166_v43, %v4166_v43  ;;  %v586_v48 = vrot.slane %v564_v44, %v4162_v41  ;;  %v594_v51 = vcombine.high %v572_v45, %v572_v45  ;;  %v3783_v3 = vld [vmem:[%s4917_s1 + $0x1d8] sm:$0xff]   ;;  %v3787_v7 = vld [vmem:[%s4917_s1 + $0x1d0] sm:$0xff]   ;;  %v3790_v10 = vld [vmem:[%s4917_s1 + $0x148] sm:$0xff]  }
  0x13   :  { %v3784_v4 = vld [vmem:[%s4917_s1 + $0x118] sm:$0xff]   ;;  %v3788_v8 = vld [vmem:[%s4917_s1 + $0x110] sm:$0xff]   ;;  %v3791_v11 = vld [vmem:[%s4917_s1 + $0x1c8] sm:$0xff]  }
  0x14   :  { %3357 = vmatpush3.bf16.msra.mxu0 %v3751_v18  ;;  %v593_v50 = vrot.slane %v565_v46, %v4162_v41  ;;  %2345 = vmatprep.mubr.bf16.mxu0 %v586_v48  ;;  %v596_v53 = vcombine.high %v586_v48, %v586_v48  ;;  %v3785_v5 = vld [vmem:[%s4917_s1 + $0x198] sm:$0xff]   ;;  %v3789_v9 = vld [vmem:[%s4917_s1 + $0x190] sm:$0xff]   ;;  %v3792_v12 = vld [vmem:[%s4917_s1 + $0x108] sm:$0xff]   ;;  %v579_v18 = vrot.slane %v4166_v43, %v4162_v41 }
  0x15   :  { %3379 = vmatpush3.bf16.msra.mxu1 %v3752_v19  ;;  %3358 = vmatprep.subr.bf16.mxu0 %v3753_v20  ;;  %v3793_v13 = vld [vmem:[%s4917_s1 + $0x188] sm:$0xff]   ;;  %v3794_v14 = vld [vmem:[%s4917_s1 + $0x140] sm:$0xff]   ;;  %v3798_v19 = vld [vmem:[%s4917_s1 + $0x278] sm:$0xff]  }
  0x16   :  { %3380 = vmatprep.subr.bf16.mxu1 %v3754_v21  ;;  %v597_v56 = vcombine.high %v593_v50, %v593_v50  ;;  %2385 = vmatprep.mubr.bf16.mxu1 %v596_v53  ;;  %v3795_v15 = vld [vmem:[%s4917_s1 + $0x1c0] sm:$0xff]   ;;  %v3799_v20 = vld [vmem:[%s4917_s1 + $0x2f8] sm:$0xff]   ;;  %v3806_v28 = vld [vmem:[%s4917_s1 + $0x268] sm:$0xff]  }
  0x17   :  { %v3796_v16 = vld [vmem:[%s4917_s1 + $0x100] sm:$0xff]   ;;  %v3800_v21 = vld [vmem:[%s4917_s1 + $0x238] sm:$0xff]   ;;  %v3818_v40 = vld [vmem:[%s4917_s1 + $0x250] sm:$0xff]  }
  0x18   :  { %3359 = vmatpush3.bf16.msra.mxu0 %v3755_v22  ;;  %v3797_v17 = vld [vmem:[%s4917_s1 + $0x180] sm:$0xff]   ;;  %v3801_v22 = vld [vmem:[%s4917_s1 + $0x2b8] sm:$0xff]   ;;  %v3819_v42 = vld [vmem:[%s4917_s1 + $0x2d0] sm:$0xff]  }
  0x19   :  { %3381 = vmatpush3.bf16.msra.mxu1 %v3756_v23  ;;  %3360 = vmatprep.subr.bf16.mxu0 %v3757_v24  ;;  %v595_v23 = vcombine.high %v579_v18, %v579_v18  ;;  %v3802_v24 = vld [vmem:[%s4917_s1 + $0x270] sm:$0xff]   ;;  %v3811_v33 = vld [vmem:[%s4917_s1 + $0x2e0] sm:$0xff]   ;;  %v3814_v36 = vld [vmem:[%s4917_s1 + $0x258] sm:$0xff]  }
  0x1a   :  { %3382 = vmatprep.subr.bf16.mxu1 %v3758_v25  ;;  %v3803_v25 = vld [vmem:[%s4917_s1 + $0x2f0] sm:$0xff]   ;;  %v3812_v34 = vld [vmem:[%s4917_s1 + $0x220] sm:$0xff]   ;;  %v3815_v37 = vld [vmem:[%s4917_s1 + $0x2d8] sm:$0xff]  }
  0x1b   :  { %v3817_v39 = vld [vmem:[%s4917_s1 + $0x298] sm:$0xff]   ;;  %v3820_v43 = vld [vmem:[%s4917_s1 + $0x210] sm:$0xff]   ;;  %v23_v46 = vld [vmem:[%s4916_s0 + $0x8] sm:$0xff] }
  0x1c   :  { %3361 = vmatpush3.bf16.msra.mxu0 %v3759_v26  ;;  %v3804_v26 = vld [vmem:[%s4917_s1 + $0x230] sm:$0xff]   ;;  %v605_v48 = vrot.slane %v23_v46, %v4162_v41 }
  0x1d   :  { %3383 = vmatpush3.bf16.msra.mxu1 %v3760_v27  ;;  %3362 = vmatprep.subr.bf16.mxu0 %v3761_v29  ;;  %v3805_v27 = vld [vmem:[%s4917_s1 + $0x2b0] sm:$0xff]   ;;  %v3807_v29 = vld [vmem:[%s4917_s1 + $0x2e8] sm:$0xff]  }
  0x1e   :  { %3384 = vmatprep.subr.bf16.mxu1 %v3762_v30  ;;  %v3808_v30 = vld [vmem:[%s4917_s1 + $0x228] sm:$0xff]   ;;  %v3821_v44 = vld [vmem:[%s4917_s1 + $0x290] sm:$0xff]  }
  0x20   :  { %3363 = vmatpush3.bf16.msra.mxu0 %v3763_v31  ;;  %v3809_v31 = vld [vmem:[%s4917_s1 + $0x2a8] sm:$0xff]  }
  0x21   :  { %3385 = vmatpush3.bf16.msra.mxu1 %v3764_v32  ;;  %3392 = vmatprep.subr.bf16.mxu0 %v3766_v35  ;;  %v3810_v32 = vld [vmem:[%s4917_s1 + $0x260] sm:$0xff]  }
  0x22   :  { %3414 = vmatprep.subr.bf16.mxu1 %v3767_v38  ;;  %v3813_v35 = vld [vmem:[%s4917_s1 + $0x2a0] sm:$0xff]   ;;  %v3816_v38 = vld [vmem:[%s4917_s1 + $0x218] sm:$0xff]  }
  0x23   :  { %2346 = vmatmul.mubr.bf16.vlgmr.msra.gmra.mxu0 %v572_v45  ;;  %v3822_v45 = vld [vmem:[%s4917_s1 + $0x248] sm:$0xff]  }
  0x24   :  { %3393 = vmatpush3.bf16.msra.mxu0 %v3768_v47  ;;  %2386 = vmatmul.mubr.bf16.vlgmr.msra.gmra.mxu1 %v594_v51  ;;  %v3823_v47 = vld [vmem:[%s4917_s1 + $0x2c8] sm:$0xff]  }
  0x25   :  { %3394 = vmatprep.subr.bf16.mxu0 %v3770_v52  ;;  %3415 = vmatpush3.bf16.msra.mxu1 %v3769_v49  ;;  %v598_v49 = vcombine.high %v23_v46, %v23_v46  ;;  %v3825_v51 = vld [vmem:[%s4917_s1 + $0x288] sm:$0xff]   ;;  %v613_v52 = vcombine.high %v605_v48, %v605_v48 }
  0x26   :  { %2425 = vmatprep.mubr.bf16.mxu0 %v593_v50  ;;  %3416 = vmatprep.subr.bf16.mxu1 %v3771_v54  ;;  %v3824_v50 = vld [vmem:[%s4917_s1 + $0x208] sm:$0xff]   ;;  %v3826_v54 = vld [vmem:[%s4917_s1 + $0x240] sm:$0xff]  }
  0x27   :  { %2465 = vmatprep.mubr.bf16.mxu1 %v597_v56  ;;  %v4354_v53 = vrot.slane %v598_v49, %v4162_v41  ;;  %v635_v56 = vrot.slane %v613_v52, %v4162_v41  ;;  %v3873_v46 = vld [vmem:[%s4917_s1 + $0x428] sm:$0xff]   ;;  %v3876_v49 = vld [vmem:[%s4917_s1 + $0x4e0] sm:$0xff]   ;;  %v3879_v52 = vld [vmem:[%s4917_s1 + $0x458] sm:$0xff]  }
  0x28   :  { %3395 = vmatpush3.bf16.msra.mxu0 %v3772_v55  ;;  %v3827_v55 = vld [vmem:[%s4917_s1 + $0x2c0] sm:$0xff]  }
  0x29   :  { %3396 = vmatprep.subr.bf16.mxu0 %v3774_v58  ;;  %3417 = vmatpush3.bf16.msra.mxu1 %v3773_v57  ;;  %v614_v57 = vcombine.high %v4354_v53, %v4354_v53  ;;  %v3828_v58 = vld [vmem:[%s4917_s1 + $0x200] sm:$0xff]  }
  0x2a   :  { %3418 = vmatprep.subr.bf16.mxu1 %v3775_v59  ;;  %v3829_v59 = vld [vmem:[%s4917_s1 + $0x280] sm:$0xff]  }
  0x2c   :  { %3397 = vmatpush3.bf16.msra.mxu0 %v3776_v60  ;;  %v645_v60 = vcombine.high %v635_v56, %v635_v56 }
  0x2d   :  { %3398 = vmatprep.subr.bf16.mxu0 %v3778_v62  ;;  %3419 = vmatpush3.bf16.msra.mxu1 %v3777_v61  ;;  %v621_v61 = vrot.slane %v605_v48, %v4162_v41  ;;  %v3830_v62 = vld [vmem:[%s4917_s1 + $0x378] sm:$0xff]   ;;  %v3875_v48 = vld [vmem:[%s4917_s1 + $0x460] sm:$0xff]  }
  0x2e   :  { %3420 = vmatprep.subr.bf16.mxu1 %v3779_v63  ;;  %v3831_v63 = vld [vmem:[%s4917_s1 + $0x3f8] sm:$0xff]  }
  0x30   :  { %3399 = vmatpush3.bf16.msra.mxu0 %v3780_v0  ;;  %v642_v0 = vrot.slane %v614_v57, %v4162_v41  ;;  %v3884_v57 = vld [vmem:[%s4917_s1 + $0x4d0] sm:$0xff]  }
  0x31   :  { %3400 = vmatprep.subr.bf16.mxu0 %v3782_v2  ;;  %3421 = vmatpush3.bf16.msra.mxu1 %v3781_v1  ;;  %v3832_v1 = vld [vmem:[%s4917_s1 + $0x338] sm:$0xff]  }
  0x32   :  { %3422 = vmatprep.subr.bf16.mxu1 %v3783_v3  ;;  %v3833_v2 = vld [vmem:[%s4917_s1 + $0x3b8] sm:$0xff]   ;;  %v643_v3 = vcombine.high %v621_v61, %v621_v61 }
  0x34   :  { %3401 = vmatpush3.bf16.msra.mxu0 %v3784_v4  ;;  %v3834_v4 = vld [vmem:[%s4917_s1 + $0x370] sm:$0xff]  }
  0x35   :  { %3402 = vmatprep.subr.bf16.mxu0 %v3786_v6  ;;  %3423 = vmatpush3.bf16.msra.mxu1 %v3785_v5  ;;  %v3835_v5 = vld [vmem:[%s4917_s1 + $0x3f0] sm:$0xff]   ;;  %v646_v6 = vcombine.high %v642_v0, %v642_v0 }
  0x36   :  { %3424 = vmatprep.subr.bf16.mxu1 %v3787_v7  ;;  %v3836_v7 = vld [vmem:[%s4917_s1 + $0x330] sm:$0xff]  }
  0x38   :  { %3403 = vmatpush3.bf16.msra.mxu0 %v3788_v8  ;;  %v3837_v8 = vld [vmem:[%s4917_s1 + $0x3b0] sm:$0xff]  }
  0x39   :  { %3404 = vmatprep.subr.bf16.mxu0 %v3790_v10  ;;  %3425 = vmatpush3.bf16.msra.mxu1 %v3789_v9  ;;  %v3838_v9 = vld [vmem:[%s4917_s1 + $0x368] sm:$0xff]  }
  0x3a   :  { %3426 = vmatprep.subr.bf16.mxu1 %v3791_v11  ;;  %v3839_v10 = vld [vmem:[%s4917_s1 + $0x3e8] sm:$0xff]  }
  0x3b   :  { %v3840_v11 = vld [vmem:[%s4917_s1 + $0x328] sm:$0xff]  }
  0x3c   :  { %3405 = vmatpush3.bf16.msra.mxu0 %v3792_v12  ;;  %v3841_v12 = vld [vmem:[%s4917_s1 + $0x3a8] sm:$0xff]  }
  0x3d   :  { %3406 = vmatprep.subr.bf16.mxu0 %v3794_v14  ;;  %3427 = vmatpush3.bf16.msra.mxu1 %v3793_v13  ;;  %v3842_v13 = vld [vmem:[%s4917_s1 + $0x360] sm:$0xff]  }
  0x3e   :  { %3428 = vmatprep.subr.bf16.mxu1 %v3795_v15  ;;  %v3843_v14 = vld [vmem:[%s4917_s1 + $0x3e0] sm:$0xff]  }
  0x3f   :  { %v3844_v15 = vld [vmem:[%s4917_s1 + $0x320] sm:$0xff]  }
  0x40   :  { %3407 = vmatpush3.bf16.msra.mxu0 %v3796_v16  ;;  %v3845_v16 = vld [vmem:[%s4917_s1 + $0x3a0] sm:$0xff]  }
  0x41   :  { %3436 = vmatprep.subr.bf16.mxu0 %v3798_v19  ;;  %3429 = vmatpush3.bf16.msra.mxu1 %v3797_v17  ;;  %v3846_v17 = vld [vmem:[%s4917_s1 + $0x358] sm:$0xff]  }
  0x42   :  { %3458 = vmatprep.subr.bf16.mxu1 %v3799_v20  ;;  %v3848_v19 = vld [vmem:[%s4917_s1 + $0x318] sm:$0xff]  }
  0x43   :  { %2426 = vmatmul.mubr.bf16.vlgmr.msra.gmra.mxu0 %v579_v18  ;;  %v3847_v18 = vld [vmem:[%s4917_s1 + $0x3d8] sm:$0xff]  }
  0x44   :  { %3437 = vmatpush3.bf16.msra.mxu0 %v3800_v21  ;;  %2466 = vmatmul.mubr.bf16.vlgmr.msra.gmra.mxu1 %v595_v23  ;;  %v3849_v20 = vld [vmem:[%s4917_s1 + $0x398] sm:$0xff]   ;;  %v3850_v21 = vld [vmem:[%s4917_s1 + $0x350] sm:$0xff]  }
  0x45   :  { %3438 = vmatprep.subr.bf16.mxu0 %v3802_v24  ;;  %3459 = vmatpush3.bf16.msra.mxu1 %v3801_v22  ;;  %v3851_v22 = vld [vmem:[%s4917_s1 + $0x3d0] sm:$0xff]  }
  0x46   :  { %3460 = vmatprep.subr.bf16.mxu1 %v3803_v25  ;;  %2505 = vmatprep.mubr.bf16.mxu0 %v635_v56  ;;  %v3852_v23 = vld [vmem:[%s4917_s1 + $0x310] sm:$0xff]   ;;  %v3854_v25 = vld [vmem:[%s4917_s1 + $0x348] sm:$0xff]  }
  0x47   :  { %2545 = vmatprep.mubr.bf16.mxu1 %v645_v60  ;;  %v3853_v24 = vld [vmem:[%s4917_s1 + $0x390] sm:$0xff]   ;;  %v3887_v60 = vld [vmem:[%s4917_s1 + $0x448] sm:$0xff]  }
  0x48   :  { %3439 = vmatpush3.bf16.msra.mxu0 %v3804_v26  ;;  %v3855_v26 = vld [vmem:[%s4917_s1 + $0x3c8] sm:$0xff]   ;;  %v3883_v56 = vld [vmem:[%s4917_s1 + $0x450] sm:$0xff]  }
  0x49   :  { %3440 = vmatprep.subr.bf16.mxu0 %v3806_v28  ;;  %3461 = vmatpush3.bf16.msra.mxu1 %v3805_v27  ;;  %v3856_v27 = vld [vmem:[%s4917_s1 + $0x308] sm:$0xff]  }
  0x4a   :  { %3462 = vmatprep.subr.bf16.mxu1 %v3807_v29  ;;  %v3857_v28 = vld [vmem:[%s4917_s1 + $0x388] sm:$0xff]   ;;  %v3858_v29 = vld [vmem:[%s4917_s1 + $0x340] sm:$0xff]  }
  0x4c   :  { %3441 = vmatpush3.bf16.msra.mxu0 %v3808_v30  ;;  %v3859_v30 = vld [vmem:[%s4917_s1 + $0x3c0] sm:$0xff]  }
  0x4d   :  { %3442 = vmatprep.subr.bf16.mxu0 %v3810_v32  ;;  %3463 = vmatpush3.bf16.msra.mxu1 %v3809_v31  ;;  %v3860_v31 = vld [vmem:[%s4917_s1 + $0x300] sm:$0xff]  }
  0x4e   :  { %3464 = vmatprep.subr.bf16.mxu1 %v3811_v33  ;;  %v3861_v32 = vld [vmem:[%s4917_s1 + $0x380] sm:$0xff]   ;;  %v628_v33 = vrot.slane %v4354_v53, %v4162_v41  ;;  %v3880_v53 = vld [vmem:[%s4917_s1 + $0x4d8] sm:$0xff]  }
  0x50   :  { %3443 = vmatpush3.bf16.msra.mxu0 %v3812_v34  ;;  %v3863_v34 = vld [vmem:[%s4917_s1 + $0x478] sm:$0xff]  }
  0x51   :  { %3444 = vmatprep.subr.bf16.mxu0 %v3814_v36  ;;  %3465 = vmatpush3.bf16.msra.mxu1 %v3813_v35  ;;  %v3864_v35 = vld [vmem:[%s4917_s1 + $0x4f8] sm:$0xff]  }
  0x52   :  { %3466 = vmatprep.subr.bf16.mxu1 %v3815_v37  ;;  %v3865_v36 = vld [vmem:[%s4917_s1 + $0x438] sm:$0xff]  }
  0x53   :  { %v3866_v37 = vld [vmem:[%s4917_s1 + $0x4b8] sm:$0xff]  }
  0x54   :  { %3445 = vmatpush3.bf16.msra.mxu0 %v3816_v38  ;;  %v644_v38 = vcombine.high %v628_v33, %v628_v33 }
  0x55   :  { %3446 = vmatprep.subr.bf16.mxu0 %v3818_v40  ;;  %3467 = vmatpush3.bf16.msra.mxu1 %v3817_v39  ;;  %v3867_v39 = vld [vmem:[%s4917_s1 + $0x470] sm:$0xff]  }
  0x56   :  { %3468 = vmatprep.subr.bf16.mxu1 %v3819_v42  ;;  %v3868_v40 = vld [vmem:[%s4917_s1 + $0x4f0] sm:$0xff]  }
  0x57   :  { %v3869_v42 = vld [vmem:[%s4917_s1 + $0x430] sm:$0xff]  }
  0x58   :  { %3447 = vmatpush3.bf16.msra.mxu0 %v3820_v43  ;;  %v3870_v43 = vld [vmem:[%s4917_s1 + $0x4b0] sm:$0xff]  }
  0x59   :  { %3448 = vmatprep.subr.bf16.mxu0 %v3822_v45  ;;  %3469 = vmatpush3.bf16.msra.mxu1 %v3821_v44  ;;  %v3871_v44 = vld [vmem:[%s4917_s1 + $0x468] sm:$0xff]  }
  0x5a   :  { %3470 = vmatprep.subr.bf16.mxu1 %v3823_v47  ;;  %v3872_v45 = vld [vmem:[%s4917_s1 + $0x4e8] sm:$0xff]  }
  0x5b   :  { %v3874_v47 = vld [vmem:[%s4917_s1 + $0x4a8] sm:$0xff]  }
  0x5c   :  { %3449 = vmatpush3.bf16.msra.mxu0 %v3824_v50  ;;  %v3877_v50 = vld [vmem:[%s4917_s1 + $0x420] sm:$0xff]  }
  0x5d   :  { %3450 = vmatprep.subr.bf16.mxu0 %v3826_v54  ;;  %3471 = vmatpush3.bf16.msra.mxu1 %v3825_v51  ;;  %v3878_v51 = vld [vmem:[%s4917_s1 + $0x4a0] sm:$0xff]   ;;  %v3881_v54 = vld [vmem:[%s4917_s1 + $0x418] sm:$0xff]  }
  0x5e   :  { %3472 = vmatprep.subr.bf16.mxu1 %v3827_v55  ;;  %v3882_v55 = vld [vmem:[%s4917_s1 + $0x498] sm:$0xff]  }
  0x60   :  { %3451 = vmatpush3.bf16.msra.mxu0 %v3828_v58  ;;  %v3885_v58 = vld [vmem:[%s4917_s1 + $0x410] sm:$0xff]  }
  0x61   :  { %3480 = vmatprep.subr.bf16.mxu0 %v3830_v62  ;;  %3473 = vmatpush3.bf16.msra.mxu1 %v3829_v59  ;;  %v3886_v59 = vld [vmem:[%s4917_s1 + $0x490] sm:$0xff]   ;;  %v3888_v62 = vld [vmem:[%s4917_s1 + $0x4c8] sm:$0xff]  }
  0x62   :  { %3502 = vmatprep.subr.bf16.mxu1 %v3831_v63 }
  0x63   :  { %2506 = vmatmul.mubr.bf16.vlgmr.msra.gmra.mxu0 %v621_v61  ;;  %v24_v61 = vld [vmem:[%s4916_s0 + $0x10] sm:$0xff] }
  0x64   :  { %3481 = vmatpush3.bf16.msra.mxu0 %v3832_v1  ;;  %2585 = vmatprep.mubr.bf16.mxu0 %v642_v0  ;;  %v654_v63 = vrot.slane %v24_v61, %v4162_v41  ;;  %v647_v0 = vcombine.high %v24_v61, %v24_v61  ;;  %v3889_v1 = vld [vmem:[%s4917_s1 + $0x408] sm:$0xff]  }
  0x65   :  { %2546 = vmatmul.mubr.bf16.vlgmr.msra.gmra.mxu1 %v643_v3  ;;  %3482 = vmatprep.subr.bf16.mxu0 %v3834_v4  ;;  %v3938_v61 = vld [vmem:[%s4917_s1 + $0x628] sm:$0xff]  }
  0x66   :  { %3503 = vmatpush3.bf16.msra.mxu1 %v3833_v2  ;;  %2625 = vmatprep.mubr.bf16.mxu1 %v646_v6  ;;  %v3890_v2 = vld [vmem:[%s4917_s1 + $0x488] sm:$0xff]   ;;  %v662_v3 = vcombine.high %v654_v63, %v654_v63  ;;  %v4560_v4 = vrot.slane %v647_v0, %v4162_v41  ;;  %v3892_v6 = vld [vmem:[%s4917_s1 + $0x4c0] sm:$0xff]  }
  0x67   :  { %3504 = vmatprep.subr.bf16.mxu1 %v3835_v5  ;;  %v3891_v5 = vld [vmem:[%s4917_s1 + $0x440] sm:$0xff]  }
  0x68   :  { %3483 = vmatpush3.bf16.msra.mxu0 %v3836_v7  ;;  %v684_v7 = vrot.slane %v662_v3, %v4162_v41  ;;  %v3941_v0 = vld [vmem:[%s4917_s1 + $0x6e0] sm:$0xff]   ;;  %v3944_v3 = vld [vmem:[%s4917_s1 + $0x658] sm:$0xff]  }
  0x69   :  { %3484 = vmatprep.subr.bf16.mxu0 %v3838_v9  ;;  %v3893_v9 = vld [vmem:[%s4917_s1 + $0x400] sm:$0xff]  }
  0x6a   :  { %3505 = vmatpush3.bf16.msra.mxu1 %v3837_v8  ;;  %v663_v8 = vcombine.high %v4560_v4, %v4560_v4 }
  0x6b   :  { %3506 = vmatprep.subr.bf16.mxu1 %v3839_v10  ;;  %v3894_v10 = vld [vmem:[%s4917_s1 + $0x480] sm:$0xff]  }
  0x6c   :  { %3485 = vmatpush3.bf16.msra.mxu0 %v3840_v11  ;;  %v694_v11 = vcombine.high %v684_v7, %v684_v7 }
  0x6d   :  { %3486 = vmatprep.subr.bf16.mxu0 %v3842_v13  ;;  %v3895_v13 = vld [vmem:[%s4917_s1 + $0x578] sm:$0xff]  }
  0x6e   :  { %3507 = vmatpush3.bf16.msra.mxu1 %v3841_v12  ;;  %v670_v12 = vrot.slane %v654_v63, %v4162_v41  ;;  %v3940_v63 = vld [vmem:[%s4917_s1 + $0x660] sm:$0xff]  }
  0x6f   :  { %3508 = vmatprep.subr.bf16.mxu1 %v3843_v14  ;;  %v3896_v14 = vld [vmem:[%s4917_s1 + $0x5f8] sm:$0xff]  }
  0x70   :  { %3487 = vmatpush3.bf16.msra.mxu0 %v3844_v15  ;;  %v691_v15 = vrot.slane %v663_v8, %v4162_v41  ;;  %v3949_v8 = vld [vmem:[%s4917_s1 + $0x6d0] sm:$0xff]  }
  0x71   :  { %3488 = vmatprep.subr.bf16.mxu0 %v3846_v17  ;;  %v3898_v17 = vld [vmem:[%s4917_s1 + $0x5b8] sm:$0xff]  }
  0x72   :  { %3509 = vmatpush3.bf16.msra.mxu1 %v3845_v16  ;;  %v3897_v16 = vld [vmem:[%s4917_s1 + $0x538] sm:$0xff]  }
  0x73   :  { %3510 = vmatprep.subr.bf16.mxu1 %v3847_v18  ;;  %v692_v18 = vcombine.high %v670_v12, %v670_v12 }
  0x74   :  { %3489 = vmatpush3.bf16.msra.mxu0 %v3848_v19  ;;  %v3899_v19 = vld [vmem:[%s4917_s1 + $0x570] sm:$0xff]  }
  0x75   :  { %3490 = vmatprep.subr.bf16.mxu0 %v3850_v21  ;;  %v695_v21 = vcombine.high %v691_v15, %v691_v15 }
  0x76   :  { %3511 = vmatpush3.bf16.msra.mxu1 %v3849_v20  ;;  %v3900_v20 = vld [vmem:[%s4917_s1 + $0x5f0] sm:$0xff]  }
  0x77   :  { %3512 = vmatprep.subr.bf16.mxu1 %v3851_v22  ;;  %v3901_v22 = vld [vmem:[%s4917_s1 + $0x530] sm:$0xff]  }
  0x78   :  { %3491 = vmatpush3.bf16.msra.mxu0 %v3852_v23  ;;  %v3902_v23 = vld [vmem:[%s4917_s1 + $0x5b0] sm:$0xff]  }
  0x79   :  { %3492 = vmatprep.subr.bf16.mxu0 %v3854_v25  ;;  %v3904_v25 = vld [vmem:[%s4917_s1 + $0x5e8] sm:$0xff]  }
  0x7a   :  { %3513 = vmatpush3.bf16.msra.mxu1 %v3853_v24  ;;  %v3903_v24 = vld [vmem:[%s4917_s1 + $0x568] sm:$0xff]  }
  0x7b   :  { %3514 = vmatprep.subr.bf16.mxu1 %v3855_v26  ;;  %v3905_v26 = vld [vmem:[%s4917_s1 + $0x528] sm:$0xff]  }
  0x7c   :  { %3493 = vmatpush3.bf16.msra.mxu0 %v3856_v27  ;;  %v3906_v27 = vld [vmem:[%s4917_s1 + $0x5a8] sm:$0xff]  }
  0x7d   :  { %3494 = vmatprep.subr.bf16.mxu0 %v3858_v29  ;;  %v3908_v29 = vld [vmem:[%s4917_s1 + $0x5e0] sm:$0xff]  }
  0x7e   :  { %3515 = vmatpush3.bf16.msra.mxu1 %v3857_v28  ;;  %v3907_v28 = vld [vmem:[%s4917_s1 + $0x560] sm:$0xff]  }
  0x7f   :  { %3516 = vmatprep.subr.bf16.mxu1 %v3859_v30  ;;  %v3909_v30 = vld [vmem:[%s4917_s1 + $0x520] sm:$0xff]  }
  0x80   :  { %3495 = vmatpush3.bf16.msra.mxu0 %v3860_v31  ;;  %v3910_v31 = vld [vmem:[%s4917_s1 + $0x5a0] sm:$0xff]  }
  0x81   :  { %3524 = vmatprep.subr.bf16.mxu0 %v3863_v34  ;;  %v3913_v34 = vld [vmem:[%s4917_s1 + $0x518] sm:$0xff]  }
  0x82   :  { %3517 = vmatpush3.bf16.msra.mxu1 %v3861_v32  ;;  %v3911_v32 = vld [vmem:[%s4917_s1 + $0x558] sm:$0xff]  }
  0x83   :  { %2586 = vmatmul.mubr.bf16.vlgmr.msra.gmra.mxu0 %v628_v33  ;;  %3546 = vmatprep.subr.bf16.mxu1 %v3864_v35  ;;  %v3912_v33 = vld [vmem:[%s4917_s1 + $0x5d8] sm:$0xff]  }
  0x84   :  { %3525 = vmatpush3.bf16.msra.mxu0 %v3865_v36  ;;  %2665 = vmatprep.mubr.bf16.mxu0 %v684_v7  ;;  %v3914_v35 = vld [vmem:[%s4917_s1 + $0x598] sm:$0xff]   ;;  %v3915_v36 = vld [vmem:[%s4917_s1 + $0x550] sm:$0xff]  }
  0x85   :  { %2626 = vmatmul.mubr.bf16.vlgmr.msra.gmra.mxu1 %v644_v38  ;;  %3526 = vmatprep.subr.bf16.mxu0 %v3867_v39  ;;  %v3917_v38 = vld [vmem:[%s4917_s1 + $0x510] sm:$0xff]  }
  0x86   :  { %3547 = vmatpush3.bf16.msra.mxu1 %v3866_v37  ;;  %2705 = vmatprep.mubr.bf16.mxu1 %v694_v11  ;;  %v3916_v37 = vld [vmem:[%s4917_s1 + $0x5d0] sm:$0xff]   ;;  %v3952_v11 = vld [vmem:[%s4917_s1 + $0x648] sm:$0xff]  }
  0x87   :  { %3548 = vmatprep.subr.bf16.mxu1 %v3868_v40  ;;  %v3918_v39 = vld [vmem:[%s4917_s1 + $0x590] sm:$0xff]   ;;  %v3919_v40 = vld [vmem:[%s4917_s1 + $0x548] sm:$0xff]  }
  0x88   :  { %3527 = vmatpush3.bf16.msra.mxu0 %v3869_v42  ;;  %v3920_v42 = vld [vmem:[%s4917_s1 + $0x5c8] sm:$0xff]   ;;  %v3948_v7 = vld [vmem:[%s4917_s1 + $0x650] sm:$0xff]  }
  0x89   :  { %3528 = vmatprep.subr.bf16.mxu0 %v3871_v44  ;;  %v3922_v44 = vld [vmem:[%s4917_s1 + $0x588] sm:$0xff]  }
  0x8a   :  { %3549 = vmatpush3.bf16.msra.mxu1 %v3870_v43  ;;  %v3921_v43 = vld [vmem:[%s4917_s1 + $0x508] sm:$0xff]  }
  0x8b   :  { %3550 = vmatprep.subr.bf16.mxu1 %v3872_v45  ;;  %v3923_v45 = vld [vmem:[%s4917_s1 + $0x540] sm:$0xff]  }
  0x8c   :  { %3529 = vmatpush3.bf16.msra.mxu0 %v3873_v46  ;;  %v3924_v46 = vld [vmem:[%s4917_s1 + $0x5c0] sm:$0xff]  }
  0x8d   :  { %3530 = vmatprep.subr.bf16.mxu0 %v3875_v48  ;;  %v3926_v48 = vld [vmem:[%s4917_s1 + $0x580] sm:$0xff]  }
  0x8e   :  { %3551 = vmatpush3.bf16.msra.mxu1 %v3874_v47  ;;  %v3925_v47 = vld [vmem:[%s4917_s1 + $0x500] sm:$0xff]  }
  0x8f   :  { %3552 = vmatprep.subr.bf16.mxu1 %v3876_v49  ;;  %v677_v49 = vrot.slane %v4560_v4, %v4162_v41  ;;  %v3945_v4 = vld [vmem:[%s4917_s1 + $0x6d8] sm:$0xff]  }
  0x90   :  { %3531 = vmatpush3.bf16.msra.mxu0 %v3877_v50  ;;  %v3928_v50 = vld [vmem:[%s4917_s1 + $0x678] sm:$0xff]  }
  0x91   :  { %3532 = vmatprep.subr.bf16.mxu0 %v3879_v52  ;;  %v3930_v52 = vld [vmem:[%s4917_s1 + $0x638] sm:$0xff]  }
  0x92   :  { %3553 = vmatpush3.bf16.msra.mxu1 %v3878_v51  ;;  %v3929_v51 = vld [vmem:[%s4917_s1 + $0x6f8] sm:$0xff]  }
  0x93   :  { %3554 = vmatprep.subr.bf16.mxu1 %v3880_v53  ;;  %v3931_v53 = vld [vmem:[%s4917_s1 + $0x6b8] sm:$0xff]  }
  0x94   :  { %3533 = vmatpush3.bf16.msra.mxu0 %v3881_v54  ;;  %v693_v54 = vcombine.high %v677_v49, %v677_v49 }
  0x95   :  { %3534 = vmatprep.subr.bf16.mxu0 %v3883_v56  ;;  %v3933_v56 = vld [vmem:[%s4917_s1 + $0x6f0] sm:$0xff]  }
  0x96   :  { %3555 = vmatpush3.bf16.msra.mxu1 %v3882_v55  ;;  %v3932_v55 = vld [vmem:[%s4917_s1 + $0x670] sm:$0xff]  }
  0x97   :  { %3556 = vmatprep.subr.bf16.mxu1 %v3884_v57  ;;  %v3934_v57 = vld [vmem:[%s4917_s1 + $0x630] sm:$0xff]  }
  0x98   :  { %3535 = vmatpush3.bf16.msra.mxu0 %v3885_v58  ;;  %v3935_v58 = vld [vmem:[%s4917_s1 + $0x6b0] sm:$0xff]  }
  0x99   :  { %3536 = vmatprep.subr.bf16.mxu0 %v3887_v60  ;;  %v3937_v60 = vld [vmem:[%s4917_s1 + $0x6e8] sm:$0xff]  }
  0x9a   :  { %3557 = vmatpush3.bf16.msra.mxu1 %v3886_v59  ;;  %v3936_v59 = vld [vmem:[%s4917_s1 + $0x668] sm:$0xff]  }
  0x9b   :  { %3558 = vmatprep.subr.bf16.mxu1 %v3888_v62  ;;  %v3939_v62 = vld [vmem:[%s4917_s1 + $0x6a8] sm:$0xff]  }
  0x9c   :  { %3537 = vmatpush3.bf16.msra.mxu0 %v3889_v1  ;;  %v3942_v1 = vld [vmem:[%s4917_s1 + $0x620] sm:$0xff]  }
  0x9d   :  { %3538 = vmatprep.subr.bf16.mxu0 %v3891_v5  ;;  %v3946_v5 = vld [vmem:[%s4917_s1 + $0x618] sm:$0xff]  }
  0x9e   :  { %3559 = vmatpush3.bf16.msra.mxu1 %v3890_v2  ;;  %v3943_v2 = vld [vmem:[%s4917_s1 + $0x6a0] sm:$0xff]  }
  0x9f   :  { %3560 = vmatprep.subr.bf16.mxu1 %v3892_v6  ;;  %v3947_v6 = vld [vmem:[%s4917_s1 + $0x698] sm:$0xff]  }
  0xa0   :  { %3539 = vmatpush3.bf16.msra.mxu0 %v3893_v9  ;;  %v3950_v9 = vld [vmem:[%s4917_s1 + $0x610] sm:$0xff]  }
  0xa1   :  { %3568 = vmatprep.subr.bf16.mxu0 %v3895_v13  ;;  %v3953_v13 = vld [vmem:[%s4917_s1 + $0x6c8] sm:$0xff]  }
  0xa2   :  { %3561 = vmatpush3.bf16.msra.mxu1 %v3894_v10  ;;  %v3951_v10 = vld [vmem:[%s4917_s1 + $0x690] sm:$0xff]  }
  0xa3   :  { %2666 = vmatmul.mubr.bf16.vlgmr.msra.gmra.mxu0 %v670_v12  ;;  %3590 = vmatprep.subr.bf16.mxu1 %v3896_v14  ;;  %v25_v12 = vld [vmem:[%s4916_s0 + $0x18] sm:$0xff] }
  0xa4   :  { %3569 = vmatpush3.bf16.msra.mxu0 %v3897_v16  ;;  %2745 = vmatprep.mubr.bf16.mxu0 %v691_v15  ;;  %v703_v14 = vrot.slane %v25_v12, %v4162_v41  ;;  %v696_v15 = vcombine.high %v25_v12, %v25_v12  ;;  %v3954_v16 = vld [vmem:[%s4917_s1 + $0x608] sm:$0xff]  }
  0xa5   :  { %2706 = vmatmul.mubr.bf16.vlgmr.msra.gmra.mxu1 %v692_v18  ;;  %3570 = vmatprep.subr.bf16.mxu0 %v3899_v19 }
  0xa6   :  { %3591 = vmatpush3.bf16.msra.mxu1 %v3898_v17  ;;  %2785 = vmatprep.mubr.bf16.mxu1 %v695_v21  ;;  %v3956_v17 = vld [vmem:[%s4917_s1 + $0x640] sm:$0xff]   ;;  %v711_v18 = vcombine.high %v703_v14, %v703_v14  ;;  %v4766_v19 = vrot.slane %v696_v15, %v4162_v41 }
  0xa7   :  { %3592 = vmatprep.subr.bf16.mxu1 %v3900_v20  ;;  %v3955_v20 = vld [vmem:[%s4917_s1 + $0x688] sm:$0xff]   ;;  %v3957_v21 = vld [vmem:[%s4917_s1 + $0x6c0] sm:$0xff]  }
  0xa8   :  { %3571 = vmatpush3.bf16.msra.mxu0 %v3901_v22  ;;  %v3958_v22 = vld [vmem:[%s4917_s1 + $0x600] sm:$0xff]  }
  0xa9   :  { %3572 = vmatprep.subr.bf16.mxu0 %v3903_v24  ;;  %v712_v24 = vcombine.high %v4766_v19, %v4766_v19 }
  0xaa   :  { %3593 = vmatpush3.bf16.msra.mxu1 %v3902_v23  ;;  %v733_v23 = vrot.slane %v711_v18, %v4162_v41 }
  0xab   :  { %3594 = vmatprep.subr.bf16.mxu1 %v3904_v25  ;;  %v3959_v25 = vld [vmem:[%s4917_s1 + $0x680] sm:$0xff]  }
  0xac   :  { %3573 = vmatpush3.bf16.msra.mxu0 %v3905_v26  ;;  %v743_v26 = vcombine.high %v733_v23, %v733_v23 }
  0xad   :  { %3574 = vmatprep.subr.bf16.mxu0 %v3907_v28  ;;  %v3960_v28 = vld [vmem:[%s4917_s1 + $0x778] sm:$0xff]  }
  0xae   :  { %3595 = vmatpush3.bf16.msra.mxu1 %v3906_v27  ;;  %v719_v27 = vrot.slane %v703_v14, %v4162_v41 }
  0xaf   :  { %3596 = vmatprep.subr.bf16.mxu1 %v3908_v29  ;;  %v3961_v29 = vld [vmem:[%s4917_s1 + $0x7f8] sm:$0xff]  }
  0xb0   :  { %3575 = vmatpush3.bf16.msra.mxu0 %v3909_v30  ;;  %v740_v30 = vrot.slane %v712_v24, %v4162_v41 }
  0xb1   :  { %3576 = vmatprep.subr.bf16.mxu0 %v3911_v32  ;;  %v3963_v32 = vld [vmem:[%s4917_s1 + $0x7b8] sm:$0xff]  }
  0xb2   :  { %3597 = vmatpush3.bf16.msra.mxu1 %v3910_v31  ;;  %v3962_v31 = vld [vmem:[%s4917_s1 + $0x738] sm:$0xff]  }
  0xb3   :  { %3598 = vmatprep.subr.bf16.mxu1 %v3912_v33  ;;  %v741_v33 = vcombine.high %v719_v27, %v719_v27 }
  0xb4   :  { %3577 = vmatpush3.bf16.msra.mxu0 %v3913_v34  ;;  %v3964_v34 = vld [vmem:[%s4917_s1 + $0x770] sm:$0xff]  }
  0xb5   :  { %3578 = vmatprep.subr.bf16.mxu0 %v3915_v36  ;;  %v744_v36 = vcombine.high %v740_v30, %v740_v30 }
  0xb6   :  { %3599 = vmatpush3.bf16.msra.mxu1 %v3914_v35  ;;  %v3965_v35 = vld [vmem:[%s4917_s1 + $0x7f0] sm:$0xff]  }
  0xb7   :  { %3600 = vmatprep.subr.bf16.mxu1 %v3916_v37 }
  0xb8   :  { %3579 = vmatpush3.bf16.msra.mxu0 %v3917_v38  ;;  %v3082_v38 = vld [vmem:[%s4918_s2] ss:$0 sm:$0xff] }
  0xb9   :  { %3580 = vmatprep.subr.bf16.mxu0 %v3919_v40  ;;  %v3967_v40 = vld [vmem:[%s4917_s1 + $0x7b0] sm:$0xff]  }
  0xba   :  { %3601 = vmatpush3.bf16.msra.mxu1 %v3918_v39  ;;  %v3966_v39 = vld [vmem:[%s4917_s1 + $0x730] sm:$0xff]  }
  0xbb   :  { %3602 = vmatprep.subr.bf16.mxu1 %v3920_v42 }
  0xbc   :  { %3581 = vmatpush3.bf16.msra.mxu0 %v3921_v43 }
  0xbd   :  { %3582 = vmatprep.subr.bf16.mxu0 %v3923_v45 }
  0xbe   :  { %3603 = vmatpush3.bf16.msra.mxu1 %v3922_v44  ;;  %v3968_v44 = vld [vmem:[%s4917_s1 + $0x768] sm:$0xff]  }
  0xbf   :  { %3604 = vmatprep.subr.bf16.mxu1 %v3924_v46  ;;  %v3969_v46 = vld [vmem:[%s4917_s1 + $0x7e8] sm:$0xff]  }
  0xc0   :  { %3583 = vmatpush3.bf16.msra.mxu0 %v3925_v47 }
  0xc1   :  { %3612 = vmatprep.subr.bf16.mxu0 %v3928_v50 }
  0xc2   :  { %3605 = vmatpush3.bf16.msra.mxu1 %v3926_v48 }
  0xc3   :  { %2746 = vmatmul.mubr.bf16.vlgmr.msra.gmra.mxu0 %v677_v49  ;;  %3634 = vmatprep.subr.bf16.mxu1 %v3929_v51  ;;  %v3970_v49 = vld [vmem:[%s4917_s1 + $0x728] sm:$0xff]  }
  0xc4   :  { %3613 = vmatpush3.bf16.msra.mxu0 %v3930_v52  ;;  %2825 = vmatprep.mubr.bf16.mxu0 %v733_v23  ;;  %v3971_v52 = vld [vmem:[%s4917_s1 + $0x7a8] sm:$0xff]  }
  0xc5   :  { %2786 = vmatmul.mubr.bf16.vlgmr.msra.gmra.mxu1 %v693_v54  ;;  %3614 = vmatprep.subr.bf16.mxu0 %v3932_v55  ;;  %v3972_v55 = vld [vmem:[%s4917_s1 + $0x760] sm:$0xff]  }
  0xc6   :  { %3635 = vmatpush3.bf16.msra.mxu1 %v3931_v53  ;;  %2865 = vmatprep.mubr.bf16.mxu1 %v743_v26 }
  0xc7   :  { %3636 = vmatprep.subr.bf16.mxu1 %v3933_v56 }
  0xc8   :  { %3615 = vmatpush3.bf16.msra.mxu0 %v3934_v57  ;;  %v3973_v57 = vld [vmem:[%s4917_s1 + $0x7e0] sm:$0xff]  }
  0xc9   :  { %3616 = vmatprep.subr.bf16.mxu0 %v3936_v59  ;;  %v3974_v59 = vld [vmem:[%s4917_s1 + $0x720] sm:$0xff]  }
  0xca   :  { %3637 = vmatpush3.bf16.msra.mxu1 %v3935_v58 }
  0xcb   :  { %3638 = vmatprep.subr.bf16.mxu1 %v3937_v60  ;;  %v3975_v60 = vld [vmem:[%s4917_s1 + $0x7a0] sm:$0xff]  }
  0xcc   :  { %3617 = vmatpush3.bf16.msra.mxu0 %v3938_v61  ;;  %v3976_v61 = vld [vmem:[%s4917_s1 + $0x758] sm:$0xff]  }
  0xcd   :  { %3618 = vmatprep.subr.bf16.mxu0 %v3940_v63  ;;  %v3978_v63 = vld [vmem:[%s4917_s1 + $0x718] sm:$0xff]  }
  0xce   :  { %3639 = vmatpush3.bf16.msra.mxu1 %v3939_v62  ;;  %v3977_v62 = vld [vmem:[%s4917_s1 + $0x7d8] sm:$0xff]  }
  0xcf   :  { %3640 = vmatprep.subr.bf16.mxu1 %v3941_v0  ;;  %v3979_v0 = vld [vmem:[%s4917_s1 + $0x798] sm:$0xff]  }
  0xd0   :  { %3619 = vmatpush3.bf16.msra.mxu0 %v3942_v1  ;;  %v3980_v1 = vld [vmem:[%s4917_s1 + $0x750] sm:$0xff]  }
  0xd1   :  { %3620 = vmatprep.subr.bf16.mxu0 %v3944_v3  ;;  %v3982_v3 = vld [vmem:[%s4917_s1 + $0x710] sm:$0xff]  }
  0xd2   :  { %3641 = vmatpush3.bf16.msra.mxu1 %v3943_v2  ;;  %v3981_v2 = vld [vmem:[%s4917_s1 + $0x7d0] sm:$0xff]  }
  0xd3   :  { %3642 = vmatprep.subr.bf16.mxu1 %v3945_v4  ;;  %v3983_v4 = vld [vmem:[%s4917_s1 + $0x790] sm:$0xff]  }
  0xd4   :  { %3621 = vmatpush3.bf16.msra.mxu0 %v3946_v5  ;;  %v3984_v5 = vld [vmem:[%s4917_s1 + $0x748] sm:$0xff]  }
  0xd5   :  { %3622 = vmatprep.subr.bf16.mxu0 %v3948_v7  ;;  %v3986_v7 = vld [vmem:[%s4917_s1 + $0x708] sm:$0xff]  }
  0xd6   :  { %3643 = vmatpush3.bf16.msra.mxu1 %v3947_v6  ;;  %v3985_v6 = vld [vmem:[%s4917_s1 + $0x7c8] sm:$0xff]  }
  0xd7   :  { %3644 = vmatprep.subr.bf16.mxu1 %v3949_v8  ;;  %v3988_v8 = vld [vmem:[%s4917_s1 + $0x740] sm:$0xff]  }
  0xd8   :  { %3623 = vmatpush3.bf16.msra.mxu0 %v3950_v9  ;;  %v3987_v9 = vld [vmem:[%s4917_s1 + $0x788] sm:$0xff]  }
  0xd9   :  { %3624 = vmatprep.subr.bf16.mxu0 %v3952_v11  ;;  %v3990_v11 = vld [vmem:[%s4917_s1 + $0x700] sm:$0xff]  }
  0xda   :  { %3645 = vmatpush3.bf16.msra.mxu1 %v3951_v10  ;;  %v3989_v10 = vld [vmem:[%s4917_s1 + $0x7c0] sm:$0xff]  }
  0xdb   :  { %3646 = vmatprep.subr.bf16.mxu1 %v3953_v13 }
  0xdc   :  { %3625 = vmatpush3.bf16.msra.mxu0 %v3954_v16 }
  0xdd   :  { %3626 = vmatprep.subr.bf16.mxu0 %v3956_v17 }
  0xde   :  { %3647 = vmatpush3.bf16.msra.mxu1 %v3955_v20 }
  0xdf   :  { %3648 = vmatprep.subr.bf16.mxu1 %v3957_v21 }
  0xe0   :  { %3627 = vmatpush3.bf16.msra.mxu0 %v3958_v22 }
  0xe1   :  { %3656 = vmatprep.subr.bf16.mxu0 %v3960_v28 }
  0xe2   :  { %3649 = vmatpush3.bf16.msra.mxu1 %v3959_v25 }
  0xe3   :  { %v3364_v37 = vpop.f32.mrf.mxu0  ;;  %2826 = vmatmul.mubr.bf16.vlgmr.msra.gmra.mxu0 %v719_v27  ;;  %3678 = vmatprep.subr.bf16.mxu1 %v3961_v29 }
  0xe4   :  { %3657 = vmatpush3.bf16.msra.mxu0 %v3962_v31  ;;  %2905 = vmatprep.mubr.bf16.mxu0 %v740_v30  ;;  %v3386_v42 = vpop.f32.mrf.mxu1 }
  0xe5   :  { %2866 = vmatmul.mubr.bf16.vlgmr.msra.gmra.mxu1 %v741_v33  ;;  %v3365_v43 = vpop.f32.mrf.mxu0  ;;  %3658 = vmatprep.subr.bf16.mxu0 %v3964_v34 }
  0xe6   :  { %3679 = vmatpush3.bf16.msra.mxu1 %v3963_v32  ;;  %v3366_v45 = vadd.f32 %v3365_v43, %v3364_v37  ;;  %2945 = vmatprep.mubr.bf16.mxu1 %v744_v36  ;;  %v3387_v47 = vpop.f32.mrf.mxu1 }
  0xe7   :  { %v3367_v48 = vpop.f32.mrf.mxu0  ;;  %3680 = vmatprep.subr.bf16.mxu1 %v3965_v35  ;;  %v3388_v51 = vadd.f32 %v3387_v47, %v3386_v42 }
  0xe8   :  { %v2348_v50 = vadd.f32 %v3366_v45, %v3082_v38  ;;  %3659 = vmatpush3.bf16.msra.mxu0 %v3966_v39  ;;  %v3389_v53 = vpop.f32.mrf.mxu1 }
  0xe9   :  { %v3368_v54 = vpop.f32.mrf.mxu0  ;;  %3660 = vmatprep.subr.bf16.mxu0 %v3968_v44 }
  0xea   :  { %v2388_v56 = vadd.f32 %v3388_v51, %v2348_v50  ;;  %3681 = vmatpush3.bf16.msra.mxu1 %v3967_v40  ;;  %v3390_v58 = vpop.f32.mrf.mxu1 }
  0xeb   :  { %3682 = vmatprep.subr.bf16.mxu1 %v3969_v46 }
  0xec   :  { %3661 = vmatpush3.bf16.msra.mxu0 %v3970_v49 }
  0xed   :  { %3662 = vmatprep.subr.bf16.mxu0 %v3972_v55 }
  0xee   :  { %3683 = vmatpush3.bf16.msra.mxu1 %v3971_v52 }
  0xef   :  { %3684 = vmatprep.subr.bf16.mxu1 %v3973_v57 }
  0xf0   :  { %3663 = vmatpush3.bf16.msra.mxu0 %v3974_v59 }
  0xf1   :  { %3664 = vmatprep.subr.bf16.mxu0 %v3976_v61 }
  0xf2   :  { %3685 = vmatpush3.bf16.msra.mxu1 %v3975_v60 }
  0xf3   :  { %3686 = vmatprep.subr.bf16.mxu1 %v3977_v62 }
  0xf4   :  { %3665 = vmatpush3.bf16.msra.mxu0 %v3978_v63 }
  0xf5   :  { %3666 = vmatprep.subr.bf16.mxu0 %v3980_v1 }
  0xf6   :  { %3687 = vmatpush3.bf16.msra.mxu1 %v3979_v0 }
  0xf7   :  { %3688 = vmatprep.subr.bf16.mxu1 %v3981_v2 }
  0xf8   :  { %3667 = vmatpush3.bf16.msra.mxu0 %v3982_v3 }
  0xf9   :  { %3668 = vmatprep.subr.bf16.mxu0 %v3984_v5 }
  0xfa   :  { %3689 = vmatpush3.bf16.msra.mxu1 %v3983_v4 }
  0xfb   :  { %3690 = vmatprep.subr.bf16.mxu1 %v3985_v6 }
  0xfc   :  { %3669 = vmatpush3.bf16.msra.mxu0 %v3986_v7 }
  0xfd   :  { %10 = vsyncpa [#allocation3], 0  ;;  %3670 = vmatprep.subr.bf16.mxu0 %v3988_v8  ;;  %v726_v12 = vrot.slane %v4766_v19, %v4162_v41  ;;  %v3991_v13 = vld [vmem:[%s4917_s1 + $0x780] sm:$0xff]   ;;  %v3993_v38 = vld [vmem:[%s4919_s3 + $0x38] sm:$0xff]   ;;  %v4024_v39 = vmov 0.0   ;;  %vm4025_vm0 = vmmov 0  }
  0xfe   :  { %3691 = vmatpush3.bf16.msra.mxu1 %v3987_v9  ;;  %v3994_v40 = vld [vmem:[%s4919_s3 + $0x30] sm:$0xff]   ;;  %v3995_v42 = vld [vmem:[%s4919_s3 + $0x28] sm:$0xff]   ;;  %v3996_v43 = vld [vmem:[%s4919_s3 + $0x20] sm:$0xff]   ;;  %s4026_s24 = smov [#allocation2]   ;;  %vm3066_vm1 = vcmask 74752  }
  0xff   :  { %3692 = vmatprep.subr.bf16.mxu1 %v3989_v10  ;;  %v742_v14 = vcombine.high %v726_v12, %v726_v12  ;;  %v3997_v44 = vld [vmem:[%s4919_s3 + $0x18] sm:$0xff]   ;;  %v3998_v48 = vld [vmem:[%s4919_s3 + $0x10] sm:$0xff]   ;;  %v4000_v59 = vld [vmem:[%s4919_s3] sm:$0xff]   ;;  %s3074_s25 = sshll.u32 %s4026_s24, 4  ;;  %s3075_s25 = int_to_ptr.vmem [resolvable:$true] %s3074_s25 }
 0x100   :  { %3671 = vmatpush3.bf16.msra.mxu0 %v3990_v11  ;;  %s4001_s26 = scalar_lea.vmem %s3075_s25, 32  ;;  %p4006_p1 = scmp.lt.s32.totalorder %s3075_s25, %s3075_s25 }
 0x101   :  { %3709 = vmatprep.subr.bf16.mxu0 %v4024_v39  ;;  %p4002_p0 = scmp.ne.s32.totalorder %s3075_s25, %s4001_s26  ;;  %p4007_p2 = scmp.lt.s32.totalorder %s4001_s26, %s4001_s26 }
 0x102   :  { %3693 = vmatpush3.bf16.msra.mxu1 %v3991_v13 }
 0x103   :  { %v3408_v15 = vpop.f32.mrf.mxu0  ;;  %2906 = vmatmul.mubr.bf16.vlgmr.msra.gmra.mxu0 %v726_v12  ;;  %p4008_p3 = por %p4007_p2, %p4006_p1 }
 0x104   :  { %v3430_v16 = vpop.f32.mrf.mxu1  ;;  %3710 = vmatpush3.bf16.msra.mxu0 %v3993_v38  ;;  %3725 = vmatprep.mubr.msk.bf16.mxu0 %vm4025_vm0, %v4024_v39 }
 0x105   :  { %2946 = vmatmul.mubr.bf16.vlgmr.msra.gmra.mxu1 %v742_v14  ;;  %v3409_v17 = vpop.f32.mrf.mxu0  ;;  %3711 = vmatprep.subr.bf16.mxu0 %v4024_v39  ;;  %p4009_p4 = pnand %p4008_p3, %p4002_p0 }
 0x106   :  { %v3410_v18 = vadd.f32 %v3409_v17, %v3408_v15  ;;  %v3431_v20 = vpop.f32.mrf.mxu1 }
 0x107   :  { %v3411_v21 = vpop.f32.mrf.mxu0  ;;  %v3432_v23 = vadd.f32 %v3431_v20, %v3430_v16 }
 0x108   :  { %v2428_v22 = vadd.f32 %v3410_v18, %v2388_v56  ;;  %v3433_v41 = vpop.f32.mrf.mxu1  ;;  %3712 = vmatpush3.bf16.msra.mxu0 %v3994_v40  ;;  %v3999_v56 = vld [vmem:[%s4919_s3 + $0x8] sm:$0xff]  }
 0x109   :  { %v3412_v19 = vpop.f32.mrf.mxu0  ;;  %3713 = vmatprep.subr.bf16.mxu0 %v4024_v39 }
 0x10a   :  { %v2468_v24 = vadd.f32 %v3432_v23, %v2428_v22  ;;  %v3434_v25 = vpop.f32.mrf.mxu1 }
 0x10c   :  { %3714 = vmatpush3.bf16.msra.mxu0 %v3995_v42 }
 0x10d   :  { %3715 = vmatprep.subr.bf16.mxu0 %v4024_v39 }
 0x110   :  { %3716 = vmatpush3.bf16.msra.mxu0 %v3996_v43 }
 0x111   :  { %3717 = vmatprep.subr.bf16.mxu0 %v4024_v39 }
 0x114   :  { %3718 = vmatpush3.bf16.msra.mxu0 %v3997_v44 }
 0x115   :  { %3719 = vmatprep.subr.bf16.mxu0 %v4024_v39 }
 0x118   :  { %3720 = vmatpush3.bf16.msra.mxu0 %v3998_v48 }
 0x119   :  { %3721 = vmatprep.subr.bf16.mxu0 %v4024_v39 }
 0x11c   :  { %3722 = vmatpush3.bf16.msra.mxu0 %v3999_v56 }
 0x11d   :  { %3723 = vmatprep.subr.bf16.mxu0 %v4024_v39 }
 0x120   :  { %3724 = vmatpush3.bf16.msra.mxu0 %v4000_v59 }
 0x123   :  { %v3452_v26 = vpop.f32.mrf.mxu0 }
 0x125   :  { %v3474_v27 = vpop.f32.mrf.mxu1  ;;  %v3453_v28 = vpop.f32.mrf.mxu0 }
 0x126   :  { %v3454_v29 = vadd.f32 %v3453_v28, %v3452_v26 }
 0x127   :  { %v3475_v30 = vpop.f32.mrf.mxu1  ;;  %v3455_v31 = vpop.f32.mrf.mxu0 }
 0x128   :  { %v2508_v32 = vadd.f32 %v3454_v29, %v2468_v24  ;;  %v3476_v33 = vadd.f32 %v3475_v30, %v3474_v27 }
 0x129   :  { %v3477_v34 = vpop.f32.mrf.mxu1  ;;  %v3456_v35 = vpop.f32.mrf.mxu0 }
 0x12a   :  { %v2548_v36 = vadd.f32 %v3476_v33, %v2508_v32 }
 0x12b   :  { %v3478_v37 = vpop.f32.mrf.mxu1 }
 0x143   :  { %v3496_v45 = vpop.f32.mrf.mxu0 }
 0x145   :  { %v3518_v46 = vpop.f32.mrf.mxu1  ;;  %v3497_v47 = vpop.f32.mrf.mxu0 }
 0x146   :  { %v3498_v49 = vadd.f32 %v3497_v47, %v3496_v45 }
 0x147   :  { %v3519_v50 = vpop.f32.mrf.mxu1  ;;  %v3499_v51 = vpop.f32.mrf.mxu0 }
 0x148   :  { %v2588_v52 = vadd.f32 %v3498_v49, %v2548_v36  ;;  %v3520_v53 = vadd.f32 %v3519_v50, %v3518_v46  ;;  %v3339_v46 = vld [vmem:[%s4920_s4] ss:$0 sm:$0xff] }
 0x149   :  { %v3521_v54 = vpop.f32.mrf.mxu1  ;;  %v3500_v55 = vpop.f32.mrf.mxu0 }
 0x14a   :  { %v2628_v57 = vadd.f32 %v3520_v53, %v2588_v52 }
 0x14b   :  { %v3522_v58 = vpop.f32.mrf.mxu1 }
 0x163   :  { %v3540_v60 = vpop.f32.mrf.mxu0 }
 0x165   :  { %v3562_v61 = vpop.f32.mrf.mxu1  ;;  %v3541_v62 = vpop.f32.mrf.mxu0 }
 0x166   :  { %v3542_v63 = vadd.f32 %v3541_v62, %v3540_v60 }
 0x167   :  { %v3563_v0 = vpop.f32.mrf.mxu1  ;;  %v3543_v1 = vpop.f32.mrf.mxu0 }
 0x168   :  { %v2668_v2 = vadd.f32 %v3542_v63, %v2628_v57  ;;  %v3564_v3 = vadd.f32 %v3563_v0, %v3562_v61 }
 0x169   :  { %v3565_v4 = vpop.f32.mrf.mxu1  ;;  %v3544_v5 = vpop.f32.mrf.mxu0 }
 0x16a   :  { %v2708_v6 = vadd.f32 %v3564_v3, %v2668_v2 }
 0x16b   :  { %v3566_v7 = vpop.f32.mrf.mxu1 }
 0x183   :  { %v3584_v8 = vpop.f32.mrf.mxu0 }
 0x185   :  { %v3606_v9 = vpop.f32.mrf.mxu1  ;;  %v3585_v10 = vpop.f32.mrf.mxu0 }
 0x186   :  { %v3586_v19 = vadd.f32 %v3585_v10, %v3584_v8 }
 0x187   :  { %v3607_v11 = vpop.f32.mrf.mxu1  ;;  %v3587_v12 = vpop.f32.mrf.mxu0 }
 0x188   :  { %v2748_v24 = vadd.f32 %v3586_v19, %v2708_v6  ;;  %v3608_v25 = vadd.f32 %v3607_v11, %v3606_v9 }
 0x189   :  { %v3609_v13 = vpop.f32.mrf.mxu1  ;;  %v3588_v14 = vpop.f32.mrf.mxu0 }
 0x18a   :  { %v2788_v27 = vadd.f32 %v3608_v25, %v2748_v24 }
 0x18b   :  { %v3610_v15 = vpop.f32.mrf.mxu1 }
 0x1a3   :  { %v3628_v16 = vpop.f32.mrf.mxu0 }
 0x1a5   :  { %v3650_v17 = vpop.f32.mrf.mxu1  ;;  %v3629_v18 = vpop.f32.mrf.mxu0 }
 0x1a6   :  { %v3630_v26 = vadd.f32 %v3629_v18, %v3628_v16 }
 0x1a7   :  { %v3651_v20 = vpop.f32.mrf.mxu1  ;;  %v3631_v21 = vpop.f32.mrf.mxu0 }
 0x1a8   :  { %v2828_v28 = vadd.f32 %v3630_v26, %v2788_v27  ;;  %v3652_v29 = vadd.f32 %v3651_v20, %v3650_v17 }
 0x1a9   :  { %v3653_v22 = vpop.f32.mrf.mxu1  ;;  %v3632_v23 = vpop.f32.mrf.mxu0 }
 0x1aa   :  { %v2868_v33 = vadd.f32 %v3652_v29, %v2828_v28 }
 0x1ab   :  { %v3654_v41 = vpop.f32.mrf.mxu1 }
 0x1c3   :  { %v3672_v30 = vpop.f32.mrf.mxu0 }
 0x1c5   :  { %v3694_v31 = vpop.f32.mrf.mxu1  ;;  %v3673_v32 = vpop.f32.mrf.mxu0 }
 0x1c6   :  { %v3674_v34 = vadd.f32 %v3673_v32, %v3672_v30 }
 0x1c7   :  { %v3695_v35 = vpop.f32.mrf.mxu1  ;;  %v3675_v36 = vpop.f32.mrf.mxu0 }
 0x1c8   :  { %v2908_v37 = vadd.f32 %v3674_v34, %v2868_v33  ;;  %v3696_v38 = vadd.f32 %v3695_v35, %v3694_v31 }
 0x1c9   :  { %v3697_v39 = vpop.f32.mrf.mxu1  ;;  %v3676_v40 = vpop.f32.mrf.mxu0 }
 0x1ca   :  { %v2948_v42 = vadd.f32 %v3696_v38, %v2908_v37 }
 0x1cb   :  { %v3698_v43 = vpop.f32.mrf.mxu1 }
 0x1cc   :  { %v2953_v44 = vmax.f32 %v2948_v42, 0.0 }
 0x1ce   :  { %v2954_v45 = vpack.c.bf16 %v2953_v44, %v2953_v44 }
 0x1d0   :  { %3726 = vmatmul.mubr.bf16.vlgmr.msra.gmra.mxu0 %v2954_v45 }
 0x290   :  { %v3060_v47 = vpop.f32.mrf.mxu0 }
 0x291   :  { %v3061_v48 = vadd.f32 %v3339_v46, %v3060_v47 }
 0x292   :  { %v3727_v49 = vpop.f32.mrf.mxu0 }
 0x293   :  { %3067 = vst.msk [vmem:[#allocation2] sm:$0x3] %vm3066_vm1, %v3061_v48 }
 0x294   :  { %v3063_v50 = vpop.f32.mrf.mxu0 }
 0x295   :  { %4012 = shalt.err (!%p4009_p4)
}
 0x296   :  { %3077 = dma.vmem_to_hbm [thread:$0]  %s3075_s25, 32, %s4921_s5, [#allocation3]   ;;  %v3728_v51 = vpop.f32.mrf.mxu0 }
 0x297   :  { %4021 = dma.done.wait [#allocation3], 32  }
 0x298   :  { %4022 = vsyncadd [#allocation3], 4294967264 }
 0x299   :  { %3081 = vsyncpa [#allocation3], 1 }

// kernel: cnn_forward.4
= control target key start
LH: loop header
LB: loop body
LE: loop exit
PB: predicated region body
PF: predicated region fallthrough
CT: control target
= control target key end

     0   :  { %s6659_s22 = smov 64   ;;  %vm139_vm0 = vsmask.f32 3328  ;;  %vm140_vm1 = vsmask.f32 7440  ;;  %s6660_s6 = smov 96   ;;  %s9751_s0 = inlined_call_operand.vmem [shape: bf16[2,9,9,128], index: 0, kind: input, shape index: {}]   ;;  %s9752_s1 = inlined_call_operand.vmem [shape: bf16[9,32,64], index: 1, kind: input, shape index: {}]   ;;  %s9753_s2 = inlined_call_operand.vmem [shape: f32[1,64], index: 2, kind: input, shape index: {}]   ;;  %s9754_s3 = inlined_call_operand.vmem [shape: bf16[2,8,8,64], index: 3, kind: output, shape index: {}]  }
   0x1   :  { %v19_v0 = vld [vmem:[%s9751_s0 + $0x20] sm:$0xf]  ;;  %v20_v1 = vld [vmem:[%s9751_s0 + $0x28] sm:$0xf]  ;;  %v17_v12 = vld [vmem:[%s9751_s0 + $0x10] sm:$0xf] }
   0x2   :  { %v15_v2 = vld [vmem:[%s9751_s0] sm:$0xf]  ;;  %v6691_v3 = vcombine.low %v19_v0, %v20_v1  ;;  %v199_v4 = vshrl.u32 %v19_v0, 16  ;;  %v202_v5 = vshll.u32 %v19_v0, 16  ;;  %v213_v6 = vshrl.u32 %v20_v1, 16  ;;  %vm6826_vm2 = vmor %vm139_vm0, %vm140_vm1  ;;  %s6661_s15 = smov 32  }
   0x3   :  { %v16_v7 = vld [vmem:[%s9751_s0 + $0x8] sm:$0xf]  ;;  %v216_v8 = vshll.u32 %v20_v1, 16  ;;  %v143_v10 = vshrl.u32 %v15_v2, 16  ;;  %v146_v11 = vshll.u32 %v15_v2, 16  ;;  %v171_v25 = vshrl.u32 %v17_v12, 16 }
   0x4   :  { %v6696_v9 = vcombine.low %v15_v2, %v16_v7  ;;  %v6701_v13 = vrot.slane %v199_v4, 4  ;;  %v6703_v14 = vrot.slane %v202_v5, 5  ;;  %v6705_v15 = vrot.slane %v213_v6, 4  ;;  %91 = vrot.lane.b32.xlu1 %v6691_v3, %s6659_s22  ;;  %v18_v17 = vld [vmem:[%s9751_s0 + $0x18] sm:$0xf] }
   0x5   :  { %v157_v16 = vshrl.u32 %v16_v7, 16  ;;  %v6712_v18 = vrot.slane %v216_v8, 5  ;;  %v6714_v19 = vrot.slane %v143_v10, 4  ;;  %v6716_v20 = vrot.slane %v146_v11, 5  ;;  %v23_v22 = vld [vmem:[%s9751_s0 + $0x48] sm:$0xf] }
   0x6   :  { %v160_v21 = vshll.u32 %v16_v7, 16  ;;  %87 = vrot.lane.b32.xlu0 %v6696_v9, %s6659_s22  ;;  %v6725_v24 = vcombine.low %v17_v12, %v18_v17  ;;  %v174_v26 = vshll.u32 %v17_v12, 16  ;;  %v24_v27 = vld [vmem:[%s9751_s0 + $0x50] sm:$0xf]  ;;  %v185_v29 = vshrl.u32 %v18_v17, 16 }
   0x7   :  { %v6723_v23 = vrot.slane %v157_v16, 4  ;;  %v188_v30 = vshll.u32 %v18_v17, 16  ;;  %v6732_v31 = vcombine.low %v23_v22, %v24_v27  ;;  %v21_v32 = vld [vmem:[%s9751_s0 + $0x30] sm:$0xf]  ;;  %v6737_v33 = vrot.slane %v171_v25, 4 }
   0x8   :  { %v6730_v28 = vrot.slane %v160_v21, 5  ;;  %v6739_v34 = vrot.slane %v174_v26, 5  ;;  %v255_v35 = vshrl.u32 %v23_v22, 16  ;;  %v258_v36 = vshll.u32 %v23_v22, 16  ;;  %v22_v37 = vld [vmem:[%s9751_s0 + $0x38] sm:$0xf] }
   0x9   :  { %v6744_v38 = vrot.slane %v185_v29, 4  ;;  %v6746_v39 = vrot.slane %v188_v30, 5  ;;  %v269_v40 = vshrl.u32 %v24_v27, 16  ;;  %v272_v41 = vshll.u32 %v24_v27, 16  ;;  %v27_v42 = vld [vmem:[%s9751_s0 + $0x68] sm:$0xf] }
   0xa   :  { %89 = vrot.lane.b32.xlu0 %v6725_v24, %s6659_s22  ;;  %v6753_v43 = vrot.slane %v255_v35, 4  ;;  %v6755_v44 = vrot.slane %v258_v36, 5  ;;  %v6757_v45 = vcombine.low %v21_v32, %v22_v37  ;;  %v227_v46 = vshrl.u32 %v21_v32, 16  ;;  %v28_v47 = vld [vmem:[%s9751_s0 + $0x70] sm:$0xf]  ;;  %v6642_v27 = vld [vmem:[%s9752_s1 + $0x40] sm:$0xff]  }
   0xb   :  { %v6762_v48 = vrot.slane %v269_v40, 4  ;;  %v6764_v49 = vrot.slane %v272_v41, 5  ;;  %v230_v50 = vshll.u32 %v21_v32, 16  ;;  %v241_v51 = vshrl.u32 %v22_v37, 16  ;;  %v25_v52 = vld [vmem:[%s9751_s0 + $0x58] sm:$0xf] }
   0xc   :  { %v6769_v53 = vrot.slane %v227_v46, 4  ;;  %v244_v54 = vshll.u32 %v22_v37, 16  ;;  %93 = vrot.lane.b32.xlu1 %v6757_v45, %s6659_s22  ;;  %v6773_v55 = vcombine.low %v27_v42, %v28_v47  ;;  %v311_v56 = vshrl.u32 %v27_v42, 16  ;;  %v26_v57 = vld [vmem:[%s9751_s0 + $0x60] sm:$0xf] }
   0xd   :  { %v6780_v58 = vrot.slane %v230_v50, 5  ;;  %v6782_v59 = vrot.slane %v241_v51, 4  ;;  %v314_v60 = vshll.u32 %v27_v42, 16  ;;  %v325_v61 = vshrl.u32 %v28_v47, 16  ;;  %v123_v2 = vld [vmem:[%s9751_s0 + $0x4] sm:$0x1] }
   0xe   :  { %95 = vrot.lane.b32.xlu0 %v6732_v31, %s6659_s22  ;;  %v6784_v62 = vrot.slane %v244_v54, 5  ;;  %v6786_v63 = vrot.slane %v311_v56, 4  ;;  %v328_v0 = vshll.u32 %v28_v47, 16  ;;  %v6788_v1 = vcombine.low %v25_v52, %v26_v57  ;;  %v124_v8 = vld [vmem:[%s9751_s0 + $0xc] sm:$0x1] }
   0xf   :  { %v6793_v4 = vrot.slane %v314_v60, 5  ;;  %v6795_v5 = vrot.slane %v325_v61, 4  ;;  %v283_v6 = vshrl.u32 %v25_v52, 16  ;;  %v286_v7 = vshll.u32 %v25_v52, 16  ;;  %v29_v16 = vld [vmem:[%s9751_s0 + $0x78] sm:$0xf] }
  0x10   :  { %v297_v10 = vshrl.u32 %v26_v57, 16  ;;  %v300_v11 = vshll.u32 %v26_v57, 16  ;;  %97 = vrot.lane.b32.xlu1 %v6788_v1, %s6659_s22  ;;  %v149_v12 = vor.u32 %v6716_v20, %v6714_v19  ;;  %v6810_v17 = vld [vmem:[%s9751_s0 + $0x80] sm:$0xf]  ;;  %v6812_v21 = vrot.slane %v328_v0, 5 }
  0x11   :  { %v6816_v22 = vrot.slane %v283_v6, 4  ;;  %v152_v25 = vshll.u32 %v123_v2, 16  ;;  %v163_v19 = vor.u32 %v6730_v28, %v6723_v23  ;;  %v6820_v20 = vrot.slane %v286_v7, 5  ;;  %v127_v32 = vld [vmem:[%s9751_s0 + $0x24] sm:$0x1] }
  0x12   :  { %99 = vrot.lane.b32.xlu0 %v6773_v55, %s6659_s22  ;;  %v6822_v26 = vrot.slane %v297_v10, 4  ;;  %v150_v29 = vrot.slane %v149_v12, 4  ;;  %v166_v30 = vshll.u32 %v124_v8, 16  ;;  %v6834_v23 = vcombine.low %v29_v16, %v6810_v17  ;;  %v128_v50 = vld [vmem:[%s9751_s0 + $0x2c] sm:$0x1] }
  0x13   :  { %v154_v35 = vrot.slane %v152_v25, 5  ;;  %v164_v36 = vrot.slane %v163_v19, 4  ;;  %v339_v28 = vshrl.u32 %v29_v16, 16  ;;  %v6836_v37 = vrot.slane %v300_v11, 5  ;;  %v125_v54 = vld [vmem:[%s9751_s0 + $0x14] sm:$0x1] }
  0x14   :  { %v168_v40 = vrot.slane %v166_v30, 5  ;;  %v342_v41 = vshll.u32 %v29_v16, 16  ;;  %v353_v42 = vshrl.u32 %v6810_v17, 16  ;;  %v356_v47 = vshll.u32 %v6810_v17, 16  ;;  %101 = vrot.lane.b32.xlu1 %v6834_v23, %s6659_s22  ;;  %v126_v0 = vld [vmem:[%s9751_s0 + $0x1c] sm:$0x1] }
  0x15   :  { %v155_v46 = vsel %vm6826_vm2, %v150_v29, %v154_v35  ;;  %v205_v51 = vor.u32 %v6703_v14, %v6701_v13  ;;  %v208_v52 = vshll.u32 %v127_v32, 16  ;;  %v6854_v57 = vrot.slane %v339_v28, 4  ;;  %v131_v12 = vld [vmem:[%s9751_s0 + $0x4c] sm:$0x1]  ;;  %v130_v29 = vld [vmem:[%s9751_s0 + $0x3c] sm:$0x1] }
  0x16   :  { %v169_v56 = vsel %vm6826_vm2, %v164_v36, %v168_v40  ;;  %v6856_v60 = vrot.slane %v342_v41, 5  ;;  %v6858_v61 = vrot.slane %v353_v42, 4  ;;  %v219_v6 = vor.u32 %v6712_v18, %v6705_v15 }
  0x17   :  { %v6863_v2 = vcombine.low %v155_v46, %v169_v56  ;;  %v206_v13 = vrot.slane %v205_v51, 4  ;;  %v210_v14 = vrot.slane %v208_v52, 5  ;;  %v222_v7 = vshll.u32 %v128_v50, 16  ;;  %v136_v50 = vld [vmem:[%s9751_s0 + $0x74] sm:$0x1] }
  0x18   :  { %v177_v8 = vor.u32 %v6739_v34, %v6737_v33  ;;  %v180_v10 = vshll.u32 %v125_v54, 16  ;;  %v191_v11 = vor.u32 %v6746_v39, %v6744_v38  ;;  %v220_v15 = vrot.slane %v219_v6, 4  ;;  %v132_v33 = vld [vmem:[%s9751_s0 + $0x54] sm:$0x1]  ;;  %v134_v6 = vld [vmem:[%s9751_s0 + $0x64] sm:$0x1] }
  0x19   :  { %406 = vrot.lane.b32.xlu0 %v6863_v2, %s6660_s6  ;;  %v211_v16 = vsel %vm6826_vm2, %v206_v13, %v210_v14  ;;  %v194_v18 = vshll.u32 %v126_v0, 16  ;;  %v261_v34 = vor.u32 %v6755_v44, %v6753_v43  ;;  %v129_v38 = vld [vmem:[%s9751_s0 + $0x34] sm:$0x1]  ;;  %v224_v39 = vrot.slane %v222_v7, 5  ;;  %v135_v43 = vld [vmem:[%s9751_s0 + $0x6c] sm:$0x1] }
  0x1a   :  { %v178_v17 = vrot.slane %v177_v8, 4  ;;  %v182_v25 = vrot.slane %v180_v10, 5  ;;  %v192_v19 = vrot.slane %v191_v11, 4  ;;  %v264_v35 = vshll.u32 %v131_v12, 16 }
  0x1b   :  { %v196_v30 = vrot.slane %v194_v18, 5  ;;  %v262_v32 = vrot.slane %v261_v34, 4  ;;  %v275_v36 = vor.u32 %v6764_v49, %v6762_v48  ;;  %v225_v44 = vsel %vm6826_vm2, %v220_v15, %v224_v39 }
  0x1c   :  { %v183_v28 = vsel %vm6826_vm2, %v178_v17, %v182_v25  ;;  %v278_v40 = vshll.u32 %v132_v33, 16  ;;  %v233_v41 = vor.u32 %v6780_v58, %v6769_v53  ;;  %v6902_v42 = vcombine.low %v211_v16, %v225_v44  ;;  %v133_v58 = vld [vmem:[%s9751_s0 + $0x5c] sm:$0x1] }
  0x1d   :  { %390 = vrot.lane.b32.xlu0 %v6863_v2, %s6661_s15  ;;  %v197_v48 = vsel %vm6826_vm2, %v192_v19, %v196_v30  ;;  %v266_v49 = vrot.slane %v264_v35, 5  ;;  %v276_v46 = vrot.slane %v275_v36, 4  ;;  %v236_v53 = vshll.u32 %v129_v38, 16 }
  0x1e   :  { %v6909_v51 = vcombine.low %v183_v28, %v197_v48  ;;  %v280_v52 = vrot.slane %v278_v40, 5  ;;  %v234_v54 = vrot.slane %v233_v41, 4  ;;  %v358_v56 = vrot.slane %v356_v47, 5 }
  0x1f   :  { %v247_v0 = vor.u32 %v6784_v62, %v6782_v59  ;;  %v250_v13 = vshll.u32 %v130_v29, 16  ;;  %v317_v14 = vor.u32 %v6793_v4, %v6786_v63  ;;  %v267_v7 = vsel %vm6826_vm2, %v262_v32, %v266_v49 }
  0x20   :  { %408 = vrot.lane.b32.xlu1 %v6909_v51, %s6660_s6  ;;  %v238_v8 = vrot.slane %v236_v53, 5  ;;  %v320_v10 = vshll.u32 %v135_v43, 16  ;;  %v331_v47 = vor.u32 %v6812_v21, %v6795_v5  ;;  %v281_v59 = vsel %vm6826_vm2, %v276_v46, %v280_v52  ;;  %v6631_v52 = vld [vmem:[%s9752_s1 + $0x18] sm:$0xff]  }
  0x21   :  { %410 = vrot.lane.b32.xlu0 %v6902_v42, %s6660_s6  ;;  %v248_v62 = vrot.slane %v247_v0, 4  ;;  %v252_v63 = vrot.slane %v250_v13, 5  ;;  %v318_v4 = vrot.slane %v317_v14, 4  ;;  %v334_v15 = vshll.u32 %v136_v50, 16  ;;  %6610 = vmatprep.subr.bf16.mxu1 %v6631_v52 }
  0x22   :  { %v239_v11 = vsel %vm6826_vm2, %v234_v54, %v238_v8  ;;  %v322_v12 = vrot.slane %v320_v10, 5  ;;  %v332_v16 = vrot.slane %v331_v47, 4  ;;  %v289_v5 = vor.u32 %v6820_v20, %v6816_v22  ;;  %v137_v22 = vld [vmem:[%s9751_s0 + $0x7c] sm:$0x1]  ;;  %5998 = vmatprep.subr.bf16.mxu0 %v6631_v52  ;;  %6612 = vmatpush3.bf16.msra.mxu1 %v6631_v52  ;;  %v6633_v54 = vld [vmem:[%s9752_s1 + $0x10] sm:$0xff]  }
  0x23   :  { %v253_v18 = vsel %vm6826_vm2, %v248_v62, %v252_v63  ;;  %v292_v21 = vshll.u32 %v133_v58, 16  ;;  %v303_v33 = vor.u32 %v6836_v37, %v6822_v26  ;;  %v336_v38 = vrot.slane %v334_v15, 5  ;;  %v138_v26 = vld [vmem:[%s9751_s0 + $0x84] sm:$0x1]  ;;  %5999 = vmatpush3.bf16.msra.mxu0 %v6631_v52  ;;  %6611 = vmatprep.subr.bf16.mxu1 %v6633_v54  ;;  %v7066_v63 = vld [vmem:[%s9752_s1 + $0x28] sm:$0xff]  }
  0x24   :  { %392 = vrot.lane.b32.xlu1 %v6909_v51, %s6661_s15  ;;  %v6941_v34 = vcombine.low %v239_v11, %v253_v18  ;;  %v306_v39 = vshll.u32 %v134_v6, 16  ;;  %v6945_v17 = vcombine.low %v267_v7, %v281_v59  ;;  %v290_v25 = vrot.slane %v289_v5, 4  ;;  %6000 = vmatprep.subr.bf16.mxu0 %v6633_v54  ;;  %v7055_v59 = vld [vmem:[%s9752_s1 + $0x8] sm:$0xff]  }
  0x25   :  { %394 = vrot.lane.b32.xlu0 %v6902_v42, %s6661_s15  ;;  %v294_v19 = vrot.slane %v292_v21, 5  ;;  %v304_v29 = vrot.slane %v303_v33, 4  ;;  %v323_v37 = vsel %vm6826_vm2, %v318_v4, %v322_v12  ;;  %v337_v30 = vsel %vm6826_vm2, %v332_v16, %v336_v38 }
  0x26   :  { %v308_v20 = vrot.slane %v306_v39, 5  ;;  %v345_v32 = vor.u32 %v6856_v60, %v6854_v57  ;;  %v348_v35 = vshll.u32 %v137_v22, 16  ;;  %v359_v44 = vor.u32 %v358_v56, %v6858_v61  ;;  %6613 = vmatpush3.bf16.msra.mxu1 %v6633_v54  ;;  %v7166_v22 = vld [vmem:[%s9751_s0 + $0x28] ss:$8 sps:$4 sm:$0xff]  }
  0x27   :  { %v295_v36 = vsel %vm6826_vm2, %v290_v25, %v294_v19  ;;  %v362_v28 = vshll.u32 %v138_v26, 16  ;;  %v6970_v40 = vcombine.low %v323_v37, %v337_v30  ;;  %6001 = vmatpush3.bf16.msra.mxu0 %v6633_v54  ;;  %6066 = vmatprep.subr.bf16.mxu1 %v7055_v59  ;;  %vm487_vm3 = vcmask 261120   ;;  %v7184_v26 = vld [vmem:[%s9751_s0 + $0x70] ss:$8 sps:$4 sm:$0xff]  }
  0x28   :  { %412 = vrot.lane.b32.xlu1 %v6941_v34, %s6660_s6  ;;  %v309_v43 = vsel %vm6826_vm2, %v304_v29, %v308_v20  ;;  %v346_v57 = vrot.slane %v345_v32, 4  ;;  %v350_v60 = vrot.slane %v348_v35, 5  ;;  %v360_v48 = vrot.slane %v359_v44, 4  ;;  %6134 = vmatprep.subr.bf16.mxu0 %v7066_v63  ;;  %v7157_v29 = vld [vmem:[%s9751_s0 + $0x8] ss:$8 sps:$4 sm:$0xff]  }
  0x29   :  { %414 = vrot.lane.b32.xlu0 %v6945_v17, %s6660_s6  ;;  %v6972_v41 = vcombine.low %v295_v36, %v309_v43  ;;  %v364_v49 = vrot.slane %v362_v28, 5  ;;  %9896 = vst [vmem:[#allocation21_spill] sm:$0xff] %v7157_v29  ;;  %v7175_v20 = vld [vmem:[%s9751_s0 + $0x50] ss:$8 sps:$4 sm:$0xff]   ;;  %v7207_v32 = vld [vmem:[%s9751_s0 + $0x60] ss:$8 sps:$4 sm:$0xff]  }
  0x2a   :  { %v351_v61 = vsel %vm6826_vm2, %v346_v57, %v350_v60  ;;  %v7189_v37 = vld [vmem:[%s9751_s0 + $0x18] ss:$8 sps:$4 sm:$0xff]   ;;  %v5461_v35 = vld [vmem:[%s9751_s0 + $0x8] sm:$0xf]  ;;  %v5463_v36 = vld [vmem:[%s9751_s0 + $0x10] sm:$0xf] }
  0x2b   :  { %v365_v46 = vsel %vm6826_vm2, %v360_v48, %v364_v49  ;;  %9897 = vst [vmem:[#allocation22_spill] sm:$0xff] %v7189_v37  ;;  %v7198_v30 = vld [vmem:[%s9751_s0 + $0x38] ss:$8 sps:$4 sm:$0xff]   ;;  %v2340_v44 = vshrl.u32 %v5461_v35, 16  ;;  %v2343_v28 = vshll.u32 %v5461_v35, 16  ;;  %v2354_v57 = vshrl.u32 %v5463_v36, 16 }
  0x2c   :  { %396 = vrot.lane.b32.xlu1 %v6941_v34, %s6661_s15  ;;  %v6986_v50 = vcombine.low %v351_v61, %v365_v46  ;;  %v7222_v43 = vld [vmem:[%s9751_s0 + $0x80] ss:$8 sps:$4 sm:$0xff]   ;;  %v2357_v60 = vshll.u32 %v5463_v36, 16  ;;  %v5465_v48 = vld [vmem:[%s9751_s0 + $0x18] sm:$0xf]  ;;  %vm5252_vm4 = vcmask 519168  }
  0x2d   :  { %398 = vrot.lane.b32.xlu0 %v6945_v17, %s6661_s15  ;;  %v5467_v49 = vld [vmem:[%s9751_s0 + $0x20] sm:$0xf]  ;;  %v5462_v46 = vld [vmem:[%s9751_s0 + $0xc] sm:$0x1]  ;;  %v2342_v52 = vrot.slane %v2340_v44, 4  ;;  %v2345_v54 = vrot.slane %v2343_v28, 5 }
  0x2e   :  { %v2356_v35 = vrot.slane %v2354_v57, 4  ;;  %v2359_v36 = vrot.slane %v2357_v60, 5  ;;  %v6637_v28 = vld [vmem:[%s9752_s1] sm:$0xff]  }
  0x30   :  { %416 = vrot.lane.b32.xlu1 %v6972_v41, %s6660_s6 }
  0x31   :  { %418 = vrot.lane.b32.xlu0 %v6970_v40, %s6660_s6 }
  0x34   :  { %400 = vrot.lane.b32.xlu1 %v6972_v41, %s6661_s15 }
  0x35   :  { %402 = vrot.lane.b32.xlu0 %v6970_v40, %s6661_s15 }
  0x38   :  { %420 = vrot.lane.b32.xlu1 %v6986_v50, %s6660_s6 }
  0x39   :  { %404 = vrot.lane.b32.xlu0 %v6986_v50, %s6661_s15 }
  0x3d   :  { %71 = vrot.lane.b32.xlu0 %v6696_v9, %s6660_s6 }
  0x76   :  { %v7002_v53 = vpop.permute.xlu1 %91 }
  0x77   :  { %9877 = vst [vmem:[#allocation2_spill] sm:$0xff] %v7002_v53  ;;  %447 = vrot.lane.b32.xlu0 %v7002_v53, %s6660_s6  ;;  %v2346_v53 = vor.u32 %v2345_v54, %v2342_v52 }
  0x78   :  { %v7004_v58 = vpop.permute.xlu0 %87 }
  0x79   :  { %9878 = vst [vmem:[#allocation3_spill] sm:$0xff] %v7004_v58  ;;  %443 = vrot.lane.b32.xlu1 %v7004_v58, %s6660_s6 }
  0x7b   :  { %75 = vrot.lane.b32.xlu0 %v6691_v3, %s6660_s6 }
  0x7c   :  { %v7010_v56 = vpop.permute.xlu0 %89 }
  0x7d   :  { %9879 = vst [vmem:[#allocation4_spill] sm:$0xff] %v7010_v56  ;;  %445 = vrot.lane.b32.xlu1 %v7010_v56, %s6660_s6  ;;  %v2349_v56 = vshll.u32 %v5462_v46, 16  ;;  %v2347_v46 = vrot.slane %v2346_v53, 4  ;;  %v5469_v53 = vld [vmem:[%s9751_s0 + $0x28] sm:$0xf] }
  0x7e   :  { %v7022_v13 = vpop.permute.xlu1 %93 }
  0x7f   :  { %9881 = vst [vmem:[#allocation6_spill] sm:$0xff] %v7022_v13  ;;  %v2351_v52 = vrot.slane %v2349_v56, 5 }
  0x80   :  { %v7016_v0 = vpop.permute.xlu0 %95 }
  0x81   :  { %9880 = vst [vmem:[#allocation5_spill] sm:$0xff] %v7016_v0  ;;  %73 = vrot.lane.b32.xlu1 %v6725_v24, %s6660_s6  ;;  %451 = vrot.lane.b32.xlu0 %v7016_v0, %s6660_s6  ;;  %v2382_v0 = vshrl.u32 %v5467_v49, 16  ;;  %v2352_v56 = vsel %vm6826_vm2, %v2347_v46, %v2351_v52 }
  0x82   :  { %v7034_v6 = vpop.permute.xlu1 %97 }
  0x83   :  { %9883 = vst [vmem:[#allocation8_spill] sm:$0xff] %v7034_v6  ;;  %v2384_v58 = vrot.slane %v2382_v0, 4  ;;  %v6638_v0 = vld [vmem:[%s9752_s1 + $0x20] sm:$0xff]  }
  0x84   :  { %v7028_v14 = vpop.permute.xlu0 %99 }
  0x85   :  { %449 = vrot.lane.b32.xlu1 %v7022_v13, %s6660_s6  ;;  %79 = vrot.lane.b32.xlu0 %v6732_v31, %s6660_s6  ;;  %9882 = vst [vmem:[#allocation7_spill] sm:$0xff] %v7028_v14  ;;  %v2385_v13 = vshll.u32 %v5467_v49, 16 }
  0x86   :  { %v7042_v8 = vpop.permute.xlu1 %101 }
  0x87   :  { %9884 = vst [vmem:[#allocation9_spill] sm:$0xff] %v7042_v8  ;;  %v2387_v49 = vrot.slane %v2385_v13, 5 }
  0x89   :  { %77 = vrot.lane.b32.xlu1 %v6757_v45, %s6660_s6  ;;  %455 = vrot.lane.b32.xlu0 %v7028_v14, %s6660_s6  ;;  %v2368_v14 = vshrl.u32 %v5465_v48, 16 }
  0x8b   :  { %v7036_v7 = vpop.permute.xlu0 %406  ;;  %v2370_v60 = vrot.slane %v2368_v14, 4 }
  0x8d   :  { %453 = vrot.lane.b32.xlu1 %v7034_v6, %s6660_s6  ;;  %83 = vrot.lane.b32.xlu0 %v6773_v55, %s6660_s6  ;;  %v2371_v6 = vshll.u32 %v5465_v48, 16 }
  0x8f   :  { %v7044_v10 = vpop.permute.xlu0 %390  ;;  %v2373_v48 = vrot.slane %v2371_v6, 5 }
  0x90   :  { %9885 = vst [vmem:[#allocation10_spill] sm:$0xff] %v7044_v10 }
  0x91   :  { %81 = vrot.lane.b32.xlu1 %v6788_v1, %s6660_s6  ;;  %459 = vrot.lane.b32.xlu0 %v7036_v7, %s6660_s6 }
  0x92   :  { %v7050_v47 = vpop.permute.xlu1 %408 }
  0x93   :  { %9886 = vst [vmem:[#allocation11_spill] sm:$0xff] %v7050_v47  ;;  %v7057_v62 = vpop.permute.xlu0 %410 }
  0x94   :  { %9887 = vst [vmem:[#allocation12_spill] sm:$0xff] %v7057_v62 }
  0x95   :  { %457 = vrot.lane.b32.xlu1 %v7042_v8, %s6660_s6  ;;  %427 = vrot.lane.b32.xlu0 %v7044_v10, %s6660_s6  ;;  %v5464_v8 = vld [vmem:[%s9751_s0 + $0x14] sm:$0x1] }
  0x96   :  { %v7069_v4 = vpop.permute.xlu1 %392  ;;  %v2363_v44 = vshll.u32 %v5464_v8, 16  ;;  %v5468_v8 = vld [vmem:[%s9751_s0 + $0x24] sm:$0x1] }
  0x97   :  { %9888 = vst [vmem:[#allocation13_spill] sm:$0xff] %v7069_v4  ;;  %v7072_v11 = vpop.permute.xlu0 %394 }
  0x98   :  { %9889 = vst [vmem:[#allocation14_spill] sm:$0xff] %v7072_v11  ;;  %v2365_v6 = vrot.slane %v2363_v44, 5 }
  0x99   :  { %85 = vrot.lane.b32.xlu1 %v6834_v23, %s6660_s6  ;;  %463 = vrot.lane.b32.xlu0 %v7057_v62, %s6660_s6 }
  0x9a   :  { %v7078_v12 = vpop.permute.xlu1 %412 }
  0x9b   :  { %9890 = vst [vmem:[#allocation15_spill] sm:$0xff] %v7078_v12  ;;  %v7080_v16 = vpop.permute.xlu0 %414 }
  0x9c   :  { %9891 = vst [vmem:[#allocation16_spill] sm:$0xff] %v7080_v16 }
  0x9d   :  { %461 = vrot.lane.b32.xlu1 %v7050_v47, %s6660_s6  ;;  %431 = vrot.lane.b32.xlu0 %v7072_v11, %s6660_s6 }
  0x9e   :  { %v7088_v18 = vpop.permute.xlu1 %396 }
  0x9f   :  { %v7086_v15 = vpop.permute.xlu0 %398  ;;  %9892 = vst [vmem:[#allocation17_spill] sm:$0xff] %v7088_v18 }
  0xa1   :  { %429 = vrot.lane.b32.xlu1 %v7069_v4, %s6660_s6  ;;  %467 = vrot.lane.b32.xlu0 %v7080_v16, %s6660_s6 }
  0xa2   :  { %v7100_v21 = vpop.permute.xlu1 %416 }
  0xa3   :  { %v7094_v5 = vpop.permute.xlu0 %418  ;;  %9894 = vst [vmem:[#allocation19_spill] sm:$0xff] %v7100_v21 }
  0xa4   :  { %9893 = vst [vmem:[#allocation18_spill] sm:$0xff] %v7094_v5 }
  0xa5   :  { %465 = vrot.lane.b32.xlu1 %v7078_v12, %s6660_s6  ;;  %435 = vrot.lane.b32.xlu0 %v7086_v15, %s6660_s6 }
  0xa6   :  { %v7108_v38 = vpop.permute.xlu1 %400 }
  0xa7   :  { %v7106_v33 = vpop.permute.xlu0 %402 }
  0xa9   :  { %433 = vrot.lane.b32.xlu1 %v7088_v18, %s6660_s6  ;;  %471 = vrot.lane.b32.xlu0 %v7094_v5, %s6660_s6  ;;  %v2391_v5 = vshll.u32 %v5468_v8, 16  ;;  %v2399_v8 = vshll.u32 %v5469_v53, 16 }
  0xaa   :  { %v7122_v19 = vpop.permute.xlu1 %420 }
  0xab   :  { %v7114_v39 = vpop.permute.xlu0 %404  ;;  %9895 = vst [vmem:[#allocation20_spill] sm:$0xff] %v7122_v19 }
  0xad   :  { %469 = vrot.lane.b32.xlu1 %v7100_v21, %s6660_s6  ;;  %439 = vrot.lane.b32.xlu0 %v7106_v33, %s6660_s6 }
  0xaf   :  { %v7120_v25 = vpop.permute.xlu0 %71 }
  0xb0   :  { %6002 = vmatprep.mubr.msk.bf16.mxu0 %vm487_vm3, %v7120_v25 }
  0xb1   :  { %437 = vrot.lane.b32.xlu1 %v7108_v38, %s6660_s6  ;;  %1246 = vrot.lane.b32.xlu0 %v6863_v2, %s6659_s22 }
  0xb5   :  { %473 = vrot.lane.b32.xlu1 %v7122_v19, %s6660_s6  ;;  %1250 = vrot.lane.b32.xlu0 %v6902_v42, %s6659_s22  ;;  %v2360_v19 = vor.u32 %v2359_v36, %v2356_v35  ;;  %v2374_v35 = vor.u32 %v2373_v48, %v2370_v60 }
  0xb7   :  { %v2361_v14 = vrot.slane %v2360_v19, 4  ;;  %v2375_v48 = vrot.slane %v2374_v35, 4 }
  0xb9   :  { %1254 = vrot.lane.b32.xlu0 %v6945_v17, %s6659_s22  ;;  %441 = vrot.lane.b32.xlu1 %v7114_v39, %s6660_s6  ;;  %v2366_v19 = vsel %vm6826_vm2, %v2361_v14, %v2365_v6  ;;  %v5473_v14 = vld [vmem:[%s9751_s0 + $0x38] sm:$0xf] }
  0xbd   :  { %1258 = vrot.lane.b32.xlu0 %v6970_v40, %s6659_s22  ;;  %1248 = vrot.lane.b32.xlu1 %v6909_v51, %s6659_s22 }
  0xc1   :  { %103 = vrot.lane.b32.xlu0 %v6696_v9, %s6661_s15  ;;  %1252 = vrot.lane.b32.xlu1 %v6941_v34, %s6659_s22 }
  0xc5   :  { %107 = vrot.lane.b32.xlu0 %v6691_v3, %s6661_s15  ;;  %1256 = vrot.lane.b32.xlu1 %v6972_v41, %s6659_s22 }
  0xc9   :  { %111 = vrot.lane.b32.xlu0 %v6732_v31, %s6661_s15  ;;  %1260 = vrot.lane.b32.xlu1 %v6986_v50, %s6659_s22 }
  0xcd   :  { %115 = vrot.lane.b32.xlu0 %v6773_v55, %s6661_s15  ;;  %105 = vrot.lane.b32.xlu1 %v6725_v24, %s6661_s15 }
  0xd1   :  { %1785 = vrot.lane.b32.xlu0 %v7157_v29, %s6659_s22  ;;  %109 = vrot.lane.b32.xlu1 %v6757_v45, %s6661_s15 }
  0xd5   :  { %1789 = vrot.lane.b32.xlu0 %v7166_v22, %s6659_s22  ;;  %113 = vrot.lane.b32.xlu1 %v6788_v1, %s6661_s15 }
  0xd9   :  { %1793 = vrot.lane.b32.xlu0 %v7175_v20, %s6659_s22  ;;  %117 = vrot.lane.b32.xlu1 %v6834_v23, %s6661_s15 }
  0xdd   :  { %1797 = vrot.lane.b32.xlu0 %v7184_v26, %s6659_s22  ;;  %1787 = vrot.lane.b32.xlu1 %v7189_v37, %s6659_s22 }
  0xe1   :  { %1791 = vrot.lane.b32.xlu1 %v7198_v30, %s6659_s22  ;;  %1822 = vrot.lane.b32.xlu0 %v7120_v25, %s6659_s22 }
  0xe5   :  { %2608 = vrot.lane.b32.xlu0 %v7044_v10, %s6661_s15  ;;  %1795 = vrot.lane.b32.xlu1 %v7207_v32, %s6659_s22 }
  0xe9   :  { %1799 = vrot.lane.b32.xlu1 %v7222_v43, %s6659_s22  ;;  %1801 = vrot.lane.b32.xlu0 %v7157_v29, %s6661_s15  ;;  %v448_v61 = vpop.permute.xlu0 %447 }
  0xeb   :  { %v444_v10 = vpop.permute.xlu1 %443 }
  0xec   :  { %6034 = vmatprep.mubr.msk.bf16.mxu1 %vm487_vm3, %v444_v10  ;;  %v5466_v10 = vld [vmem:[%s9751_s0 + $0x1c] sm:$0x1] }
  0xed   :  { %v7241_v29 = vpop.permute.xlu0 %75  ;;  %v2377_v36 = vshll.u32 %v5466_v10, 16 }
  0xee   :  { %1826 = vrot.lane.b32.xlu0 %v7241_v29, %s6659_s22 }
  0xef   :  { %v446_v57 = vpop.permute.xlu1 %445 }
  0xf0   :  { %6035 = vmatmul.mubr.msk.bf16.vlgmr.msra.gmra.mxu1 %vm487_vm3, %v446_v57  ;;  %v2388_v57 = vor.u32 %v2387_v49, %v2384_v58  ;;  %v5471_v58 = vld [vmem:[%s9751_s0 + $0x30] sm:$0xf]  ;;  %v2379_v49 = vrot.slane %v2377_v36, 5  ;;  %v7305_v36 = vcombine.low %v2352_v56, %v2366_v19 }
  0xf1   :  { %6038 = vmatprep.mubr.msk.bf16.mxu1 %vm487_vm3, %v448_v61  ;;  %6067 = vmatpush3.bf16.msra.mxu1 %v7055_v59  ;;  %v7265_v59 = vld [vmem:[%s9752_s1 + $0x38] sm:$0xff]   ;;  %v7287_v61 = vld [vmem:[%s9752_s1 + $0x48] sm:$0xff]   ;;  %v2410_v46 = vshrl.u32 %v5471_v58, 16  ;;  %v2413_v52 = vshll.u32 %v5471_v58, 16  ;;  %v2401_v58 = vrot.slane %v2399_v8, 5 }
  0xf2   :  { %6068 = vmatprep.subr.bf16.mxu1 %v6637_v28  ;;  %v2389_v10 = vrot.slane %v2388_v57, 4  ;;  %9899 = vst [vmem:[#allocation24_spill] sm:$0xff] %v7305_v36  ;;  %v2380_v57 = vsel %vm6826_vm2, %v2375_v48, %v2379_v49  ;;  %v2424_v48 = vshrl.u32 %v5473_v14, 16  ;;  %v2427_v49 = vshll.u32 %v5473_v14, 16 }
  0xf3   :  { %v7260_v13 = vpop.permute.xlu1 %73  ;;  %v452_v54 = vpop.permute.xlu0 %451  ;;  %v2412_v56 = vrot.slane %v2410_v46, 4  ;;  %v2415_v19 = vrot.slane %v2413_v52, 5 }
  0xf4   :  { %1824 = vrot.lane.b32.xlu1 %v7260_v13, %s6659_s22  ;;  %6003 = vmatmul.mubr.msk.bf16.vlgmr.msra.gmra.mxu0 %vm487_vm3, %v7260_v13  ;;  %v2426_v14 = vrot.slane %v2424_v48, 4 }
  0xf5   :  { %6006 = vmatprep.mubr.msk.bf16.mxu0 %vm487_vm3, %v7241_v29  ;;  %6135 = vmatpush3.bf16.msra.mxu0 %v7066_v63  ;;  %v2393_v63 = vrot.slane %v2391_v5, 5  ;;  %v5475_v5 = vld [vmem:[%s9751_s0 + $0x40] sm:$0xf]  ;;  %v2416_v52 = vor.u32 %v2415_v19, %v2412_v56 }
  0xf6   :  { %6069 = vmatpush3.bf16.msra.mxu1 %v6637_v28  ;;  %6136 = vmatprep.subr.bf16.mxu0 %v6638_v0  ;;  %v2396_v28 = vshrl.u32 %v5469_v53, 16 }
  0xf7   :  { %v450_v44 = vpop.permute.xlu1 %449  ;;  %v7289_v60 = vpop.permute.xlu0 %79  ;;  %6202 = vmatprep.subr.bf16.mxu1 %v7265_v59  ;;  %v2417_v19 = vrot.slane %v2416_v52, 4 }
  0xf8   :  { %2610 = vrot.lane.b32.xlu1 %v7069_v4, %s6661_s15  ;;  %6039 = vmatmul.mubr.msk.bf16.gmra.mxu1 %vm487_vm3, %v450_v44  ;;  %v2398_v53 = vrot.slane %v2396_v28, 4  ;;  %v5472_v44 = vld [vmem:[%s9751_s0 + $0x34] sm:$0x1] }
  0xf9   :  { %6042 = vmatprep.mubr.msk.bf16.mxu1 %vm487_vm3, %v452_v54  ;;  %6137 = vmatpush3.bf16.msra.mxu0 %v6638_v0  ;;  %v2394_v0 = vsel %vm6826_vm2, %v2389_v10, %v2393_v63  ;;  %v5470_v54 = vld [vmem:[%s9751_s0 + $0x2c] sm:$0x1]  ;;  %v2438_v10 = vshrl.u32 %v5475_v5, 16  ;;  %v2441_v63 = vshll.u32 %v5475_v5, 16  ;;  %v2419_v21 = vshll.u32 %v5472_v44, 16 }
  0xfa   :  { %6270 = vmatprep.subr.bf16.mxu0 %v7287_v61  ;;  %v7327_v28 = vcombine.low %v2380_v57, %v2394_v0  ;;  %v2402_v8 = vor.u32 %v2401_v58, %v2398_v53  ;;  %v2405_v46 = vshll.u32 %v5470_v54, 16  ;;  %v2429_v5 = vrot.slane %v2427_v49, 5  ;;  %v5474_v57 = vld [vmem:[%s9751_s0 + $0x3c] sm:$0x1]  ;;  %v5477_v53 = vld [vmem:[%s9751_s0 + $0x50] sm:$0xf] }
  0xfb   :  { %v7303_v6 = vpop.permute.xlu1 %77  ;;  %v456_v35 = vpop.permute.xlu0 %455  ;;  %v2440_v16 = vrot.slane %v2438_v10, 4  ;;  %v2443_v12 = vrot.slane %v2441_v63, 5  ;;  %v2421_v44 = vrot.slane %v2419_v21, 5  ;;  %v2433_v49 = vshll.u32 %v5474_v57, 16 }
  0xfc   :  { %9898 = vst [vmem:[#allocation23_spill] sm:$0xff] %v7303_v6  ;;  %1803 = vrot.lane.b32.xlu1 %v7189_v37, %s6661_s15  ;;  %6007 = vmatmul.mubr.msk.bf16.gmra.mxu0 %vm487_vm3, %v7303_v6  ;;  %9900 = vst [vmem:[#allocation25_spill] sm:$0xff] %v7327_v28  ;;  %v2403_v58 = vrot.slane %v2402_v8, 4  ;;  %v2407_v56 = vrot.slane %v2405_v46, 5  ;;  %v2430_v48 = vor.u32 %v2429_v5, %v2426_v14  ;;  %v5478_v14 = vld [vmem:[%s9751_s0 + $0x54] sm:$0x1] }
  0xfd   :  { %1828 = vrot.lane.b32.xlu0 %v7303_v6, %s6659_s22  ;;  %6010 = vmatprep.mubr.msk.bf16.mxu0 %vm487_vm3, %v7289_v60  ;;  %v2444_v10 = vor.u32 %v2443_v12, %v2440_v16  ;;  %v5481_v12 = vld [vmem:[%s9751_s0 + $0x60] sm:$0xf]  ;;  %v5483_v16 = vld [vmem:[%s9751_s0 + $0x68] sm:$0xf]  ;;  %v2435_v8 = vrot.slane %v2433_v49, 5  ;;  %v2461_v49 = vshll.u32 %v5478_v14, 16 }
  0xfe   :  { %v2408_v21 = vsel %vm6826_vm2, %v2403_v58, %v2407_v56  ;;  %v5480_v56 = vld [vmem:[%s9751_s0 + $0x5c] sm:$0x1] }
  0xff   :  { %v454_v37 = vpop.permute.xlu1 %453  ;;  %v7325_v4 = vpop.permute.xlu0 %83  ;;  %v2445_v46 = vrot.slane %v2444_v10, 4 }
 0x100   :  { %2587 = vrot.lane.b32.xlu1 %v7305_v36, %s6660_s6  ;;  %6043 = vmatmul.mubr.msk.bf16.gmra.mxu1 %vm487_vm3, %v454_v37  ;;  %v5476_v37 = vld [vmem:[%s9751_s0 + $0x44] sm:$0x1]  ;;  %v2452_v36 = vshrl.u32 %v5477_v53, 16 }
 0x101   :  { %2612 = vrot.lane.b32.xlu0 %v7072_v11, %s6661_s15  ;;  %6046 = vmatprep.mubr.msk.bf16.mxu1 %vm487_vm3, %v456_v35  ;;  %v5479_v35 = vld [vmem:[%s9751_s0 + $0x58] sm:$0xf]  ;;  %v2447_v63 = vshll.u32 %v5476_v37, 16  ;;  %v2455_v11 = vshll.u32 %v5477_v53, 16 }
 0x102   :  { %v2469_v6 = vshll.u32 %v5479_v35, 16  ;;  %v2454_v5 = vrot.slane %v2452_v36, 4 }
 0x103   :  { %v7341_v0 = vpop.permute.xlu1 %81  ;;  %v460_v54 = vpop.permute.xlu0 %459  ;;  %v2449_v52 = vrot.slane %v2447_v63, 5  ;;  %v2457_v57 = vrot.slane %v2455_v11, 5 }
 0x104   :  { %2589 = vrot.lane.b32.xlu1 %v7327_v28, %s6660_s6  ;;  %6011 = vmatmul.mubr.msk.bf16.gmra.mxu0 %vm487_vm3, %v7341_v0  ;;  %v2466_v28 = vshrl.u32 %v5479_v35, 16  ;;  %v2471_v53 = vrot.slane %v2469_v6, 5 }
 0x105   :  { %1805 = vrot.lane.b32.xlu0 %v7166_v22, %s6661_s15  ;;  %6014 = vmatprep.mubr.msk.bf16.mxu0 %vm487_vm3, %v7325_v4  ;;  %v2422_v22 = vsel %vm6826_vm2, %v2417_v19, %v2421_v44  ;;  %v2483_v19 = vshll.u32 %v5481_v12, 16  ;;  %v2494_v44 = vshrl.u32 %v5483_v16, 16  ;;  %v2450_v36 = vsel %vm6826_vm2, %v2445_v46, %v2449_v52 }
 0x106   :  { %v2468_v37 = vrot.slane %v2466_v28, 4  ;;  %v7385_v11 = vcombine.low %v2408_v21, %v2422_v22  ;;  %v2458_v28 = vor.u32 %v2457_v57, %v2454_v5  ;;  %v2463_v52 = vrot.slane %v2461_v49, 5 }
 0x107   :  { %v458_v62 = vpop.permute.xlu1 %457  ;;  %v428_v47 = vpop.permute.xlu0 %427  ;;  %v2485_v21 = vrot.slane %v2483_v19, 5  ;;  %v2496_v22 = vrot.slane %v2494_v44, 4  ;;  %v5487_v44 = vld [vmem:[%s9751_s0 + $0x78] sm:$0xf] }
 0x108   :  { %2614 = vrot.lane.b32.xlu1 %v7088_v18, %s6661_s15  ;;  %6047 = vmatmul.mubr.msk.bf16.gmra.mxu1 %vm487_vm3, %v458_v62  ;;  %v2431_v62 = vrot.slane %v2430_v48, 4  ;;  %v2497_v48 = vshll.u32 %v5483_v16, 16  ;;  %9901 = vst [vmem:[#allocation26_spill] sm:$0xff] %v7385_v11  ;;  %v2472_v10 = vor.u32 %v2471_v53, %v2468_v37  ;;  %v2459_v46 = vrot.slane %v2458_v28, 4 }
 0x109   :  { %1830 = vrot.lane.b32.xlu0 %v7289_v60, %s6659_s22  ;;  %6050 = vmatprep.mubr.msk.bf16.mxu1 %vm487_vm3, %v460_v54  ;;  %v2480_v54 = vshrl.u32 %v5481_v12, 16 }
 0x10a   :  { %v2436_v6 = vsel %vm6826_vm2, %v2431_v62, %v2435_v8  ;;  %v2499_v18 = vrot.slane %v2497_v48, 5  ;;  %v5482_v62 = vld [vmem:[%s9751_s0 + $0x64] sm:$0x1]  ;;  %v5484_v8 = vld [vmem:[%s9751_s0 + $0x6c] sm:$0x1]  ;;  %v2473_v14 = vrot.slane %v2472_v10, 4 }
 0x10b   :  { %v7376_v35 = vpop.permute.xlu1 %85  ;;  %v464_v58 = vpop.permute.xlu0 %463  ;;  %v2482_v16 = vrot.slane %v2480_v54, 4  ;;  %v2503_v19 = vshll.u32 %v5484_v8, 16 }
 0x10c   :  { %1807 = vrot.lane.b32.xlu1 %v7198_v30, %s6661_s15  ;;  %6015 = vmatmul.mubr.msk.bf16.gmra.mxu0 %vm487_vm3, %v7376_v35  ;;  %v2475_v30 = vshll.u32 %v5480_v56, 16  ;;  %v2489_v56 = vshll.u32 %v5482_v62, 16  ;;  %v2500_v54 = vor.u32 %v2499_v18, %v2496_v22  ;;  %v2464_v18 = vsel %vm6826_vm2, %v2459_v46, %v2463_v52  ;;  %v5491_v22 = vld [vmem:[%s9751_s0 + $0x88] sm:$0xf] }
 0x10d   :  { %1832 = vrot.lane.b32.xlu0 %v7341_v0, %s6659_s22  ;;  %6018 = vmatprep.mubr.msk.bf16.mxu0 %vm487_vm3, %v428_v47  ;;  %v7397_v47 = vcombine.low %v2436_v6, %v2450_v36  ;;  %v2486_v53 = vor.u32 %v2485_v21, %v2482_v16  ;;  %v2505_v10 = vrot.slane %v2503_v19, 5  ;;  %v2525_v16 = vshll.u32 %v5487_v44, 16  ;;  %v5489_v21 = vld [vmem:[%s9751_s0 + $0x80] sm:$0xf] }
 0x10e   :  { %v2477_v5 = vrot.slane %v2475_v30, 5  ;;  %v2501_v49 = vrot.slane %v2500_v54, 4  ;;  %v5488_v54 = vld [vmem:[%s9751_s0 + $0x7c] sm:$0x1]  ;;  %v2539_v19 = vshll.u32 %v5489_v21, 16 }
 0x10f   :  { %v462_v63 = vpop.permute.xlu1 %461  ;;  %v432_v12 = vpop.permute.xlu0 %431  ;;  %9902 = vst [vmem:[#allocation27_spill] sm:$0xff] %v7397_v47  ;;  %v2487_v28 = vrot.slane %v2486_v53, 4 }
 0x110   :  { %2591 = vrot.lane.b32.xlu1 %v7385_v11, %s6660_s6  ;;  %6051 = vmatmul.mubr.msk.bf16.gmra.mxu1 %vm487_vm3, %v462_v63  ;;  %v2478_v48 = vsel %vm6826_vm2, %v2473_v14, %v2477_v5  ;;  %v2506_v14 = vsel %vm6826_vm2, %v2501_v49, %v2505_v10  ;;  %v5486_v5 = vld [vmem:[%s9751_s0 + $0x74] sm:$0x1]  ;;  %v2531_v49 = vshll.u32 %v5488_v54, 16 }
 0x111   :  { %2616 = vrot.lane.b32.xlu0 %v7086_v15, %s6661_s15  ;;  %6054 = vmatprep.mubr.msk.bf16.mxu1 %vm487_vm3, %v464_v58  ;;  %v5485_v58 = vld [vmem:[%s9751_s0 + $0x70] sm:$0xf]  ;;  %v7436_v46 = vcombine.low %v2464_v18, %v2478_v48 }
 0x112   :  { %v2508_v30 = vshrl.u32 %v5485_v58, 16  ;;  %v2511_v63 = vshll.u32 %v5485_v58, 16  ;;  %v2550_v58 = vshrl.u32 %v5491_v22, 16 }
 0x113   :  { %v430_v57 = vpop.permute.xlu1 %429  ;;  %v468_v37 = vpop.permute.xlu0 %467  ;;  %9903 = vst [vmem:[#allocation28_spill] sm:$0xff] %v7436_v46 }
 0x114   :  { %2593 = vrot.lane.b32.xlu1 %v7397_v47, %s6660_s6  ;;  %6019 = vmatmul.mubr.msk.bf16.gmra.mxu0 %vm487_vm3, %v430_v57  ;;  %v2510_v57 = vrot.slane %v2508_v30, 4  ;;  %v2541_v30 = vrot.slane %v2539_v19, 5 }
 0x115   :  { %1809 = vrot.lane.b32.xlu0 %v7175_v20, %s6661_s15  ;;  %6022 = vmatprep.mubr.msk.bf16.mxu0 %vm487_vm3, %v432_v12  ;;  %v2491_v20 = vrot.slane %v2489_v56, 5  ;;  %v2522_v12 = vshrl.u32 %v5487_v44, 16  ;;  %v2527_v56 = vrot.slane %v2525_v16, 5  ;;  %v2553_v44 = vshll.u32 %v5491_v22, 16  ;;  %v5490_v16 = vld [vmem:[%s9751_s0 + $0x84] sm:$0x1] }
 0x117   :  { %v466_v6 = vpop.permute.xlu1 %465  ;;  %v436_v36 = vpop.permute.xlu0 %435  ;;  %v2492_v52 = vsel %vm6826_vm2, %v2487_v28, %v2491_v20  ;;  %v2524_v53 = vrot.slane %v2522_v12, 4  ;;  %v2517_v20 = vshll.u32 %v5486_v5, 16  ;;  %v2555_v12 = vrot.slane %v2553_v44, 5 }
 0x118   :  { %2618 = vrot.lane.b32.xlu1 %v7108_v38, %s6661_s15  ;;  %6055 = vmatmul.mubr.msk.bf16.gmra.mxu1 %vm487_vm3, %v466_v6  ;;  %v7454_v6 = vcombine.low %v2492_v52, %v2506_v14  ;;  %v2533_v5 = vrot.slane %v2531_v49, 5 }
 0x119   :  { %1834 = vrot.lane.b32.xlu0 %v7325_v4, %s6659_s22  ;;  %6058 = vmatprep.mubr.msk.bf16.mxu1 %vm487_vm3, %v468_v37  ;;  %v2513_v37 = vrot.slane %v2511_v63, 5  ;;  %v2552_v63 = vrot.slane %v2550_v58, 4  ;;  %v2519_v52 = vrot.slane %v2517_v20, 5 }
 0x11a   :  { %9904 = vst [vmem:[#allocation29_spill] sm:$0xff] %v7454_v6 }
 0x11b   :  { %v434_v62 = vpop.permute.xlu1 %433  ;;  %v472_v8 = vpop.permute.xlu0 %471  ;;  %v2514_v28 = vor.u32 %v2513_v37, %v2510_v57  ;;  %v2545_v37 = vshll.u32 %v5490_v16, 16  ;;  %v9920_v16 = vld [vmem:[#allocation23_spill] sm:$0xff] }
 0x11c   :  { %1811 = vrot.lane.b32.xlu1 %v7207_v32, %s6661_s15  ;;  %6023 = vmatmul.mubr.msk.bf16.gmra.mxu0 %vm487_vm3, %v434_v62  ;;  %v2536_v32 = vshrl.u32 %v5489_v21, 16  ;;  %v5492_v21 = vld [vmem:[%s9751_s0 + $0x8c] sm:$0x1] }
 0x11d   :  { %1836 = vrot.lane.b32.xlu0 %v7376_v35, %s6659_s22  ;;  %6026 = vmatprep.mubr.msk.bf16.mxu0 %vm487_vm3, %v436_v36  ;;  %v2528_v36 = vor.u32 %v2527_v56, %v2524_v53  ;;  %v2556_v53 = vor.u32 %v2555_v12, %v2552_v63  ;;  %v2559_v56 = vshll.u32 %v5492_v21, 16  ;;  %v2547_v44 = vrot.slane %v2545_v37, 5 }
 0x11e   :  { %v2538_v10 = vrot.slane %v2536_v32, 4 }
 0x11f   :  { %v470_v18 = vpop.permute.xlu1 %469  ;;  %v440_v48 = vpop.permute.xlu0 %439  ;;  %v2529_v14 = vrot.slane %v2528_v36, 4 }
 0x120   :  { %2595 = vrot.lane.b32.xlu1 %v7436_v46, %s6660_s6  ;;  %6059 = vmatmul.mubr.msk.bf16.gmra.mxu1 %vm487_vm3, %v470_v18  ;;  %v2542_v57 = vor.u32 %v2541_v30, %v2538_v10  ;;  %v2557_v18 = vrot.slane %v2556_v53, 4  ;;  %v6641_v10 = vld [vmem:[%s9752_s1 + $0x30] sm:$0xff]  }
 0x121   :  { %2620 = vrot.lane.b32.xlu0 %v7106_v33, %s6661_s15  ;;  %6062 = vmatprep.mubr.msk.bf16.mxu1 %vm487_vm3, %v472_v8  ;;  %v2515_v8 = vrot.slane %v2514_v28, 4  ;;  %v2534_v58 = vsel %vm6826_vm2, %v2529_v14, %v2533_v5 }
 0x123   :  { %v438_v22 = vpop.permute.xlu1 %437  ;;  %v7468_v62 = vpop.permute.xlu0 %1246  ;;  %v2520_v19 = vsel %vm6826_vm2, %v2515_v8, %v2519_v52  ;;  %v9922_v8 = vld [vmem:[#allocation15_spill] sm:$0xff]  ;;  %v9923_v52 = vld [vmem:[#allocation16_spill] sm:$0xff] }
 0x124   :  { %2597 = vrot.lane.b32.xlu1 %v7454_v6, %s6660_s6  ;;  %6027 = vmatmul.mubr.msk.bf16.gmra.mxu0 %vm487_vm3, %v438_v22  ;;  %v7492_v36 = vcombine.low %v2520_v19, %v2534_v58  ;;  %v9931_v58 = vld [vmem:[#allocation4_spill] sm:$0xff] }
 0x125   :  { %6030 = vmatprep.mubr.msk.bf16.mxu0 %vm487_vm3, %v440_v48  ;;  %1813 = vrot.lane.b32.xlu0 %v7184_v26, %s6661_s15  ;;  %v2543_v26 = vrot.slane %v2542_v57, 4  ;;  %v2561_v48 = vrot.slane %v2559_v56, 5  ;;  %v9926_v57 = vld [vmem:[#allocation19_spill] sm:$0xff] }
 0x126   :  { %9906 = vst [vmem:[#allocation31_spill] sm:$0xff] %v7492_v36 }
 0x127   :  { %v474_v54 = vpop.permute.xlu1 %473  ;;  %v7476_v32 = vpop.permute.xlu0 %1250  ;;  %v2562_v49 = vsel %vm6826_vm2, %v2557_v18, %v2561_v48 }
 0x128   :  { %2622 = vrot.lane.b32.xlu1 %v7114_v39, %s6661_s15  ;;  %6063 = vmatmul.mubr.msk.bf16.gmra.mxu1 %vm487_vm3, %v474_v54  ;;  %v9929_v54 = vld [vmem:[#allocation20_spill] sm:$0xff] }
 0x129   :  { %6070 = vmatprep.mubr.msk.bf16.mxu1 %vm487_vm3, %v6696_v9  ;;  %v2548_v9 = vsel %vm6826_vm2, %v2543_v26, %v2547_v44  ;;  %v9932_v26 = vld [vmem:[#allocation2_spill] sm:$0xff] }
 0x12b   :  { %v442_v28 = vpop.permute.xlu1 %441  ;;  %v7487_v20 = vpop.permute.xlu0 %1254 }
 0x12c   :  { %9905 = vst [vmem:[#allocation30_spill] sm:$0xff] %v7487_v20  ;;  %1815 = vrot.lane.b32.xlu1 %v7222_v43, %s6661_s15  ;;  %6031 = vmatmul.mubr.msk.bf16.gmra.mxu0 %vm487_vm3, %v442_v28 }
 0x12d   :  { %6138 = vmatprep.mubr.msk.bf16.mxu0 %vm487_vm3, %v6863_v2  ;;  %v7511_v2 = vcombine.low %v2548_v9, %v2562_v49  ;;  %v9936_v9 = vld [vmem:[#allocation6_spill] sm:$0xff]  ;;  %v9937_v49 = vld [vmem:[#allocation5_spill] sm:$0xff] }
 0x12f   :  { %v7503_v30 = vpop.permute.xlu1 %1248  ;;  %v7505_v43 = vpop.permute.xlu0 %1258  ;;  %9908 = vst [vmem:[#allocation33_spill] sm:$0xff] %v7511_v2 }
 0x130   :  { %9907 = vst [vmem:[#allocation32_spill] sm:$0xff] %v7505_v43  ;;  %2599 = vrot.lane.b32.xlu1 %v7492_v36, %s6660_s6  ;;  %6071 = vmatmul.mubr.msk.bf16.vlgmr.msra.gmra.mxu1 %vm487_vm3, %v6725_v24 }
 0x131   :  { %6074 = vmatprep.mubr.msk.bf16.mxu1 %vm487_vm3, %v6691_v3  ;;  %6203 = vmatpush3.bf16.msra.mxu1 %v7265_v59 }
 0x132   :  { %6204 = vmatprep.subr.bf16.mxu1 %v6641_v10 }
 0x133   :  { %v7519_v63 = vpop.permute.xlu1 %1252  ;;  %v7521_v12 = vpop.permute.xlu0 %103 }
 0x134   :  { %9909 = vst [vmem:[#allocation34_spill] sm:$0xff] %v7519_v63  ;;  %2601 = vrot.lane.b32.xlu1 %v7511_v2, %s6660_s6  ;;  %6139 = vmatmul.mubr.msk.bf16.vlgmr.msra.gmra.mxu0 %vm487_vm3, %v6909_v51 }
 0x135   :  { %6142 = vmatprep.mubr.msk.bf16.mxu0 %vm487_vm3, %v6902_v42  ;;  %6271 = vmatpush3.bf16.msra.mxu0 %v7287_v61 }
 0x136   :  { %6205 = vmatpush3.bf16.msra.mxu1 %v6641_v10  ;;  %6272 = vmatprep.subr.bf16.mxu0 %v6642_v27 }
 0x137   :  { %v7530_v3 = vpop.permute.xlu1 %1256  ;;  %v7532_v24 = vpop.permute.xlu0 %107 }
 0x138   :  { %9910 = vst [vmem:[#allocation35_spill] sm:$0xff] %v7530_v3  ;;  %6075 = vmatmul.mubr.msk.bf16.gmra.mxu1 %vm487_vm3, %v6757_v45 }
 0x139   :  { %6078 = vmatprep.mubr.msk.bf16.mxu1 %vm487_vm3, %v6732_v31  ;;  %6273 = vmatpush3.bf16.msra.mxu0 %v6642_v27 }
 0x13b   :  { %v7538_v59 = vpop.permute.xlu1 %1260  ;;  %v7540_v51 = vpop.permute.xlu0 %111 }
 0x13c   :  { %9911 = vst [vmem:[#allocation36_spill] sm:$0xff] %v7538_v59  ;;  %6143 = vmatmul.mubr.msk.bf16.gmra.mxu0 %vm487_vm3, %v6941_v34 }
 0x13d   :  { %6146 = vmatprep.mubr.msk.bf16.mxu0 %vm487_vm3, %v6945_v17 }
 0x13f   :  { %v7546_v42 = vpop.permute.xlu1 %105  ;;  %v7548_v61 = vpop.permute.xlu0 %115 }
 0x140   :  { %6079 = vmatmul.mubr.msk.bf16.gmra.mxu1 %vm487_vm3, %v6788_v1 }
 0x141   :  { %6082 = vmatprep.mubr.msk.bf16.mxu1 %vm487_vm3, %v6773_v55 }
 0x143   :  { %v7554_v31 = vpop.permute.xlu1 %109  ;;  %v7556_v45 = vpop.permute.xlu0 %1785 }
 0x144   :  { %9912 = vst [vmem:[#allocation37_spill] sm:$0xff] %v7556_v45  ;;  %6147 = vmatmul.mubr.msk.bf16.gmra.mxu0 %vm487_vm3, %v6972_v41  ;;  %1838 = vrot.lane.b32.xlu0 %v7556_v45, %s6659_s22 }
 0x145   :  { %6150 = vmatprep.mubr.msk.bf16.mxu0 %vm487_vm3, %v6970_v40 }
 0x147   :  { %v7564_v34 = vpop.permute.xlu1 %113  ;;  %v7566_v17 = vpop.permute.xlu0 %1789 }
 0x148   :  { %9913 = vst [vmem:[#allocation38_spill] sm:$0xff] %v7566_v17  ;;  %6083 = vmatmul.mubr.msk.bf16.gmra.mxu1 %vm487_vm3, %v6834_v23 }
 0x149   :  { %6086 = vmatprep.mubr.msk.bf16.mxu1 %vm487_vm3, %v7120_v25  ;;  %v9919_v25 = vld [vmem:[#allocation12_spill] sm:$0xff] }
 0x14b   :  { %v7572_v55 = vpop.permute.xlu1 %117  ;;  %v7576_v1 = vpop.permute.xlu0 %1793 }
 0x14c   :  { %6151 = vmatmul.mubr.msk.bf16.gmra.mxu0 %vm487_vm3, %v6986_v50  ;;  %9914 = vst [vmem:[#allocation39_spill] sm:$0xff] %v7576_v1  ;;  %v9918_v50 = vld [vmem:[#allocation11_spill] sm:$0xff] }
 0x14d   :  { %6154 = vmatprep.mubr.msk.bf16.mxu0 %vm487_vm3, %v7036_v7 }
 0x14f   :  { %v7580_v40 = vpop.permute.xlu1 %1787  ;;  %v7590_v23 = vpop.permute.xlu0 %1797 }
 0x150   :  { %9915 = vst [vmem:[#allocation40_spill] sm:$0xff] %v7580_v40  ;;  %2626 = vrot.lane.b32.xlu1 %v7580_v40, %s6661_s15  ;;  %6087 = vmatmul.mubr.msk.bf16.gmra.mxu1 %vm487_vm3, %v7260_v13  ;;  %9916 = vst [vmem:[#allocation41_spill] sm:$0xff] %v7590_v23  ;;  %v7611_v13 = vld [vmem:[%s9752_s1 + $0x68] sm:$0xff]  }
 0x151   :  { %1840 = vrot.lane.b32.xlu0 %v7580_v40, %s6659_s22  ;;  %6090 = vmatprep.mubr.msk.bf16.mxu1 %vm487_vm3, %v7241_v29  ;;  %v7605_v29 = vld [vmem:[%s9752_s1 + $0x58] sm:$0xff]   ;;  %v9949_v40 = vld [vmem:[#allocation14_spill] sm:$0xff] }
 0x152   :  { %6338 = vmatprep.subr.bf16.mxu1 %v7605_v29  ;;  %6406 = vmatprep.subr.bf16.mxu0 %v7611_v13 }
 0x153   :  { %v7592_v41 = vpop.permute.xlu1 %1791  ;;  %v7617_v21 = vpop.permute.xlu0 %1822 }
 0x154   :  { %9917 = vst [vmem:[#allocation42_spill] sm:$0xff] %v7592_v41  ;;  %1844 = vrot.lane.b32.xlu1 %v7592_v41, %s6659_s22  ;;  %6155 = vmatmul.mubr.msk.bf16.gmra.mxu0 %vm487_vm3, %v9918_v50 }
 0x155   :  { %2624 = vrot.lane.b32.xlu0 %v7556_v45, %s6661_s15  ;;  %6158 = vmatprep.mubr.msk.bf16.mxu0 %vm487_vm3, %v9919_v25 }
 0x157   :  { %v7623_v22 = vpop.permute.xlu1 %1795  ;;  %v7634_v14 = vpop.permute.xlu0 %2608 }
 0x158   :  { %2630 = vrot.lane.b32.xlu1 %v7592_v41, %s6661_s15  ;;  %6091 = vmatmul.mubr.msk.bf16.gmra.mxu1 %vm487_vm3, %v9920_v16  ;;  %9921 = vst [vmem:[#allocation11_spill] sm:$0xff] %v7623_v22 }
 0x159   :  { %1842 = vrot.lane.b32.xlu0 %v7566_v17, %s6659_s22  ;;  %6094 = vmatprep.mubr.msk.bf16.mxu1 %vm487_vm3, %v7289_v60 }
 0x15b   :  { %v7640_v60 = vpop.permute.xlu1 %1799  ;;  %v7646_v5 = vpop.permute.xlu0 %1801 }
 0x15c   :  { %1848 = vrot.lane.b32.xlu1 %v7623_v22, %s6659_s22  ;;  %6159 = vmatmul.mubr.msk.bf16.gmra.mxu0 %vm487_vm3, %v9922_v8  ;;  %9924 = vst [vmem:[#allocation12_spill] sm:$0xff] %v7640_v60  ;;  %9925 = vst [vmem:[#allocation23_spill] sm:$0xff] %v7646_v5 }
 0x15d   :  { %2628 = vrot.lane.b32.xlu0 %v7566_v17, %s6661_s15  ;;  %6162 = vmatprep.mubr.msk.bf16.mxu0 %vm487_vm3, %v9923_v52 }
 0x160   :  { %2634 = vrot.lane.b32.xlu1 %v7623_v22, %s6661_s15  ;;  %6095 = vmatmul.mubr.msk.bf16.gmra.mxu1 %vm487_vm3, %v7341_v0  ;;  %v9927_v0 = vld [vmem:[#allocation18_spill] sm:$0xff]  ;;  %v7666_v53 = vpop.permute.xlu0 %1826 }
 0x161   :  { %1846 = vrot.lane.b32.xlu0 %v7576_v1, %s6659_s22  ;;  %6098 = vmatprep.mubr.msk.bf16.mxu1 %vm487_vm3, %v7325_v4  ;;  %v9928_v4 = vld [vmem:[#allocation3_spill] sm:$0xff] }
 0x164   :  { %1852 = vrot.lane.b32.xlu1 %v7640_v60, %s6659_s22  ;;  %6163 = vmatmul.mubr.msk.bf16.gmra.mxu0 %vm487_vm3, %v9926_v57 }
 0x165   :  { %2632 = vrot.lane.b32.xlu0 %v7576_v1, %s6661_s15  ;;  %6166 = vmatprep.mubr.msk.bf16.mxu0 %vm487_vm3, %v9927_v0  ;;  %v9945_v1 = vld [vmem:[#allocation10_spill] sm:$0xff] }
 0x166   :  { %v7656_v37 = vpop.permute.xlu1 %1824 }
 0x168   :  { %2638 = vrot.lane.b32.xlu1 %v7640_v60, %s6661_s15  ;;  %6099 = vmatmul.mubr.msk.bf16.gmra.mxu1 %vm487_vm3, %v7376_v35 }
 0x169   :  { %1850 = vrot.lane.b32.xlu0 %v7590_v23, %s6659_s22  ;;  %6102 = vmatprep.mubr.msk.bf16.mxu1 %vm487_vm3, %v9928_v4 }
 0x16a   :  { %v7668_v56 = vpop.permute.xlu1 %2610 }
 0x16c   :  { %6167 = vmatmul.mubr.msk.bf16.gmra.mxu0 %vm487_vm3, %v9929_v54 }
 0x16d   :  { %2636 = vrot.lane.b32.xlu0 %v7590_v23, %s6661_s15  ;;  %6170 = vmatprep.mubr.msk.bf16.mxu0 %vm487_vm3, %v7468_v62  ;;  %v9944_v23 = vld [vmem:[#allocation9_spill] sm:$0xff] }
 0x16e   :  { %v7676_v35 = vpop.permute.xlu1 %1803 }
 0x16f   :  { %9930 = vst [vmem:[#allocation15_spill] sm:$0xff] %v7676_v35  ;;  %v7678_v19 = vpop.permute.xlu0 %1828  ;;  %1856 = vrot.lane.b32.xlu1 %v7676_v35, %s6659_s22 }
 0x170   :  { %6103 = vmatmul.mubr.msk.bf16.gmra.mxu1 %vm487_vm3, %v9931_v58 }
 0x171   :  { %1854 = vrot.lane.b32.xlu0 %v7646_v5, %s6659_s22  ;;  %6106 = vmatprep.mubr.msk.bf16.mxu1 %vm487_vm3, %v9932_v26  ;;  %v9939_v5 = vld [vmem:[#allocation8_spill] sm:$0xff] }
 0x172   :  { %v7688_v44 = vpop.permute.xlu1 %2587 }
 0x173   :  { %9933 = vst [vmem:[#allocation16_spill] sm:$0xff] %v7688_v44  ;;  %v7690_v18 = vpop.permute.xlu0 %2612 }
 0x174   :  { %6171 = vmatmul.mubr.msk.bf16.gmra.mxu0 %vm487_vm3, %v7503_v30 }
 0x175   :  { %2640 = vrot.lane.b32.xlu0 %v7688_v44, %s6661_s15  ;;  %6174 = vmatprep.mubr.msk.bf16.mxu0 %vm487_vm3, %v7476_v32 }
 0x176   :  { %v7698_v48 = vpop.permute.xlu1 %2589 }
 0x177   :  { %9934 = vst [vmem:[#allocation19_spill] sm:$0xff] %v7698_v48  ;;  %v7700_v28 = vpop.permute.xlu0 %1805  ;;  %2642 = vrot.lane.b32.xlu1 %v7698_v48, %s6661_s15 }
 0x178   :  { %9935 = vst [vmem:[#allocation18_spill] sm:$0xff] %v7700_v28  ;;  %6107 = vmatmul.mubr.msk.bf16.gmra.mxu1 %vm487_vm3, %v9936_v9 }
 0x179   :  { %6110 = vmatprep.mubr.msk.bf16.mxu1 %vm487_vm3, %v9937_v49  ;;  %1858 = vrot.lane.b32.xlu0 %v7700_v28, %s6659_s22  ;;  %v9940_v28 = vld [vmem:[#allocation7_spill] sm:$0xff] }
 0x17a   :  { %v7710_v10 = vpop.permute.xlu1 %2614 }
 0x17b   :  { %v7712_v27 = vpop.permute.xlu0 %1830 }
 0x17c   :  { %6175 = vmatmul.mubr.msk.bf16.gmra.mxu0 %vm487_vm3, %v7519_v63 }
 0x17d   :  { %6178 = vmatprep.mubr.msk.bf16.mxu0 %vm487_vm3, %v7487_v20 }
 0x17e   :  { %v7718_v16 = vpop.permute.xlu1 %1807 }
 0x17f   :  { %9938 = vst [vmem:[#allocation3_spill] sm:$0xff] %v7718_v16  ;;  %v7720_v35 = vpop.permute.xlu0 %1832  ;;  %1860 = vrot.lane.b32.xlu1 %v7718_v16, %s6659_s22 }
 0x180   :  { %6111 = vmatmul.mubr.msk.bf16.gmra.mxu1 %vm487_vm3, %v9939_v5 }
 0x181   :  { %6114 = vmatprep.mubr.msk.bf16.mxu1 %vm487_vm3, %v9940_v28 }
 0x182   :  { %v7728_v48 = vpop.permute.xlu1 %2591 }
 0x183   :  { %9941 = vst [vmem:[#allocation20_spill] sm:$0xff] %v7728_v48  ;;  %v7730_v44 = vpop.permute.xlu0 %2616  ;;  %2644 = vrot.lane.b32.xlu0 %v7728_v48, %s6661_s15 }
 0x184   :  { %6179 = vmatmul.mubr.msk.bf16.gmra.mxu0 %vm487_vm3, %v7530_v3 }
 0x185   :  { %6182 = vmatprep.mubr.msk.bf16.mxu0 %vm487_vm3, %v7505_v43 }
 0x186   :  { %v7738_v16 = vpop.permute.xlu1 %2593 }
 0x187   :  { %9942 = vst [vmem:[#allocation4_spill] sm:$0xff] %v7738_v16  ;;  %v7740_v60 = vpop.permute.xlu0 %1809  ;;  %2646 = vrot.lane.b32.xlu1 %v7738_v16, %s6661_s15 }
 0x188   :  { %9943 = vst [vmem:[#allocation2_spill] sm:$0xff] %v7740_v60  ;;  %6115 = vmatmul.mubr.msk.bf16.gmra.mxu1 %vm487_vm3, %v9944_v23  ;;  %1862 = vrot.lane.b32.xlu0 %v7740_v60, %s6659_s22 }
 0x189   :  { %6118 = vmatprep.mubr.msk.bf16.mxu1 %vm487_vm3, %v7521_v12 }
 0x18a   :  { %v7750_v48 = vpop.permute.xlu1 %2618 }
 0x18b   :  { %v7752_v22 = vpop.permute.xlu0 %1834 }
 0x18c   :  { %6183 = vmatmul.mubr.msk.bf16.gmra.mxu0 %vm487_vm3, %v7538_v59 }
 0x18d   :  { %6186 = vmatprep.mubr.msk.bf16.mxu0 %vm487_vm3, %v9945_v1  ;;  %v9948_v1 = vld [vmem:[#allocation13_spill] sm:$0xff] }
 0x18e   :  { %v7758_v16 = vpop.permute.xlu1 %1811 }
 0x18f   :  { %9946 = vst [vmem:[#allocation6_spill] sm:$0xff] %v7758_v16  ;;  %v7760_v41 = vpop.permute.xlu0 %1836  ;;  %1864 = vrot.lane.b32.xlu1 %v7758_v16, %s6659_s22 }
 0x190   :  { %6119 = vmatmul.mubr.msk.bf16.gmra.mxu1 %vm487_vm3, %v7546_v42 }
 0x191   :  { %6122 = vmatprep.mubr.msk.bf16.mxu1 %vm487_vm3, %v7532_v24 }
 0x192   :  { %v7768_v60 = vpop.permute.xlu1 %2595 }
 0x193   :  { %9947 = vst [vmem:[#allocation5_spill] sm:$0xff] %v7768_v60  ;;  %v7770_v17 = vpop.permute.xlu0 %2620  ;;  %2648 = vrot.lane.b32.xlu0 %v7768_v60, %s6661_s15  ;;  %v9952_v60 = vld [vmem:[#allocation17_spill] sm:$0xff] }
 0x194   :  { %6187 = vmatmul.mubr.msk.bf16.gmra.mxu0 %vm487_vm3, %v9948_v1 }
 0x195   :  { %6190 = vmatprep.mubr.msk.bf16.mxu0 %vm487_vm3, %v9949_v40 }
 0x196   :  { %v7778_v16 = vpop.permute.xlu1 %2597 }
 0x197   :  { %9950 = vst [vmem:[#allocation8_spill] sm:$0xff] %v7778_v16  ;;  %2650 = vrot.lane.b32.xlu1 %v7778_v16, %s6661_s15  ;;  %v7782_v45 = vpop.permute.xlu0 %1813 }
 0x198   :  { %9951 = vst [vmem:[#allocation7_spill] sm:$0xff] %v7782_v45  ;;  %6123 = vmatmul.mubr.msk.bf16.gmra.mxu1 %vm487_vm3, %v7554_v31  ;;  %1866 = vrot.lane.b32.xlu0 %v7782_v45, %s6659_s22 }
 0x199   :  { %6126 = vmatprep.mubr.msk.bf16.mxu1 %vm487_vm3, %v7540_v51 }
 0x19a   :  { %v7790_v1 = vpop.permute.xlu1 %2622 }
 0x19c   :  { %6191 = vmatmul.mubr.msk.bf16.gmra.mxu0 %vm487_vm3, %v9952_v60  ;;  %v9956_v60 = vld [vmem:[#allocation24_spill] sm:$0xff] }
 0x19d   :  { %6194 = vmatprep.mubr.msk.bf16.mxu0 %vm487_vm3, %v7086_v15 }
 0x19e   :  { %v7796_v40 = vpop.permute.xlu1 %1815 }
 0x19f   :  { %9953 = vst [vmem:[#allocation9_spill] sm:$0xff] %v7796_v40  ;;  %1868 = vrot.lane.b32.xlu1 %v7796_v40, %s6659_s22  ;;  %v9957_v40 = vld [vmem:[#allocation25_spill] sm:$0xff] }
 0x1a0   :  { %6127 = vmatmul.mubr.msk.bf16.gmra.mxu1 %vm487_vm3, %v7564_v34 }
 0x1a1   :  { %6130 = vmatprep.mubr.msk.bf16.mxu1 %vm487_vm3, %v7548_v61 }
 0x1a2   :  { %v7804_v45 = vpop.permute.xlu1 %2599 }
 0x1a3   :  { %9954 = vst [vmem:[#allocation10_spill] sm:$0xff] %v7804_v45  ;;  %2652 = vrot.lane.b32.xlu0 %v7804_v45, %s6661_s15 }
 0x1a4   :  { %6195 = vmatmul.mubr.msk.bf16.gmra.mxu0 %vm487_vm3, %v7108_v38 }
 0x1a5   :  { %6198 = vmatprep.mubr.msk.bf16.mxu0 %vm487_vm3, %v7106_v33  ;;  %v6645_v33 = vld [vmem:[%s9752_s1 + $0x50] sm:$0xff]  }
 0x1a6   :  { %v7812_v15 = vpop.permute.xlu1 %2601 }
 0x1a7   :  { %9955 = vst [vmem:[#allocation13_spill] sm:$0xff] %v7812_v15  ;;  %2654 = vrot.lane.b32.xlu1 %v7812_v15, %s6661_s15  ;;  %3093 = vrot.lane.b32.xlu0 %v9956_v60, %s6659_s22 }
 0x1a8   :  { %6131 = vmatmul.mubr.msk.bf16.gmra.mxu1 %vm487_vm3, %v7572_v55 }
 0x1a9   :  { %6206 = vmatprep.mubr.msk.bf16.mxu1 %vm487_vm3, %v9928_v4 }
 0x1ab   :  { %3095 = vrot.lane.b32.xlu1 %v9957_v40, %s6659_s22  ;;  %3097 = vrot.lane.b32.xlu0 %v7385_v11, %s6659_s22 }
 0x1ac   :  { %6199 = vmatmul.mubr.msk.bf16.gmra.mxu0 %vm487_vm3, %v7114_v39 }
 0x1ad   :  { %6274 = vmatprep.mubr.msk.bf16.mxu0 %vm487_vm3, %v7521_v12  ;;  %v6646_v12 = vld [vmem:[%s9752_s1 + $0x60] sm:$0xff]  }
 0x1af   :  { %3099 = vrot.lane.b32.xlu1 %v7397_v47, %s6659_s22  ;;  %3101 = vrot.lane.b32.xlu0 %v7436_v46, %s6659_s22 }
 0x1b0   :  { %v7837_v38 = vpop.f32.mrf.mxu1  ;;  %6207 = vmatmul.mubr.msk.bf16.vlgmr.msra.gmra.mxu1 %vm487_vm3, %v9931_v58 }
 0x1b1   :  { %6210 = vmatprep.mubr.msk.bf16.mxu1 %vm487_vm3, %v9932_v26  ;;  %6339 = vmatpush3.bf16.msra.mxu1 %v7605_v29 }
 0x1b2   :  { %v7844_v39 = vpop.f32.mrf.mxu1  ;;  %6340 = vmatprep.subr.bf16.mxu1 %v6645_v33 }
 0x1b3   :  { %3103 = vrot.lane.b32.xlu1 %v7454_v6, %s6659_s22  ;;  %3105 = vrot.lane.b32.xlu0 %v7492_v36, %s6659_s22 }
 0x1b4   :  { %v7853_v4 = vpop.f32.mrf.mxu0  ;;  %v7855_v58 = vpop.f32.mrf.mxu1  ;;  %6275 = vmatmul.mubr.msk.bf16.vlgmr.msra.gmra.mxu0 %vm487_vm3, %v7546_v42 }
 0x1b5   :  { %6278 = vmatprep.mubr.msk.bf16.mxu0 %vm487_vm3, %v7532_v24  ;;  %6407 = vmatpush3.bf16.msra.mxu0 %v7611_v13 }
 0x1b6   :  { %v7862_v29 = vpop.f32.mrf.mxu0  ;;  %v7864_v26 = vpop.f32.mrf.mxu1  ;;  %6341 = vmatpush3.bf16.msra.mxu1 %v6645_v33  ;;  %6408 = vmatprep.subr.bf16.mxu0 %v6646_v12 }
 0x1b7   :  { %9958 = vst [vmem:[#allocation14_spill] sm:$0xff] %v7864_v26  ;;  %3107 = vrot.lane.b32.xlu1 %v7511_v2, %s6659_s22  ;;  %3130 = vrot.lane.b32.xlu0 %v7036_v7, %s6659_s22  ;;  %v9961_v7 = vld [vmem:[#allocation21_spill] sm:$0xff] }
 0x1b8   :  { %v7870_v15 = vpop.f32.mrf.mxu0  ;;  %v7872_v42 = vpop.f32.mrf.mxu1  ;;  %6211 = vmatmul.mubr.msk.bf16.gmra.mxu1 %vm487_vm3, %v9936_v9 }
 0x1b9   :  { %9959 = vst [vmem:[#allocation17_spill] sm:$0xff] %v7872_v42  ;;  %6214 = vmatprep.mubr.msk.bf16.mxu1 %vm487_vm3, %v9937_v49  ;;  %6409 = vmatpush3.bf16.msra.mxu0 %v6646_v12  ;;  %v7894_v9 = vpop.permute.xlu0 %1838 }
 0x1ba   :  { %v7878_v24 = vpop.f32.mrf.mxu0  ;;  %v7880_v13 = vpop.f32.mrf.mxu1 }
 0x1bb   :  { %9960 = vst [vmem:[#allocation43_spill] sm:$0xff] %v7880_v13  ;;  %3132 = vrot.lane.b32.xlu1 %v9918_v50, %s6659_s22  ;;  %3615 = vrot.lane.b32.xlu0 %v9961_v7, %s6660_s6  ;;  %v9964_v50 = vld [vmem:[#allocation22_spill] sm:$0xff] }
 0x1bc   :  { %v7886_v33 = vpop.f32.mrf.mxu0  ;;  %v7888_v45 = vpop.f32.mrf.mxu1  ;;  %6279 = vmatmul.mubr.msk.bf16.gmra.mxu0 %vm487_vm3, %v7554_v31 }
 0x1bd   :  { %9962 = vst [vmem:[#allocation21_spill] sm:$0xff] %v7888_v45  ;;  %6282 = vmatprep.mubr.msk.bf16.mxu0 %vm487_vm3, %v7540_v51 }
 0x1be   :  { %v7896_v49 = vpop.f32.mrf.mxu0  ;;  %v7898_v12 = vpop.f32.mrf.mxu1 }
 0x1bf   :  { %9963 = vst [vmem:[#allocation44_spill] sm:$0xff] %v7898_v12  ;;  %3617 = vrot.lane.b32.xlu1 %v9964_v50, %s6660_s6  ;;  %3109 = vrot.lane.b32.xlu0 %v9956_v60, %s6661_s15 }
 0x1c0   :  { %v7904_v7 = vpop.f32.mrf.mxu0  ;;  %v7906_v16 = vpop.f32.mrf.mxu1  ;;  %6215 = vmatmul.mubr.msk.bf16.gmra.mxu1 %vm487_vm3, %v9939_v5 }
 0x1c1   :  { %9965 = vst [vmem:[#allocation22_spill] sm:$0xff] %v7906_v16  ;;  %6218 = vmatprep.mubr.msk.bf16.mxu1 %vm487_vm3, %v9940_v28  ;;  %v8029_v16 = vld [vmem:[%s9751_s0 + $0x60] ss:$8 sps:$4 sm:$0xff]  }
 0x1c2   :  { %v7912_v51 = vpop.f32.mrf.mxu0  ;;  %v7914_v31 = vpop.f32.mrf.mxu1  ;;  %9979 = vst [vmem:[#allocation58_spill] sm:$0xff] %v8029_v16 }
 0x1c3   :  { %9966 = vst [vmem:[#allocation45_spill] sm:$0xff] %v7914_v31  ;;  %v7916_v59 = vpop.permute.xlu0 %1840  ;;  %3111 = vrot.lane.b32.xlu1 %v9957_v40, %s6661_s15  ;;  %3134 = vrot.lane.b32.xlu0 %v9919_v25, %s6659_s22  ;;  %v7941_v25 = vld [vmem:[%s9751_s0 + $0x28] ss:$8 sps:$4 sm:$0xff]  }
 0x1c4   :  { %v7922_v50 = vpop.f32.mrf.mxu0  ;;  %6283 = vmatmul.mubr.msk.bf16.gmra.mxu0 %vm487_vm3, %v7564_v34  ;;  %v7926_v5 = vpop.f32.mrf.mxu1 }
 0x1c5   :  { %9967 = vst [vmem:[#allocation46_spill] sm:$0xff] %v7926_v5  ;;  %6286 = vmatprep.mubr.msk.bf16.mxu0 %vm487_vm3, %v7548_v61 }
 0x1c6   :  { %v7930_v28 = vpop.f32.mrf.mxu0  ;;  %v7932_v60 = vpop.f32.mrf.mxu1 }
 0x1c7   :  { %9968 = vst [vmem:[#allocation47_spill] sm:$0xff] %v7932_v60  ;;  %v7934_v31 = vpop.permute.xlu0 %2624  ;;  %3136 = vrot.lane.b32.xlu1 %v9922_v8, %s6659_s22  ;;  %3619 = vrot.lane.b32.xlu0 %v7941_v25, %s6660_s6  ;;  %v7960_v60 = vld [vmem:[%s9751_s0 + $0x38] ss:$8 sps:$4 sm:$0xff]  }
 0x1c8   :  { %v7945_v34 = vpop.f32.mrf.mxu0  ;;  %6219 = vmatmul.mubr.msk.bf16.gmra.mxu1 %vm487_vm3, %v9944_v23  ;;  %v7949_v61 = vpop.f32.mrf.mxu1  ;;  %9971 = vst [vmem:[#allocation50_spill] sm:$0xff] %v7960_v60 }
 0x1c9   :  { %9969 = vst [vmem:[#allocation48_spill] sm:$0xff] %v7949_v61  ;;  %6222 = vmatprep.mubr.msk.bf16.mxu1 %vm487_vm3, %v7617_v21 }
 0x1ca   :  { %v7953_v40 = vpop.f32.mrf.mxu0  ;;  %v7955_v8 = vpop.f32.mrf.mxu1 }
 0x1cb   :  { %9970 = vst [vmem:[#allocation49_spill] sm:$0xff] %v7955_v8  ;;  %3621 = vrot.lane.b32.xlu1 %v7960_v60, %s6660_s6  ;;  %3113 = vrot.lane.b32.xlu0 %v7385_v11, %s6661_s15  ;;  %v7970_v21 = vpop.permute.xlu0 %1842 }
 0x1cc   :  { %v7966_v23 = vpop.f32.mrf.mxu0  ;;  %6287 = vmatmul.mubr.msk.bf16.gmra.mxu0 %vm487_vm3, %v7572_v55  ;;  %v7972_v61 = vpop.f32.mrf.mxu1 }
 0x1cd   :  { %9972 = vst [vmem:[#allocation51_spill] sm:$0xff] %v7972_v61  ;;  %6290 = vmatprep.mubr.msk.bf16.mxu0 %vm487_vm3, %v7634_v14 }
 0x1ce   :  { %v7976_v8 = vpop.f32.mrf.mxu0  ;;  %v7978_v5 = vpop.f32.mrf.mxu1 }
 0x1cf   :  { %9973 = vst [vmem:[#allocation52_spill] sm:$0xff] %v7978_v5  ;;  %3115 = vrot.lane.b32.xlu1 %v7397_v47, %s6661_s15  ;;  %3138 = vrot.lane.b32.xlu0 %v9923_v52, %s6659_s22  ;;  %v7994_v61 = vpop.permute.xlu0 %2628  ;;  %v8003_v52 = vld [vmem:[%s9751_s0 + $0x50] ss:$8 sps:$4 sm:$0xff]  }
 0x1d0   :  { %v7984_v11 = vpop.f32.mrf.mxu0  ;;  %6223 = vmatmul.mubr.msk.bf16.gmra.mxu1 %vm487_vm3, %v7656_v37  ;;  %v7988_v55 = vpop.f32.mrf.mxu1  ;;  %9976 = vst [vmem:[#allocation55_spill] sm:$0xff] %v8003_v52 }
 0x1d1   :  { %9974 = vst [vmem:[#allocation53_spill] sm:$0xff] %v7988_v55  ;;  %6226 = vmatprep.mubr.msk.bf16.mxu1 %vm487_vm3, %v7666_v53  ;;  %v8007_v37 = vpop.permute.xlu1 %2626 }
 0x1d2   :  { %v7992_v14 = vpop.f32.mrf.mxu0  ;;  %v7996_v5 = vpop.f32.mrf.mxu1 }
 0x1d3   :  { %9975 = vst [vmem:[#allocation54_spill] sm:$0xff] %v7996_v5  ;;  %3140 = vrot.lane.b32.xlu1 %v9926_v57, %s6659_s22  ;;  %3623 = vrot.lane.b32.xlu0 %v8003_v52, %s6660_s6  ;;  %v8022_v5 = vld [vmem:[%s9752_s1 + $0x78] sm:$0xff]  }
 0x1d4   :  { %v8009_v53 = vpop.f32.mrf.mxu0  ;;  %6291 = vmatmul.mubr.msk.bf16.gmra.mxu0 %vm487_vm3, %v7668_v56  ;;  %v8013_v47 = vpop.f32.mrf.mxu1  ;;  %6474 = vmatprep.subr.bf16.mxu1 %v8022_v5 }
 0x1d5   :  { %9977 = vst [vmem:[#allocation56_spill] sm:$0xff] %v8013_v47  ;;  %6294 = vmatprep.mubr.msk.bf16.mxu0 %vm487_vm3, %v7690_v18  ;;  %v8043_v18 = vld [vmem:[%s9752_s1 + $0x88] sm:$0xff]  }
 0x1d6   :  { %v8017_v57 = vpop.f32.mrf.mxu0  ;;  %v8024_v55 = vpop.f32.mrf.mxu1  ;;  %6542 = vmatprep.subr.bf16.mxu0 %v8043_v18 }
 0x1d7   :  { %9978 = vst [vmem:[#allocation57_spill] sm:$0xff] %v8024_v55  ;;  %3625 = vrot.lane.b32.xlu1 %v8029_v16, %s6660_s6  ;;  %3117 = vrot.lane.b32.xlu0 %v7436_v46, %s6661_s15  ;;  %v8045_v55 = vpop.permute.xlu0 %1846  ;;  %v8051_v46 = vpop.permute.xlu1 %1844 }
 0x1d8   :  { %v8035_v56 = vpop.f32.mrf.mxu0  ;;  %6227 = vmatmul.mubr.msk.bf16.gmra.mxu1 %vm487_vm3, %v7678_v19  ;;  %v8047_v47 = vpop.f32.mrf.mxu1 }
 0x1d9   :  { %9980 = vst [vmem:[#allocation59_spill] sm:$0xff] %v8047_v47  ;;  %6230 = vmatprep.mubr.msk.bf16.mxu1 %vm487_vm3, %v7712_v27 }
 0x1da   :  { %v8053_v16 = vpop.f32.mrf.mxu0  ;;  %v8056_v19 = vpop.f32.mrf.mxu1 }
 0x1db   :  { %9981 = vst [vmem:[#allocation60_spill] sm:$0xff] %v8056_v19  ;;  %3119 = vrot.lane.b32.xlu1 %v7454_v6, %s6661_s15  ;;  %3142 = vrot.lane.b32.xlu0 %v9927_v0, %s6659_s22  ;;  %v8072_v12 = vpop.permute.xlu0 %2632  ;;  %v8081_v0 = vld [vmem:[%s9751_s0 + $0x70] ss:$8 sps:$4 sm:$0xff]  }
 0x1dc   :  { %v8062_v43 = vpop.f32.mrf.mxu0  ;;  %6295 = vmatmul.mubr.msk.bf16.gmra.mxu0 %vm487_vm3, %v7710_v10  ;;  %v8066_v27 = vpop.f32.mrf.mxu1  ;;  %9984 = vst [vmem:[#allocation63_spill] sm:$0xff] %v8081_v0 }
 0x1dd   :  { %9982 = vst [vmem:[#allocation61_spill] sm:$0xff] %v8066_v27  ;;  %6298 = vmatprep.mubr.msk.bf16.mxu0 %vm487_vm3, %v7730_v44  ;;  %v8085_v10 = vpop.permute.xlu1 %2630  ;;  %v8102_v27 = vld [vmem:[%s9751_s0 + $0x80] ss:$8 sps:$4 sm:$0xff]  }
 0x1de   :  { %v8070_v47 = vpop.f32.mrf.mxu0  ;;  %v8074_v19 = vpop.f32.mrf.mxu1  ;;  %9987 = vst [vmem:[#allocation66_spill] sm:$0xff] %v8102_v27 }
 0x1df   :  { %9983 = vst [vmem:[#allocation62_spill] sm:$0xff] %v8074_v19  ;;  %3144 = vrot.lane.b32.xlu1 %v9929_v54, %s6659_s22  ;;  %3627 = vrot.lane.b32.xlu0 %v8081_v0, %s6660_s6 }
 0x1e0   :  { %v8087_v44 = vpop.f32.mrf.mxu0  ;;  %6231 = vmatmul.mubr.msk.bf16.gmra.mxu1 %vm487_vm3, %v7720_v35  ;;  %v8091_v6 = vpop.f32.mrf.mxu1 }
 0x1e1   :  { %9985 = vst [vmem:[#allocation64_spill] sm:$0xff] %v8091_v6  ;;  %6234 = vmatprep.mubr.msk.bf16.mxu1 %vm487_vm3, %v7752_v22  ;;  %v8112_v22 = vpop.permute.xlu0 %1850 }
 0x1e2   :  { %v8095_v54 = vpop.f32.mrf.mxu0  ;;  %v8097_v19 = vpop.f32.mrf.mxu1 }
 0x1e3   :  { %9986 = vst [vmem:[#allocation65_spill] sm:$0xff] %v8097_v19  ;;  %3629 = vrot.lane.b32.xlu1 %v8102_v27, %s6660_s6  ;;  %3121 = vrot.lane.b32.xlu0 %v7492_v36, %s6661_s15  ;;  %v8118_v19 = vpop.permute.xlu1 %1848 }
 0x1e4   :  { %v8108_v35 = vpop.f32.mrf.mxu0  ;;  %6299 = vmatmul.mubr.msk.bf16.gmra.mxu0 %vm487_vm3, %v7750_v48  ;;  %v8114_v6 = vpop.f32.mrf.mxu1 }
 0x1e5   :  { %9988 = vst [vmem:[#allocation67_spill] sm:$0xff] %v8114_v6  ;;  %6302 = vmatprep.mubr.msk.bf16.mxu0 %vm487_vm3, %v7770_v17  ;;  %v8136_v6 = vpop.permute.xlu0 %2636 }
 0x1e6   :  { %v8120_v0 = vpop.f32.mrf.mxu0  ;;  %v8122_v27 = vpop.f32.mrf.mxu1 }
 0x1e7   :  { %9989 = vst [vmem:[#allocation68_spill] sm:$0xff] %v8122_v27  ;;  %3123 = vrot.lane.b32.xlu1 %v7511_v2, %s6661_s15  ;;  %v8140_v27 = vpop.permute.xlu1 %2634 }
 0x1e8   :  { %v8126_v36 = vpop.f32.mrf.mxu0  ;;  %6235 = vmatmul.mubr.msk.bf16.gmra.mxu1 %vm487_vm3, %v7760_v41  ;;  %v8130_v48 = vpop.f32.mrf.mxu1 }
 0x1e9   :  { %9990 = vst [vmem:[#allocation69_spill] sm:$0xff] %v8130_v48  ;;  %6238 = vmatprep.mubr.msk.bf16.mxu1 %vm487_vm3, %v7894_v9 }
 0x1ea   :  { %v8134_v17 = vpop.f32.mrf.mxu0  ;;  %v8138_v3 = vpop.f32.mrf.mxu1 }
 0x1eb   :  { %9991 = vst [vmem:[#allocation70_spill] sm:$0xff] %v8138_v3  ;;  %v8158_v3 = vpop.permute.xlu0 %1854 }
 0x1ec   :  { %v8142_v45 = vpop.f32.mrf.mxu0  ;;  %6303 = vmatmul.mubr.msk.bf16.gmra.mxu0 %vm487_vm3, %v7790_v1  ;;  %v8146_v2 = vpop.f32.mrf.mxu1 }
 0x1ed   :  { %9992 = vst [vmem:[#allocation71_spill] sm:$0xff] %v8146_v2  ;;  %6306 = vmatprep.mubr.msk.bf16.mxu0 %vm487_vm3, %v7934_v31  ;;  %v8162_v1 = vpop.permute.xlu1 %1852 }
 0x1ee   :  { %v8150_v41 = vpop.f32.mrf.mxu0  ;;  %v8152_v9 = vpop.f32.mrf.mxu1 }
 0x1ef   :  { %9993 = vst [vmem:[#allocation72_spill] sm:$0xff] %v8152_v9  ;;  %v8175_v26 = vpop.permute.xlu0 %2640 }
 0x1f0   :  { %v8154_v48 = vpop.f32.mrf.mxu0  ;;  %6239 = vmatmul.mubr.msk.bf16.gmra.mxu1 %vm487_vm3, %v7916_v59  ;;  %v6072_v52 = vpop.f32.mrf.mxu1 }
 0x1f1   :  { %6242 = vmatprep.mubr.msk.bf16.mxu1 %vm487_vm3, %v7970_v21  ;;  %v1000_v2 = vadd.f32 %v6072_v52, %v7853_v4  ;;  %v2639_v63 = vpop.permute.xlu1 %2638 }
 0x1f2   :  { %v8165_v31 = vpop.f32.mrf.mxu0  ;;  %v991_v13 = vpop.f32.mrf.mxu1 }
 0x1f3   :  { %v992_v9 = vadd.f32 %v991_v13, %v7862_v29 }
 0x1f4   :  { %v6140_v60 = vpop.f32.mrf.mxu0  ;;  %6307 = vmatmul.mubr.msk.bf16.gmra.mxu0 %vm487_vm3, %v8007_v37  ;;  %v6073_v59 = vpop.f32.mrf.mxu1 }
 0x1f5   :  { %v8170_v42 = vadd.f32 %v6140_v60, %v1000_v2  ;;  %6310 = vmatprep.mubr.msk.bf16.mxu0 %vm487_vm3, %v7994_v61  ;;  %v1003_v21 = vadd.f32 %v6073_v59, %v7870_v15  ;;  %v8187_v37 = vpop.permute.xlu0 %1858  ;;  %v1857_v59 = vpop.permute.xlu1 %1856 }
 0x1f6   :  { %v1409_v20 = vpop.f32.mrf.mxu0  ;;  %v994_v4 = vpop.f32.mrf.mxu1 }
 0x1f7   :  { %v8177_v52 = vadd.f32 %v1409_v20, %v992_v9  ;;  %v995_v29 = vadd.f32 %v994_v4, %v7878_v24 }
 0x1f8   :  { %v6141_v13 = vpop.f32.mrf.mxu0  ;;  %6243 = vmatmul.mubr.msk.bf16.gmra.mxu1 %vm487_vm3, %v8051_v46  ;;  %v6076_v2 = vpop.f32.mrf.mxu1 }
 0x1f9   :  { %v8182_v60 = vadd.f32 %v6141_v13, %v1003_v21  ;;  %6246 = vmatprep.mubr.msk.bf16.mxu1 %vm487_vm3, %v8045_v55  ;;  %v1016_v15 = vadd.f32 %v6076_v2, %v7886_v33 }
 0x1fa   :  { %v1412_v61 = vpop.f32.mrf.mxu0  ;;  %v1007_v20 = vpop.f32.mrf.mxu1 }
 0x1fb   :  { %v8189_v9 = vadd.f32 %v1412_v61, %v995_v29  ;;  %v1008_v24 = vadd.f32 %v1007_v20, %v7896_v49  ;;  %v2643_v29 = vpop.permute.xlu1 %2642 }
 0x1fc   :  { %v6144_v4 = vpop.f32.mrf.mxu0  ;;  %6311 = vmatmul.mubr.msk.bf16.gmra.mxu0 %vm487_vm3, %v8085_v10  ;;  %v6077_v46 = vpop.f32.mrf.mxu1 }
 0x1fd   :  { %v8194_v21 = vadd.f32 %v6144_v4, %v1016_v15  ;;  %6314 = vmatprep.mubr.msk.bf16.mxu0 %vm487_vm3, %v8072_v12  ;;  %v1019_v33 = vadd.f32 %v6077_v46, %v7904_v7  ;;  %v2645_v10 = vpop.permute.xlu0 %2644 }
 0x1fe   :  { %v1425_v55 = vpop.f32.mrf.mxu0  ;;  %v1010_v13 = vpop.f32.mrf.mxu1 }
 0x1ff   :  { %v8199_v2 = vadd.f32 %v1425_v55, %v1008_v24  ;;  %v1011_v61 = vadd.f32 %v1010_v13, %v7912_v51  ;;  %v1861_v46 = vpop.permute.xlu1 %1860 }
 0x200   :  { %v6145_v49 = vpop.f32.mrf.mxu0  ;;  %6247 = vmatmul.mubr.msk.bf16.gmra.mxu1 %vm487_vm3, %v8118_v19  ;;  %v6080_v20 = vpop.f32.mrf.mxu1 }
 0x201   :  { %v8204_v15 = vadd.f32 %v6145_v49, %v1019_v33  ;;  %6250 = vmatprep.mubr.msk.bf16.mxu1 %vm487_vm3, %v8112_v22  ;;  %v1032_v12 = vadd.f32 %v6080_v20, %v7922_v50  ;;  %v1863_v19 = vpop.permute.xlu0 %1862 }
 0x202   :  { %v1428_v7 = vpop.f32.mrf.mxu0  ;;  %v1023_v4 = vpop.f32.mrf.mxu1 }
 0x203   :  { %v8209_v24 = vadd.f32 %v1428_v7, %v1011_v61  ;;  %v1024_v51 = vadd.f32 %v1023_v4, %v7930_v28  ;;  %v2647_v20 = vpop.permute.xlu1 %2646 }
 0x204   :  { %v6148_v55 = vpop.f32.mrf.mxu0  ;;  %6315 = vmatmul.mubr.msk.bf16.gmra.mxu0 %vm487_vm3, %v8140_v27  ;;  %v6081_v13 = vpop.f32.mrf.mxu1 }
 0x205   :  { %v8214_v33 = vadd.f32 %v6148_v55, %v1032_v12  ;;  %6318 = vmatprep.mubr.msk.bf16.mxu0 %vm487_vm3, %v8136_v6  ;;  %v1035_v50 = vadd.f32 %v6081_v13, %v7945_v34  ;;  %v2649_v12 = vpop.permute.xlu0 %2648 }
 0x206   :  { %v1441_v22 = vpop.f32.mrf.mxu0  ;;  %v1026_v49 = vpop.f32.mrf.mxu1 }
 0x207   :  { %v8219_v61 = vadd.f32 %v1441_v22, %v1024_v51  ;;  %v1027_v28 = vadd.f32 %v1026_v49, %v7953_v40  ;;  %v8231_v13 = vpop.permute.xlu1 %1864 }
 0x208   :  { %v6149_v7 = vpop.f32.mrf.mxu0  ;;  %6251 = vmatmul.mubr.msk.bf16.gmra.mxu1 %vm487_vm3, %v8162_v1  ;;  %v6084_v27 = vpop.f32.mrf.mxu1 }
 0x209   :  { %v8224_v4 = vadd.f32 %v6149_v7, %v1035_v50  ;;  %6254 = vmatprep.mubr.msk.bf16.mxu1 %vm487_vm3, %v8158_v3  ;;  %v1048_v6 = vadd.f32 %v6084_v27, %v7966_v23 }
 0x20a   :  { %v1444_v34 = vpop.f32.mrf.mxu0  ;;  %v1039_v55 = vpop.f32.mrf.mxu1 }
 0x20b   :  { %v8229_v51 = vadd.f32 %v1444_v34, %v1027_v28  ;;  %v1040_v40 = vadd.f32 %v1039_v55, %v7976_v8  ;;  %v1867_v28 = vpop.permute.xlu0 %1866  ;;  %v8242_v27 = vpop.permute.xlu1 %2650 }
 0x20c   :  { %v6152_v22 = vpop.f32.mrf.mxu0  ;;  %6319 = vmatmul.mubr.msk.bf16.gmra.mxu0 %vm487_vm3, %v2639_v63  ;;  %v6085_v1 = vpop.f32.mrf.mxu1 }
 0x20d   :  { %v8235_v50 = vadd.f32 %v6152_v22, %v1048_v6  ;;  %6322 = vmatprep.mubr.msk.bf16.mxu0 %vm487_vm3, %v8175_v26  ;;  %v1051_v3 = vadd.f32 %v6085_v1, %v7984_v11 }
 0x20e   :  { %v1457_v23 = vpop.f32.mrf.mxu0  ;;  %v1042_v49 = vpop.f32.mrf.mxu1 }
 0x20f   :  { %v8240_v7 = vadd.f32 %v1457_v23, %v1040_v40  ;;  %v1043_v8 = vadd.f32 %v1042_v49, %v7992_v14 }
 0x210   :  { %v6153_v34 = vpop.f32.mrf.mxu0  ;;  %6255 = vmatmul.mubr.msk.bf16.gmra.mxu1 %vm487_vm3, %v1857_v59  ;;  %v6088_v63 = vpop.f32.mrf.mxu1 }
 0x211   :  { %v8246_v6 = vadd.f32 %v6153_v34, %v1051_v3  ;;  %6258 = vmatprep.mubr.msk.bf16.mxu1 %vm487_vm3, %v8187_v37  ;;  %v1064_v11 = vadd.f32 %v6088_v63, %v8009_v53  ;;  %v8253_v22 = vpop.permute.xlu1 %1868 }
 0x212   :  { %v1460_v26 = vpop.f32.mrf.mxu0  ;;  %v1055_v55 = vpop.f32.mrf.mxu1 }
 0x213   :  { %v8251_v40 = vadd.f32 %v1460_v26, %v1043_v8  ;;  %v1056_v1 = vadd.f32 %v1055_v55, %v8017_v57 }
 0x214   :  { %v6156_v14 = vpop.f32.mrf.mxu0  ;;  %6323 = vmatmul.mubr.msk.bf16.gmra.mxu0 %vm487_vm3, %v2643_v29  ;;  %v6089_v59 = vpop.f32.mrf.mxu1 }
 0x215   :  { %v8257_v23 = vadd.f32 %v6156_v14, %v1064_v11  ;;  %6326 = vmatprep.mubr.msk.bf16.mxu0 %vm487_vm3, %v2645_v10  ;;  %v2653_v3 = vpop.permute.xlu0 %2652  ;;  %v1067_v37 = vadd.f32 %v6089_v59, %v8035_v56 }
 0x216   :  { %v1473_v53 = vpop.f32.mrf.mxu0  ;;  %v1058_v49 = vpop.f32.mrf.mxu1 }
 0x217   :  { %v8261_v34 = vadd.f32 %v1473_v53, %v1056_v1  ;;  %v1059_v8 = vadd.f32 %v1058_v49, %v8053_v16 }
 0x218   :  { %v6157_v63 = vpop.f32.mrf.mxu0  ;;  %6259 = vmatmul.mubr.msk.bf16.gmra.mxu1 %vm487_vm3, %v1861_v46  ;;  %v6092_v57 = vpop.f32.mrf.mxu1 }
 0x219   :  { %v8265_v26 = vadd.f32 %v6157_v63, %v1067_v37  ;;  %v8267_v29 = vpop.permute.xlu1 %2654  ;;  %6262 = vmatprep.mubr.msk.bf16.mxu1 %vm487_vm3, %v1863_v19  ;;  %v1080_v10 = vadd.f32 %v6092_v57, %v8062_v43  ;;  %v8271_v11 = vpop.permute.xlu0 %3093 }
 0x21a   :  { %9994 = vst [vmem:[#allocation73_spill] sm:$0xff] %v8271_v11  ;;  %v1476_v56 = vpop.f32.mrf.mxu0  ;;  %v1071_v55 = vpop.f32.mrf.mxu1  ;;  %3146 = vrot.lane.b32.xlu0 %v8271_v11, %s6659_s22 }
 0x21b   :  { %v8273_v1 = vadd.f32 %v1476_v56, %v1059_v8  ;;  %v1072_v16 = vadd.f32 %v1071_v55, %v8070_v47 }
 0x21c   :  { %v6160_v46 = vpop.f32.mrf.mxu0  ;;  %6327 = vmatmul.mubr.msk.bf16.gmra.mxu0 %vm487_vm3, %v2647_v20  ;;  %v6093_v14 = vpop.f32.mrf.mxu1 }
 0x21d   :  { %v8279_v59 = vadd.f32 %v6160_v46, %v1080_v10  ;;  %v8281_v19 = vpop.permute.xlu1 %3095  ;;  %6330 = vmatprep.mubr.msk.bf16.mxu0 %vm487_vm3, %v2649_v12  ;;  %v1083_v43 = vadd.f32 %v6093_v14, %v8087_v44  ;;  %v8285_v37 = vpop.permute.xlu0 %3097 }
 0x21e   :  { %9995 = vst [vmem:[#allocation74_spill] sm:$0xff] %v8281_v19  ;;  %9996 = vst [vmem:[#allocation75_spill] sm:$0xff] %v8285_v37  ;;  %3148 = vrot.lane.b32.xlu1 %v8281_v19, %s6659_s22  ;;  %v1489_v53 = vpop.f32.mrf.mxu0  ;;  %v1074_v49 = vpop.f32.mrf.mxu1  ;;  %3150 = vrot.lane.b32.xlu0 %v8285_v37, %s6659_s22  ;;  %v10026_v19 = vld [vmem:[#allocation32_spill] sm:$0xff] }
 0x21f   :  { %v8289_v47 = vadd.f32 %v1489_v53, %v1072_v16  ;;  %v1075_v20 = vadd.f32 %v1074_v49, %v8095_v54 }
 0x220   :  { %v6161_v8 = vpop.f32.mrf.mxu0  ;;  %6263 = vmatmul.mubr.msk.bf16.gmra.mxu1 %vm487_vm3, %v8231_v13  ;;  %v6096_v12 = vpop.f32.mrf.mxu1 }
 0x221   :  { %v8296_v44 = vadd.f32 %v6161_v8, %v1083_v43  ;;  %v8298_v63 = vpop.permute.xlu1 %3099  ;;  %6266 = vmatprep.mubr.msk.bf16.mxu1 %vm487_vm3, %v1867_v28  ;;  %v1096_v57 = vadd.f32 %v6096_v12, %v8108_v35  ;;  %v8302_v10 = vpop.permute.xlu0 %3101 }
 0x222   :  { %9997 = vst [vmem:[#allocation76_spill] sm:$0xff] %v8298_v63  ;;  %9998 = vst [vmem:[#allocation77_spill] sm:$0xff] %v8302_v10  ;;  %3152 = vrot.lane.b32.xlu1 %v8298_v63, %s6659_s22  ;;  %v1492_v56 = vpop.f32.mrf.mxu0  ;;  %v1087_v54 = vpop.f32.mrf.mxu1  ;;  %3154 = vrot.lane.b32.xlu0 %v8302_v10, %s6659_s22 }
 0x223   :  { %v8306_v55 = vadd.f32 %v1492_v56, %v1075_v20  ;;  %v1088_v13 = vadd.f32 %v1087_v54, %v8120_v0 }
 0x224   :  { %v6164_v16 = vpop.f32.mrf.mxu0  ;;  %6331 = vmatmul.mubr.msk.bf16.gmra.mxu0 %vm487_vm3, %v8242_v27  ;;  %v6097_v28 = vpop.f32.mrf.mxu1 }
 0x225   :  { %v8313_v35 = vadd.f32 %v6164_v16, %v1096_v57  ;;  %v8315_v46 = vpop.permute.xlu1 %3103  ;;  %6334 = vmatprep.mubr.msk.bf16.mxu0 %vm487_vm3, %v2653_v3  ;;  %v1099_v14 = vadd.f32 %v6097_v28, %v8126_v36  ;;  %v8319_v43 = vpop.permute.xlu0 %3105 }
 0x226   :  { %9999 = vst [vmem:[#allocation78_spill] sm:$0xff] %v8315_v46  ;;  %10000 = vst [vmem:[#allocation79_spill] sm:$0xff] %v8319_v43  ;;  %3156 = vrot.lane.b32.xlu1 %v8315_v46, %s6659_s22  ;;  %v1505_v53 = vpop.f32.mrf.mxu0  ;;  %v1090_v0 = vpop.f32.mrf.mxu1  ;;  %3158 = vrot.lane.b32.xlu0 %v8319_v43, %s6659_s22  ;;  %v10015_v46 = vld [vmem:[#allocation50_spill] sm:$0xff] }
 0x227   :  { %v8323_v49 = vadd.f32 %v1505_v53, %v1088_v13  ;;  %v1091_v27 = vadd.f32 %v1090_v0, %v8134_v17 }
 0x228   :  { %v6165_v20 = vpop.f32.mrf.mxu0  ;;  %6267 = vmatmul.mubr.msk.bf16.gmra.mxu1 %vm487_vm3, %v8253_v22  ;;  %v6100_v3 = vpop.f32.mrf.mxu1 }
 0x229   :  { %v8330_v36 = vadd.f32 %v6165_v20, %v1099_v14  ;;  %v8332_v8 = vpop.permute.xlu1 %3107  ;;  %6342 = vmatprep.mubr.msk.bf16.mxu1 %vm487_vm3, %v7468_v62  ;;  %v1112_v12 = vadd.f32 %v6100_v3, %v8142_v45  ;;  %v8337_v57 = vpop.permute.xlu0 %3130  ;;  %v6657_v45 = vld [vmem:[%s9751_s0 + $0x8] ss:$8 sps:$4 sm:$0xff]  }
 0x22a   :  { %10001 = vst [vmem:[#allocation80_spill] sm:$0xff] %v8332_v8  ;;  %3160 = vrot.lane.b32.xlu1 %v8332_v8, %s6659_s22  ;;  %v1508_v17 = vpop.f32.mrf.mxu0  ;;  %v1103_v56 = vpop.f32.mrf.mxu1  ;;  %v10011_v8 = vld [vmem:[#allocation30_spill] sm:$0xff] }
 0x22b   :  { %v8341_v54 = vadd.f32 %v1508_v17, %v1091_v27  ;;  %v1104_v22 = vadd.f32 %v1103_v56, %v8150_v41 }
 0x22c   :  { %v6168_v13 = vpop.f32.mrf.mxu0  ;;  %6335 = vmatmul.mubr.msk.bf16.gmra.mxu0 %vm487_vm3, %v8267_v29  ;;  %v6101_v16 = vpop.f32.mrf.mxu1  ;;  %v6649_v29 = vld [vmem:[%s9752_s1 + $0x70] sm:$0xff]  }
 0x22d   :  { %v8346_v28 = vadd.f32 %v6168_v13, %v1112_v12  ;;  %v8348_v62 = vpop.permute.xlu1 %3132  ;;  %6410 = vmatprep.mubr.msk.bf16.mxu0 %vm487_vm3, %v6657_v45  ;;  %v1115_v14 = vadd.f32 %v6101_v16, %v8154_v48  ;;  %v8355_v53 = vpop.permute.xlu0 %3615 }
 0x22e   :  { %10002 = vst [vmem:[#allocation81_spill] sm:$0xff] %v8355_v53  ;;  %v1521_v41 = vpop.f32.mrf.mxu0  ;;  %v1106_v0 = vpop.f32.mrf.mxu1 }
 0x22f   :  { %v8360_v27 = vadd.f32 %v1521_v41, %v1104_v22  ;;  %v1107_v20 = vadd.f32 %v1106_v0, %v8165_v31 }
 0x230   :  { %v6169_v3 = vpop.f32.mrf.mxu0  ;;  %6343 = vmatmul.mubr.msk.bf16.vlgmr.msra.gmra.mxu1 %vm487_vm3, %v7503_v30  ;;  %v6104_v12 = vpop.f32.mrf.mxu1  ;;  %v6650_v30 = vld [vmem:[%s9752_s1 + $0x80] sm:$0xff]  }
 0x231   :  { %v8365_v17 = vadd.f32 %v6169_v3, %v1115_v14  ;;  %v8367_v48 = vpop.permute.xlu1 %3617  ;;  %6346 = vmatprep.mubr.msk.bf16.mxu1 %vm487_vm3, %v7476_v32  ;;  %6475 = vmatpush3.bf16.msra.mxu1 %v8022_v5  ;;  %v8372_v56 = vpop.permute.xlu0 %3109  ;;  %v1128_v31 = vadd.f32 %v6104_v12, %v7837_v38  ;;  %v6658_v32 = vld [vmem:[%s9751_s0 + $0x18] ss:$8 sps:$4 sm:$0xff]  }
 0x232   :  { %10003 = vst [vmem:[#allocation82_spill] sm:$0xff] %v8367_v48  ;;  %10004 = vst [vmem:[#allocation83_spill] sm:$0xff] %v8372_v56  ;;  %v1524_v22 = vpop.f32.mrf.mxu0  ;;  %6476 = vmatprep.subr.bf16.mxu1 %v6649_v29  ;;  %v1119_v13 = vpop.f32.mrf.mxu1  ;;  %3162 = vrot.lane.b32.xlu0 %v8372_v56, %s6659_s22 }
 0x233   :  { %v8375_v16 = vadd.f32 %v1524_v22, %v1107_v20  ;;  %v1120_v5 = vadd.f32 %v1119_v13, %v7844_v39 }
 0x234   :  { %v6172_v45 = vpop.f32.mrf.mxu0  ;;  %6411 = vmatmul.mubr.msk.bf16.vlgmr.msra.gmra.mxu0 %vm487_vm3, %v6658_v32  ;;  %v6105_v38 = vpop.f32.mrf.mxu1 }
 0x235   :  { %v8387_v14 = vadd.f32 %v6172_v45, %v1128_v31  ;;  %v8389_v41 = vpop.permute.xlu1 %3111  ;;  %6414 = vmatprep.mubr.msk.bf16.mxu0 %vm487_vm3, %v7941_v25  ;;  %6543 = vmatpush3.bf16.msra.mxu0 %v8043_v18  ;;  %v8394_v0 = vpop.permute.xlu0 %3134  ;;  %v1131_v3 = vadd.f32 %v6105_v38, %v7855_v58  ;;  %v10008_v31 = vld [vmem:[#allocation34_spill] sm:$0xff] }
 0x236   :  { %10006 = vst [vmem:[#allocation85_spill] sm:$0xff] %v8389_v41  ;;  %3164 = vrot.lane.b32.xlu1 %v8389_v41, %s6659_s22  ;;  %v1537_v20 = vpop.f32.mrf.mxu0  ;;  %6477 = vmatpush3.bf16.msra.mxu1 %v6649_v29  ;;  %v1122_v39 = vpop.f32.mrf.mxu1  ;;  %v10009_v25 = vld [vmem:[#allocation14_spill] sm:$0xff] }
 0x237   :  { %10005 = vst [vmem:[#allocation84_spill] sm:$0xff] %v8387_v14  ;;  %v8399_v12 = vadd.f32 %v1537_v20, %v1120_v5  ;;  %6544 = vmatprep.subr.bf16.mxu0 %v6650_v30  ;;  %v1123_v13 = vadd.f32 %v1122_v39, %v10009_v25  ;;  %v10013_v5 = vld [vmem:[#allocation17_spill] sm:$0xff] }
 0x238   :  { %v6173_v22 = vpop.f32.mrf.mxu0  ;;  %6347 = vmatmul.mubr.msk.bf16.gmra.mxu1 %vm487_vm3, %v10008_v31  ;;  %v6108_v18 = vpop.f32.mrf.mxu1 }
 0x239   :  { %10007 = vst [vmem:[#allocation86_spill] sm:$0xff] %v8399_v12  ;;  %v8404_v45 = vadd.f32 %v6173_v22, %v1131_v3  ;;  %v8406_v32 = vpop.permute.xlu1 %3136  ;;  %6350 = vmatprep.mubr.msk.bf16.mxu1 %vm487_vm3, %v10011_v8  ;;  %6545 = vmatpush3.bf16.msra.mxu0 %v6650_v30  ;;  %v8410_v58 = vpop.permute.xlu0 %3619  ;;  %v1144_v38 = vadd.f32 %v6108_v18, %v10013_v5  ;;  %v10016_v3 = vld [vmem:[#allocation43_spill] sm:$0xff]  ;;  %v10020_v5 = vld [vmem:[#allocation21_spill] sm:$0xff] }
 0x23a   :  { %10012 = vst [vmem:[#allocation14_spill] sm:$0xff] %v8410_v58  ;;  %v1540_v29 = vpop.f32.mrf.mxu0  ;;  %v1135_v20 = vpop.f32.mrf.mxu1  ;;  %v10018_v8 = vld [vmem:[#allocation55_spill] sm:$0xff] }
 0x23b   :  { %10010 = vst [vmem:[#allocation34_spill] sm:$0xff] %v8404_v45  ;;  %v8413_v43 = vadd.f32 %v1540_v29, %v1123_v13  ;;  %v1136_v39 = vadd.f32 %v1135_v20, %v10016_v3  ;;  %v10022_v20 = vld [vmem:[#allocation35_spill] sm:$0xff] }
 0x23c   :  { %v6176_v31 = vpop.f32.mrf.mxu0  ;;  %6415 = vmatmul.mubr.msk.bf16.gmra.mxu0 %vm487_vm3, %v10015_v46  ;;  %v6109_v22 = vpop.f32.mrf.mxu1 }
 0x23d   :  { %10014 = vst [vmem:[#allocation30_spill] sm:$0xff] %v8413_v43  ;;  %v8418_v25 = vadd.f32 %v6176_v31, %v1144_v38  ;;  %v8420_v10 = vpop.permute.xlu1 %3621  ;;  %6418 = vmatprep.mubr.msk.bf16.mxu0 %vm487_vm3, %v10018_v8  ;;  %v8424_v30 = vpop.permute.xlu0 %3113  ;;  %v1147_v13 = vadd.f32 %v6109_v22, %v10020_v5  ;;  %v10023_v38 = vld [vmem:[#allocation44_spill] sm:$0xff] }
 0x23e   :  { %10019 = vst [vmem:[#allocation50_spill] sm:$0xff] %v8424_v30  ;;  %v1553_v18 = vpop.f32.mrf.mxu0  ;;  %v1138_v29 = vpop.f32.mrf.mxu1  ;;  %3166 = vrot.lane.b32.xlu0 %v8424_v30, %s6659_s22 }
 0x23f   :  { %10017 = vst [vmem:[#allocation17_spill] sm:$0xff] %v8418_v25  ;;  %v8427_v63 = vadd.f32 %v1553_v18, %v1136_v39  ;;  %v1139_v31 = vadd.f32 %v1138_v29, %v10023_v38  ;;  %v10027_v18 = vld [vmem:[#allocation22_spill] sm:$0xff]  ;;  %v10032_v25 = vld [vmem:[#allocation63_spill] sm:$0xff] }
 0x240   :  { %v6177_v46 = vpop.f32.mrf.mxu0  ;;  %6351 = vmatmul.mubr.msk.bf16.gmra.mxu1 %vm487_vm3, %v10022_v20  ;;  %v6112_v3 = vpop.f32.mrf.mxu1  ;;  %v10029_v38 = vld [vmem:[#allocation58_spill] sm:$0xff] }
 0x241   :  { %10021 = vst [vmem:[#allocation43_spill] sm:$0xff] %v8427_v63  ;;  %v8434_v37 = vadd.f32 %v6177_v46, %v1147_v13  ;;  %v8436_v8 = vpop.permute.xlu1 %3115  ;;  %6354 = vmatprep.mubr.msk.bf16.mxu1 %vm487_vm3, %v10026_v19  ;;  %v8440_v22 = vpop.permute.xlu0 %3138  ;;  %v1160_v5 = vadd.f32 %v6112_v3, %v10027_v18  ;;  %v10030_v13 = vld [vmem:[#allocation45_spill] sm:$0xff]  ;;  %v10033_v18 = vld [vmem:[#allocation46_spill] sm:$0xff] }
 0x242   :  { %10025 = vst [vmem:[#allocation21_spill] sm:$0xff] %v8436_v8  ;;  %3168 = vrot.lane.b32.xlu1 %v8436_v8, %s6659_s22  ;;  %v1556_v39 = vpop.f32.mrf.mxu0  ;;  %v1151_v11 = vpop.f32.mrf.mxu1 }
 0x243   :  { %10024 = vst [vmem:[#allocation55_spill] sm:$0xff] %v8434_v37  ;;  %v8445_v20 = vadd.f32 %v1556_v39, %v1139_v31  ;;  %v1152_v46 = vadd.f32 %v1151_v11, %v10030_v13  ;;  %v10036_v11 = vld [vmem:[#allocation47_spill] sm:$0xff] }
 0x244   :  { %v6180_v29 = vpop.f32.mrf.mxu0  ;;  %6419 = vmatmul.mubr.msk.bf16.gmra.mxu0 %vm487_vm3, %v10029_v38  ;;  %v6113_v37 = vpop.f32.mrf.mxu1  ;;  %v10035_v38 = vld [vmem:[#allocation36_spill] sm:$0xff] }
 0x245   :  { %10028 = vst [vmem:[#allocation35_spill] sm:$0xff] %v8445_v20  ;;  %v8450_v63 = vadd.f32 %v6180_v29, %v1160_v5  ;;  %v8452_v19 = vpop.permute.xlu1 %3140  ;;  %6422 = vmatprep.mubr.msk.bf16.mxu0 %vm487_vm3, %v10032_v25  ;;  %v8456_v43 = vpop.permute.xlu0 %3623  ;;  %v1163_v31 = vadd.f32 %v6113_v37, %v10033_v18  ;;  %v10039_v18 = vld [vmem:[#allocation48_spill] sm:$0xff] }
 0x246   :  { %v1569_v3 = vpop.f32.mrf.mxu0  ;;  %v1154_v39 = vpop.f32.mrf.mxu1 }
 0x247   :  { %10031 = vst [vmem:[#allocation44_spill] sm:$0xff] %v8450_v63  ;;  %v8459_v20 = vadd.f32 %v1569_v3, %v1152_v46  ;;  %v1155_v5 = vadd.f32 %v1154_v39, %v10036_v11 }
 0x248   :  { %v6181_v45 = vpop.f32.mrf.mxu0  ;;  %6355 = vmatmul.mubr.msk.bf16.gmra.mxu1 %vm487_vm3, %v10035_v38  ;;  %v6116_v29 = vpop.f32.mrf.mxu1  ;;  %v10041_v38 = vld [vmem:[#allocation66_spill] sm:$0xff] }
 0x249   :  { %10034 = vst [vmem:[#allocation32_spill] sm:$0xff] %v8459_v20  ;;  %v8464_v13 = vadd.f32 %v6181_v45, %v1163_v31  ;;  %v8466_v63 = vpop.permute.xlu1 %3625  ;;  %6358 = vmatprep.mubr.msk.bf16.mxu1 %vm487_vm3, %v8337_v57  ;;  %v8470_v25 = vpop.permute.xlu0 %3117  ;;  %v1176_v46 = vadd.f32 %v6116_v29, %v10039_v18  ;;  %v10042_v45 = vld [vmem:[#allocation49_spill] sm:$0xff] }
 0x24a   :  { %10038 = vst [vmem:[#allocation58_spill] sm:$0xff] %v8470_v25  ;;  %v1572_v37 = vpop.f32.mrf.mxu0  ;;  %v1167_v3 = vpop.f32.mrf.mxu1  ;;  %3170 = vrot.lane.b32.xlu0 %v8470_v25, %s6659_s22 }
 0x24b   :  { %10037 = vst [vmem:[#allocation22_spill] sm:$0xff] %v8464_v13  ;;  %v8473_v20 = vadd.f32 %v1572_v37, %v1155_v5  ;;  %v1168_v31 = vadd.f32 %v1167_v3, %v10042_v45  ;;  %v10045_v37 = vld [vmem:[#allocation51_spill] sm:$0xff] }
 0x24c   :  { %v6184_v39 = vpop.f32.mrf.mxu0  ;;  %6423 = vmatmul.mubr.msk.bf16.gmra.mxu0 %vm487_vm3, %v10041_v38  ;;  %v6117_v11 = vpop.f32.mrf.mxu1 }
 0x24d   :  { %10040 = vst [vmem:[#allocation45_spill] sm:$0xff] %v8473_v20  ;;  %v8480_v13 = vadd.f32 %v6184_v39, %v1176_v46  ;;  %v8482_v57 = vpop.permute.xlu1 %3119  ;;  %6426 = vmatprep.mubr.msk.bf16.mxu0 %vm487_vm3, %v8355_v53  ;;  %v3143_v29 = vpop.permute.xlu0 %3142  ;;  %v1179_v18 = vadd.f32 %v6117_v11, %v10045_v37  ;;  %v10047_v46 = vld [vmem:[#allocation52_spill] sm:$0xff]  ;;  %v10049_v37 = vld [vmem:[#allocation53_spill] sm:$0xff] }
 0x24e   :  { %10044 = vst [vmem:[#allocation46_spill] sm:$0xff] %v8482_v57  ;;  %3172 = vrot.lane.b32.xlu1 %v8482_v57, %s6659_s22  ;;  %v1585_v5 = vpop.f32.mrf.mxu0  ;;  %v1170_v20 = vpop.f32.mrf.mxu1 }
 0x24f   :  { %10043 = vst [vmem:[#allocation63_spill] sm:$0xff] %v8480_v13  ;;  %v8489_v12 = vadd.f32 %v1585_v5, %v1168_v31  ;;  %v1171_v3 = vadd.f32 %v1170_v20, %v10047_v46 }
 0x250   :  { %v6185_v38 = vpop.f32.mrf.mxu0  ;;  %6359 = vmatmul.mubr.msk.bf16.gmra.mxu1 %vm487_vm3, %v8348_v62  ;;  %v6120_v39 = vpop.f32.mrf.mxu1  ;;  %v10051_v62 = vld [vmem:[#allocation54_spill] sm:$0xff] }
 0x251   :  { %10046 = vst [vmem:[#allocation36_spill] sm:$0xff] %v8489_v12  ;;  %v8494_v45 = vadd.f32 %v6185_v38, %v1179_v18  ;;  %v8496_v53 = vpop.permute.xlu1 %3144  ;;  %6362 = vmatprep.mubr.msk.bf16.mxu1 %vm487_vm3, %v8394_v0  ;;  %v8500_v13 = vpop.permute.xlu0 %3627  ;;  %v1192_v31 = vadd.f32 %v6120_v39, %v10049_v37  ;;  %v10054_v37 = vld [vmem:[#allocation56_spill] sm:$0xff] }
 0x252   :  { %10048 = vst [vmem:[#allocation47_spill] sm:$0xff] %v8500_v13  ;;  %v1588_v11 = vpop.f32.mrf.mxu0  ;;  %v1183_v5 = vpop.f32.mrf.mxu1 }
 0x253   :  { %v8503_v12 = vadd.f32 %v1588_v11, %v1171_v3  ;;  %v1184_v20 = vadd.f32 %v1183_v5, %v10051_v62 }
 0x254   :  { %v6188_v14 = vpop.f32.mrf.mxu0  ;;  %6427 = vmatmul.mubr.msk.bf16.gmra.mxu0 %vm487_vm3, %v8367_v48  ;;  %v6121_v18 = vpop.f32.mrf.mxu1 }
 0x255   :  { %10050 = vst [vmem:[#allocation48_spill] sm:$0xff] %v8503_v12  ;;  %v8508_v38 = vadd.f32 %v6188_v14, %v1192_v31  ;;  %v8510_v46 = vpop.permute.xlu1 %3629  ;;  %6430 = vmatprep.mubr.msk.bf16.mxu0 %vm487_vm3, %v8410_v58  ;;  %v8514_v0 = vpop.permute.xlu0 %3121  ;;  %v1195_v3 = vadd.f32 %v6121_v18, %v10054_v37  ;;  %v10056_v14 = vld [vmem:[#allocation57_spill] sm:$0xff]  ;;  %v10058_v18 = vld [vmem:[#allocation59_spill] sm:$0xff] }
 0x256   :  { %10052 = vst [vmem:[#allocation66_spill] sm:$0xff] %v8510_v46  ;;  %10053 = vst [vmem:[#allocation49_spill] sm:$0xff] %v8514_v0  ;;  %v1601_v39 = vpop.f32.mrf.mxu0  ;;  %v1186_v11 = vpop.f32.mrf.mxu1  ;;  %3174 = vrot.lane.b32.xlu0 %v8514_v0, %s6659_s22 }
 0x257   :  { %v8517_v12 = vadd.f32 %v1601_v39, %v1184_v20  ;;  %v1187_v31 = vadd.f32 %v1186_v11, %v10056_v14 }
 0x258   :  { %v6189_v5 = vpop.f32.mrf.mxu0  ;;  %6363 = vmatmul.mubr.msk.bf16.gmra.mxu1 %vm487_vm3, %v8406_v32  ;;  %v6124_v62 = vpop.f32.mrf.mxu1 }
 0x259   :  { %10055 = vst [vmem:[#allocation51_spill] sm:$0xff] %v8517_v12  ;;  %v8524_v48 = vadd.f32 %v6189_v5, %v1195_v3  ;;  %v8526_v58 = vpop.permute.xlu1 %3123  ;;  %6366 = vmatprep.mubr.msk.bf16.mxu1 %vm487_vm3, %v8440_v22  ;;  %v1208_v39 = vadd.f32 %v6124_v62, %v10058_v18  ;;  %v10059_v3 = vld [vmem:[#allocation60_spill] sm:$0xff] }
 0x25a   :  { %10057 = vst [vmem:[#allocation52_spill] sm:$0xff] %v8526_v58  ;;  %3176 = vrot.lane.b32.xlu1 %v8526_v58, %s6659_s22  ;;  %v1604_v20 = vpop.f32.mrf.mxu0  ;;  %v1199_v37 = vpop.f32.mrf.mxu1  ;;  %4102 = vrot.lane.b32.xlu0 %v8372_v56, %s6660_s6 }
 0x25b   :  { %v8533_v12 = vadd.f32 %v1604_v20, %v1187_v31  ;;  %v1200_v11 = vadd.f32 %v1199_v37, %v10059_v3  ;;  %v10060_v31 = vld [vmem:[#allocation61_spill] sm:$0xff] }
 0x25c   :  { %v6192_v32 = vpop.f32.mrf.mxu0  ;;  %6431 = vmatmul.mubr.msk.bf16.gmra.mxu0 %vm487_vm3, %v8420_v10  ;;  %v6125_v5 = vpop.f32.mrf.mxu1 }
 0x25d   :  { %v8540_v22 = vadd.f32 %v6192_v32, %v1208_v39  ;;  %6434 = vmatprep.mubr.msk.bf16.mxu0 %vm487_vm3, %v8456_v43  ;;  %v1211_v62 = vadd.f32 %v6125_v5, %v10060_v31  ;;  %v10061_v39 = vld [vmem:[#allocation62_spill] sm:$0xff] }
 0x25e   :  { %4104 = vrot.lane.b32.xlu1 %v8389_v41, %s6660_s6  ;;  %v1617_v14 = vpop.f32.mrf.mxu0  ;;  %v1202_v20 = vpop.f32.mrf.mxu1  ;;  %4106 = vrot.lane.b32.xlu0 %v8424_v30, %s6660_s6  ;;  %v10073_v30 = vld [vmem:[#allocation38_spill] sm:$0xff] }
 0x25f   :  { %v8547_v18 = vadd.f32 %v1617_v14, %v1200_v11  ;;  %v1203_v37 = vadd.f32 %v1202_v20, %v10061_v39  ;;  %v10062_v11 = vld [vmem:[#allocation64_spill] sm:$0xff] }
 0x260   :  { %v6193_v56 = vpop.f32.mrf.mxu0  ;;  %6367 = vmatmul.mubr.msk.bf16.gmra.mxu1 %vm487_vm3, %v8452_v19  ;;  %v6128_v32 = vpop.f32.mrf.mxu1 }
 0x261   :  { %v8554_v3 = vadd.f32 %v6193_v56, %v1211_v62  ;;  %6370 = vmatprep.mubr.msk.bf16.mxu1 %vm487_vm3, %v3143_v29  ;;  %v1224_v14 = vadd.f32 %v6128_v32, %v10062_v11  ;;  %v10063_v56 = vld [vmem:[#allocation65_spill] sm:$0xff] }
 0x262   :  { %4108 = vrot.lane.b32.xlu1 %v8436_v8, %s6660_s6  ;;  %v1620_v5 = vpop.f32.mrf.mxu0  ;;  %v1215_v31 = vpop.f32.mrf.mxu1  ;;  %4110 = vrot.lane.b32.xlu0 %v8470_v25, %s6660_s6 }
 0x263   :  { %v8560_v41 = vadd.f32 %v1620_v5, %v1203_v37  ;;  %v1216_v62 = vadd.f32 %v1215_v31, %v10063_v56  ;;  %v10064_v37 = vld [vmem:[#allocation67_spill] sm:$0xff] }
 0x264   :  { %v6196_v19 = vpop.f32.mrf.mxu0  ;;  %6435 = vmatmul.mubr.msk.bf16.gmra.mxu0 %vm487_vm3, %v8466_v63  ;;  %v6129_v20 = vpop.f32.mrf.mxu1 }
 0x265   :  { %v8567_v29 = vadd.f32 %v6196_v19, %v1224_v14  ;;  %6438 = vmatprep.mubr.msk.bf16.mxu0 %vm487_vm3, %v8500_v13  ;;  %v1227_v32 = vadd.f32 %v6129_v20, %v10064_v37  ;;  %v10065_v14 = vld [vmem:[#allocation68_spill] sm:$0xff]  ;;  %v10066_v20 = vld [vmem:[#allocation69_spill] sm:$0xff] }
 0x266   :  { %4112 = vrot.lane.b32.xlu1 %v8482_v57, %s6660_s6  ;;  %v1633_v39 = vpop.f32.mrf.mxu0  ;;  %v1218_v5 = vpop.f32.mrf.mxu1  ;;  %4114 = vrot.lane.b32.xlu0 %v8514_v0, %s6660_s6  ;;  %v10068_v0 = vld [vmem:[#allocation37_spill] sm:$0xff] }
 0x267   :  { %v8574_v11 = vadd.f32 %v1633_v39, %v1216_v62  ;;  %v1219_v31 = vadd.f32 %v1218_v5, %v10065_v14  ;;  %v10071_v14 = vld [vmem:[#allocation40_spill] sm:$0xff] }
 0x268   :  { %v6197_v25 = vpop.f32.mrf.mxu0  ;;  %6371 = vmatmul.mubr.msk.bf16.gmra.mxu1 %vm487_vm3, %v8496_v53  ;;  %v6132_v19 = vpop.f32.mrf.mxu1  ;;  %v10069_v53 = vld [vmem:[#allocation70_spill] sm:$0xff] }
 0x269   :  { %v8581_v56 = vadd.f32 %v6197_v25, %v1227_v32  ;;  %v1240_v37 = vadd.f32 %v6132_v19, %v10066_v20 }
 0x26a   :  { %4116 = vrot.lane.b32.xlu1 %v8526_v58, %s6660_s6  ;;  %v1636_v57 = vpop.f32.mrf.mxu0  ;;  %v1231_v62 = vpop.f32.mrf.mxu1  ;;  %4118 = vrot.lane.b32.xlu0 %v10068_v0, %s6660_s6 }
 0x26b   :  { %v8586_v39 = vadd.f32 %v1636_v57, %v1219_v31  ;;  %v1232_v5 = vadd.f32 %v1231_v62, %v10069_v53  ;;  %v10072_v31 = vld [vmem:[#allocation71_spill] sm:$0xff]  ;;  %v10074_v62 = vld [vmem:[#allocation72_spill] sm:$0xff] }
 0x26c   :  { %v6200_v8 = vpop.f32.mrf.mxu0  ;;  %6439 = vmatmul.mubr.msk.bf16.gmra.mxu0 %vm487_vm3, %v8510_v46  ;;  %v6133_v25 = vpop.f32.mrf.mxu1 }
 0x26d   :  { %10067 = vst [vmem:[#allocation53_spill] sm:$0xff] %v8586_v39  ;;  %v8593_v32 = vadd.f32 %v6200_v8, %v1240_v37  ;;  %6442 = vmatprep.mubr.msk.bf16.mxu0 %vm487_vm3, %v10068_v0  ;;  %v1243_v19 = vadd.f32 %v6133_v25, %v10072_v31 }
 0x26e   :  { %4120 = vrot.lane.b32.xlu1 %v10071_v14, %s6660_s6  ;;  %v1649_v57 = vpop.f32.mrf.mxu0  ;;  %v1234_v20 = vpop.f32.mrf.mxu1  ;;  %4122 = vrot.lane.b32.xlu0 %v10073_v30, %s6660_s6 }
 0x26f   :  { %10070 = vst [vmem:[#allocation54_spill] sm:$0xff] %v8593_v32  ;;  %v8600_v58 = vadd.f32 %v1649_v57, %v1232_v5  ;;  %v1235_v53 = vadd.f32 %v1234_v20, %v10074_v62  ;;  %v10075_v32 = vld [vmem:[#allocation42_spill] sm:$0xff]  ;;  %v10076_v5 = vld [vmem:[#allocation39_spill] sm:$0xff] }
 0x270   :  { %v6201_v46 = vpop.f32.mrf.mxu0  ;;  %v6208_v37 = vpop.f32.mrf.mxu1 }
 0x271   :  { %v8605_v8 = vadd.f32 %v6201_v46, %v1243_v19  ;;  %v2245_v0 = vadd.f32 %v6208_v37, %v8170_v42 }
 0x272   :  { %4124 = vrot.lane.b32.xlu1 %v10075_v32, %s6660_s6  ;;  %v1652_v39 = vpop.f32.mrf.mxu0  ;;  %v1988_v25 = vpop.f32.mrf.mxu1  ;;  %4126 = vrot.lane.b32.xlu0 %v10076_v5, %s6660_s6 }
 0x273   :  { %v8610_v13 = vadd.f32 %v1652_v39, %v1235_v53  ;;  %v2243_v57 = vadd.f32 %v1988_v25, %v8177_v52  ;;  %v10078_v39 = vld [vmem:[#allocation11_spill] sm:$0xff]  ;;  %v10080_v52 = vld [vmem:[#allocation41_spill] sm:$0xff] }
 0x274   :  { %v6276_v31 = vpop.f32.mrf.mxu0  ;;  %6443 = vmatmul.mubr.msk.bf16.gmra.mxu0 %vm487_vm3, %v10071_v14  ;;  %v6209_v46 = vpop.f32.mrf.mxu1 }
 0x275   :  { %v8617_v19 = vadd.f32 %v6276_v31, %v2245_v0  ;;  %6446 = vmatprep.mubr.msk.bf16.mxu0 %vm487_vm3, %v10073_v30  ;;  %v2246_v42 = vadd.f32 %v6209_v46, %v8182_v60  ;;  %v10081_v60 = vld [vmem:[#allocation12_spill] sm:$0xff] }
 0x276   :  { %4128 = vrot.lane.b32.xlu1 %v10078_v39, %s6660_s6  ;;  %v2774_v20 = vpop.f32.mrf.mxu0  ;;  %v1991_v62 = vpop.f32.mrf.mxu1  ;;  %4130 = vrot.lane.b32.xlu0 %v10080_v52, %s6660_s6 }
 0x277   :  { %10077 = vst [vmem:[#allocation56_spill] sm:$0xff] %v8617_v19  ;;  %v8624_v53 = vadd.f32 %v2774_v20, %v2243_v57  ;;  %v2244_v14 = vadd.f32 %v1991_v62, %v8189_v9  ;;  %v10082_v57 = vld [vmem:[#allocation16_spill] sm:$0xff]  ;;  %v10084_v62 = vld [vmem:[#allocation19_spill] sm:$0xff] }
 0x278   :  { %v6277_v37 = vpop.f32.mrf.mxu0  ;;  %v6212_v0 = vpop.f32.mrf.mxu1 }
 0x279   :  { %10079 = vst [vmem:[#allocation57_spill] sm:$0xff] %v8624_v53  ;;  %v8629_v25 = vadd.f32 %v6277_v37, %v2246_v42  ;;  %v2249_v30 = vadd.f32 %v6212_v0, %v8194_v21 }
 0x27a   :  { %4132 = vrot.lane.b32.xlu1 %v10081_v60, %s6660_s6  ;;  %v2777_v31 = vpop.f32.mrf.mxu0  ;;  %v2004_v46 = vpop.f32.mrf.mxu1  ;;  %4134 = vrot.lane.b32.xlu0 %v10082_v57, %s6660_s6 }
 0x27b   :  { %v8634_v19 = vadd.f32 %v2777_v31, %v2244_v14  ;;  %v2247_v20 = vadd.f32 %v2004_v46, %v8199_v2  ;;  %v10086_v2 = vld [vmem:[#allocation20_spill] sm:$0xff] }
 0x27c   :  { %v6280_v53 = vpop.f32.mrf.mxu0  ;;  %6447 = vmatmul.mubr.msk.bf16.gmra.mxu0 %vm487_vm3, %v10075_v32  ;;  %v6213_v9 = vpop.f32.mrf.mxu1 }
 0x27d   :  { %v8641_v42 = vadd.f32 %v6280_v53, %v2249_v30  ;;  %6450 = vmatprep.mubr.msk.bf16.mxu0 %vm487_vm3, %v10076_v5  ;;  %v2250_v21 = vadd.f32 %v6213_v9, %v8204_v15  ;;  %v10087_v15 = vld [vmem:[#allocation4_spill] sm:$0xff] }
 0x27e   :  { %4136 = vrot.lane.b32.xlu1 %v10084_v62, %s6660_s6  ;;  %v2790_v14 = vpop.f32.mrf.mxu0  ;;  %v2007_v37 = vpop.f32.mrf.mxu1  ;;  %4138 = vrot.lane.b32.xlu0 %v10086_v2, %s6660_s6 }
 0x27f   :  { %10083 = vst [vmem:[#allocation59_spill] sm:$0xff] %v8641_v42  ;;  %v8648_v0 = vadd.f32 %v2790_v14, %v2247_v20  ;;  %v2248_v32 = vadd.f32 %v2007_v37, %v8209_v24  ;;  %v10088_v20 = vld [vmem:[#allocation5_spill] sm:$0xff]  ;;  %v10090_v37 = vld [vmem:[#allocation8_spill] sm:$0xff] }
 0x280   :  { %v6281_v31 = vpop.f32.mrf.mxu0  ;;  %v6216_v53 = vpop.f32.mrf.mxu1 }
 0x281   :  { %10085 = vst [vmem:[#allocation60_spill] sm:$0xff] %v8648_v0  ;;  %v8653_v30 = vadd.f32 %v6281_v31, %v2250_v21  ;;  %v2253_v5 = vadd.f32 %v6216_v53, %v8214_v33 }
 0x282   :  { %4140 = vrot.lane.b32.xlu1 %v10087_v15, %s6660_s6  ;;  %v2793_v46 = vpop.f32.mrf.mxu0  ;;  %v2020_v9 = vpop.f32.mrf.mxu1  ;;  %4142 = vrot.lane.b32.xlu0 %v10088_v20, %s6660_s6 }
 0x283   :  { %v8658_v42 = vadd.f32 %v2793_v46, %v2248_v32  ;;  %v2251_v14 = vadd.f32 %v2020_v9, %v8219_v61  ;;  %v10091_v61 = vld [vmem:[#allocation10_spill] sm:$0xff] }
 0x284   :  { %v6284_v0 = vpop.f32.mrf.mxu0  ;;  %6451 = vmatmul.mubr.msk.bf16.gmra.mxu0 %vm487_vm3, %v10078_v39  ;;  %v6217_v24 = vpop.f32.mrf.mxu1 }
 0x285   :  { %v8665_v21 = vadd.f32 %v6284_v0, %v2253_v5  ;;  %6454 = vmatprep.mubr.msk.bf16.mxu0 %vm487_vm3, %v10080_v52  ;;  %v2254_v33 = vadd.f32 %v6217_v24, %v8224_v4  ;;  %v10093_v4 = vld [vmem:[#allocation13_spill] sm:$0xff] }
 0x286   :  { %4144 = vrot.lane.b32.xlu1 %v10090_v37, %s6660_s6  ;;  %v2806_v32 = vpop.f32.mrf.mxu0  ;;  %v2023_v31 = vpop.f32.mrf.mxu1  ;;  %4146 = vrot.lane.b32.xlu0 %v10091_v61, %s6660_s6 }
 0x287   :  { %10089 = vst [vmem:[#allocation61_spill] sm:$0xff] %v8665_v21  ;;  %v8672_v53 = vadd.f32 %v2806_v32, %v2251_v14  ;;  %v2252_v39 = vadd.f32 %v2023_v31, %v8229_v51 }
 0x288   :  { %v6285_v46 = vpop.f32.mrf.mxu0  ;;  %v6220_v0 = vpop.f32.mrf.mxu1 }
 0x289   :  { %v8677_v5 = vadd.f32 %v6285_v46, %v2254_v33  ;;  %v2257_v52 = vadd.f32 %v6220_v0, %v8235_v50  ;;  %v10095_v33 = vld [vmem:[#allocation23_spill] sm:$0xff] }
 0x28a   :  { %4148 = vrot.lane.b32.xlu1 %v10093_v4, %s6660_s6  ;;  %v2809_v9 = vpop.f32.mrf.mxu0  ;;  %v2036_v24 = vpop.f32.mrf.mxu1 }
 0x28b   :  { %10092 = vst [vmem:[#allocation62_spill] sm:$0xff] %v8677_v5  ;;  %v8682_v21 = vadd.f32 %v2809_v9, %v2252_v39  ;;  %v2255_v14 = vadd.f32 %v2036_v24, %v8240_v7 }
 0x28c   :  { %v6288_v32 = vpop.f32.mrf.mxu0  ;;  %6455 = vmatmul.mubr.msk.bf16.gmra.mxu0 %vm487_vm3, %v10081_v60  ;;  %v6221_v51 = vpop.f32.mrf.mxu1 }
 0x28d   :  { %10094 = vst [vmem:[#allocation64_spill] sm:$0xff] %v8682_v21  ;;  %v8687_v31 = vadd.f32 %v6288_v32, %v2257_v52  ;;  %6458 = vmatprep.mubr.msk.bf16.mxu0 %vm487_vm3, %v10095_v33  ;;  %v3147_v50 = vpop.permute.xlu0 %3146  ;;  %v2258_v46 = vadd.f32 %v6221_v51, %v8246_v6 }
 0x28e   :  { %v2822_v0 = vpop.f32.mrf.mxu0  ;;  %6374 = vmatprep.mubr.msk.bf16.mxu1 %vm487_vm3, %v3147_v50  ;;  %v2039_v39 = vpop.f32.mrf.mxu1 }
 0x28f   :  { %v8693_v9 = vadd.f32 %v2822_v0, %v2255_v14  ;;  %v2256_v7 = vadd.f32 %v2039_v39, %v8251_v40  ;;  %v10097_v40 = vld [vmem:[#allocation15_spill] sm:$0xff] }
 0x290   :  { %v3149_v24 = vpop.permute.xlu1 %3148  ;;  %v6289_v21 = vpop.f32.mrf.mxu0 }
 0x291   :  { %v6224_v60 = vpop.f32.mrf.mxu1  ;;  %v8696_v5 = vadd.f32 %v6289_v21, %v2258_v46  ;;  %6375 = vmatmul.mubr.msk.bf16.gmra.mxu1 %vm487_vm3, %v3149_v24  ;;  %v3151_v52 = vpop.permute.xlu0 %3150  ;;  %v10098_v46 = vld [vmem:[#allocation18_spill] sm:$0xff] }
 0x292   :  { %v2261_v32 = vadd.f32 %v6224_v60, %v8257_v23  ;;  %v2825_v33 = vpop.f32.mrf.mxu0  ;;  %6378 = vmatprep.mubr.msk.bf16.mxu1 %vm487_vm3, %v3151_v52 }
 0x293   :  { %v2052_v6 = vpop.f32.mrf.mxu1  ;;  %v8701_v51 = vadd.f32 %v2825_v33, %v2256_v7 }
 0x294   :  { %v2259_v14 = vadd.f32 %v2052_v6, %v8261_v34  ;;  %v6292_v50 = vpop.f32.mrf.mxu0  ;;  %6459 = vmatmul.mubr.msk.bf16.gmra.mxu0 %vm487_vm3, %v10097_v40  ;;  %v3153_v7 = vpop.permute.xlu1 %3152 }
 0x295   :  { %10096 = vst [vmem:[#allocation65_spill] sm:$0xff] %v8701_v51  ;;  %v6225_v0 = vpop.f32.mrf.mxu1  ;;  %v8706_v21 = vadd.f32 %v6292_v50, %v2261_v32  ;;  %6462 = vmatprep.mubr.msk.bf16.mxu0 %vm487_vm3, %v10098_v46  ;;  %v3155_v33 = vpop.permute.xlu0 %3154  ;;  %v10099_v46 = vld [vmem:[#allocation3_spill] sm:$0xff] }
 0x296   :  { %v2262_v23 = vadd.f32 %v6225_v0, %v8265_v26  ;;  %v2838_v39 = vpop.f32.mrf.mxu0 }
 0x297   :  { %v2055_v24 = vpop.f32.mrf.mxu1  ;;  %v8711_v60 = vadd.f32 %v2838_v39, %v2259_v14 }
 0x298   :  { %v2260_v52 = vadd.f32 %v2055_v24, %v8273_v1  ;;  %v6293_v34 = vpop.f32.mrf.mxu0 }
 0x299   :  { %v6228_v6 = vpop.f32.mrf.mxu1  ;;  %v8714_v51 = vadd.f32 %v6293_v34, %v2262_v23  ;;  %6379 = vmatmul.mubr.msk.bf16.gmra.mxu1 %vm487_vm3, %v3153_v7  ;;  %v10100_v23 = vld [vmem:[#allocation2_spill] sm:$0xff] }
 0x29a   :  { %v2265_v32 = vadd.f32 %v6228_v6, %v8279_v59  ;;  %v2841_v50 = vpop.f32.mrf.mxu0  ;;  %6382 = vmatprep.mubr.msk.bf16.mxu1 %vm487_vm3, %v3155_v33  ;;  %v3159_v6 = vpop.permute.xlu0 %3158 }
 0x29b   :  { %v2068_v26 = vpop.f32.mrf.mxu1  ;;  %v8719_v40 = vadd.f32 %v2841_v50, %v2260_v52  ;;  %v3157_v52 = vpop.permute.xlu1 %3156 }
 0x29c   :  { %v2263_v14 = vadd.f32 %v2068_v26, %v8289_v47  ;;  %v6296_v0 = vpop.f32.mrf.mxu0  ;;  %6463 = vmatmul.mubr.msk.bf16.gmra.mxu0 %vm487_vm3, %v10099_v46 }
 0x29d   :  { %v6229_v1 = vpop.f32.mrf.mxu1  ;;  %v8724_v39 = vadd.f32 %v6296_v0, %v2265_v32  ;;  %6466 = vmatprep.mubr.msk.bf16.mxu0 %vm487_vm3, %v10100_v23  ;;  %v10101_v23 = vld [vmem:[#allocation6_spill] sm:$0xff] }
 0x29e   :  { %v2266_v59 = vadd.f32 %v6229_v1, %v8296_v44  ;;  %v2854_v24 = vpop.f32.mrf.mxu0 }
 0x29f   :  { %v2071_v7 = vpop.f32.mrf.mxu1  ;;  %v8729_v34 = vadd.f32 %v2854_v24, %v2263_v14 }
 0x2a0   :  { %v2264_v33 = vadd.f32 %v2071_v7, %v8306_v55  ;;  %v6297_v47 = vpop.f32.mrf.mxu0 }
 0x2a1   :  { %v6232_v50 = vpop.f32.mrf.mxu1  ;;  %v8732_v26 = vadd.f32 %v6297_v47, %v2266_v59  ;;  %6383 = vmatmul.mubr.msk.bf16.gmra.mxu1 %vm487_vm3, %v3157_v52  ;;  %v10102_v59 = vld [vmem:[#allocation7_spill] sm:$0xff] }
 0x2a2   :  { %v2269_v32 = vadd.f32 %v6232_v50, %v8313_v35  ;;  %v2857_v0 = vpop.f32.mrf.mxu0  ;;  %6386 = vmatprep.mubr.msk.bf16.mxu1 %vm487_vm3, %v3159_v6 }
 0x2a3   :  { %v2084_v44 = vpop.f32.mrf.mxu1  ;;  %v8737_v46 = vadd.f32 %v2857_v0, %v2264_v33  ;;  %v3161_v33 = vpop.permute.xlu1 %3160 }
 0x2a4   :  { %v2267_v14 = vadd.f32 %v2084_v44, %v8323_v49  ;;  %v6300_v1 = vpop.f32.mrf.mxu0  ;;  %6467 = vmatmul.mubr.msk.bf16.gmra.mxu0 %vm487_vm3, %v10101_v23  ;;  %v3163_v50 = vpop.permute.xlu0 %3162 }
 0x2a5   :  { %v6233_v55 = vpop.f32.mrf.mxu1  ;;  %v8742_v24 = vadd.f32 %v6300_v1, %v2269_v32  ;;  %6470 = vmatprep.mubr.msk.bf16.mxu0 %vm487_vm3, %v10102_v59  ;;  %v10103_v59 = vld [vmem:[#allocation9_spill] sm:$0xff] }
 0x2a6   :  { %v2270_v35 = vadd.f32 %v6233_v55, %v8330_v36  ;;  %v2870_v7 = vpop.f32.mrf.mxu0 }
 0x2a7   :  { %v2087_v52 = vpop.f32.mrf.mxu1  ;;  %v8747_v47 = vadd.f32 %v2870_v7, %v2267_v14 }
 0x2a8   :  { %v2268_v6 = vadd.f32 %v2087_v52, %v8341_v54  ;;  %v6301_v49 = vpop.f32.mrf.mxu0 }
 0x2a9   :  { %v6236_v0 = vpop.f32.mrf.mxu1  ;;  %v8750_v44 = vadd.f32 %v6301_v49, %v2270_v35  ;;  %6387 = vmatmul.mubr.msk.bf16.gmra.mxu1 %vm487_vm3, %v3161_v33  ;;  %v10105_v35 = vld [vmem:[#allocation24_spill] sm:$0xff] }
 0x2aa   :  { %v2273_v32 = vadd.f32 %v6236_v0, %v8346_v28  ;;  %v2873_v1 = vpop.f32.mrf.mxu0  ;;  %6390 = vmatprep.mubr.msk.bf16.mxu1 %vm487_vm3, %v3163_v50 }
 0x2ab   :  { %v2100_v36 = vpop.f32.mrf.mxu1  ;;  %v8755_v23 = vadd.f32 %v2873_v1, %v2268_v6  ;;  %v3165_v6 = vpop.permute.xlu1 %3164 }
 0x2ac   :  { %v2271_v14 = vadd.f32 %v2100_v36, %v8360_v27  ;;  %v6304_v55 = vpop.f32.mrf.mxu0  ;;  %6471 = vmatmul.mubr.msk.bf16.gmra.mxu0 %vm487_vm3, %v10103_v59  ;;  %v10108_v36 = vld [vmem:[#allocation84_spill] sm:$0xff] }
 0x2ad   :  { %v6237_v54 = vpop.f32.mrf.mxu1  ;;  %v8760_v7 = vadd.f32 %v6304_v55, %v2273_v32  ;;  %6546 = vmatprep.mubr.msk.bf16.mxu0 %vm487_vm3, %v10105_v35 }
 0x2ae   :  { %v2274_v28 = vadd.f32 %v6237_v54, %v8365_v17  ;;  %v2886_v52 = vpop.f32.mrf.mxu0 }
 0x2af   :  { %10104 = vst [vmem:[#allocation67_spill] sm:$0xff] %v8760_v7  ;;  %v2103_v33 = vpop.f32.mrf.mxu1  ;;  %v8765_v49 = vadd.f32 %v2886_v52, %v2271_v14  ;;  %v10110_v14 = vld [vmem:[#allocation86_spill] sm:$0xff] }
 0x2b0   :  { %v2272_v50 = vadd.f32 %v2103_v33, %v8375_v16  ;;  %v6305_v27 = vpop.f32.mrf.mxu0  ;;  %v3167_v32 = vpop.permute.xlu0 %3166  ;;  %v10113_v33 = vld [vmem:[#allocation26_spill] sm:$0xff] }
 0x2b1   :  { %10106 = vst [vmem:[#allocation68_spill] sm:$0xff] %v8765_v49  ;;  %v6240_v0 = vpop.f32.mrf.mxu1  ;;  %v8768_v1 = vadd.f32 %v6305_v27, %v2274_v28  ;;  %6391 = vmatmul.mubr.msk.bf16.gmra.mxu1 %vm487_vm3, %v3165_v6  ;;  %v10111_v49 = vld [vmem:[#allocation25_spill] sm:$0xff]  ;;  %v10114_v6 = vld [vmem:[#allocation34_spill] sm:$0xff] }
 0x2b2   :  { %v2277_v55 = vadd.f32 %v6240_v0, %v10108_v36  ;;  %v2889_v59 = vpop.f32.mrf.mxu0  ;;  %6394 = vmatprep.mubr.msk.bf16.mxu1 %vm487_vm3, %v3167_v32 }
 0x2b3   :  { %10107 = vst [vmem:[#allocation69_spill] sm:$0xff] %v8768_v1  ;;  %v2116_v17 = vpop.f32.mrf.mxu1  ;;  %v8773_v54 = vadd.f32 %v2889_v59, %v2272_v50  ;;  %v10116_v59 = vld [vmem:[#allocation30_spill] sm:$0xff] }
 0x2b4   :  { %v2275_v35 = vadd.f32 %v2116_v17, %v10110_v14  ;;  %v6308_v52 = vpop.f32.mrf.mxu0  ;;  %6547 = vmatmul.mubr.msk.bf16.vlgmr.msra.gmra.mxu0 %vm487_vm3, %v10111_v49  ;;  %v3169_v50 = vpop.permute.xlu1 %3168  ;;  %v10118_v49 = vld [vmem:[#allocation17_spill] sm:$0xff] }
 0x2b5   :  { %10109 = vst [vmem:[#allocation37_spill] sm:$0xff] %v8773_v54  ;;  %v6241_v16 = vpop.f32.mrf.mxu1  ;;  %v8778_v28 = vadd.f32 %v6308_v52, %v2277_v55  ;;  %6550 = vmatprep.mubr.msk.bf16.mxu0 %vm487_vm3, %v10113_v33 }
 0x2b6   :  { %v2278_v27 = vadd.f32 %v6241_v16, %v10114_v6  ;;  %v2902_v0 = vpop.f32.mrf.mxu0  ;;  %v10120_v16 = vld [vmem:[#allocation43_spill] sm:$0xff] }
 0x2b7   :  { %10112 = vst [vmem:[#allocation70_spill] sm:$0xff] %v8778_v28  ;;  %v2119_v36 = vpop.f32.mrf.mxu1  ;;  %v8783_v32 = vadd.f32 %v2902_v0, %v2275_v35  ;;  %v10121_v35 = vld [vmem:[#allocation27_spill] sm:$0xff] }
 0x2b8   :  { %v2276_v54 = vadd.f32 %v2119_v36, %v10116_v59  ;;  %v6309_v17 = vpop.f32.mrf.mxu0 }
 0x2b9   :  { %10115 = vst [vmem:[#allocation40_spill] sm:$0xff] %v8783_v32  ;;  %v6244_v14 = vpop.f32.mrf.mxu1  ;;  %v8786_v1 = vadd.f32 %v6309_v17, %v2278_v27  ;;  %6395 = vmatmul.mubr.msk.bf16.gmra.mxu1 %vm487_vm3, %v3169_v50  ;;  %v10123_v27 = vld [vmem:[#allocation28_spill] sm:$0xff]  ;;  %v10124_v50 = vld [vmem:[#allocation55_spill] sm:$0xff] }
 0x2ba   :  { %v2281_v55 = vadd.f32 %v6244_v14, %v10118_v49  ;;  %v2905_v52 = vpop.f32.mrf.mxu0 }
 0x2bb   :  { %10117 = vst [vmem:[#allocation71_spill] sm:$0xff] %v8786_v1  ;;  %v2132_v28 = vpop.f32.mrf.mxu1  ;;  %v8790_v33 = vadd.f32 %v2905_v52, %v2276_v54 }
 0x2bc   :  { %v2279_v6 = vadd.f32 %v2132_v28, %v10120_v16  ;;  %v6312_v7 = vpop.f32.mrf.mxu0  ;;  %6551 = vmatmul.mubr.msk.bf16.gmra.mxu0 %vm487_vm3, %v10121_v35  ;;  %v3171_v59 = vpop.permute.xlu0 %3170  ;;  %v10126_v28 = vld [vmem:[#allocation35_spill] sm:$0xff] }
 0x2bd   :  { %10119 = vst [vmem:[#allocation38_spill] sm:$0xff] %v8790_v33  ;;  %v6245_v0 = vpop.f32.mrf.mxu1  ;;  %v8795_v36 = vadd.f32 %v6312_v7, %v2281_v55  ;;  %6554 = vmatprep.mubr.msk.bf16.mxu0 %vm487_vm3, %v10123_v27  ;;  %6398 = vmatprep.mubr.msk.bf16.mxu1 %vm487_vm3, %v3171_v59  ;;  %v10128_v7 = vld [vmem:[#allocation44_spill] sm:$0xff] }
 0x2be   :  { %v2282_v17 = vadd.f32 %v6245_v0, %v10124_v50  ;;  %v2918_v14 = vpop.f32.mrf.mxu0  ;;  %v10130_v50 = vld [vmem:[#allocation32_spill] sm:$0xff] }
 0x2bf   :  { %10122 = vst [vmem:[#allocation72_spill] sm:$0xff] %v8795_v36  ;;  %v2135_v54 = vpop.f32.mrf.mxu1  ;;  %v8801_v49 = vadd.f32 %v2918_v14, %v2279_v6  ;;  %v10131_v6 = vld [vmem:[#allocation29_spill] sm:$0xff] }
 0x2c0   :  { %v2280_v52 = vadd.f32 %v2135_v54, %v10126_v28  ;;  %v3173_v16 = vpop.permute.xlu1 %3172  ;;  %v6313_v33 = vpop.f32.mrf.mxu0  ;;  %v10133_v28 = vld [vmem:[#allocation31_spill] sm:$0xff] }
 0x2c1   :  { %10125 = vst [vmem:[#allocation42_spill] sm:$0xff] %v8801_v49  ;;  %v6248_v35 = vpop.f32.mrf.mxu1  ;;  %v8804_v1 = vadd.f32 %v6313_v33, %v2282_v17  ;;  %6399 = vmatmul.mubr.msk.bf16.gmra.mxu1 %vm487_vm3, %v3173_v16  ;;  %v10134_v33 = vld [vmem:[#allocation22_spill] sm:$0xff] }
 0x2c2   :  { %v2285_v55 = vadd.f32 %v6248_v35, %v10128_v7  ;;  %v2921_v27 = vpop.f32.mrf.mxu0 }
 0x2c3   :  { %10127 = vst [vmem:[#allocation39_spill] sm:$0xff] %v8804_v1  ;;  %v2148_v36 = vpop.f32.mrf.mxu1  ;;  %v8808_v0 = vadd.f32 %v2921_v27, %v2280_v52  ;;  %v10135_v52 = vld [vmem:[#allocation45_spill] sm:$0xff] }
 0x2c4   :  { %v2283_v59 = vadd.f32 %v2148_v36, %v10130_v50  ;;  %v6316_v32 = vpop.f32.mrf.mxu0  ;;  %6555 = vmatmul.mubr.msk.bf16.gmra.mxu0 %vm487_vm3, %v10131_v6  ;;  %v10136_v6 = vld [vmem:[#allocation63_spill] sm:$0xff] }
 0x2c5   :  { %10129 = vst [vmem:[#allocation11_spill] sm:$0xff] %v8808_v0  ;;  %v6249_v14 = vpop.f32.mrf.mxu1  ;;  %v8813_v54 = vadd.f32 %v6316_v32, %v2285_v55  ;;  %6558 = vmatprep.mubr.msk.bf16.mxu0 %vm487_vm3, %v10133_v28 }
 0x2c6   :  { %v2286_v17 = vadd.f32 %v6249_v14, %v10134_v33  ;;  %v2934_v16 = vpop.f32.mrf.mxu0  ;;  %v10137_v14 = vld [vmem:[#allocation36_spill] sm:$0xff] }
 0x2c7   :  { %10132 = vst [vmem:[#allocation41_spill] sm:$0xff] %v8813_v54  ;;  %v2151_v35 = vpop.f32.mrf.mxu1  ;;  %v8818_v7 = vadd.f32 %v2934_v16, %v2283_v59  ;;  %v10138_v16 = vld [vmem:[#allocation33_spill] sm:$0xff] }
 0x2c8   :  { %v2284_v27 = vadd.f32 %v2151_v35, %v10135_v52  ;;  %v6317_v0 = vpop.f32.mrf.mxu0  ;;  %v3175_v1 = vpop.permute.xlu0 %3174 }
 0x2c9   :  { %v6252_v36 = vpop.f32.mrf.mxu1  ;;  %v8821_v50 = vadd.f32 %v6317_v0, %v2286_v17  ;;  %6402 = vmatprep.mubr.msk.bf16.mxu1 %vm487_vm3, %v3175_v1  ;;  %v10140_v17 = vld [vmem:[#allocation81_spill] sm:$0xff] }
 0x2ca   :  { %v2289_v49 = vadd.f32 %v6252_v36, %v10136_v6  ;;  %v2937_v32 = vpop.f32.mrf.mxu0  ;;  %v10141_v6 = vld [vmem:[#allocation48_spill] sm:$0xff] }
 0x2cb   :  { %v2164_v55 = vpop.f32.mrf.mxu1  ;;  %v8825_v28 = vadd.f32 %v2937_v32, %v2284_v27 }
 0x2cc   :  { %v2287_v33 = vadd.f32 %v2164_v55, %v10137_v14  ;;  %v3177_v54 = vpop.permute.xlu1 %3176  ;;  %v6320_v59 = vpop.f32.mrf.mxu0  ;;  %6559 = vmatmul.mubr.msk.bf16.gmra.mxu0 %vm487_vm3, %v10138_v16 }
 0x2cd   :  { %v6253_v35 = vpop.f32.mrf.mxu1  ;;  %v8830_v52 = vadd.f32 %v6320_v59, %v2289_v49  ;;  %6403 = vmatmul.mubr.msk.bf16.gmra.mxu1 %vm487_vm3, %v3177_v54  ;;  %6562 = vmatprep.mubr.msk.bf16.mxu0 %vm487_vm3, %v10082_v57 }
 0x2ce   :  { %v2290_v1 = vadd.f32 %v6253_v35, %v8494_v45  ;;  %v2950_v0 = vpop.f32.mrf.mxu0  ;;  %6478 = vmatprep.mubr.msk.bf16.mxu1 %vm487_vm3, %v10140_v17  ;;  %v10142_v45 = vld [vmem:[#allocation51_spill] sm:$0xff]  ;;  %v10143_v17 = vld [vmem:[#allocation82_spill] sm:$0xff] }
 0x2cf   :  { %10139 = vst [vmem:[#allocation12_spill] sm:$0xff] %v8830_v52  ;;  %v2167_v27 = vpop.f32.mrf.mxu1  ;;  %v8838_v36 = vadd.f32 %v2950_v0, %v2287_v33 }
 0x2d0   :  { %v2288_v32 = vadd.f32 %v2167_v27, %v10141_v6  ;;  %v6321_v55 = vpop.f32.mrf.mxu0  ;;  %v10144_v27 = vld [vmem:[#allocation14_spill] sm:$0xff] }
 0x2d1   :  { %v6256_v14 = vpop.f32.mrf.mxu1  ;;  %v8841_v49 = vadd.f32 %v6321_v55, %v2290_v1 }
 0x2d2   :  { %v2293_v54 = vadd.f32 %v6256_v14, %v8508_v38  ;;  %v2953_v59 = vpop.f32.mrf.mxu0 }
 0x2d3   :  { %v2180_v16 = vpop.f32.mrf.mxu1  ;;  %v8844_v57 = vadd.f32 %v2953_v59, %v2288_v32 }
 0x2d4   :  { %v2291_v35 = vadd.f32 %v2180_v16, %v10142_v45  ;;  %v6324_v52 = vpop.f32.mrf.mxu0  ;;  %6563 = vmatmul.mubr.msk.bf16.gmra.mxu0 %vm487_vm3, %v10084_v62 }
 0x2d5   :  { %v6257_v33 = vpop.f32.mrf.mxu1  ;;  %v8849_v0 = vadd.f32 %v6324_v52, %v2293_v54  ;;  %6479 = vmatmul.mubr.msk.bf16.vlgmr.msra.gmra.mxu1 %vm487_vm3, %v10143_v17  ;;  %6566 = vmatprep.mubr.msk.bf16.mxu0 %vm487_vm3, %v10086_v2 }
 0x2d6   :  { %v2294_v38 = vadd.f32 %v6257_v33, %v8524_v48  ;;  %v2966_v1 = vpop.f32.mrf.mxu0  ;;  %6482 = vmatprep.mubr.msk.bf16.mxu1 %vm487_vm3, %v10144_v27 }
 0x2d7   :  { %v2183_v6 = vpop.f32.mrf.mxu1  ;;  %v8858_v32 = vadd.f32 %v2966_v1, %v2291_v35 }
 0x2d8   :  { %v2292_v62 = vadd.f32 %v2183_v6, %v8533_v12  ;;  %v6325_v55 = vpop.f32.mrf.mxu0 }
 0x2d9   :  { %v6260_v52 = vpop.f32.mrf.mxu1  ;;  %v8861_v14 = vadd.f32 %v6325_v55, %v2294_v38 }
 0x2da   :  { %v2297_v54 = vadd.f32 %v6260_v52, %v8540_v22  ;;  %v2969_v59 = vpop.f32.mrf.mxu0 }
 0x2db   :  { %v2196_v16 = vpop.f32.mrf.mxu1  ;;  %v8864_v2 = vadd.f32 %v2969_v59, %v2292_v62 }
 0x2dc   :  { %v2295_v48 = vadd.f32 %v2196_v16, %v8547_v18  ;;  %v6328_v45 = vpop.f32.mrf.mxu0  ;;  %6567 = vmatmul.mubr.msk.bf16.gmra.mxu0 %vm487_vm3, %v10087_v15  ;;  %v10146_v16 = vld [vmem:[#allocation53_spill] sm:$0xff] }
 0x2dd   :  { %v6261_v35 = vpop.f32.mrf.mxu1  ;;  %v8869_v33 = vadd.f32 %v6328_v45, %v2297_v54  ;;  %6483 = vmatmul.mubr.msk.bf16.gmra.mxu1 %vm487_vm3, %v8420_v10  ;;  %6570 = vmatprep.mubr.msk.bf16.mxu0 %vm487_vm3, %v10088_v20  ;;  %v10145_v54 = vld [vmem:[#allocation47_spill] sm:$0xff] }
 0x2de   :  { %v2298_v12 = vadd.f32 %v6261_v35, %v8554_v3  ;;  %v2982_v22 = vpop.f32.mrf.mxu0  ;;  %6486 = vmatprep.mubr.msk.bf16.mxu1 %vm487_vm3, %v8456_v43 }
 0x2df   :  { %v2199_v18 = vpop.f32.mrf.mxu1  ;;  %v8878_v17 = vadd.f32 %v2982_v22, %v2295_v48 }
 0x2e0   :  { %v2296_v15 = vadd.f32 %v2199_v18, %v8560_v41  ;;  %v6329_v38 = vpop.f32.mrf.mxu0 }
 0x2e1   :  { %v6264_v1 = vpop.f32.mrf.mxu1  ;;  %v8881_v27 = vadd.f32 %v6329_v38, %v2298_v12  ;;  %v10147_v12 = vld [vmem:[#allocation54_spill] sm:$0xff]  ;;  %v4103_v38 = vpop.permute.xlu0 %4102 }
 0x2e2   :  { %v2301_v10 = vadd.f32 %v6264_v1, %v8567_v29  ;;  %v2985_v6 = vpop.f32.mrf.mxu0 }
 0x2e3   :  { %v2212_v62 = vpop.f32.mrf.mxu1  ;;  %v8884_v20 = vadd.f32 %v2985_v6, %v2296_v15  ;;  %v10148_v6 = vld [vmem:[#allocation66_spill] sm:$0xff] }
 0x2e4   :  { %v2299_v3 = vadd.f32 %v2212_v62, %v8574_v11  ;;  %v6332_v55 = vpop.f32.mrf.mxu0  ;;  %6571 = vmatmul.mubr.msk.bf16.gmra.mxu0 %vm487_vm3, %v10090_v37  ;;  %v10149_v62 = vld [vmem:[#allocation73_spill] sm:$0xff] }
 0x2e5   :  { %v6265_v43 = vpop.f32.mrf.mxu1  ;;  %v8889_v52 = vadd.f32 %v6332_v55, %v2301_v10  ;;  %6487 = vmatmul.mubr.msk.bf16.gmra.mxu1 %vm487_vm3, %v8466_v63  ;;  %6574 = vmatprep.mubr.msk.bf16.mxu0 %vm487_vm3, %v10091_v61 }
 0x2e6   :  { %v2302_v41 = vadd.f32 %v6265_v43, %v8581_v56  ;;  %v2998_v29 = vpop.f32.mrf.mxu0  ;;  %6490 = vmatprep.mubr.msk.bf16.mxu1 %vm487_vm3, %v10145_v54 }
 0x2e7   :  { %v2215_v11 = vpop.f32.mrf.mxu1  ;;  %v8898_v59 = vadd.f32 %v2998_v29, %v2299_v3 }
 0x2e8   :  { %v2300_v37 = vadd.f32 %v2215_v11, %v10146_v16  ;;  %v6333_v48 = vpop.f32.mrf.mxu0  ;;  %v10150_v11 = vld [vmem:[#allocation56_spill] sm:$0xff] }
 0x2e9   :  { %v6268_v45 = vpop.f32.mrf.mxu1  ;;  %v8901_v35 = vadd.f32 %v6333_v48, %v2302_v41 }
 0x2ea   :  { %v2305_v63 = vadd.f32 %v6268_v45, %v10147_v12  ;;  %v3001_v22 = vpop.f32.mrf.mxu0  ;;  %v4105_v12 = vpop.permute.xlu1 %4104 }
 0x2eb   :  { %v2228_v18 = vpop.f32.mrf.mxu1  ;;  %v8904_v61 = vadd.f32 %v3001_v22, %v2300_v37 }
 0x2ec   :  { %v2303_v56 = vadd.f32 %v2228_v18, %v8600_v58  ;;  %v6336_v15 = vpop.f32.mrf.mxu0  ;;  %6575 = vmatmul.mubr.msk.bf16.gmra.mxu0 %vm487_vm3, %v10093_v4  ;;  %v10152_v18 = vld [vmem:[#allocation74_spill] sm:$0xff] }
 0x2ed   :  { %v6269_v1 = vpop.f32.mrf.mxu1  ;;  %v8909_v10 = vadd.f32 %v6336_v15, %v2305_v63  ;;  %6491 = vmatmul.mubr.msk.bf16.gmra.mxu1 %vm487_vm3, %v10148_v6  ;;  %6578 = vmatprep.mubr.msk.bf16.mxu0 %vm487_vm3, %v10149_v62 }
 0x2ee   :  { %v2306_v3 = vadd.f32 %v6269_v1, %v8605_v8  ;;  %v3014_v55 = vpop.f32.mrf.mxu0  ;;  %6494 = vmatprep.mubr.msk.bf16.mxu1 %vm487_vm3, %v4103_v38  ;;  %v10151_v8 = vld [vmem:[#allocation57_spill] sm:$0xff]  ;;  %v10153_v38 = vld [vmem:[#allocation75_spill] sm:$0xff] }
 0x2ef   :  { %v2231_v58 = vpop.f32.mrf.mxu1  ;;  %v8917_v43 = vadd.f32 %v3014_v55, %v2303_v56  ;;  %v4107_v56 = vpop.permute.xlu0 %4106 }
 0x2f0   :  { %v2304_v4 = vadd.f32 %v2231_v58, %v8610_v13  ;;  %v6337_v41 = vpop.f32.mrf.mxu0 }
 0x2f1   :  { %v8920_v29 = vadd.f32 %v6337_v41, %v2306_v3  ;;  %v6344_v54 = vpop.f32.mrf.mxu1 }
 0x2f2   :  { %v3553_v16 = vadd.f32 %v6344_v54, %v10150_v11  ;;  %v3017_v37 = vpop.f32.mrf.mxu0  ;;  %v10154_v54 = vld [vmem:[#allocation59_spill] sm:$0xff] }
 0x2f3   :  { %v8923_v48 = vadd.f32 %v3017_v37, %v2304_v4  ;;  %v3296_v45 = vpop.f32.mrf.mxu1 }
 0x2f4   :  { %v3551_v63 = vadd.f32 %v3296_v45, %v10151_v8  ;;  %v6412_v22 = vpop.f32.mrf.mxu0  ;;  %6579 = vmatmul.mubr.msk.bf16.gmra.mxu0 %vm487_vm3, %v10152_v18  ;;  %v10156_v18 = vld [vmem:[#allocation76_spill] sm:$0xff] }
 0x2f5   :  { %v6345_v15 = vpop.f32.mrf.mxu1  ;;  %v8928_v13 = vadd.f32 %v6412_v22, %v3553_v16  ;;  %6495 = vmatmul.mubr.msk.bf16.gmra.mxu1 %vm487_vm3, %v4105_v12  ;;  %6582 = vmatprep.mubr.msk.bf16.mxu0 %vm487_vm3, %v10153_v38  ;;  %v4109_v12 = vpop.permute.xlu1 %4108 }
 0x2f6   :  { %v3554_v1 = vadd.f32 %v6345_v15, %v8629_v25  ;;  %v3778_v6 = vpop.f32.mrf.mxu0  ;;  %6498 = vmatprep.mubr.msk.bf16.mxu1 %vm487_vm3, %v4107_v56  ;;  %v10155_v25 = vld [vmem:[#allocation60_spill] sm:$0xff]  ;;  %v10157_v15 = vld [vmem:[#allocation77_spill] sm:$0xff] }
 0x2f7   :  { %v3299_v62 = vpop.f32.mrf.mxu1  ;;  %v8935_v3 = vadd.f32 %v3778_v6, %v3551_v63  ;;  %v4111_v63 = vpop.permute.xlu0 %4110 }
 0x2f8   :  { %v3552_v55 = vadd.f32 %v3299_v62, %v8634_v19  ;;  %v6413_v58 = vpop.f32.mrf.mxu0 }
 0x2f9   :  { %v6348_v4 = vpop.f32.mrf.mxu1  ;;  %v8938_v41 = vadd.f32 %v6413_v58, %v3554_v1 }
 0x2fa   :  { %v3557_v11 = vadd.f32 %v6348_v4, %v10154_v54  ;;  %v3781_v16 = vpop.f32.mrf.mxu0 }
 0x2fb   :  { %v3312_v37 = vpop.f32.mrf.mxu1  ;;  %v8941_v45 = vadd.f32 %v3781_v16, %v3552_v55 }
 0x2fc   :  { %v3555_v8 = vadd.f32 %v3312_v37, %v10155_v25  ;;  %v6416_v22 = vpop.f32.mrf.mxu0  ;;  %6583 = vmatmul.mubr.msk.bf16.gmra.mxu0 %vm487_vm3, %v10156_v18 }
 0x2fd   :  { %v6349_v56 = vpop.f32.mrf.mxu1  ;;  %v8946_v19 = vadd.f32 %v6416_v22, %v3557_v11  ;;  %6499 = vmatmul.mubr.msk.bf16.gmra.mxu1 %vm487_vm3, %v4109_v12  ;;  %6586 = vmatprep.mubr.msk.bf16.mxu0 %vm487_vm3, %v10157_v15  ;;  %v10158_v11 = vld [vmem:[#allocation61_spill] sm:$0xff]  ;;  %v4113_v22 = vpop.permute.xlu1 %4112  ;;  %v10161_v15 = vld [vmem:[#allocation79_spill] sm:$0xff] }
 0x2fe   :  { %v3558_v38 = vadd.f32 %v6349_v56, %v8653_v30  ;;  %v3794_v1 = vpop.f32.mrf.mxu0  ;;  %6502 = vmatprep.mubr.msk.bf16.mxu1 %vm487_vm3, %v4111_v63  ;;  %v10159_v63 = vld [vmem:[#allocation78_spill] sm:$0xff] }
 0x2ff   :  { %v3315_v6 = vpop.f32.mrf.mxu1  ;;  %v8953_v62 = vadd.f32 %v3794_v1, %v3555_v8  ;;  %v4115_v8 = vpop.permute.xlu0 %4114 }
 0x300   :  { %v3556_v55 = vadd.f32 %v3315_v6, %v8658_v42  ;;  %v6417_v58 = vpop.f32.mrf.mxu0 }
 0x301   :  { %v6352_v4 = vpop.f32.mrf.mxu1  ;;  %v8956_v54 = vadd.f32 %v6417_v58, %v3558_v38  ;;  %v10162_v38 = vld [vmem:[#allocation62_spill] sm:$0xff]  ;;  %v10164_v58 = vld [vmem:[#allocation64_spill] sm:$0xff] }
 0x302   :  { %v3561_v16 = vadd.f32 %v6352_v4, %v10158_v11  ;;  %v3797_v37 = vpop.f32.mrf.mxu0 }
 0x303   :  { %v3328_v12 = vpop.f32.mrf.mxu1  ;;  %v8959_v25 = vadd.f32 %v3797_v37, %v3556_v55 }
 0x304   :  { %v3559_v30 = vadd.f32 %v3328_v12, %v8672_v53  ;;  %v6420_v18 = vpop.f32.mrf.mxu0  ;;  %6587 = vmatmul.mubr.msk.bf16.gmra.mxu0 %vm487_vm3, %v10159_v63 }
 0x305   :  { %v6353_v56 = vpop.f32.mrf.mxu1  ;;  %v8964_v42 = vadd.f32 %v6420_v18, %v3561_v16  ;;  %6503 = vmatmul.mubr.msk.bf16.gmra.mxu1 %vm487_vm3, %v4113_v22  ;;  %6590 = vmatprep.mubr.msk.bf16.mxu0 %vm487_vm3, %v10161_v15  ;;  %v4117_v15 = vpop.permute.xlu1 %4116 }
 0x306   :  { %v3562_v1 = vadd.f32 %v6353_v56, %v10162_v38  ;;  %v3810_v6 = vpop.f32.mrf.mxu0  ;;  %6506 = vmatprep.mubr.msk.bf16.mxu1 %vm487_vm3, %v4115_v8  ;;  %v10167_v8 = vld [vmem:[#allocation80_spill] sm:$0xff] }
 0x307   :  { %10160 = vst [vmem:[#allocation16_spill] sm:$0xff] %v8964_v42  ;;  %v3331_v55 = vpop.f32.mrf.mxu1  ;;  %v8971_v53 = vadd.f32 %v3810_v6, %v3559_v30  ;;  %v4119_v30 = vpop.permute.xlu0 %4118 }
 0x308   :  { %v3560_v4 = vadd.f32 %v3331_v55, %v10164_v58  ;;  %v6421_v11 = vpop.f32.mrf.mxu0 }
 0x309   :  { %10163 = vst [vmem:[#allocation19_spill] sm:$0xff] %v8971_v53  ;;  %v6356_v37 = vpop.f32.mrf.mxu1  ;;  %v8974_v12 = vadd.f32 %v6421_v11, %v3562_v1  ;;  %v10169_v1 = vld [vmem:[#allocation83_spill] sm:$0xff]  ;;  %v10171_v11 = vld [vmem:[#allocation65_spill] sm:$0xff] }
 0x30a   :  { %v3565_v16 = vadd.f32 %v6356_v37, %v8687_v31  ;;  %v3813_v22 = vpop.f32.mrf.mxu0 }
 0x30b   :  { %10165 = vst [vmem:[#allocation20_spill] sm:$0xff] %v8974_v12  ;;  %v3344_v18 = vpop.f32.mrf.mxu1  ;;  %v8977_v63 = vadd.f32 %v3813_v22, %v3560_v4 }
 0x30c   :  { %v3563_v56 = vadd.f32 %v3344_v18, %v8693_v9  ;;  %v6424_v38 = vpop.f32.mrf.mxu0  ;;  %6591 = vmatmul.mubr.msk.bf16.gmra.mxu0 %vm487_vm3, %v10167_v8 }
 0x30d   :  { %10166 = vst [vmem:[#allocation4_spill] sm:$0xff] %v8977_v63  ;;  %v6357_v6 = vpop.f32.mrf.mxu1  ;;  %v8982_v55 = vadd.f32 %v6424_v38, %v3565_v16  ;;  %6507 = vmatmul.mubr.msk.bf16.gmra.mxu1 %vm487_vm3, %v4117_v15  ;;  %6594 = vmatprep.mubr.msk.bf16.mxu0 %vm487_vm3, %v10169_v1  ;;  %v4121_v1 = vpop.permute.xlu1 %4120  ;;  %v10206_v63 = vld [vmem:[#allocation38_spill] sm:$0xff] }
 0x30e   :  { %v3566_v31 = vadd.f32 %v6357_v6, %v8696_v5  ;;  %v3826_v58 = vpop.f32.mrf.mxu0  ;;  %6510 = vmatprep.mubr.msk.bf16.mxu1 %vm487_vm3, %v4119_v30  ;;  %v10174_v30 = vld [vmem:[#allocation85_spill] sm:$0xff] }
 0x30f   :  { %10168 = vst [vmem:[#allocation5_spill] sm:$0xff] %v8982_v55  ;;  %v3347_v4 = vpop.f32.mrf.mxu1  ;;  %v8989_v9 = vadd.f32 %v3826_v58, %v3563_v56  ;;  %v4123_v56 = vpop.permute.xlu0 %4122 }
 0x310   :  { %v3564_v37 = vadd.f32 %v3347_v4, %v10171_v11  ;;  %v6425_v22 = vpop.f32.mrf.mxu0 }
 0x311   :  { %10170 = vst [vmem:[#allocation8_spill] sm:$0xff] %v8989_v9  ;;  %v6360_v18 = vpop.f32.mrf.mxu1  ;;  %v8992_v8 = vadd.f32 %v6425_v22, %v3566_v31  ;;  %v10176_v31 = vld [vmem:[#allocation50_spill] sm:$0xff] }
 0x312   :  { %v3569_v16 = vadd.f32 %v6360_v18, %v8706_v21  ;;  %v3829_v15 = vpop.f32.mrf.mxu0 }
 0x313   :  { %10172 = vst [vmem:[#allocation10_spill] sm:$0xff] %v8992_v8  ;;  %v3360_v38 = vpop.f32.mrf.mxu1  ;;  %v8995_v55 = vadd.f32 %v3829_v15, %v3564_v37 }
 0x314   :  { %v3567_v5 = vadd.f32 %v3360_v38, %v8711_v60  ;;  %v6428_v6 = vpop.f32.mrf.mxu0  ;;  %6595 = vmatmul.mubr.msk.bf16.gmra.mxu0 %vm487_vm3, %v10174_v30 }
 0x315   :  { %10173 = vst [vmem:[#allocation13_spill] sm:$0xff] %v8995_v55  ;;  %v6361_v58 = vpop.f32.mrf.mxu1  ;;  %v9000_v4 = vadd.f32 %v6428_v6, %v3569_v16  ;;  %6511 = vmatmul.mubr.msk.bf16.gmra.mxu1 %vm487_vm3, %v4121_v1  ;;  %6598 = vmatprep.mubr.msk.bf16.mxu0 %vm487_vm3, %v10176_v31  ;;  %v4125_v31 = vpop.permute.xlu1 %4124 }
 0x316   :  { %v3570_v21 = vadd.f32 %v6361_v58, %v8714_v51  ;;  %v3842_v11 = vpop.f32.mrf.mxu0  ;;  %6514 = vmatprep.mubr.msk.bf16.mxu1 %vm487_vm3, %v4123_v56  ;;  %v10180_v56 = vld [vmem:[#allocation21_spill] sm:$0xff] }
 0x317   :  { %10175 = vst [vmem:[#allocation23_spill] sm:$0xff] %v9000_v4  ;;  %v3363_v37 = vpop.f32.mrf.mxu1  ;;  %v9007_v60 = vadd.f32 %v3842_v11, %v3567_v5  ;;  %v4127_v5 = vpop.permute.xlu0 %4126  ;;  %v10204_v4 = vld [vmem:[#allocation71_spill] sm:$0xff] }
 0x318   :  { %v3568_v22 = vadd.f32 %v3363_v37, %v8719_v40  ;;  %v6429_v18 = vpop.f32.mrf.mxu0 }
 0x319   :  { %10177 = vst [vmem:[#allocation15_spill] sm:$0xff] %v9007_v60  ;;  %v6364_v15 = vpop.f32.mrf.mxu1  ;;  %v9010_v38 = vadd.f32 %v6429_v18, %v3570_v21  ;;  %v10182_v21 = vld [vmem:[#allocation58_spill] sm:$0xff] }
 0x31a   :  { %v3573_v16 = vadd.f32 %v6364_v15, %v8724_v39  ;;  %v3845_v1 = vpop.f32.mrf.mxu0 }
 0x31b   :  { %10178 = vst [vmem:[#allocation18_spill] sm:$0xff] %v9010_v38  ;;  %v3376_v6 = vpop.f32.mrf.mxu1  ;;  %v9013_v30 = vadd.f32 %v3845_v1, %v3568_v22 }
 0x31c   :  { %v3571_v51 = vadd.f32 %v3376_v6, %v8729_v34  ;;  %v6432_v58 = vpop.f32.mrf.mxu0  ;;  %6599 = vmatmul.mubr.msk.bf16.gmra.mxu0 %vm487_vm3, %v10180_v56 }
 0x31d   :  { %10179 = vst [vmem:[#allocation3_spill] sm:$0xff] %v9013_v30  ;;  %v6365_v11 = vpop.f32.mrf.mxu1  ;;  %v9018_v40 = vadd.f32 %v6432_v58, %v3573_v16  ;;  %6515 = vmatmul.mubr.msk.bf16.gmra.mxu1 %vm487_vm3, %v4125_v31  ;;  %6602 = vmatprep.mubr.msk.bf16.mxu0 %vm487_vm3, %v10182_v21  ;;  %v4129_v21 = vpop.permute.xlu1 %4128  ;;  %v10202_v30 = vld [vmem:[#allocation40_spill] sm:$0xff] }
 0x31e   :  { %v3574_v39 = vadd.f32 %v6365_v11, %v8732_v26  ;;  %v3858_v37 = vpop.f32.mrf.mxu0  ;;  %6518 = vmatprep.mubr.msk.bf16.mxu1 %vm487_vm3, %v4127_v5  ;;  %v10186_v5 = vld [vmem:[#allocation46_spill] sm:$0xff] }
 0x31f   :  { %10181 = vst [vmem:[#allocation2_spill] sm:$0xff] %v9018_v40  ;;  %v3379_v22 = vpop.f32.mrf.mxu1  ;;  %v9025_v34 = vadd.f32 %v3858_v37, %v3571_v51  ;;  %v4131_v51 = vpop.permute.xlu0 %4130 }
 0x320   :  { %v3572_v18 = vadd.f32 %v3379_v22, %v8737_v46  ;;  %v6433_v15 = vpop.f32.mrf.mxu0 }
 0x321   :  { %10183 = vst [vmem:[#allocation6_spill] sm:$0xff] %v9025_v34  ;;  %v6368_v1 = vpop.f32.mrf.mxu1  ;;  %v9028_v6 = vadd.f32 %v6433_v15, %v3574_v39  ;;  %v10188_v39 = vld [vmem:[#allocation49_spill] sm:$0xff] }
 0x322   :  { %v3577_v16 = vadd.f32 %v6368_v1, %v8742_v24  ;;  %v3861_v31 = vpop.f32.mrf.mxu0 }
 0x323   :  { %10184 = vst [vmem:[#allocation7_spill] sm:$0xff] %v9028_v6  ;;  %v3392_v58 = vpop.f32.mrf.mxu1  ;;  %v9031_v56 = vadd.f32 %v3861_v31, %v3572_v18 }
 0x324   :  { %v3575_v26 = vadd.f32 %v3392_v58, %v8747_v47  ;;  %v6436_v11 = vpop.f32.mrf.mxu0  ;;  %6603 = vmatmul.mubr.msk.bf16.gmra.mxu0 %vm487_vm3, %v10186_v5 }
 0x325   :  { %10185 = vst [vmem:[#allocation9_spill] sm:$0xff] %v9031_v56  ;;  %v6369_v37 = vpop.f32.mrf.mxu1  ;;  %v9036_v46 = vadd.f32 %v6436_v11, %v3577_v16  ;;  %6519 = vmatmul.mubr.msk.bf16.gmra.mxu1 %vm487_vm3, %v4129_v21  ;;  %6606 = vmatprep.mubr.msk.bf16.mxu0 %vm487_vm3, %v10188_v39  ;;  %v10191_v16 = vld [vmem:[#allocation67_spill] sm:$0xff]  ;;  %v4133_v39 = vpop.permute.xlu1 %4132 }
 0x326   :  { %v3578_v24 = vadd.f32 %v6369_v37, %v8750_v44  ;;  %v3874_v22 = vpop.f32.mrf.mxu0  ;;  %6522 = vmatprep.mubr.msk.bf16.mxu1 %vm487_vm3, %v4131_v51  ;;  %v10193_v44 = vld [vmem:[#allocation68_spill] sm:$0xff] }
 0x327   :  { %10187 = vst [vmem:[#allocation24_spill] sm:$0xff] %v9036_v46  ;;  %v3395_v18 = vpop.f32.mrf.mxu1  ;;  %v9043_v47 = vadd.f32 %v3874_v22, %v3575_v26  ;;  %v10194_v51 = vld [vmem:[#allocation52_spill] sm:$0xff]  ;;  %v4135_v26 = vpop.permute.xlu0 %4134 }
 0x328   :  { %v3576_v15 = vadd.f32 %v3395_v18, %v8755_v23  ;;  %v6437_v1 = vpop.f32.mrf.mxu0 }
 0x329   :  { %10189 = vst [vmem:[#allocation84_spill] sm:$0xff] %v9043_v47  ;;  %v6372_v31 = vpop.f32.mrf.mxu1  ;;  %v9046_v58 = vadd.f32 %v6437_v1, %v3578_v24  ;;  %v10196_v24 = vld [vmem:[#allocation69_spill] sm:$0xff]  ;;  %v10201_v47 = vld [vmem:[#allocation70_spill] sm:$0xff] }
 0x32a   :  { %v3581_v11 = vadd.f32 %v6372_v31, %v10191_v16  ;;  %v3877_v21 = vpop.f32.mrf.mxu0  ;;  %v10198_v16 = vld [vmem:[#allocation37_spill] sm:$0xff] }
 0x32b   :  { %10190 = vst [vmem:[#allocation86_spill] sm:$0xff] %v9046_v58  ;;  %v3408_v5 = vpop.f32.mrf.mxu1  ;;  %v9049_v46 = vadd.f32 %v3877_v21, %v3576_v15 }
 0x32c   :  { %v3579_v37 = vadd.f32 %v3408_v5, %v10193_v44  ;;  %v6440_v56 = vpop.f32.mrf.mxu0  ;;  %6607 = vmatmul.mubr.msk.bf16.gmra.mxu0 %vm487_vm3, %v10194_v51 }
 0x32d   :  { %10192 = vst [vmem:[#allocation25_spill] sm:$0xff] %v9049_v46  ;;  %v6373_v22 = vpop.f32.mrf.mxu1  ;;  %v9054_v23 = vadd.f32 %v6440_v56, %v3581_v11  ;;  %6523 = vmatmul.mubr.msk.bf16.gmra.mxu1 %vm487_vm3, %v4133_v39  ;;  %v4137_v56 = vpop.permute.xlu1 %4136 }
 0x32e   :  { %v3582_v18 = vadd.f32 %v6373_v22, %v10196_v24  ;;  %v3890_v1 = vpop.f32.mrf.mxu0  ;;  %6526 = vmatprep.mubr.msk.bf16.mxu1 %vm487_vm3, %v4135_v26 }
 0x32f   :  { %10195 = vst [vmem:[#allocation26_spill] sm:$0xff] %v9054_v23  ;;  %v3411_v15 = vpop.f32.mrf.mxu1  ;;  %v9059_v31 = vadd.f32 %v3890_v1, %v3579_v37  ;;  %v4139_v23 = vpop.permute.xlu0 %4138 }
 0x330   :  { %v3580_v21 = vadd.f32 %v3411_v15, %v10198_v16  ;;  %v6441_v5 = vpop.f32.mrf.mxu0 }
 0x331   :  { %10197 = vst [vmem:[#allocation34_spill] sm:$0xff] %v9059_v31  ;;  %v9062_v44 = vadd.f32 %v6441_v5, %v3582_v18  ;;  %v4141_v37 = vpop.permute.xlu1 %4140 }
 0x332   :  { %v3893_v51 = vpop.f32.mrf.mxu0 }
 0x333   :  { %10199 = vst [vmem:[#allocation30_spill] sm:$0xff] %v9062_v44  ;;  %v9064_v46 = vadd.f32 %v3893_v51, %v3580_v21  ;;  %v4143_v1 = vpop.permute.xlu0 %4142 }
 0x334   :  { %v6444_v11 = vpop.f32.mrf.mxu0 }
 0x335   :  { %10200 = vst [vmem:[#allocation17_spill] sm:$0xff] %v9064_v46  ;;  %6527 = vmatmul.mubr.msk.bf16.gmra.mxu1 %vm487_vm3, %v4137_v56  ;;  %v4145_v21 = vpop.permute.xlu1 %4144 }
 0x336   :  { %v3906_v39 = vpop.f32.mrf.mxu0  ;;  %6530 = vmatprep.mubr.msk.bf16.mxu1 %vm487_vm3, %v4139_v23 }
 0x337   :  { %v4147_v51 = vpop.permute.xlu0 %4146 }
 0x338   :  { %v6445_v26 = vpop.f32.mrf.mxu0 }
 0x339   :  { %v4149_v44 = vpop.permute.xlu1 %4148 }
 0x33a   :  { %v3909_v22 = vpop.f32.mrf.mxu0 }
 0x33c   :  { %v6448_v24 = vpop.f32.mrf.mxu0 }
 0x33d   :  { %6531 = vmatmul.mubr.msk.bf16.gmra.mxu1 %vm487_vm3, %v4141_v37 }
 0x33e   :  { %v3922_v18 = vpop.f32.mrf.mxu0  ;;  %6534 = vmatprep.mubr.msk.bf16.mxu1 %vm487_vm3, %v4143_v1 }
 0x340   :  { %v6449_v15 = vpop.f32.mrf.mxu0 }
 0x342   :  { %v3925_v16 = vpop.f32.mrf.mxu0 }
 0x344   :  { %v6452_v5 = vpop.f32.mrf.mxu0 }
 0x345   :  { %6535 = vmatmul.mubr.msk.bf16.gmra.mxu1 %vm487_vm3, %v4145_v21 }
 0x346   :  { %v3938_v56 = vpop.f32.mrf.mxu0  ;;  %6538 = vmatprep.mubr.msk.bf16.mxu1 %vm487_vm3, %v4147_v51 }
 0x348   :  { %v6453_v23 = vpop.f32.mrf.mxu0 }
 0x34a   :  { %v3941_v46 = vpop.f32.mrf.mxu0 }
 0x34c   :  { %v6456_v31 = vpop.f32.mrf.mxu0 }
 0x34d   :  { %6539 = vmatmul.mubr.msk.bf16.gmra.mxu1 %vm487_vm3, %v4149_v44 }
 0x34e   :  { %v3954_v37 = vpop.f32.mrf.mxu0 }
 0x350   :  { %v9073_v58 = vpop.f32.mrf.mxu0 }
 0x351   :  { %v6376_v1 = vpop.f32.mrf.mxu1 }
 0x352   :  { %v3585_v6 = vadd.f32 %v6376_v1, %v10201_v47  ;;  %v9076_v34 = vpop.f32.mrf.mxu0 }
 0x353   :  { %v3424_v40 = vpop.f32.mrf.mxu1 }
 0x354   :  { %v3583_v21 = vadd.f32 %v3424_v40, %v10202_v30  ;;  %v9079_v38 = vpop.f32.mrf.mxu0  ;;  %v9081_v51 = vadd.f32 %v6444_v11, %v3585_v6  ;;  %v10208_v30 = vld [vmem:[#allocation72_spill] sm:$0xff] }
 0x355   :  { %v6377_v60 = vpop.f32.mrf.mxu1 }
 0x356   :  { %10203 = vst [vmem:[#allocation43_spill] sm:$0xff] %v9081_v51  ;;  %v3586_v55 = vadd.f32 %v6377_v60, %v10204_v4  ;;  %v9084_v8 = vpop.f32.mrf.mxu0  ;;  %v9086_v44 = vadd.f32 %v3906_v39, %v3583_v21  ;;  %v10210_v4 = vld [vmem:[#allocation42_spill] sm:$0xff] }
 0x357   :  { %v3427_v9 = vpop.f32.mrf.mxu1 }
 0x358   :  { %10205 = vst [vmem:[#allocation27_spill] sm:$0xff] %v9086_v44  ;;  %v3584_v12 = vadd.f32 %v3427_v9, %v10206_v63  ;;  %v9089_v47 = vpop.f32.mrf.mxu0  ;;  %v9091_v1 = vadd.f32 %v6445_v26, %v3586_v55  ;;  %v10211_v63 = vld [vmem:[#allocation39_spill] sm:$0xff] }
 0x359   :  { %v6380_v53 = vpop.f32.mrf.mxu1 }
 0x35a   :  { %10207 = vst [vmem:[#allocation28_spill] sm:$0xff] %v9091_v1  ;;  %v3589_v40 = vadd.f32 %v6380_v53, %v10208_v30  ;;  %v9094_v42 = vpop.f32.mrf.mxu0  ;;  %v9096_v6 = vadd.f32 %v3909_v22, %v3584_v12  ;;  %v10212_v53 = vld [vmem:[#allocation11_spill] sm:$0xff] }
 0x35b   :  { %v3440_v11 = vpop.f32.mrf.mxu1 }
 0x35c   :  { %10209 = vst [vmem:[#allocation55_spill] sm:$0xff] %v9096_v6  ;;  %v3587_v60 = vadd.f32 %v3440_v11, %v10210_v4  ;;  %v9099_v51 = vpop.f32.mrf.mxu0  ;;  %v9101_v39 = vadd.f32 %v6448_v24, %v3589_v40  ;;  %v10213_v11 = vld [vmem:[#allocation41_spill] sm:$0xff] }
 0x35d   :  { %v6381_v21 = vpop.f32.mrf.mxu1 }
 0x35e   :  { %v3590_v9 = vadd.f32 %v6381_v21, %v10211_v63  ;;  %v9104_v44 = vpop.f32.mrf.mxu0  ;;  %v9106_v55 = vadd.f32 %v3922_v18, %v3587_v60 }
 0x35f   :  { %v3443_v26 = vpop.f32.mrf.mxu1 }
 0x360   :  { %v3588_v30 = vadd.f32 %v3443_v26, %v10212_v53  ;;  %v9109_v1 = vpop.f32.mrf.mxu0  ;;  %v9111_v12 = vadd.f32 %v6449_v15, %v3590_v9 }
 0x361   :  { %v6384_v22 = vpop.f32.mrf.mxu1 }
 0x362   :  { %v3593_v4 = vadd.f32 %v6384_v22, %v10213_v11  ;;  %v9114_v6 = vpop.f32.mrf.mxu0  ;;  %v9116_v24 = vadd.f32 %v3925_v16, %v3588_v30 }
 0x363   :  { %v3456_v40 = vpop.f32.mrf.mxu1 }
 0x364   :  { %10214 = vst [vmem:[#allocation35_spill] sm:$0xff] %v9116_v24  ;;  %v3591_v21 = vadd.f32 %v3456_v40, %v8818_v7  ;;  %v9119_v63 = vpop.f32.mrf.mxu0  ;;  %v9121_v18 = vadd.f32 %v6452_v5, %v3593_v4  ;;  %v10215_v7 = vld [vmem:[#allocation12_spill] sm:$0xff] }
 0x365   :  { %v6385_v60 = vpop.f32.mrf.mxu1 }
 0x366   :  { %v3594_v26 = vadd.f32 %v6385_v60, %v8821_v50  ;;  %v9124_v53 = vpop.f32.mrf.mxu0  ;;  %v9126_v15 = vadd.f32 %v3938_v56, %v3591_v21 }
 0x367   :  { %v3459_v9 = vpop.f32.mrf.mxu1 }
 0x368   :  { %v3592_v22 = vadd.f32 %v3459_v9, %v8825_v28  ;;  %v9129_v11 = vpop.f32.mrf.mxu0  ;;  %v9131_v16 = vadd.f32 %v6453_v23, %v3594_v26 }
 0x369   :  { %v6388_v30 = vpop.f32.mrf.mxu1 }
 0x36a   :  { %v3597_v40 = vadd.f32 %v6388_v30, %v10215_v7  ;;  %v9134_v24 = vpop.f32.mrf.mxu0  ;;  %v9136_v5 = vadd.f32 %v3941_v46, %v3592_v22 }
 0x36b   :  { %v3472_v4 = vpop.f32.mrf.mxu1 }
 0x36c   :  { %v3595_v50 = vadd.f32 %v3472_v4, %v8838_v36  ;;  %v9139_v60 = vpop.f32.mrf.mxu0  ;;  %v9141_v56 = vadd.f32 %v6456_v31, %v3597_v40 }
 0x36d   :  { %v6389_v21 = vpop.f32.mrf.mxu1 }
 0x36e   :  { %10216 = vst [vmem:[#allocation44_spill] sm:$0xff] %v9141_v56  ;;  %v3598_v28 = vadd.f32 %v6389_v21, %v8841_v49  ;;  %v9144_v9 = vpop.f32.mrf.mxu0  ;;  %v9146_v23 = vadd.f32 %v3954_v37, %v3595_v50 }
 0x36f   :  { %v3475_v26 = vpop.f32.mrf.mxu1 }
 0x370   :  { %10217 = vst [vmem:[#allocation32_spill] sm:$0xff] %v9146_v23  ;;  %v3596_v30 = vadd.f32 %v3475_v26, %v8844_v57  ;;  %v9149_v7 = vpop.f32.mrf.mxu0  ;;  %v9152_v46 = vadd.f32 %v9073_v58, %v3598_v28 }
 0x371   :  { %v6392_v36 = vpop.f32.mrf.mxu1 }
 0x372   :  { %10218 = vst [vmem:[#allocation29_spill] sm:$0xff] %v9152_v46  ;;  %v3601_v22 = vadd.f32 %v6392_v36, %v8849_v0  ;;  %v9155_v31 = vpop.f32.mrf.mxu0  ;;  %v9158_v40 = vadd.f32 %v9076_v34, %v3596_v30 }
 0x373   :  { %v3488_v49 = vpop.f32.mrf.mxu1 }
 0x374   :  { %10219 = vst [vmem:[#allocation31_spill] sm:$0xff] %v9158_v40  ;;  %v3599_v37 = vadd.f32 %v3488_v49, %v8858_v32  ;;  %v9161_v4 = vpop.f32.mrf.mxu0  ;;  %v9164_v57 = vadd.f32 %v9079_v38, %v3601_v22 }
 0x375   :  { %v6393_v50 = vpop.f32.mrf.mxu1 }
 0x376   :  { %v3602_v58 = vadd.f32 %v6393_v50, %v8861_v14  ;;  %v9167_v21 = vpop.f32.mrf.mxu0  ;;  %v9170_v0 = vadd.f32 %v9084_v8, %v3599_v37 }
 0x377   :  { %v3491_v28 = vpop.f32.mrf.mxu1 }
 0x378   :  { %v3600_v34 = vadd.f32 %v3491_v28, %v8864_v2  ;;  %v9173_v26 = vpop.f32.mrf.mxu0  ;;  %v9176_v32 = vadd.f32 %v9089_v47, %v3602_v58 }
 0x379   :  { %v6396_v30 = vpop.f32.mrf.mxu1 }
 0x37a   :  { %v3605_v38 = vadd.f32 %v6396_v30, %v8869_v33  ;;  %v9179_v36 = vpop.f32.mrf.mxu0  ;;  %v9182_v14 = vadd.f32 %v9094_v42, %v3600_v34 }
 0x37b   :  { %v3504_v22 = vpop.f32.mrf.mxu1 }
 0x37c   :  { %10220 = vst [vmem:[#allocation22_spill] sm:$0xff] %v9182_v14  ;;  %v3603_v8 = vadd.f32 %v3504_v22, %v8878_v17  ;;  %v9185_v49 = vpop.f32.mrf.mxu0  ;;  %v9188_v2 = vadd.f32 %v9099_v51, %v3605_v38 }
 0x37d   :  { %v6397_v37 = vpop.f32.mrf.mxu1 }
 0x37e   :  { %10221 = vst [vmem:[#allocation45_spill] sm:$0xff] %v9188_v2  ;;  %v3606_v47 = vadd.f32 %v6397_v37, %v8881_v27  ;;  %v9191_v50 = vpop.f32.mrf.mxu0  ;;  %v9194_v33 = vadd.f32 %v9104_v44, %v3603_v8 }
 0x37f   :  { %v3507_v58 = vpop.f32.mrf.mxu1 }
 0x380   :  { %10222 = vst [vmem:[#allocation63_spill] sm:$0xff] %v9194_v33  ;;  %v3604_v42 = vadd.f32 %v3507_v58, %v8884_v20  ;;  %v9197_v28 = vpop.f32.mrf.mxu0  ;;  %v9200_v17 = vadd.f32 %v9109_v1, %v3606_v47 }
 0x381   :  { %v6400_v34 = vpop.f32.mrf.mxu1 }
 0x382   :  { %10223 = vst [vmem:[#allocation36_spill] sm:$0xff] %v9200_v17  ;;  %v3609_v51 = vadd.f32 %v6400_v34, %v8889_v52  ;;  %v9203_v30 = vpop.f32.mrf.mxu0  ;;  %v9206_v27 = vadd.f32 %v9114_v6, %v3604_v42 }
 0x383   :  { %v3520_v38 = vpop.f32.mrf.mxu1 }
 0x384   :  { %10224 = vst [vmem:[#allocation33_spill] sm:$0xff] %v9206_v27  ;;  %v3607_v44 = vadd.f32 %v3520_v38, %v8898_v59  ;;  %v9209_v22 = vpop.f32.mrf.mxu0  ;;  %v9212_v20 = vadd.f32 %v9119_v63, %v3609_v51 }
 0x385   :  { %v6401_v8 = vpop.f32.mrf.mxu1 }
 0x386   :  { %10225 = vst [vmem:[#allocation81_spill] sm:$0xff] %v9212_v20  ;;  %v3610_v1 = vadd.f32 %v6401_v8, %v8901_v35  ;;  %v9215_v37 = vpop.f32.mrf.mxu0  ;;  %v9218_v52 = vadd.f32 %v9124_v53, %v3607_v44 }
 0x387   :  { %v3523_v47 = vpop.f32.mrf.mxu1 }
 0x388   :  { %10226 = vst [vmem:[#allocation48_spill] sm:$0xff] %v9218_v52  ;;  %v3608_v6 = vadd.f32 %v3523_v47, %v8904_v61  ;;  %v9221_v58 = vpop.f32.mrf.mxu0  ;;  %v9224_v59 = vadd.f32 %v9129_v11, %v3610_v1 }
 0x38a   :  { %10227 = vst [vmem:[#allocation51_spill] sm:$0xff] %v9224_v59  ;;  %v9226_v42 = vpop.f32.mrf.mxu0  ;;  %v9229_v63 = vadd.f32 %v9134_v24, %v3608_v6 }
 0x38c   :  { %10228 = vst [vmem:[#allocation82_spill] sm:$0xff] %v9229_v63  ;;  %v9231_v34 = vpop.f32.mrf.mxu0 }
 0x38d   :  { %v6404_v35 = vpop.f32.mrf.mxu1 }
 0x38e   :  { %v3613_v51 = vadd.f32 %v6404_v35, %v8909_v10  ;;  %v9234_v53 = vpop.f32.mrf.mxu0 }
 0x38f   :  { %v3536_v38 = vpop.f32.mrf.mxu1 }
 0x390   :  { %v3611_v61 = vadd.f32 %v3536_v38, %v8917_v43  ;;  %v9237_v44 = vpop.f32.mrf.mxu0  ;;  %v9240_v11 = vadd.f32 %v9139_v60, %v3613_v51 }
 0x391   :  { %v6405_v8 = vpop.f32.mrf.mxu1 }
 0x392   :  { %10229 = vst [vmem:[#allocation14_spill] sm:$0xff] %v9240_v11  ;;  %v3614_v1 = vadd.f32 %v6405_v8, %v8920_v29  ;;  %v9243_v24 = vpop.f32.mrf.mxu0  ;;  %v9246_v47 = vadd.f32 %v9144_v9, %v3611_v61 }
 0x393   :  { %v3539_v6 = vpop.f32.mrf.mxu1 }
 0x394   :  { %10230 = vst [vmem:[#allocation47_spill] sm:$0xff] %v9246_v47  ;;  %v3612_v10 = vadd.f32 %v3539_v6, %v8923_v48  ;;  %v9249_v35 = vpop.f32.mrf.mxu0  ;;  %v9252_v43 = vadd.f32 %v9149_v7, %v3614_v1 }
 0x395   :  { %v6480_v38 = vpop.f32.mrf.mxu1 }
 0x396   :  { %10231 = vst [vmem:[#allocation53_spill] sm:$0xff] %v9252_v43  ;;  %v4525_v60 = vadd.f32 %v6480_v38, %v8928_v13  ;;  %v9255_v51 = vpop.f32.mrf.mxu0  ;;  %v9258_v29 = vadd.f32 %v9155_v31, %v3612_v10 }
 0x397   :  { %v4268_v8 = vpop.f32.mrf.mxu1 }
 0x398   :  { %10232 = vst [vmem:[#allocation54_spill] sm:$0xff] %v9258_v29  ;;  %v9261_v9 = vadd.f32 %v9161_v4, %v4525_v60  ;;  %v4523_v61 = vadd.f32 %v4268_v8, %v8935_v3  ;;  %v9264_v48 = vpop.f32.mrf.mxu0 }
 0x399   :  { %v6481_v6 = vpop.f32.mrf.mxu1 }
 0x39a   :  { %v9267_v7 = vadd.f32 %v9167_v21, %v4523_v61  ;;  %v4526_v1 = vadd.f32 %v6481_v6, %v8938_v41  ;;  %v9270_v13 = vpop.f32.mrf.mxu0 }
 0x39b   :  { %v4271_v38 = vpop.f32.mrf.mxu1 }
 0x39c   :  { %v9273_v31 = vadd.f32 %v9173_v26, %v4526_v1  ;;  %v4524_v10 = vadd.f32 %v4271_v38, %v8941_v45  ;;  %v9276_v4 = vpop.f32.mrf.mxu0 }
 0x39d   :  { %v6484_v60 = vpop.f32.mrf.mxu1 }
 0x39e   :  { %v9279_v3 = vadd.f32 %v9179_v36, %v4524_v10  ;;  %v4529_v8 = vadd.f32 %v6484_v60, %v8946_v19  ;;  %v9282_v21 = vpop.f32.mrf.mxu0 }
 0x39f   :  { %v4284_v61 = vpop.f32.mrf.mxu1 }
 0x3a0   :  { %v9285_v41 = vadd.f32 %v9185_v49, %v4529_v8  ;;  %v4527_v6 = vadd.f32 %v4284_v61, %v8953_v62  ;;  %v9288_v26 = vpop.f32.mrf.mxu0  ;;  %v10233_v61 = vld [vmem:[#allocation16_spill] sm:$0xff] }
 0x3a1   :  { %v6485_v1 = vpop.f32.mrf.mxu1 }
 0x3a2   :  { %v9291_v45 = vadd.f32 %v9191_v50, %v4527_v6  ;;  %v4530_v38 = vadd.f32 %v6485_v1, %v8956_v54  ;;  %v9294_v36 = vpop.f32.mrf.mxu0  ;;  %v10234_v1 = vld [vmem:[#allocation19_spill] sm:$0xff] }
 0x3a3   :  { %v4287_v10 = vpop.f32.mrf.mxu1 }
 0x3a4   :  { %v9297_v19 = vadd.f32 %v9197_v28, %v4530_v38  ;;  %v4528_v60 = vadd.f32 %v4287_v10, %v8959_v25  ;;  %v9300_v49 = vpop.f32.mrf.mxu0  ;;  %v10235_v10 = vld [vmem:[#allocation20_spill] sm:$0xff] }
 0x3a5   :  { %v6488_v8 = vpop.f32.mrf.mxu1 }
 0x3a6   :  { %v9303_v62 = vadd.f32 %v9203_v30, %v4528_v60  ;;  %v4533_v29 = vadd.f32 %v6488_v8, %v10233_v61  ;;  %v9306_v50 = vpop.f32.mrf.mxu0  ;;  %v10236_v61 = vld [vmem:[#allocation4_spill] sm:$0xff] }
 0x3a7   :  { %v4300_v6 = vpop.f32.mrf.mxu1 }
 0x3a8   :  { %v9309_v54 = vadd.f32 %v9209_v22, %v4533_v29  ;;  %v4531_v43 = vadd.f32 %v4300_v6, %v10234_v1  ;;  %v9312_v28 = vpop.f32.mrf.mxu0  ;;  %v10237_v1 = vld [vmem:[#allocation5_spill] sm:$0xff] }
 0x3a9   :  { %v6489_v38 = vpop.f32.mrf.mxu1 }
 0x3aa   :  { %v9315_v25 = vadd.f32 %v9215_v37, %v4531_v43  ;;  %v4534_v47 = vadd.f32 %v6489_v38, %v10235_v10  ;;  %v9318_v30 = vpop.f32.mrf.mxu0  ;;  %v10238_v10 = vld [vmem:[#allocation8_spill] sm:$0xff] }
 0x3ab   :  { %v4303_v60 = vpop.f32.mrf.mxu1 }
 0x3ac   :  { %v9321_v8 = vadd.f32 %v9221_v58, %v4534_v47  ;;  %v4532_v11 = vadd.f32 %v4303_v60, %v10236_v61  ;;  %v9324_v22 = vpop.f32.mrf.mxu0  ;;  %v10239_v61 = vld [vmem:[#allocation10_spill] sm:$0xff] }
 0x3ad   :  { %v6492_v29 = vpop.f32.mrf.mxu1 }
 0x3ae   :  { %v9327_v6 = vadd.f32 %v9226_v42, %v4532_v11  ;;  %v4537_v63 = vadd.f32 %v6492_v29, %v10237_v1  ;;  %v9330_v37 = vpop.f32.mrf.mxu0  ;;  %v9347_v29 = vld [vmem:[%s9753_s2] ss:$0 sm:$0xff] }
 0x3af   :  { %v4316_v43 = vpop.f32.mrf.mxu1  ;;  %v5062_v46 = vadd.f32 %v9347_v29, %v9261_v9 }
 0x3b0   :  { %v9333_v38 = vadd.f32 %v9231_v34, %v4537_v63  ;;  %v4535_v40 = vadd.f32 %v4316_v43, %v10238_v10  ;;  %v9336_v58 = vpop.f32.mrf.mxu0  ;;  %v10240_v34 = vld [vmem:[#allocation13_spill] sm:$0xff] }
 0x3b1   :  { %v6493_v47 = vpop.f32.mrf.mxu1  ;;  %v5126_v9 = vmax.f32 %v5062_v46, 0.0 }
 0x3b2   :  { %v9339_v60 = vadd.f32 %v9234_v53, %v4535_v40  ;;  %v4538_v59 = vadd.f32 %v6493_v47, %v10239_v61  ;;  %v9342_v42 = vpop.f32.mrf.mxu0  ;;  %v10241_v53 = vld [vmem:[#allocation23_spill] sm:$0xff] }
 0x3b3   :  { %v4319_v11 = vpop.f32.mrf.mxu1 }
 0x3b4   :  { %v9350_v63 = vadd.f32 %v9237_v44, %v4538_v59  ;;  %v4536_v1 = vadd.f32 %v4319_v11, %v10240_v34  ;;  %v9353_v43 = vpop.f32.mrf.mxu0  ;;  %v10242_v59 = vld [vmem:[#allocation15_spill] sm:$0xff]  ;;  %v5060_v11 = vadd.f32 %v9347_v29, %v9267_v7 }
 0x3b5   :  { %v6496_v10 = vpop.f32.mrf.mxu1  ;;  %v10244_v7 = vld [vmem:[#allocation3_spill] sm:$0xff] }
 0x3b6   :  { %v9356_v40 = vadd.f32 %v9243_v24, %v4536_v1  ;;  %v4541_v47 = vadd.f32 %v6496_v10, %v10241_v53  ;;  %v9359_v61 = vpop.f32.mrf.mxu0  ;;  %v10243_v10 = vld [vmem:[#allocation18_spill] sm:$0xff] }
 0x3b7   :  { %v4332_v52 = vpop.f32.mrf.mxu1 }
 0x3b8   :  { %v5007_v20 = vadd.f32 %v9249_v35, %v4541_v47  ;;  %v4539_v44 = vadd.f32 %v4332_v52, %v10242_v59  ;;  %v9365_v27 = vpop.f32.mrf.mxu0  ;;  %v5063_v35 = vadd.f32 %v9347_v29, %v9273_v31 }
 0x3b9   :  { %v6497_v34 = vpop.f32.mrf.mxu1 }
 0x3ba   :  { %v5078_v24 = vadd.f32 %v9347_v29, %v5007_v20  ;;  %v5005_v1 = vadd.f32 %v9255_v51, %v4539_v44  ;;  %v4542_v53 = vadd.f32 %v6497_v34, %v10243_v10  ;;  %v9372_v17 = vpop.f32.mrf.mxu0  ;;  %v5124_v20 = vmax.f32 %v5060_v11, 0.0 }
 0x3bb   :  { %v4335_v47 = vpop.f32.mrf.mxu1  ;;  %v5061_v51 = vadd.f32 %v9347_v29, %v9279_v3  ;;  %v10246_v3 = vld [vmem:[#allocation6_spill] sm:$0xff] }
 0x3bc   :  { %v5142_v52 = vmax.f32 %v5078_v24, 0.0  ;;  %v5076_v59 = vadd.f32 %v9347_v29, %v5005_v1  ;;  %v5008_v33 = vadd.f32 %v9264_v48, %v4542_v53  ;;  %v4540_v23 = vadd.f32 %v4335_v47, %v10244_v7  ;;  %v9379_v2 = vpop.f32.mrf.mxu0  ;;  %v10245_v48 = vld [vmem:[#allocation2_spill] sm:$0xff] }
 0x3bd   :  { %v6500_v44 = vpop.f32.mrf.mxu1  ;;  %v5127_v1 = vmax.f32 %v5063_v35, 0.0 }
 0x3be   :  { %v9383_v34 = vmax.f32 %v5126_v9, %v5142_v52  ;;  %v5140_v46 = vmax.f32 %v5076_v59, 0.0  ;;  %v5079_v31 = vadd.f32 %v9347_v29, %v5008_v33  ;;  %v5006_v24 = vadd.f32 %v9270_v13, %v4540_v23  ;;  %v9387_v10 = vpop.f32.mrf.mxu0 }
 0x3bf   :  { %v4545_v53 = vadd.f32 %v6500_v44, %v10245_v48  ;;  %v4348_v47 = vpop.f32.mrf.mxu1  ;;  %v5125_v52 = vmax.f32 %v5061_v51, 0.0  ;;  %v5066_v33 = vadd.f32 %v9347_v29, %v9285_v41  ;;  %v5064_v23 = vadd.f32 %v9347_v29, %v9291_v45 }
 0x3c0   :  { %v9390_v7 = vmax.f32 %v5124_v20, %v5140_v46  ;;  %v5143_v11 = vmax.f32 %v5079_v31, 0.0  ;;  %v5077_v56 = vadd.f32 %v9347_v29, %v5006_v24  ;;  %v4543_v14 = vadd.f32 %v4348_v47, %v10246_v3  ;;  %v9394_v9 = vpop.f32.mrf.mxu0  ;;  %v10247_v46 = vld [vmem:[#allocation7_spill] sm:$0xff] }
 0x3c1   :  { %v5011_v13 = vadd.f32 %v9276_v4, %v4545_v53  ;;  %v6501_v35 = vpop.f32.mrf.mxu1  ;;  %v5067_v51 = vadd.f32 %v9347_v29, %v9297_v19 }
 0x3c2   :  { %v9401_v59 = vmax.f32 %v5127_v1, %v5143_v11  ;;  %v5141_v20 = vmax.f32 %v5077_v56, 0.0  ;;  %v5009_v44 = vadd.f32 %v9282_v21, %v4543_v14  ;;  %v4546_v31 = vadd.f32 %v6501_v35, %v10247_v46  ;;  %v9405_v24 = vpop.f32.mrf.mxu0  ;;  %v10248_v1 = vld [vmem:[#allocation9_spill] sm:$0xff] }
 0x3c3   :  { %v5082_v41 = vadd.f32 %v9347_v29, %v5011_v13  ;;  %v4351_v48 = vpop.f32.mrf.mxu1  ;;  %v5130_v14 = vmax.f32 %v5066_v33, 0.0  ;;  %v5128_v21 = vmax.f32 %v5064_v23, 0.0  ;;  %v5065_v11 = vadd.f32 %v9347_v29, %v9303_v62 }
 0x3c4   :  { %v9410_v47 = vmax.f32 %v5125_v52, %v5141_v20  ;;  %v5080_v4 = vadd.f32 %v9347_v29, %v5009_v44  ;;  %v5012_v45 = vadd.f32 %v9288_v26, %v4546_v31  ;;  %v4544_v56 = vadd.f32 %v4351_v48, %v10248_v1  ;;  %v9415_v53 = vpop.f32.mrf.mxu0  ;;  %v10249_v20 = vld [vmem:[#allocation24_spill] sm:$0xff] }
 0x3c5   :  { %v5146_v3 = vmax.f32 %v5082_v41, 0.0  ;;  %v6504_v19 = vpop.f32.mrf.mxu1  ;;  %v5131_v26 = vmax.f32 %v5067_v51, 0.0  ;;  %v5070_v31 = vadd.f32 %v9347_v29, %v9309_v54  ;;  %v10250_v1 = vld [vmem:[#allocation84_spill] sm:$0xff] }
 0x3c6   :  { %v5144_v35 = vmax.f32 %v5080_v4, 0.0  ;;  %v5083_v13 = vadd.f32 %v9347_v29, %v5012_v45  ;;  %v5010_v52 = vadd.f32 %v9294_v36, %v4544_v56  ;;  %v4549_v44 = vadd.f32 %v6504_v19, %v10249_v20  ;;  %v9422_v46 = vpop.f32.mrf.mxu0 }
 0x3c7   :  { %v9426_v33 = vmax.f32 %v5130_v14, %v5146_v3  ;;  %v4364_v23 = vpop.f32.mrf.mxu1  ;;  %v5129_v36 = vmax.f32 %v5065_v11, 0.0  ;;  %v10251_v14 = vld [vmem:[#allocation86_spill] sm:$0xff] }
 0x3c8   :  { %v9428_v48 = vmax.f32 %v5128_v21, %v5144_v35  ;;  %v5147_v62 = vmax.f32 %v5083_v13, 0.0  ;;  %v5081_v41 = vadd.f32 %v9347_v29, %v5010_v52  ;;  %v5015_v4 = vadd.f32 %v9300_v49, %v4549_v44  ;;  %v9432_v45 = vpop.f32.mrf.mxu0 }
 0x3c9   :  { %v4547_v56 = vadd.f32 %v4364_v23, %v10250_v1  ;;  %v6505_v19 = vpop.f32.mrf.mxu1  ;;  %v5134_v35 = vmax.f32 %v5070_v31, 0.0  ;;  %v5068_v13 = vadd.f32 %v9347_v29, %v9315_v25  ;;  %v5071_v49 = vadd.f32 %v9347_v29, %v9321_v8 }
 0x3ca   :  { %v9435_v51 = vmax.f32 %v5131_v26, %v5147_v62  ;;  %v5145_v20 = vmax.f32 %v5081_v41, 0.0  ;;  %v5086_v54 = vadd.f32 %v9347_v29, %v5015_v4  ;;  %v4550_v3 = vadd.f32 %v6505_v19, %v10251_v14  ;;  %v9439_v21 = vpop.f32.mrf.mxu0  ;;  %v10252_v62 = vld [vmem:[#allocation25_spill] sm:$0xff] }
 0x3cb   :  { %v5013_v11 = vadd.f32 %v9306_v50, %v4547_v56  ;;  %v4367_v52 = vpop.f32.mrf.mxu1  ;;  %v5069_v31 = vadd.f32 %v9347_v29, %v9327_v6  ;;  %v5074_v14 = vadd.f32 %v9347_v29, %v9333_v38 }
 0x3cc   :  { %v9446_v44 = vmax.f32 %v5129_v36, %v5145_v20  ;;  %v5150_v26 = vmax.f32 %v5086_v54, 0.0  ;;  %v5016_v23 = vadd.f32 %v9312_v28, %v4550_v3  ;;  %v4548_v41 = vadd.f32 %v4367_v52, %v10252_v62  ;;  %v9450_v4 = vpop.f32.mrf.mxu0  ;;  %v10254_v36 = vld [vmem:[#allocation26_spill] sm:$0xff] }
 0x3cd   :  { %v5084_v25 = vadd.f32 %v9347_v29, %v5013_v11  ;;  %v6508_v1 = vpop.f32.mrf.mxu1  ;;  %v5132_v28 = vmax.f32 %v5068_v13, 0.0  ;;  %v5135_v54 = vmax.f32 %v5071_v49, 0.0  ;;  %v5133_v62 = vmax.f32 %v5069_v31, 0.0 }
 0x3ce   :  { %v9455_v19 = vmax.f32 %v5134_v35, %v5150_v26  ;;  %v5087_v50 = vadd.f32 %v9347_v29, %v5016_v23  ;;  %v5014_v8 = vadd.f32 %v9318_v30, %v4548_v41  ;;  %v4553_v56 = vadd.f32 %v6508_v1, %v10254_v36  ;;  %v9460_v20 = vpop.f32.mrf.mxu0  ;;  %v10255_v26 = vld [vmem:[#allocation34_spill] sm:$0xff] }
 0x3cf   :  { %v5148_v3 = vmax.f32 %v5084_v25, 0.0  ;;  %v4380_v6 = vpop.f32.mrf.mxu1  ;;  %v5072_v30 = vadd.f32 %v9347_v29, %v9339_v60 }
 0x3d0   :  { %10253 = vst [vmem:[#allocation66_spill] sm:$0xff] %v9455_v19  ;;  %v5151_v52 = vmax.f32 %v5087_v50, 0.0  ;;  %v5085_v11 = vadd.f32 %v9347_v29, %v5014_v8  ;;  %v5019_v35 = vadd.f32 %v9324_v22, %v4553_v56  ;;  %v4551_v23 = vadd.f32 %v4380_v6, %v10255_v26  ;;  %v9471_v13 = vpop.f32.mrf.mxu0  ;;  %v10259_v22 = vld [vmem:[#allocation30_spill] sm:$0xff] }
 0x3d1   :  { %v9469_v41 = vmax.f32 %v5132_v28, %v5148_v3  ;;  %10257 = vst [vmem:[#allocation56_spill] sm:$0xff] %v9471_v13  ;;  %v6509_v49 = vpop.f32.mrf.mxu1  ;;  %v5138_v8 = vmax.f32 %v5074_v14, 0.0  ;;  %v10261_v28 = vld [vmem:[#allocation17_spill] sm:$0xff]  ;;  %v5136_v26 = vmax.f32 %v5072_v30, 0.0  ;;  %v5073_v14 = vadd.f32 %v9347_v29, %v9356_v40 }
 0x3d2   :  { %v9473_v1 = vmax.f32 %v5135_v54, %v5151_v52  ;;  %v5149_v38 = vmax.f32 %v5085_v11, 0.0  ;;  %v5090_v25 = vadd.f32 %v9347_v29, %v5019_v35  ;;  %v5017_v50 = vadd.f32 %v9330_v37, %v4551_v23  ;;  %v9485_v11 = vpop.f32.mrf.mxu0 }
 0x3d3   :  { %10256 = vst [vmem:[#allocation73_spill] sm:$0xff] %v9469_v41  ;;  %v4554_v36 = vadd.f32 %v6509_v49, %v10259_v22  ;;  %v4383_v56 = vpop.f32.mrf.mxu1  ;;  %v5075_v54 = vadd.f32 %v9347_v29, %v9350_v63  ;;  %10262 = vst [vmem:[#allocation75_spill] sm:$0xff] %v9485_v11 }
 0x3d4   :  { %10258 = vst [vmem:[#allocation57_spill] sm:$0xff] %v9473_v1  ;;  %v9478_v31 = vmax.f32 %v5133_v62, %v5149_v38  ;;  %v5154_v6 = vmax.f32 %v5090_v25, 0.0  ;;  %v5088_v60 = vadd.f32 %v9347_v29, %v5017_v50  ;;  %v4552_v3 = vadd.f32 %v4383_v56, %v10261_v28  ;;  %v6596_v50 = vpop.f32.mrf.mxu0 }
 0x3d5   :  { %v5020_v52 = vadd.f32 %v9336_v58, %v4554_v36  ;;  %v6512_v37 = vpop.f32.mrf.mxu1  ;;  %v5139_v25 = vmax.f32 %v5075_v54, 0.0  ;;  %v5137_v36 = vmax.f32 %v5073_v14, 0.0 }
 0x3d6   :  { %10260 = vst [vmem:[#allocation74_spill] sm:$0xff] %v9478_v31  ;;  %v9489_v35 = vmax.f32 %v5138_v8, %v5154_v6  ;;  %v5152_v23 = vmax.f32 %v5088_v60, 0.0  ;;  %v5018_v62 = vadd.f32 %v9342_v42, %v4552_v3  ;;  %v9500_v6 = vpop.f32.mrf.mxu0 }
 0x3d7   :  { %v5091_v49 = vadd.f32 %v9347_v29, %v5020_v52  ;;  %v4396_v38 = vpop.f32.mrf.mxu1 }
 0x3d8   :  { %10263 = vst [vmem:[#allocation59_spill] sm:$0xff] %v9489_v35  ;;  %v9493_v30 = vmax.f32 %v5136_v26, %v5152_v23  ;;  %v5089_v63 = vadd.f32 %v9347_v29, %v5018_v62  ;;  %v9502_v3 = vpop.f32.mrf.mxu0 }
 0x3d9   :  { %v5155_v58 = vmax.f32 %v5091_v49, 0.0  ;;  %v6513_v22 = vpop.f32.mrf.mxu1 }
 0x3da   :  { %10264 = vst [vmem:[#allocation60_spill] sm:$0xff] %v9493_v30  ;;  %v5153_v56 = vmax.f32 %v5089_v63, 0.0  ;;  %v9504_v23 = vpop.f32.mrf.mxu0  ;;  %v10267_v63 = vld [vmem:[#allocation43_spill] sm:$0xff] }
 0x3db   :  { %v9496_v28 = vmax.f32 %v5139_v25, %v5155_v58  ;;  %v4399_v40 = vpop.f32.mrf.mxu1  ;;  %v4557_v25 = vadd.f32 %v6512_v37, %v10267_v63  ;;  %v10270_v30 = vld [vmem:[#allocation55_spill] sm:$0xff] }
 0x3dc   :  { %v9498_v8 = vmax.f32 %v5137_v36, %v5153_v56  ;;  %v9506_v49 = vpop.f32.mrf.mxu0  ;;  %v10268_v36 = vld [vmem:[#allocation27_spill] sm:$0xff]  ;;  %v4556_v35 = vadd.f32 %v4399_v40, %v10270_v30 }
 0x3dd   :  { %10265 = vst [vmem:[#allocation76_spill] sm:$0xff] %v9496_v28  ;;  %v6516_v42 = vpop.f32.mrf.mxu1  ;;  %v4555_v56 = vadd.f32 %v4396_v38, %v10268_v36  ;;  %v5023_v41 = vadd.f32 %v9353_v43, %v4557_v25  ;;  %v10271_v40 = vld [vmem:[#allocation35_spill] sm:$0xff] }
 0x3de   :  { %10266 = vst [vmem:[#allocation77_spill] sm:$0xff] %v9498_v8  ;;  %v10269_v8 = vld [vmem:[#allocation28_spill] sm:$0xff]  ;;  %v9512_v31 = vpop.f32.mrf.mxu0  ;;  %v4561_v11 = vadd.f32 %v6516_v42, %v9101_v39 }
 0x3df   :  { %v4412_v60 = vpop.f32.mrf.mxu1  ;;  %v4558_v28 = vadd.f32 %v6513_v22, %v10269_v8  ;;  %v5021_v37 = vadd.f32 %v9359_v61, %v4555_v56  ;;  %v5022_v22 = vadd.f32 %v9372_v17, %v4556_v35  ;;  %v5094_v39 = vadd.f32 %v9347_v29, %v5023_v41 }
 0x3e0   :  { %v4559_v19 = vadd.f32 %v4412_v60, %v9106_v55  ;;  %v9524_v8 = vpop.f32.mrf.mxu0  ;;  %v5027_v55 = vadd.f32 %v9379_v2, %v4561_v11 }
 0x3e1   :  { %v6517_v26 = vpop.f32.mrf.mxu1  ;;  %v5024_v38 = vadd.f32 %v9365_v27, %v4558_v28 }
 0x3e2   :  { %v4562_v30 = vadd.f32 %v6517_v26, %v9111_v12  ;;  %v5025_v61 = vadd.f32 %v9387_v10, %v4559_v19  ;;  %v5092_v12 = vadd.f32 %v9347_v29, %v5021_v37  ;;  %v9546_v42 = vpop.f32.mrf.mxu0  ;;  %v9551_v19 = vadd.f32 %v9347_v29, %v5027_v55 }
 0x3e3   :  { %v4415_v52 = vpop.f32.mrf.mxu1  ;;  %v9540_v28 = vadd.f32 %v9347_v29, %v5024_v38 }
 0x3e4   :  { %v4560_v63 = vadd.f32 %v4415_v52, %v10271_v40  ;;  %v5028_v41 = vadd.f32 %v9394_v9, %v4562_v30  ;;  %v9555_v60 = vadd.f32 %v9347_v29, %v5025_v61  ;;  %v10272_v61 = vld [vmem:[#allocation22_spill] sm:$0xff] }
 0x3e5   :  { %v6520_v54 = vpop.f32.mrf.mxu1 }
 0x3e6   :  { %v4565_v43 = vadd.f32 %v6520_v54, %v9121_v18  ;;  %v9543_v18 = vadd.f32 %v9347_v29, %v5022_v22  ;;  %v5026_v2 = vadd.f32 %v9405_v24, %v4560_v63  ;;  %v5156_v24 = vmax.f32 %v5092_v12, 0.0 }
 0x3e7   :  { %v4428_v62 = vpop.f32.mrf.mxu1  ;;  %v5160_v38 = vmax.f32 %v9555_v60, 0.0 }
 0x3e8   :  { %v4563_v27 = vadd.f32 %v4428_v62, %v9126_v15  ;;  %v5031_v15 = vadd.f32 %v9415_v53, %v4565_v43  ;;  %v5159_v53 = vmax.f32 %v9540_v28, 0.0  ;;  %v5157_v36 = vmax.f32 %v9543_v18, 0.0  ;;  %v10273_v28 = vld [vmem:[#allocation44_spill] sm:$0xff] }
 0x3e9   :  { %v6521_v14 = vpop.f32.mrf.mxu1  ;;  %v9567_v56 = vadd.f32 %v9347_v29, %v5026_v2 }
 0x3ea   :  { %v4566_v17 = vadd.f32 %v6521_v14, %v9131_v16  ;;  %v5158_v16 = vmax.f32 %v5094_v39, 0.0  ;;  %v5029_v26 = vadd.f32 %v9422_v46, %v4563_v27  ;;  %v9569_v46 = vpop.f32.mrf.mxu0 }
 0x3eb   :  { %v4431_v58 = vpop.f32.mrf.mxu1  ;;  %v5161_v27 = vmax.f32 %v9567_v56, 0.0 }
 0x3ec   :  { %v5032_v9 = vadd.f32 %v9432_v45, %v4566_v17  ;;  %v4564_v52 = vadd.f32 %v4431_v58, %v9136_v5  ;;  %v9572_v45 = vadd.f32 %v9347_v29, %v5031_v15  ;;  %v5162_v58 = vmax.f32 %v9551_v19, 0.0  ;;  %v9592_v12 = vpop.f32.mrf.mxu0 }
 0x3ed   :  { %v9514_v1 = vpop.f32.mrf.mxu1  ;;  %v9580_v22 = vadd.f32 %v9347_v29, %v5029_v26 }
 0x3ee   :  { %v9583_v30 = vadd.f32 %v9347_v29, %v5032_v9  ;;  %v5030_v40 = vadd.f32 %v9439_v21, %v4564_v52  ;;  %v5166_v17 = vmax.f32 %v9572_v45, 0.0  ;;  %v4569_v18 = vadd.f32 %v9514_v1, %v10273_v28  ;;  %v10274_v9 = vld [vmem:[#allocation45_spill] sm:$0xff] }
 0x3ef   :  { %v9519_v13 = vpop.f32.mrf.mxu1 }
 0x3f0   :  { %v9601_v26 = vadd.f32 %v9347_v29, %v5030_v40 }
 0x3f1   :  { %v9529_v25 = vpop.f32.mrf.mxu1 }
 0x3f3   :  { %v9536_v35 = vpop.f32.mrf.mxu1 }
 0x3f5   :  { %v6528_v10 = vpop.f32.mrf.mxu1 }
 0x3f6   :  { %v4573_v11 = vadd.f32 %v6528_v10, %v9164_v57  ;;  %v9564_v57 = vadd.f32 %v9347_v29, %v5028_v41  ;;  %v5164_v10 = vmax.f32 %v9580_v22, 0.0 }
 0x3f7   :  { %v4460_v54 = vpop.f32.mrf.mxu1 }
 0x3f8   :  { %v5039_v62 = vadd.f32 %v6596_v50, %v4573_v11  ;;  %v4571_v14 = vadd.f32 %v4460_v54, %v9170_v0  ;;  %v5167_v11 = vmax.f32 %v9583_v30, 0.0  ;;  %v10293_v30 = vld [vmem:[#allocation54_spill] sm:$0xff] }
 0x3f9   :  { %v6529_v5 = vpop.f32.mrf.mxu1 }
 0x3fa   :  { %v5110_v50 = vadd.f32 %v9347_v29, %v5039_v62  ;;  %v5037_v0 = vadd.f32 %v9500_v6, %v4571_v14  ;;  %v4574_v37 = vadd.f32 %v6529_v5, %v9176_v32  ;;  %v5163_v32 = vmax.f32 %v9564_v57, 0.0  ;;  %v6605_v5 = vpop.f32.mrf.mxu0 }
 0x3fb   :  { %v4463_v63 = vpop.f32.mrf.mxu1 }
 0x3fc   :  { %v5174_v43 = vmax.f32 %v5110_v50, 0.0  ;;  %v5108_v39 = vadd.f32 %v9347_v29, %v5037_v0  ;;  %v5040_v55 = vadd.f32 %v9502_v3, %v4574_v37  ;;  %v4572_v6 = vadd.f32 %v4463_v63, %v10272_v61  ;;  %v10276_v63 = vld [vmem:[#allocation63_spill] sm:$0xff] }
 0x3fd   :  { %v6532_v21 = vpop.f32.mrf.mxu1  ;;  %v5035_v50 = vadd.f32 %v9450_v4, %v4569_v18  ;;  %v10277_v4 = vld [vmem:[#allocation36_spill] sm:$0xff] }
 0x3fe   :  { %v5206_v41 = vmax.f32 %v5158_v16, %v5174_v43  ;;  %v5172_v2 = vmax.f32 %v5108_v39, 0.0  ;;  %v5111_v15 = vadd.f32 %v9347_v29, %v5040_v55  ;;  %v5038_v3 = vadd.f32 %v9504_v23, %v4572_v6  ;;  %v10275_v23 = vld [vmem:[#allocation32_spill] sm:$0xff] }
 0x3ff   :  { %v4577_v52 = vadd.f32 %v6532_v21, %v10274_v9  ;;  %v4476_v54 = vpop.f32.mrf.mxu1  ;;  %v4567_v0 = vadd.f32 %v9519_v13, %v10275_v23 }
 0x400   :  { %v5222_v62 = vmax.f32 %v9383_v34, %v5206_v41  ;;  %v5204_v1 = vmax.f32 %v5156_v24, %v5172_v2  ;;  %v5175_v14 = vmax.f32 %v5111_v15, 0.0  ;;  %v5109_v16 = vadd.f32 %v9347_v29, %v5038_v3  ;;  %v4961_v2 = vpop.f32.mrf.mxu0 }
 0x401   :  { %v5043_v37 = vadd.f32 %v9506_v49, %v4577_v52  ;;  %v4575_v40 = vadd.f32 %v4476_v54, %v10276_v63  ;;  %v6533_v43 = vpop.f32.mrf.mxu1  ;;  %v5165_v24 = vmax.f32 %v9601_v26, 0.0  ;;  %v9623_v15 = vadd.f32 %v9347_v29, %v5035_v50  ;;  %v10280_v63 = vld [vmem:[#allocation48_spill] sm:$0xff] }
 0x402   :  { %v5238_v39 = vpack.c.bf16 %v5222_v62, %v5222_v62  ;;  %v5220_v55 = vmax.f32 %v9390_v7, %v5204_v1  ;;  %v5207_v61 = vmax.f32 %v5159_v53, %v5175_v14  ;;  %v5173_v34 = vmax.f32 %v5109_v16, 0.0  ;;  %v10278_v53 = vld [vmem:[#allocation33_spill] sm:$0xff] }
 0x403   :  { %v5114_v6 = vadd.f32 %v9347_v29, %v5043_v37  ;;  %v5041_v28 = vadd.f32 %v9512_v31, %v4575_v40  ;;  %v4578_v18 = vadd.f32 %v6533_v43, %v10277_v4  ;;  %v4479_v21 = vpop.f32.mrf.mxu1  ;;  %v10279_v62 = vld [vmem:[#allocation81_spill] sm:$0xff]  ;;  %v5033_v14 = vadd.f32 %v9460_v20, %v4567_v0  ;;  %v6608_v20 = vpop.f32.mrf.mxu0 }
 0x404   :  { %5255 = vst.msk [vmem:[%s9754_s3 + $0x8] sm:$0xf] %vm5252_vm4, %v5238_v39  ;;  %v5236_v13 = vpack.c.bf16 %v5220_v55, %v5220_v55  ;;  %v5223_v49 = vmax.f32 %v9401_v59, %v5207_v61  ;;  %v5205_v7 = vmax.f32 %v5157_v36, %v5173_v34  ;;  %v4576_v41 = vadd.f32 %v4479_v21, %v10278_v53  ;;  %v10281_v0 = vld [vmem:[#allocation29_spill] sm:$0xff] }
 0x405   :  { %v5178_v3 = vmax.f32 %v5114_v6, 0.0  ;;  %v5112_v31 = vadd.f32 %v9347_v29, %v5041_v28  ;;  %v5044_v9 = vadd.f32 %v9524_v8, %v4578_v18  ;;  %v6536_v52 = vpop.f32.mrf.mxu1  ;;  %v4570_v19 = vadd.f32 %v9529_v25, %v10281_v0  ;;  %v10282_v6 = vld [vmem:[#allocation51_spill] sm:$0xff] }
 0x406   :  { %5253 = vst.msk [vmem:[%s9754_s3] sm:$0xf] %vm5252_vm4, %v5236_v13  ;;  %v5239_v54 = vpack.c.bf16 %v5223_v49, %v5223_v49  ;;  %v5221_v59 = vmax.f32 %v9410_v47, %v5205_v7  ;;  %v5042_v36 = vadd.f32 %v9546_v42, %v4576_v41  ;;  %v4581_v1 = vadd.f32 %v6536_v52, %v10279_v62  ;;  %v10283_v7 = vld [vmem:[#allocation31_spill] sm:$0xff] }
 0x407   :  { %v5210_v16 = vmax.f32 %v5162_v58, %v5178_v3  ;;  %v5176_v50 = vmax.f32 %v5112_v31, 0.0  ;;  %v5115_v8 = vadd.f32 %v9347_v29, %v5044_v9  ;;  %v4492_v23 = vpop.f32.mrf.mxu1  ;;  %v9658_v25 = vadd.f32 %v9347_v29, %v5033_v14 }
 0x408   :  { %5256 = vst.msk [vmem:[%s9754_s3 + $0xc] sm:$0xf] %vm5252_vm4, %v5239_v54  ;;  %v5237_v37 = vpack.c.bf16 %v5221_v59, %v5221_v59  ;;  %v5113_v47 = vadd.f32 %v9347_v29, %v5042_v36  ;;  %v5047_v42 = vadd.f32 %v9569_v46, %v4581_v1  ;;  %v4579_v40 = vadd.f32 %v4492_v23, %v10280_v63  ;;  %v10286_v54 = vld [vmem:[#allocation14_spill] sm:$0xff]  ;;  %v10289_v23 = vld [vmem:[#allocation47_spill] sm:$0xff] }
 0x409   :  { %v5226_v58 = vmax.f32 %v9426_v33, %v5210_v16  ;;  %v5208_v43 = vmax.f32 %v5160_v38, %v5176_v50  ;;  %v5179_v39 = vmax.f32 %v5115_v8, 0.0  ;;  %v6537_v55 = vpop.f32.mrf.mxu1  ;;  %v4568_v53 = vadd.f32 %v9536_v35, %v10283_v7  ;;  %v10285_v35 = vld [vmem:[#allocation56_spill] sm:$0xff]  ;;  %v10288_v16 = vld [vmem:[#allocation75_spill] sm:$0xff] }
 0x40a   :  { %5254 = vst.msk [vmem:[%s9754_s3 + $0x4] sm:$0xf] %vm5252_vm4, %v5237_v37  ;;  %v5177_v61 = vmax.f32 %v5113_v47, 0.0  ;;  %v5118_v46 = vadd.f32 %v9347_v29, %v5047_v42  ;;  %v5045_v34 = vadd.f32 %v9592_v12, %v4579_v40  ;;  %v4582_v28 = vadd.f32 %v6537_v55, %v10282_v6  ;;  %v4974_v12 = vpop.f32.mrf.mxu0  ;;  %v10291_v40 = vld [vmem:[#allocation53_spill] sm:$0xff] }
 0x40b   :  { %v5242_v33 = vpack.c.bf16 %v5226_v58, %v5226_v58  ;;  %v5224_v60 = vmax.f32 %v9428_v48, %v5208_v43  ;;  %v5211_v38 = vmax.f32 %v5163_v32, %v5179_v39  ;;  %v4495_v4 = vpop.f32.mrf.mxu1  ;;  %v10284_v32 = vld [vmem:[#allocation82_spill] sm:$0xff]  ;;  %v5036_v9 = vadd.f32 %v10285_v35, %v4570_v19 }
 0x40c   :  { %v5209_v18 = vmax.f32 %v5161_v27, %v5177_v61  ;;  %v5182_v21 = vmax.f32 %v5118_v46, 0.0  ;;  %v5116_v13 = vadd.f32 %v9347_v29, %v5045_v34  ;;  %v5048_v49 = vadd.f32 %v6605_v5, %v4582_v28  ;;  %v6609_v14 = vpop.f32.mrf.mxu0  ;;  %v10292_v61 = vld [vmem:[#allocation57_spill] sm:$0xff] }
 0x40d   :  { %5259 = vst.msk [vmem:[%s9754_s3 + $0x18] sm:$0xf] %vm5252_vm4, %v5242_v33  ;;  %v5240_v48 = vpack.c.bf16 %v5224_v60, %v5224_v60  ;;  %v5227_v57 = vmax.f32 %v9435_v51, %v5211_v38  ;;  %v4580_v41 = vadd.f32 %v4495_v4, %v10284_v32  ;;  %v6540_v56 = vpop.f32.mrf.mxu1  ;;  %v5034_v50 = vadd.f32 %v10288_v16, %v4568_v53  ;;  %v10295_v32 = vld [vmem:[#allocation59_spill] sm:$0xff] }
 0x40e   :  { %v5225_v27 = vmax.f32 %v9446_v44, %v5209_v18  ;;  %v5214_v5 = vmax.f32 %v5166_v17, %v5182_v21  ;;  %v5180_v3 = vmax.f32 %v5116_v13, 0.0  ;;  %v5119_v31 = vadd.f32 %v9347_v29, %v5048_v49  ;;  %v10287_v44 = vld [vmem:[#allocation66_spill] sm:$0xff]  ;;  %v4977_v28 = vpop.f32.mrf.mxu0 }
 0x40f   :  { %5257 = vst.msk [vmem:[%s9754_s3 + $0x10] sm:$0xf] %vm5252_vm4, %v5240_v48  ;;  %v5243_v52 = vpack.c.bf16 %v5227_v57, %v5227_v57  ;;  %v5046_v51 = vadd.f32 %v4961_v2, %v4580_v41  ;;  %v4585_v59 = vadd.f32 %v6540_v56, %v10286_v54  ;;  %v4508_v36 = vpop.f32.mrf.mxu1  ;;  %v5107_v19 = vadd.f32 %v9347_v29, %v5036_v9  ;;  %v10294_v49 = vld [vmem:[#allocation74_spill] sm:$0xff]  ;;  %v10297_v9 = vld [vmem:[#allocation76_spill] sm:$0xff] }
 0x410   :  { %v5241_v62 = vpack.c.bf16 %v5225_v27, %v5225_v27  ;;  %v5230_v1 = vmax.f32 %v10287_v44, %v5214_v5  ;;  %v5212_v45 = vmax.f32 %v5164_v10, %v5180_v3  ;;  %v5183_v17 = vmax.f32 %v5119_v31, 0.0  ;;  %v10290_v10 = vld [vmem:[#allocation73_spill] sm:$0xff]  ;;  %v10296_v31 = vld [vmem:[#allocation60_spill] sm:$0xff] }
 0x411   :  { %5260 = vst.msk [vmem:[%s9754_s3 + $0x1c] sm:$0xf] %vm5252_vm4, %v5243_v52  ;;  %v5117_v2 = vadd.f32 %v9347_v29, %v5046_v51  ;;  %v5051_v8 = vadd.f32 %v6608_v20, %v4585_v59  ;;  %v4583_v37 = vadd.f32 %v4508_v36, %v10289_v23  ;;  %v6541_v47 = vpop.f32.mrf.mxu1  ;;  %v5170_v6 = vmax.f32 %v9623_v15, 0.0  ;;  %v10298_v59 = vld [vmem:[#allocation77_spill] sm:$0xff] }
 0x412   :  { %5258 = vst.msk [vmem:[%s9754_s3 + $0x14] sm:$0xf] %vm5252_vm4, %v5241_v62  ;;  %v5246_v22 = vpack.c.bf16 %v5230_v1, %v5230_v1  ;;  %v5228_v42 = vmax.f32 %v10290_v10, %v5212_v45  ;;  %v5215_v63 = vmax.f32 %v5167_v11, %v5183_v17  ;;  %v4586_v0 = vadd.f32 %v6541_v47, %v10291_v40 }
 0x413   :  { %v5181_v58 = vmax.f32 %v5117_v2, 0.0  ;;  %v5122_v20 = vadd.f32 %v9347_v29, %v5051_v8  ;;  %v5049_v43 = vadd.f32 %v4974_v12, %v4583_v37  ;;  %v4511_v39 = vpop.f32.mrf.mxu1  ;;  %v5105_v4 = vadd.f32 %v9347_v29, %v5034_v50 }
 0x414   :  { %5263 = vst.msk [vmem:[%s9754_s3 + $0x28] sm:$0xf] %vm5252_vm4, %v5246_v22  ;;  %v5244_v55 = vpack.c.bf16 %v5228_v42, %v5228_v42  ;;  %v5231_v46 = vmax.f32 %v10292_v61, %v5215_v63  ;;  %v5052_v34 = vadd.f32 %v6609_v14, %v4586_v0  ;;  %v4584_v11 = vadd.f32 %v4511_v39, %v10293_v30 }
 0x415   :  { %v5213_v33 = vmax.f32 %v5165_v24, %v5181_v58  ;;  %v5186_v60 = vmax.f32 %v5122_v20, 0.0  ;;  %v5120_v38 = vadd.f32 %v9347_v29, %v5049_v43  ;;  %v5168_v15 = vmax.f32 %v9658_v25, 0.0 }
 0x416   :  { %5261 = vst.msk [vmem:[%s9754_s3 + $0x20] sm:$0xf] %vm5252_vm4, %v5244_v55  ;;  %v5247_v18 = vpack.c.bf16 %v5231_v46, %v5231_v46  ;;  %v5123_v21 = vadd.f32 %v9347_v29, %v5052_v34  ;;  %v5050_v13 = vadd.f32 %v4977_v28, %v4584_v11  ;;  %v5171_v7 = vmax.f32 %v5107_v19, 0.0 }
 0x417   :  { %v5229_v12 = vmax.f32 %v10294_v49, %v5213_v33  ;;  %v5218_v26 = vmax.f32 %v5170_v6, %v5186_v60  ;;  %v5184_v24 = vmax.f32 %v5120_v38, 0.0  ;;  %v5169_v27 = vmax.f32 %v5105_v4, 0.0 }
 0x418   :  { %5264 = vst.msk [vmem:[%s9754_s3 + $0x2c] sm:$0xf] %vm5252_vm4, %v5247_v18  ;;  %v5187_v53 = vmax.f32 %v5123_v21, 0.0  ;;  %v5121_v48 = vadd.f32 %v9347_v29, %v5050_v13 }
 0x419   :  { %v5245_v57 = vpack.c.bf16 %v5229_v12, %v5229_v12  ;;  %v5234_v41 = vmax.f32 %v10295_v32, %v5218_v26  ;;  %v5216_v56 = vmax.f32 %v5168_v15, %v5184_v24 }
 0x41a   :  { %v5219_v5 = vmax.f32 %v5171_v7, %v5187_v53  ;;  %v5185_v25 = vmax.f32 %v5121_v48, 0.0 }
 0x41b   :  { %5262 = vst.msk [vmem:[%s9754_s3 + $0x24] sm:$0xf] %vm5252_vm4, %v5245_v57  ;;  %v5250_v3 = vpack.c.bf16 %v5234_v41, %v5234_v41  ;;  %v5232_v35 = vmax.f32 %v10296_v31, %v5216_v56 }
 0x41c   :  { %v5235_v52 = vmax.f32 %v10297_v9, %v5219_v5  ;;  %v5217_v51 = vmax.f32 %v5169_v27, %v5185_v25 }
 0x41d   :  { %5267 = vst.msk [vmem:[%s9754_s3 + $0x38] sm:$0xf] %vm5252_vm4, %v5250_v3  ;;  %v5248_v29 = vpack.c.bf16 %v5232_v35, %v5232_v35 }
 0x41e   :  { %v5251_v54 = vpack.c.bf16 %v5235_v52, %v5235_v52  ;;  %v5233_v36 = vmax.f32 %v10298_v59, %v5217_v51 }
 0x41f   :  { %5265 = vst.msk [vmem:[%s9754_s3 + $0x30] sm:$0xf] %vm5252_vm4, %v5248_v29 }
 0x420   :  { %5268 = vst.msk [vmem:[%s9754_s3 + $0x3c] sm:$0xf] %vm5252_vm4, %v5251_v54  ;;  %v5249_v62 = vpack.c.bf16 %v5233_v36, %v5233_v36 }
 0x422   :  { %5266 = vst.msk [vmem:[%s9754_s3 + $0x34] sm:$0xf] %vm5252_vm4, %v5249_v62 }

</bundles_post_ra>
